<compile_context>
chip_gen: v7x
topology: tpu7x:2x2x1
jax: 0.10.0
libtpu: 0.0.40
codegen_flags: <defaults>
</compile_context>

<pallas_src>
import functools

import numpy as np

import jax
import jax.numpy as jnp
from jax.experimental import pallas as pl
from jax.experimental.pallas import tpu as pltpu


_CHANNELS = [1, 8, 16, 32, 64, 128]
_SPATIAL = [32, 16, 8, 4, 2]          # per-layer input spatial size (square)
_EPS = 1e-5
_N_LAYER_REFS = 8                     # M, bias, ddn, dup, sr0, sr1, sc0, sc1


# ---------------------------------------------------------------------------
# Pallas kernels
# ---------------------------------------------------------------------------
def stream_kernel(*refs, num_layers):
    """Fused conv stream + first-FC half for one of the two streams.

    refs layout:
      [0]                     x      : (1, B*32, 32)   rows=(b,y), lanes=x
      [1 + 8*l .. 1 + 8*l+7]  layer l: M     (1, 3, K, W*Cout)  banded conv
                                        bias  (1, 1, 128)        tiled, post-pool
                                        ddn   (B*H, B*H)         row shift ky=0
                                        dup   (B*H, B*H)         row shift ky=2
                                        sr0   (B*Ho, B*H)        pool row py=0
                                        sr1   (B*Ho, B*H)        pool row py=1
                                        sc0   (W*Cout, Wo*Cout)  pool col px=0
                                        sc1   (W*Cout, Wo*Cout)  pool col px=1
      [1 + 8*L]               w1_s   : (1, 128, 512)   this stream's W1 slice
      [2 + 8*L]               out    : (1, B, 512)     partial FC hidden
    """
    x_ref = refs[0]
    w1_ref = refs[1 + num_layers * _N_LAYER_REFS]
    o_ref = refs[2 + num_layers * _N_LAYER_REFS]

    a = x_ref[0]                                  # (B*32, 32)
    for l in range(num_layers):
        base = 1 + l * _N_LAYER_REFS
        (m_ref, b_ref, ddn_ref, dup_ref,
         sr0_ref, sr1_ref, sc0_ref, sc1_ref) = refs[base:base + _N_LAYER_REFS]

        # Conv3x3 (pad=1), BN scale already folded into M: 3 banded matmuls
        # (one per ky tap) + 2 tiny row-shift matmuls.
        p0 = jnp.dot(a, m_ref[0, 0], preferred_element_type=jnp.float32)
        p1 = jnp.dot(a, m_ref[0, 1], preferred_element_type=jnp.float32)
        p2 = jnp.dot(a, m_ref[0, 2], preferred_element_type=jnp.float32)
        z = (jnp.dot(ddn_ref[...], p0, preferred_element_type=jnp.float32)
             + p1
             + jnp.dot(dup_ref[...], p2, preferred_element_type=jnp.float32))

        # MaxPool 2x2: max over the two row parities, then over the two
        # column parities (0/1 selection matmuls), all on (.., 256/128) lanes.
        t = jnp.maximum(
            jnp.dot(sr0_ref[...], z, preferred_element_type=jnp.float32),
            jnp.dot(sr1_ref[...], z, preferred_element_type=jnp.float32))
        pooled = jnp.maximum(
            jnp.dot(t, sc0_ref[...], preferred_element_type=jnp.float32),
            jnp.dot(t, sc1_ref[...], preferred_element_type=jnp.float32))

        # Folded BN bias + ReLU (commute with the max-pool: same bias per
        # channel across the window, ReLU monotone).
        a = jnp.maximum(pooled + b_ref[0], 0.0)   # (B*Ho, Wo*Cout)

    # After 5 pools: a == (B, 128) stream features.  Apply this stream's half
    # of fc1 so the tail kernel only needs an add + small matmul.
    o_ref[0] = jnp.dot(a, w1_ref[0], preferred_element_type=jnp.float32)


def fc_tail_kernel(h_ref, b1_ref, w2_ref, b2_ref, o_ref):
    """relu(h_ecg + h_emg + b1) @ W2 + b2  (replaces concat + Linear+ReLU+Linear)."""
    h = jnp.maximum(h_ref[0] + h_ref[1] + b1_ref[...], 0.0)
    o_ref[...] = (jnp.dot(h, w2_ref[...], preferred_element_type=jnp.float32)
                  + b2_ref[...])


# ---------------------------------------------------------------------------
# Host-side preprocessing: fold conv/BN into banded matrices, build the small
# shift / pool-selection matrices.  Pure weight preprocessing, done once.
# ---------------------------------------------------------------------------
def _band_weight(w, scale, win):
    """w: (3,3,Cin,Cout), scale: (Cout,) -> M: (3, win*Cin, win*Cout).

    M[dy, wi*Cin+ci, wo*Cout+co] = w[dy, wi-wo+1, ci, co] * scale[co].
    """
    cin, cout = w.shape[2], w.shape[3]
    ws = (w * scale[None, None, None, :]).astype(np.float32)
    m = np.zeros((3, win * cin, win * cout), np.float32)
    for dy in range(3):
        for dx in range(3):
            for wo in range(win):
                wi = wo + dx - 1
                if 0 <= wi < win:
                    m[dy, wi * cin:(wi + 1) * cin,
                      wo * cout:(wo + 1) * cout] = ws[dy, dx]
    return m


def _row_shift(batch, h, delta):
    """(D @ X)[b*h + r] = X[b*h + r + delta] (zero across image borders)."""
    d = np.zeros((batch * h, batch * h), np.float32)
    for b in range(batch):
        for r in range(h):
            s = r + delta
            if 0 <= s < h:
                d[b * h + r, b * h + s] = 1.0
    return d


def _row_pool_select(batch, h, py):
    """(S @ X)[b*ho + i] = X[b*h + 2*i + py]."""
    ho = h // 2
    s = np.zeros((batch * ho, batch * h), np.float32)
    for b in range(batch):
        for i in range(ho):
            s[b * ho + i, b * h + 2 * i + py] = 1.0
    return s


def _col_pool_select(win, cout, px):
    """(X @ S)[:, j*cout + c] = X[:, (2*j+px)*cout + c]."""
    wo = win // 2
    s = np.zeros((win * cout, wo * cout), np.float32)
    eye = np.eye(cout, dtype=np.float32)
    for j in range(wo):
        wi = 2 * j + px
        s[wi * cout:(wi + 1) * cout, j * cout:(j + 1) * cout] = eye
    return s


def build_operands(params, batch):
    """Preprocess raw params into the arrays consumed by the fused kernels."""
    layer_ops = []
    for l, (cin, cout, win) in enumerate(
            zip(_CHANNELS[:-1], _CHANNELS[1:], _SPATIAL)):
        m_s, b_s = [], []
        for stream in ("ecg", "emg"):
            w, scale, bias = params[stream][l]
            w_np = np.asarray(w, dtype=np.float32)
            scale_np = np.asarray(scale, dtype=np.float32)
            bias_np = np.asarray(bias, dtype=np.float32)
            m_s.append(_band_weight(w_np, scale_np, win))        # (3, K, 256)
            b_s.append(np.tile(bias_np, win // 2)[None, :])      # (1, 128)
        layer_ops.append(dict(
            M=jnp.asarray(np.stack(m_s, axis=0)),                # (2,3,K,256)
            bias=jnp.asarray(np.stack(b_s, axis=0)),             # (2,1,128)
            ddn=jnp.asarray(_row_shift(batch, win, -1)),
            dup=jnp.asarray(_row_shift(batch, win, +1)),
            sr0=jnp.asarray(_row_pool_select(batch, win, 0)),
            sr1=jnp.asarray(_row_pool_select(batch, win, 1)),
            sc0=jnp.asarray(_col_pool_select(win, cout, 0)),
            sc1=jnp.asarray(_col_pool_select(win, cout, 1)),
        ))
    fc_w1, fc_b1, fc_w2, fc_b2 = params["fc"]
    w1stack = jnp.stack([fc_w1[:128, :], fc_w1[128:, :]], axis=0)  # (2,128,512)
    return dict(layers=layer_ops, w1=w1stack,
                b1=fc_b1.reshape(1, -1), w2=fc_w2, b2=fc_b2.reshape(1, -1))


# ---------------------------------------------------------------------------
# Parameters (deterministic, synthetic; mirrors the torch module's layers)
# ---------------------------------------------------------------------------
def _make_stream_params(key):
    """5 blocks of (conv weight (3,3,Cin,Cout), folded BN scale, folded BN bias)."""
    params = []
    for cin, cout in zip(_CHANNELS[:-1], _CHANNELS[1:]):
        key, kw, kb, kg, kbeta, km, kv = jax.random.split(key, 7)
        w = jax.random.normal(kw, (3, 3, cin, cout), jnp.float32) * 0.1
        conv_b = jax.random.normal(kb, (cout,), jnp.float32) * 0.05
        gamma = 1.0 + 0.1 * jax.random.normal(kg, (cout,), jnp.float32)
        beta = 0.1 * jax.random.normal(kbeta, (cout,), jnp.float32)
        run_mean = 0.1 * jax.random.normal(km, (cout,), jnp.float32)
        run_var = 1.0 + 0.1 * jnp.abs(jax.random.normal(kv, (cout,), jnp.float32))
        # y = gamma * (conv(x) + b - mean) / sqrt(var + eps) + beta
        scale = gamma / jnp.sqrt(run_var + _EPS)
        bias = (conv_b - run_mean) * scale + beta
        params.append((w, scale, bias))
    return params


def make_params(key, num_classes=53):
    k_ecg, k_emg, k1, k2, k3, k4 = jax.random.split(key, 6)
    fc_w1 = jax.random.normal(k1, (256, 512), jnp.float32) * 0.05  # torch weight.T
    fc_b1 = jax.random.normal(k2, (512,), jnp.float32) * 0.05
    fc_w2 = jax.random.normal(k3, (512, num_classes), jnp.float32) * 0.05
    fc_b2 = jax.random.normal(k4, (num_classes,), jnp.float32) * 0.05
    return {
        "ecg": _make_stream_params(k_ecg),
        "emg": _make_stream_params(k_emg),
        "fc": (fc_w1, fc_b1, fc_w2, fc_b2),
    }


# ---------------------------------------------------------------------------
# pallas_call wrappers
# ---------------------------------------------------------------------------
def _stream_spec(shape):
    """Per-stream stacked array: block out the leading stream dim."""
    nd = len(shape)
    return pl.BlockSpec((1,) + tuple(shape[1:]),
                        lambda s, _nd=nd: (s,) + (0,) * (_nd - 1))


def _shared_spec(shape):
    """Stream-independent constant: one full block, reused for both streams."""
    nd = len(shape)
    return pl.BlockSpec(tuple(shape), lambda s, _nd=nd: (0,) * _nd)


def _stream_pallas_call(x2, operands, batch):
    layers = operands["layers"]
    num_layers = len(layers)
    hidden = operands["w1"].shape[-1]

    inputs = [x2]
    in_specs = [_stream_spec(x2.shape)]
    for lo in layers:
        for name in ("M", "bias"):
            inputs.append(lo[name])
            in_specs.append(_stream_spec(lo[name].shape))
        for name in ("ddn", "dup", "sr0", "sr1", "sc0", "sc1"):
            inputs.append(lo[name])
            in_specs.append(_shared_spec(lo[name].shape))
    inputs.append(operands["w1"])
    in_specs.append(_stream_spec(operands["w1"].shape))

    return pl.pallas_call(
        functools.partial(stream_kernel, num_layers=num_layers),
        out_shape=jax.ShapeDtypeStruct((2, batch, hidden), jnp.float32),
        grid=(2,),
        in_specs=in_specs,
        out_specs=pl.BlockSpec((1, batch, hidden), lambda s: (s, 0, 0)),
        compiler_params=pltpu.CompilerParams(
            dimension_semantics=("parallel",)),
    )(*inputs)


@functools.partial(jax.jit, static_argnames=())
def multi_stream_bio_cnn(ecg_emg, operands):
    # ecg_emg: (B, 2, 32, 32) NCHW like PyTorch.
    b, s, h, w = ecg_emg.shape
    # Per-stream layout: rows = (batch, y), lanes = x  (one cheap XLA op).
    x2 = jnp.transpose(ecg_emg, (1, 0, 2, 3)).reshape(s, b * h, w)
    x2 = x2.astype(jnp.float32)

    hpart = _stream_pallas_call(x2, operands, b)           # (2, B, 512)

    num_classes = operands["w2"].shape[-1]
    return pl.pallas_call(
        fc_tail_kernel,
        out_shape=jax.ShapeDtypeStruct((b, num_classes), jnp.float32),
        in_specs=[pl.BlockSpec(memory_space=pltpu.MemorySpace.VMEM)] * 4,
        out_specs=pl.BlockSpec(memory_space=pltpu.MemorySpace.VMEM),
    )(hpart, operands["b1"], operands["w2"], operands["b2"])


if __name__ == "__main__":
    key = jax.random.PRNGKey(0)
    k_in, k_par = jax.random.split(key)
    # fc(256, ...) with 5 stride-2 pools forces 32x32 spatial input.
    x = jax.random.normal(k_in, (2, 2, 32, 32), jnp.float32)
    params = make_params(k_par, num_classes=53)
    operands = build_operands(params, batch=x.shape[0])

    out = multi_stream_bio_cnn(x, operands)
    out = jax.block_until_ready(out)

    assert out.shape == (2, 53), out.shape
    assert out.dtype == jnp.float32
    assert bool(jnp.all(jnp.isfinite(out)))
    print("KERNEL_OK")
</pallas_src>

<mosaic_0001>
module attributes {stable_mosaic.version = 11 : i64} {
  func.func @fc_tail_kernel(%arg0: memref<2x2x512xf32, #tpu.memory_space<vmem>>, %arg1: memref<1x512xf32, #tpu.memory_space<vmem>>, %arg2: memref<512x53xf32, #tpu.memory_space<vmem>>, %arg3: memref<1x53xf32, #tpu.memory_space<vmem>>, %arg4: memref<2x53xf32, #tpu.memory_space<vmem>>) attributes {dimension_semantics = [], scalar_prefetch = 0 : i64, scratch_operands = 0 : i64, tpu.core_type = #tpu.core_type<tc>} {
    %c0 = arith.constant 0 : index
    %c0_0 = arith.constant 0 : index
    %c0_1 = arith.constant 0 : index
    %0 = vector.load %arg0[%c0, %c0_0, %c0_1] : memref<2x2x512xf32, #tpu.memory_space<vmem>>, vector<1x2x512xf32>
    %1 = vector.shape_cast %0 : vector<1x2x512xf32> to vector<2x512xf32>
    %c1 = arith.constant 1 : index
    %c0_2 = arith.constant 0 : index
    %c0_3 = arith.constant 0 : index
    %2 = vector.load %arg0[%c1, %c0_2, %c0_3] : memref<2x2x512xf32, #tpu.memory_space<vmem>>, vector<1x2x512xf32>
    %3 = vector.shape_cast %2 : vector<1x2x512xf32> to vector<2x512xf32>
    %4 = arith.addf %1, %3 : vector<2x512xf32>
    %c0_4 = arith.constant 0 : index
    %c0_5 = arith.constant 0 : index
    %5 = vector.load %arg1[%c0_4, %c0_5] : memref<1x512xf32, #tpu.memory_space<vmem>>, vector<1x512xf32>
    %6 = vector.broadcast %5 : vector<1x512xf32> to vector<2x512xf32>
    %7 = arith.addf %4, %6 : vector<2x512xf32>
    %cst = arith.constant 0.000000e+00 : f32
    %8 = vector.broadcast %cst : f32 to vector<2x512xf32>
    %9 = arith.maximumf %7, %8 : vector<2x512xf32>
    %c0_6 = arith.constant 0 : index
    %c0_7 = arith.constant 0 : index
    %10 = vector.load %arg2[%c0_6, %c0_7] : memref<512x53xf32, #tpu.memory_space<vmem>>, vector<512x53xf32>
    %cst_8 = arith.constant dense<0.000000e+00> : vector<2x53xf32>
    %11 = tpu.matmul %9, %10, %cst_8 {dimension_numbers = #tpu.dot_dimension_numbers<[1], [0], [0], [1], [0, 0, 1, 1], [], []>} : vector<2x512xf32>, vector<512x53xf32>, vector<2x53xf32> -> vector<2x53xf32>
    %c0_9 = arith.constant 0 : index
    %c0_10 = arith.constant 0 : index
    %12 = vector.load %arg3[%c0_9, %c0_10] : memref<1x53xf32, #tpu.memory_space<vmem>>, vector<1x53xf32>
    %13 = vector.broadcast %12 : vector<1x53xf32> to vector<2x53xf32>
    %14 = arith.addf %11, %13 : vector<2x53xf32>
    %c0_11 = arith.constant 0 : index
    %c0_12 = arith.constant 0 : index
    %15 = vector.load %arg4[%c0_11, %c0_12] : memref<2x53xf32, #tpu.memory_space<vmem>>, vector<2x53xf32>
    tpu.vector_store %arg4[%c0_11, %c0_12], %14 {strides = array<i32>} : memref<2x53xf32, #tpu.memory_space<vmem>>, vector<2x53xf32>,
    return
  }
}

module attributes {stable_mosaic.version = 11 : i64} {
  func.func @stream_kernel(%arg0: i32, %arg1: memref<1x64x32xf32, #tpu.memory_space<vmem>>, %arg2: memref<1x3x32x256xf32, #tpu.memory_space<vmem>>, %arg3: memref<1x1x128xf32, #tpu.memory_space<vmem>>, %arg4: memref<64x64xf32, #tpu.memory_space<vmem>>, %arg5: memref<64x64xf32, #tpu.memory_space<vmem>>, %arg6: memref<32x64xf32, #tpu.memory_space<vmem>>, %arg7: memref<32x64xf32, #tpu.memory_space<vmem>>, %arg8: memref<256x128xf32, #tpu.memory_space<vmem>>, %arg9: memref<256x128xf32, #tpu.memory_space<vmem>>, %arg10: memref<1x3x128x256xf32, #tpu.memory_space<vmem>>, %arg11: memref<1x1x128xf32, #tpu.memory_space<vmem>>, %arg12: memref<32x32xf32, #tpu.memory_space<vmem>>, %arg13: memref<32x32xf32, #tpu.memory_space<vmem>>, %arg14: memref<16x32xf32, #tpu.memory_space<vmem>>, %arg15: memref<16x32xf32, #tpu.memory_space<vmem>>, %arg16: memref<256x128xf32, #tpu.memory_space<vmem>>, %arg17: memref<256x128xf32, #tpu.memory_space<vmem>>, %arg18: memref<1x3x128x256xf32, #tpu.memory_space<vmem>>, %arg19: memref<1x1x128xf32, #tpu.memory_space<vmem>>, %arg20: memref<16x16xf32, #tpu.memory_space<vmem>>, %arg21: memref<16x16xf32, #tpu.memory_space<vmem>>, %arg22: memref<8x16xf32, #tpu.memory_space<vmem>>, %arg23: memref<8x16xf32, #tpu.memory_space<vmem>>, %arg24: memref<256x128xf32, #tpu.memory_space<vmem>>, %arg25: memref<256x128xf32, #tpu.memory_space<vmem>>, %arg26: memref<1x3x128x256xf32, #tpu.memory_space<vmem>>, %arg27: memref<1x1x128xf32, #tpu.memory_space<vmem>>, %arg28: memref<8x8xf32, #tpu.memory_space<vmem>>, %arg29: memref<8x8xf32, #tpu.memory_space<vmem>>, %arg30: memref<4x8xf32, #tpu.memory_space<vmem>>, %arg31: memref<4x8xf32, #tpu.memory_space<vmem>>, %arg32: memref<256x128xf32, #tpu.memory_space<vmem>>, %arg33: memref<256x128xf32, #tpu.memory_space<vmem>>, %arg34: memref<1x3x128x256xf32, #tpu.memory_space<vmem>>, %arg35: memref<1x1x128xf32, #tpu.memory_space<vmem>>, %arg36: memref<4x4xf32, #tpu.memory_space<vmem>>, %arg37: memref<4x4xf32, #tpu.memory_space<vmem>>, %arg38: memref<2x4xf32, #tpu.memory_space<vmem>>, %arg39: memref<2x4xf32, #tpu.memory_space<vmem>>, %arg40: memref<256x128xf32, #tpu.memory_space<vmem>>, %arg41: memref<256x128xf32, #tpu.memory_space<vmem>>, %arg42: memref<1x128x512xf32, #tpu.memory_space<vmem>>, %arg43: memref<1x2x512xf32, #tpu.memory_space<vmem>>) attributes {dimension_semantics = [#tpu.dimension_semantics<parallel>], iteration_bounds = array<i64: 2>, scalar_prefetch = 0 : i64, scratch_operands = 0 : i64, tpu.core_type = #tpu.core_type<tc>, window_params = [{transform_indices = @transform_0, window_bounds = array<i64: 1, 64, 32>}, {transform_indices = @transform_1, window_bounds = array<i64: 1, 3, 32, 256>}, {transform_indices = @transform_2, window_bounds = array<i64: 1, 1, 128>}, {pipeline_mode = #tpu.pipeline_mode<synchronous>, transform_indices = @transform_3, window_bounds = array<i64: 64, 64>}, {pipeline_mode = #tpu.pipeline_mode<synchronous>, transform_indices = @transform_4, window_bounds = array<i64: 64, 64>}, {pipeline_mode = #tpu.pipeline_mode<synchronous>, transform_indices = @transform_5, window_bounds = array<i64: 32, 64>}, {pipeline_mode = #tpu.pipeline_mode<synchronous>, transform_indices = @transform_6, window_bounds = array<i64: 32, 64>}, {pipeline_mode = #tpu.pipeline_mode<synchronous>, transform_indices = @transform_7, window_bounds = array<i64: 256, 128>}, {pipeline_mode = #tpu.pipeline_mode<synchronous>, transform_indices = @transform_8, window_bounds = array<i64: 256, 128>}, {transform_indices = @transform_9, window_bounds = array<i64: 1, 3, 128, 256>}, {transform_indices = @transform_10, window_bounds = array<i64: 1, 1, 128>}, {pipeline_mode = #tpu.pipeline_mode<synchronous>, transform_indices = @transform_11, window_bounds = array<i64: 32, 32>}, {pipeline_mode = #tpu.pipeline_mode<synchronous>, transform_indices = @transform_12, window_bounds = array<i64: 32, 32>}, {pipeline_mode = #tpu.pipeline_mode<synchronous>, transform_indices = @transform_13, window_bounds = array<i64: 16, 32>}, {pipeline_mode = #tpu.pipeline_mode<synchronous>, transform_indices = @transform_14, window_bounds = array<i64: 16, 32>}, {pipeline_mode = #tpu.pipeline_mode<synchronous>, transform_indices = @transform_15, window_bounds = array<i64: 256, 128>}, {pipeline_mode = #tpu.pipeline_mode<synchronous>, transform_indices = @transform_16, window_bounds = array<i64: 256, 128>}, {transform_indices = @transform_17, window_bounds = array<i64: 1, 3, 128, 256>}, {transform_indices = @transform_18, window_bounds = array<i64: 1, 1, 128>}, {pipeline_mode = #tpu.pipeline_mode<synchronous>, transform_indices = @transform_19, window_bounds = array<i64: 16, 16>}, {pipeline_mode = #tpu.pipeline_mode<synchronous>, transform_indices = @transform_20, window_bounds = array<i64: 16, 16>}, {pipeline_mode = #tpu.pipeline_mode<synchronous>, transform_indices = @transform_21, window_bounds = array<i64: 8, 16>}, {pipeline_mode = #tpu.pipeline_mode<synchronous>, transform_indices = @transform_22, window_bounds = array<i64: 8, 16>}, {pipeline_mode = #tpu.pipeline_mode<synchronous>, transform_indices = @transform_23, window_bounds = array<i64: 256, 128>}, {pipeline_mode = #tpu.pipeline_mode<synchronous>, transform_indices = @transform_24, window_bounds = array<i64: 256, 128>}, {transform_indices = @transform_25, window_bounds = array<i64: 1, 3, 128, 256>}, {transform_indices = @transform_26, window_bounds = array<i64: 1, 1, 128>}, {pipeline_mode = #tpu.pipeline_mode<synchronous>, transform_indices = @transform_27, window_bounds = array<i64: 8, 8>}, {pipeline_mode = #tpu.pipeline_mode<synchronous>, transform_indices = @transform_28, window_bounds = array<i64: 8, 8>}, {pipeline_mode = #tpu.pipeline_mode<synchronous>, transform_indices = @transform_29, window_bounds = array<i64: 4, 8>}, {pipeline_mode = #tpu.pipeline_mode<synchronous>, transform_indices = @transform_30, window_bounds = array<i64: 4, 8>}, {pipeline_mode = #tpu.pipeline_mode<synchronous>, transform_indices = @transform_31, window_bounds = array<i64: 256, 128>}, {pipeline_mode = #tpu.pipeline_mode<synchronous>, transform_indices = @transform_32, window_bounds = array<i64: 256, 128>}, {transform_indices = @transform_33, window_bounds = array<i64: 1, 3, 128, 256>}, {transform_indices = @transform_34, window_bounds = array<i64: 1, 1, 128>}, {pipeline_mode = #tpu.pipeline_mode<synchronous>, transform_indices = @transform_35, window_bounds = array<i64: 4, 4>}, {pipeline_mode = #tpu.pipeline_mode<synchronous>, transform_indices = @transform_36, window_bounds = array<i64: 4, 4>}, {pipeline_mode = #tpu.pipeline_mode<synchronous>, transform_indices = @transform_37, window_bounds = array<i64: 2, 4>}, {pipeline_mode = #tpu.pipeline_mode<synchronous>, transform_indices = @transform_38, window_bounds = array<i64: 2, 4>}, {pipeline_mode = #tpu.pipeline_mode<synchronous>, transform_indices = @transform_39, window_bounds = array<i64: 256, 128>}, {pipeline_mode = #tpu.pipeline_mode<synchronous>, transform_indices = @transform_40, window_bounds = array<i64: 256, 128>}, {transform_indices = @transform_41, window_bounds = array<i64: 1, 128, 512>}, {transform_indices = @transform_42, window_bounds = array<i64: 1, 2, 512>}]} {
    %c0 = arith.constant 0 : index
    %c0_0 = arith.constant 0 : index
    %c0_1 = arith.constant 0 : index
    %0 = vector.load %arg1[%c0, %c0_0, %c0_1] : memref<1x64x32xf32, #tpu.memory_space<vmem>>, vector<1x64x32xf32>
    %1 = vector.shape_cast %0 : vector<1x64x32xf32> to vector<64x32xf32>
    %c0_2 = arith.constant 0 : index
    %c0_3 = arith.constant 0 : index
    %c0_4 = arith.constant 0 : index
    %c0_5 = arith.constant 0 : index
    %2 = vector.load %arg2[%c0_2, %c0_3, %c0_4, %c0_5] : memref<1x3x32x256xf32, #tpu.memory_space<vmem>>, vector<1x1x32x256xf32>
    %3 = vector.shape_cast %2 : vector<1x1x32x256xf32> to vector<32x256xf32>
    %cst = arith.constant dense<0.000000e+00> : vector<64x256xf32>
    %4 = tpu.matmul %1, %3, %cst {dimension_numbers = #tpu.dot_dimension_numbers<[1], [0], [0], [1], [0, 0, 1, 1], [], []>} : vector<64x32xf32>, vector<32x256xf32>, vector<64x256xf32> -> vector<64x256xf32>
    %c0_6 = arith.constant 0 : index
    %c1 = arith.constant 1 : index
    %c0_7 = arith.constant 0 : index
    %c0_8 = arith.constant 0 : index
    %5 = vector.load %arg2[%c0_6, %c1, %c0_7, %c0_8] : memref<1x3x32x256xf32, #tpu.memory_space<vmem>>, vector<1x1x32x256xf32>
    %6 = vector.shape_cast %5 : vector<1x1x32x256xf32> to vector<32x256xf32>
    %cst_9 = arith.constant dense<0.000000e+00> : vector<64x256xf32>
    %7 = tpu.matmul %1, %6, %cst_9 {dimension_numbers = #tpu.dot_dimension_numbers<[1], [0], [0], [1], [0, 0, 1, 1], [], []>} : vector<64x32xf32>, vector<32x256xf32>, vector<64x256xf32> -> vector<64x256xf32>
    %c0_10 = arith.constant 0 : index
    %c2 = arith.constant 2 : index
    %c0_11 = arith.constant 0 : index
    %c0_12 = arith.constant 0 : index
    %8 = vector.load %arg2[%c0_10, %c2, %c0_11, %c0_12] : memref<1x3x32x256xf32, #tpu.memory_space<vmem>>, vector<1x1x32x256xf32>
    %9 = vector.shape_cast %8 : vector<1x1x32x256xf32> to vector<32x256xf32>
    %cst_13 = arith.constant dense<0.000000e+00> : vector<64x256xf32>
    %10 = tpu.matmul %1, %9, %cst_13 {dimension_numbers = #tpu.dot_dimension_numbers<[1], [0], [0], [1], [0, 0, 1, 1], [], []>} : vector<64x32xf32>, vector<32x256xf32>, vector<64x256xf32> -> vector<64x256xf32>
    %c0_14 = arith.constant 0 : index
    %c0_15 = arith.constant 0 : index
    %11 = vector.load %arg4[%c0_14, %c0_15] : memref<64x64xf32, #tpu.memory_space<vmem>>, vector<64x64xf32>
    %cst_16 = arith.constant dense<0.000000e+00> : vector<64x256xf32>
    %12 = tpu.matmul %11, %4, %cst_16 {dimension_numbers = #tpu.dot_dimension_numbers<[1], [0], [0], [1], [0, 0, 1, 1], [], []>} : vector<64x64xf32>, vector<64x256xf32>, vector<64x256xf32> -> vector<64x256xf32>
    %13 = arith.addf %12, %7 : vector<64x256xf32>
    %c0_17 = arith.constant 0 : index
    %c0_18 = arith.constant 0 : index
    %14 = vector.load %arg5[%c0_17, %c0_18] : memref<64x64xf32, #tpu.memory_space<vmem>>, vector<64x64xf32>
    %cst_19 = arith.constant dense<0.000000e+00> : vector<64x256xf32>
    %15 = tpu.matmul %14, %10, %cst_19 {dimension_numbers = #tpu.dot_dimension_numbers<[1], [0], [0], [1], [0, 0, 1, 1], [], []>} : vector<64x64xf32>, vector<64x256xf32>, vector<64x256xf32> -> vector<64x256xf32>
    %16 = arith.addf %13, %15 : vector<64x256xf32>
    %c0_20 = arith.constant 0 : index
    %c0_21 = arith.constant 0 : index
    %17 = vector.load %arg6[%c0_20, %c0_21] : memref<32x64xf32, #tpu.memory_space<vmem>>, vector<32x64xf32>
    %cst_22 = arith.constant dense<0.000000e+00> : vector<32x256xf32>
    %18 = tpu.matmul %17, %16, %cst_22 {dimension_numbers = #tpu.dot_dimension_numbers<[1], [0], [0], [1], [0, 0, 1, 1], [], []>} : vector<32x64xf32>, vector<64x256xf32>, vector<32x256xf32> -> vector<32x256xf32>
    %c0_23 = arith.constant 0 : index
    %c0_24 = arith.constant 0 : index
    %19 = vector.load %arg7[%c0_23, %c0_24] : memref<32x64xf32, #tpu.memory_space<vmem>>, vector<32x64xf32>
    %cst_25 = arith.constant dense<0.000000e+00> : vector<32x256xf32>
    %20 = tpu.matmul %19, %16, %cst_25 {dimension_numbers = #tpu.dot_dimension_numbers<[1], [0], [0], [1], [0, 0, 1, 1], [], []>} : vector<32x64xf32>, vector<64x256xf32>, vector<32x256xf32> -> vector<32x256xf32>
    %21 = arith.maximumf %18, %20 : vector<32x256xf32>
    %c0_26 = arith.constant 0 : index
    %c0_27 = arith.constant 0 : index
    %22 = vector.load %arg8[%c0_26, %c0_27] : memref<256x128xf32, #tpu.memory_space<vmem>>, vector<256x128xf32>
    %cst_28 = arith.constant dense<0.000000e+00> : vector<32x128xf32>
    %23 = tpu.matmul %21, %22, %cst_28 {dimension_numbers = #tpu.dot_dimension_numbers<[1], [0], [0], [1], [0, 0, 1, 1], [], []>} : vector<32x256xf32>, vector<256x128xf32>, vector<32x128xf32> -> vector<32x128xf32>
    %c0_29 = arith.constant 0 : index
    %c0_30 = arith.constant 0 : index
    %24 = vector.load %arg9[%c0_29, %c0_30] : memref<256x128xf32, #tpu.memory_space<vmem>>, vector<256x128xf32>
    %cst_31 = arith.constant dense<0.000000e+00> : vector<32x128xf32>
    %25 = tpu.matmul %21, %24, %cst_31 {dimension_numbers = #tpu.dot_dimension_numbers<[1], [0], [0], [1], [0, 0, 1, 1], [], []>} : vector<32x256xf32>, vector<256x128xf32>, vector<32x128xf32> -> vector<32x128xf32>
    %26 = arith.maximumf %23, %25 : vector<32x128xf32>
    %c0_32 = arith.constant 0 : index
    %c0_33 = arith.constant 0 : index
    %c0_34 = arith.constant 0 : index
    %27 = vector.load %arg3[%c0_32, %c0_33, %c0_34] : memref<1x1x128xf32, #tpu.memory_space<vmem>>, vector<1x1x128xf32>
    %28 = vector.shape_cast %27 : vector<1x1x128xf32> to vector<1x128xf32>
    %29 = vector.broadcast %28 : vector<1x128xf32> to vector<32x128xf32>
    %30 = arith.addf %26, %29 : vector<32x128xf32>
    %cst_35 = arith.constant 0.000000e+00 : f32
    %31 = vector.broadcast %cst_35 : f32 to vector<32x128xf32>
    %32 = arith.maximumf %30, %31 : vector<32x128xf32>
    %c0_36 = arith.constant 0 : index
    %c0_37 = arith.constant 0 : index
    %c0_38 = arith.constant 0 : index
    %c0_39 = arith.constant 0 : index
    %33 = vector.load %arg10[%c0_36, %c0_37, %c0_38, %c0_39] : memref<1x3x128x256xf32, #tpu.memory_space<vmem>>, vector<1x1x128x256xf32>
    %34 = vector.shape_cast %33 : vector<1x1x128x256xf32> to vector<128x256xf32>
    %cst_40 = arith.constant dense<0.000000e+00> : vector<32x256xf32>
    %35 = tpu.matmul %32, %34, %cst_40 {dimension_numbers = #tpu.dot_dimension_numbers<[1], [0], [0], [1], [0, 0, 1, 1], [], []>} : vector<32x128xf32>, vector<128x256xf32>, vector<32x256xf32> -> vector<32x256xf32>
    %c0_41 = arith.constant 0 : index
    %c1_42 = arith.constant 1 : index
    %c0_43 = arith.constant 0 : index
    %c0_44 = arith.constant 0 : index
    %36 = vector.load %arg10[%c0_41, %c1_42, %c0_43, %c0_44] : memref<1x3x128x256xf32, #tpu.memory_space<vmem>>, vector<1x1x128x256xf32>
    %37 = vector.shape_cast %36 : vector<1x1x128x256xf32> to vector<128x256xf32>
    %cst_45 = arith.constant dense<0.000000e+00> : vector<32x256xf32>
    %38 = tpu.matmul %32, %37, %cst_45 {dimension_numbers = #tpu.dot_dimension_numbers<[1], [0], [0], [1], [0, 0, 1, 1], [], []>} : vector<32x128xf32>, vector<128x256xf32>, vector<32x256xf32> -> vector<32x256xf32>
    %c0_46 = arith.constant 0 : index
    %c2_47 = arith.constant 2 : index
    %c0_48 = arith.constant 0 : index
    %c0_49 = arith.constant 0 : index
    %39 = vector.load %arg10[%c0_46, %c2_47, %c0_48, %c0_49] : memref<1x3x128x256xf32, #tpu.memory_space<vmem>>, vector<1x1x128x256xf32>
    %40 = vector.shape_cast %39 : vector<1x1x128x256xf32> to vector<128x256xf32>
    %cst_50 = arith.constant dense<0.000000e+00> : vector<32x256xf32>
    %41 = tpu.matmul %32, %40, %cst_50 {dimension_numbers = #tpu.dot_dimension_numbers<[1], [0], [0], [1], [0, 0, 1, 1], [], []>} : vector<32x128xf32>, vector<128x256xf32>, vector<32x256xf32> -> vector<32x256xf32>
    %c0_51 = arith.constant 0 : index
    %c0_52 = arith.constant 0 : index
    %42 = vector.load %arg12[%c0_51, %c0_52] : memref<32x32xf32, #tpu.memory_space<vmem>>, vector<32x32xf32>
    %cst_53 = arith.constant dense<0.000000e+00> : vector<32x256xf32>
    %43 = tpu.matmul %42, %35, %cst_53 {dimension_numbers = #tpu.dot_dimension_numbers<[1], [0], [0], [1], [0, 0, 1, 1], [], []>} : vector<32x32xf32>, vector<32x256xf32>, vector<32x256xf32> -> vector<32x256xf32>
    %44 = arith.addf %43, %38 : vector<32x256xf32>
    %c0_54 = arith.constant 0 : index
    %c0_55 = arith.constant 0 : index
    %45 = vector.load %arg13[%c0_54, %c0_55] : memref<32x32xf32, #tpu.memory_space<vmem>>, vector<32x32xf32>
    %cst_56 = arith.constant dense<0.000000e+00> : vector<32x256xf32>
    %46 = tpu.matmul %45, %41, %cst_56 {dimension_numbers = #tpu.dot_dimension_numbers<[1], [0], [0], [1], [0, 0, 1, 1], [], []>} : vector<32x32xf32>, vector<32x256xf32>, vector<32x256xf32> -> vector<32x256xf32>
    %47 = arith.addf %44, %46 : vector<32x256xf32>
    %c0_57 = arith.constant 0 : index
    %c0_58 = arith.constant 0 : index
    %48 = vector.load %arg14[%c0_57, %c0_58] : memref<16x32xf32, #tpu.memory_space<vmem>>, vector<16x32xf32>
    %cst_59 = arith.constant dense<0.000000e+00> : vector<16x256xf32>
    %49 = tpu.matmul %48, %47, %cst_59 {dimension_numbers = #tpu.dot_dimension_numbers<[1], [0], [0], [1], [0, 0, 1, 1], [], []>} : vector<16x32xf32>, vector<32x256xf32>, vector<16x256xf32> -> vector<16x256xf32>
    %c0_60 = arith.constant 0 : index
    %c0_61 = arith.constant 0 : index
    %50 = vector.load %arg15[%c0_60, %c0_61] : memref<16x32xf32, #tpu.memory_space<vmem>>, vector<16x32xf32>
    %cst_62 = arith.constant dense<0.000000e+00> : vector<16x256xf32>
    %51 = tpu.matmul %50, %47, %cst_62 {dimension_numbers = #tpu.dot_dimension_numbers<[1], [0], [0], [1], [0, 0, 1, 1], [], []>} : vector<16x32xf32>, vector<32x256xf32>, vector<16x256xf32> -> vector<16x256xf32>
    %52 = arith.maximumf %49, %51 : vector<16x256xf32>
    %c0_63 = arith.constant 0 : index
    %c0_64 = arith.constant 0 : index
    %53 = vector.load %arg16[%c0_63, %c0_64] : memref<256x128xf32, #tpu.memory_space<vmem>>, vector<256x128xf32>
    %cst_65 = arith.constant dense<0.000000e+00> : vector<16x128xf32>
    %54 = tpu.matmul %52, %53, %cst_65 {dimension_numbers = #tpu.dot_dimension_numbers<[1], [0], [0], [1], [0, 0, 1, 1], [], []>} : vector<16x256xf32>, vector<256x128xf32>, vector<16x128xf32> -> vector<16x128xf32>
    %c0_66 = arith.constant 0 : index
    %c0_67 = arith.constant 0 : index
    %55 = vector.load %arg17[%c0_66, %c0_67] : memref<256x128xf32, #tpu.memory_space<vmem>>, vector<256x128xf32>
    %cst_68 = arith.constant dense<0.000000e+00> : vector<16x128xf32>
    %56 = tpu.matmul %52, %55, %cst_68 {dimension_numbers = #tpu.dot_dimension_numbers<[1], [0], [0], [1], [0, 0, 1, 1], [], []>} : vector<16x256xf32>, vector<256x128xf32>, vector<16x128xf32> -> vector<16x128xf32>
    %57 = arith.maximumf %54, %56 : vector<16x128xf32>
    %c0_69 = arith.constant 0 : index
    %c0_70 = arith.constant 0 : index
    %c0_71 = arith.constant 0 : index
    %58 = vector.load %arg11[%c0_69, %c0_70, %c0_71] : memref<1x1x128xf32, #tpu.memory_space<vmem>>, vector<1x1x128xf32>
    %59 = vector.shape_cast %58 : vector<1x1x128xf32> to vector<1x128xf32>
    %60 = vector.broadcast %59 : vector<1x128xf32> to vector<16x128xf32>
    %61 = arith.addf %57, %60 : vector<16x128xf32>
    %cst_72 = arith.constant 0.000000e+00 : f32
    %62 = vector.broadcast %cst_72 : f32 to vector<16x128xf32>
    %63 = arith.maximumf %61, %62 : vector<16x128xf32>
    %c0_73 = arith.constant 0 : index
    %c0_74 = arith.constant 0 : index
    %c0_75 = arith.constant 0 : index
    %c0_76 = arith.constant 0 : index
    %64 = vector.load %arg18[%c0_73, %c0_74, %c0_75, %c0_76] : memref<1x3x128x256xf32, #tpu.memory_space<vmem>>, vector<1x1x128x256xf32>
    %65 = vector.shape_cast %64 : vector<1x1x128x256xf32> to vector<128x256xf32>
    %cst_77 = arith.constant dense<0.000000e+00> : vector<16x256xf32>
    %66 = tpu.matmul %63, %65, %cst_77 {dimension_numbers = #tpu.dot_dimension_numbers<[1], [0], [0], [1], [0, 0, 1, 1], [], []>} : vector<16x128xf32>, vector<128x256xf32>, vector<16x256xf32> -> vector<16x256xf32>
    %c0_78 = arith.constant 0 : index
    %c1_79 = arith.constant 1 : index
    %c0_80 = arith.constant 0 : index
    %c0_81 = arith.constant 0 : index
    %67 = vector.load %arg18[%c0_78, %c1_79, %c0_80, %c0_81] : memref<1x3x128x256xf32, #tpu.memory_space<vmem>>, vector<1x1x128x256xf32>
    %68 = vector.shape_cast %67 : vector<1x1x128x256xf32> to vector<128x256xf32>
    %cst_82 = arith.constant dense<0.000000e+00> : vector<16x256xf32>
    %69 = tpu.matmul %63, %68, %cst_82 {dimension_numbers = #tpu.dot_dimension_numbers<[1], [0], [0], [1], [0, 0, 1, 1], [], []>} : vector<16x128xf32>, vector<128x256xf32>, vector<16x256xf32> -> vector<16x256xf32>
    %c0_83 = arith.constant 0 : index
    %c2_84 = arith.constant 2 : index
    %c0_85 = arith.constant 0 : index
    %c0_86 = arith.constant 0 : index
    %70 = vector.load %arg18[%c0_83, %c2_84, %c0_85, %c0_86] : memref<1x3x128x256xf32, #tpu.memory_space<vmem>>, vector<1x1x128x256xf32>
    %71 = vector.shape_cast %70 : vector<1x1x128x256xf32> to vector<128x256xf32>
    %cst_87 = arith.constant dense<0.000000e+00> : vector<16x256xf32>
    %72 = tpu.matmul %63, %71, %cst_87 {dimension_numbers = #tpu.dot_dimension_numbers<[1], [0], [0], [1], [0, 0, 1, 1], [], []>} : vector<16x128xf32>, vector<128x256xf32>, vector<16x256xf32> -> vector<16x256xf32>
    %c0_88 = arith.constant 0 : index
    %c0_89 = arith.constant 0 : index
    %73 = vector.load %arg20[%c0_88, %c0_89] : memref<16x16xf32, #tpu.memory_space<vmem>>, vector<16x16xf32>
    %cst_90 = arith.constant dense<0.000000e+00> : vector<16x256xf32>
    %74 = tpu.matmul %73, %66, %cst_90 {dimension_numbers = #tpu.dot_dimension_numbers<[1], [0], [0], [1], [0, 0, 1, 1], [], []>} : vector<16x16xf32>, vector<16x256xf32>, vector<16x256xf32> -> vector<16x256xf32>
    %75 = arith.addf %74, %69 : vector<16x256xf32>
    %c0_91 = arith.constant 0 : index
    %c0_92 = arith.constant 0 : index
    %76 = vector.load %arg21[%c0_91, %c0_92] : memref<16x16xf32, #tpu.memory_space<vmem>>, vector<16x16xf32>
    %cst_93 = arith.constant dense<0.000000e+00> : vector<16x256xf32>
    %77 = tpu.matmul %76, %72, %cst_93 {dimension_numbers = #tpu.dot_dimension_numbers<[1], [0], [0], [1], [0, 0, 1, 1], [], []>} : vector<16x16xf32>, vector<16x256xf32>, vector<16x256xf32> -> vector<16x256xf32>
    %78 = arith.addf %75, %77 : vector<16x256xf32>
    %c0_94 = arith.constant 0 : index
    %c0_95 = arith.constant 0 : index
    %79 = vector.load %arg22[%c0_94, %c0_95] : memref<8x16xf32, #tpu.memory_space<vmem>>, vector<8x16xf32>
    %cst_96 = arith.constant dense<0.000000e+00> : vector<8x256xf32>
    %80 = tpu.matmul %79, %78, %cst_96 {dimension_numbers = #tpu.dot_dimension_numbers<[1], [0], [0], [1], [0, 0, 1, 1], [], []>} : vector<8x16xf32>, vector<16x256xf32>, vector<8x256xf32> -> vector<8x256xf32>
    %c0_97 = arith.constant 0 : index
    %c0_98 = arith.constant 0 : index
    %81 = vector.load %arg23[%c0_97, %c0_98] : memref<8x16xf32, #tpu.memory_space<vmem>>, vector<8x16xf32>
    %cst_99 = arith.constant dense<0.000000e+00> : vector<8x256xf32>
    %82 = tpu.matmul %81, %78, %cst_99 {dimension_numbers = #tpu.dot_dimension_numbers<[1], [0], [0], [1], [0, 0, 1, 1], [], []>} : vector<8x16xf32>, vector<16x256xf32>, vector<8x256xf32> -> vector<8x256xf32>
    %83 = arith.maximumf %80, %82 : vector<8x256xf32>
    %c0_100 = arith.constant 0 : index
    %c0_101 = arith.constant 0 : index
    %84 = vector.load %arg24[%c0_100, %c0_101] : memref<256x128xf32, #tpu.memory_space<vmem>>, vector<256x128xf32>
    %cst_102 = arith.constant dense<0.000000e+00> : vector<8x128xf32>
    %85 = tpu.matmul %83, %84, %cst_102 {dimension_numbers = #tpu.dot_dimension_numbers<[1], [0], [0], [1], [0, 0, 1, 1], [], []>} : vector<8x256xf32>, vector<256x128xf32>, vector<8x128xf32> -> vector<8x128xf32>
    %c0_103 = arith.constant 0 : index
    %c0_104 = arith.constant 0 : index
    %86 = vector.load %arg25[%c0_103, %c0_104] : memref<256x128xf32, #tpu.memory_space<vmem>>, vector<256x128xf32>
    %cst_105 = arith.constant dense<0.000000e+00> : vector<8x128xf32>
    %87 = tpu.matmul %83, %86, %cst_105 {dimension_numbers = #tpu.dot_dimension_numbers<[1], [0], [0], [1], [0, 0, 1, 1], [], []>} : vector<8x256xf32>, vector<256x128xf32>, vector<8x128xf32> -> vector<8x128xf32>
    %88 = arith.maximumf %85, %87 : vector<8x128xf32>
    %c0_106 = arith.constant 0 : index
    %c0_107 = arith.constant 0 : index
    %c0_108 = arith.constant 0 : index
    %89 = vector.load %arg19[%c0_106, %c0_107, %c0_108] : memref<1x1x128xf32, #tpu.memory_space<vmem>>, vector<1x1x128xf32>
    %90 = vector.shape_cast %89 : vector<1x1x128xf32> to vector<1x128xf32>
    %91 = vector.broadcast %90 : vector<1x128xf32> to vector<8x128xf32>
    %92 = arith.addf %88, %91 : vector<8x128xf32>
    %cst_109 = arith.constant 0.000000e+00 : f32
    %93 = vector.broadcast %cst_109 : f32 to vector<8x128xf32>
    %94 = arith.maximumf %92, %93 : vector<8x128xf32>
    %c0_110 = arith.constant 0 : index
    %c0_111 = arith.constant 0 : index
    %c0_112 = arith.constant 0 : index
    %c0_113 = arith.constant 0 : index
    %95 = vector.load %arg26[%c0_110, %c0_111, %c0_112, %c0_113] : memref<1x3x128x256xf32, #tpu.memory_space<vmem>>, vector<1x1x128x256xf32>
    %96 = vector.shape_cast %95 : vector<1x1x128x256xf32> to vector<128x256xf32>
    %cst_114 = arith.constant dense<0.000000e+00> : vector<8x256xf32>
    %97 = tpu.matmul %94, %96, %cst_114 {dimension_numbers = #tpu.dot_dimension_numbers<[1], [0], [0], [1], [0, 0, 1, 1], [], []>} : vector<8x128xf32>, vector<128x256xf32>, vector<8x256xf32> -> vector<8x256xf32>
    %c0_115 = arith.constant 0 : index
    %c1_116 = arith.constant 1 : index
    %c0_117 = arith.constant 0 : index
    %c0_118 = arith.constant 0 : index
    %98 = vector.load %arg26[%c0_115, %c1_116, %c0_117, %c0_118] : memref<1x3x128x256xf32, #tpu.memory_space<vmem>>, vector<1x1x128x256xf32>
    %99 = vector.shape_cast %98 : vector<1x1x128x256xf32> to vector<128x256xf32>
    %cst_119 = arith.constant dense<0.000000e+00> : vector<8x256xf32>
    %100 = tpu.matmul %94, %99, %cst_119 {dimension_numbers = #tpu.dot_dimension_numbers<[1], [0], [0], [1], [0, 0, 1, 1], [], []>} : vector<8x128xf32>, vector<128x256xf32>, vector<8x256xf32> -> vector<8x256xf32>
    %c0_120 = arith.constant 0 : index
    %c2_121 = arith.constant 2 : index
    %c0_122 = arith.constant 0 : index
    %c0_123 = arith.constant 0 : index
    %101 = vector.load %arg26[%c0_120, %c2_121, %c0_122, %c0_123] : memref<1x3x128x256xf32, #tpu.memory_space<vmem>>, vector<1x1x128x256xf32>
    %102 = vector.shape_cast %101 : vector<1x1x128x256xf32> to vector<128x256xf32>
    %cst_124 = arith.constant dense<0.000000e+00> : vector<8x256xf32>
    %103 = tpu.matmul %94, %102, %cst_124 {dimension_numbers = #tpu.dot_dimension_numbers<[1], [0], [0], [1], [0, 0, 1, 1], [], []>} : vector<8x128xf32>, vector<128x256xf32>, vector<8x256xf32> -> vector<8x256xf32>
    %c0_125 = arith.constant 0 : index
    %c0_126 = arith.constant 0 : index
    %104 = vector.load %arg28[%c0_125, %c0_126] : memref<8x8xf32, #tpu.memory_space<vmem>>, vector<8x8xf32>
    %cst_127 = arith.constant dense<0.000000e+00> : vector<8x256xf32>
    %105 = tpu.matmul %104, %97, %cst_127 {dimension_numbers = #tpu.dot_dimension_numbers<[1], [0], [0], [1], [0, 0, 1, 1], [], []>} : vector<8x8xf32>, vector<8x256xf32>, vector<8x256xf32> -> vector<8x256xf32>
    %106 = arith.addf %105, %100 : vector<8x256xf32>
    %c0_128 = arith.constant 0 : index
    %c0_129 = arith.constant 0 : index
    %107 = vector.load %arg29[%c0_128, %c0_129] : memref<8x8xf32, #tpu.memory_space<vmem>>, vector<8x8xf32>
    %cst_130 = arith.constant dense<0.000000e+00> : vector<8x256xf32>
    %108 = tpu.matmul %107, %103, %cst_130 {dimension_numbers = #tpu.dot_dimension_numbers<[1], [0], [0], [1], [0, 0, 1, 1], [], []>} : vector<8x8xf32>, vector<8x256xf32>, vector<8x256xf32> -> vector<8x256xf32>
    %109 = arith.addf %106, %108 : vector<8x256xf32>
    %c0_131 = arith.constant 0 : index
    %c0_132 = arith.constant 0 : index
    %110 = vector.load %arg30[%c0_131, %c0_132] : memref<4x8xf32, #tpu.memory_space<vmem>>, vector<4x8xf32>
    %cst_133 = arith.constant dense<0.000000e+00> : vector<4x256xf32>
    %111 = tpu.matmul %110, %109, %cst_133 {dimension_numbers = #tpu.dot_dimension_numbers<[1], [0], [0], [1], [0, 0, 1, 1], [], []>} : vector<4x8xf32>, vector<8x256xf32>, vector<4x256xf32> -> vector<4x256xf32>
    %c0_134 = arith.constant 0 : index
    %c0_135 = arith.constant 0 : index
    %112 = vector.load %arg31[%c0_134, %c0_135] : memref<4x8xf32, #tpu.memory_space<vmem>>, vector<4x8xf32>
    %cst_136 = arith.constant dense<0.000000e+00> : vector<4x256xf32>
    %113 = tpu.matmul %112, %109, %cst_136 {dimension_numbers = #tpu.dot_dimension_numbers<[1], [0], [0], [1], [0, 0, 1, 1], [], []>} : vector<4x8xf32>, vector<8x256xf32>, vector<4x256xf32> -> vector<4x256xf32>
    %114 = arith.maximumf %111, %113 : vector<4x256xf32>
    %c0_137 = arith.constant 0 : index
    %c0_138 = arith.constant 0 : index
    %115 = vector.load %arg32[%c0_137, %c0_138] : memref<256x128xf32, #tpu.memory_space<vmem>>, vector<256x128xf32>
    %cst_139 = arith.constant dense<0.000000e+00> : vector<4x128xf32>
    %116 = tpu.matmul %114, %115, %cst_139 {dimension_numbers = #tpu.dot_dimension_numbers<[1], [0], [0], [1], [0, 0, 1, 1], [], []>} : vector<4x256xf32>, vector<256x128xf32>, vector<4x128xf32> -> vector<4x128xf32>
    %c0_140 = arith.constant 0 : index
    %c0_141 = arith.constant 0 : index
    %117 = vector.load %arg33[%c0_140, %c0_141] : memref<256x128xf32, #tpu.memory_space<vmem>>, vector<256x128xf32>
    %cst_142 = arith.constant dense<0.000000e+00> : vector<4x128xf32>
    %118 = tpu.matmul %114, %117, %cst_142 {dimension_numbers = #tpu.dot_dimension_numbers<[1], [0], [0], [1], [0, 0, 1, 1], [], []>} : vector<4x256xf32>, vector<256x128xf32>, vector<4x128xf32> -> vector<4x128xf32>
    %119 = arith.maximumf %116, %118 : vector<4x128xf32>
    %c0_143 = arith.constant 0 : index
    %c0_144 = arith.constant 0 : index
    %c0_145 = arith.constant 0 : index
    %120 = vector.load %arg27[%c0_143, %c0_144, %c0_145] : memref<1x1x128xf32, #tpu.memory_space<vmem>>, vector<1x1x128xf32>
    %121 = vector.shape_cast %120 : vector<1x1x128xf32> to vector<1x128xf32>
    %122 = vector.broadcast %121 : vector<1x128xf32> to vector<4x128xf32>
    %123 = arith.addf %119, %122 : vector<4x128xf32>
    %cst_146 = arith.constant 0.000000e+00 : f32
    %124 = vector.broadcast %cst_146 : f32 to vector<4x128xf32>
    %125 = arith.maximumf %123, %124 : vector<4x128xf32>
    %c0_147 = arith.constant 0 : index
    %c0_148 = arith.constant 0 : index
    %c0_149 = arith.constant 0 : index
    %c0_150 = arith.constant 0 : index
    %126 = vector.load %arg34[%c0_147, %c0_148, %c0_149, %c0_150] : memref<1x3x128x256xf32, #tpu.memory_space<vmem>>, vector<1x1x128x256xf32>
    %127 = vector.shape_cast %126 : vector<1x1x128x256xf32> to vector<128x256xf32>
    %cst_151 = arith.constant dense<0.000000e+00> : vector<4x256xf32>
    %128 = tpu.matmul %125, %127, %cst_151 {dimension_numbers = #tpu.dot_dimension_numbers<[1], [0], [0], [1], [0, 0, 1, 1], [], []>} : vector<4x128xf32>, vector<128x256xf32>, vector<4x256xf32> -> vector<4x256xf32>
    %c0_152 = arith.constant 0 : index
    %c1_153 = arith.constant 1 : index
    %c0_154 = arith.constant 0 : index
    %c0_155 = arith.constant 0 : index
    %129 = vector.load %arg34[%c0_152, %c1_153, %c0_154, %c0_155] : memref<1x3x128x256xf32, #tpu.memory_space<vmem>>, vector<1x1x128x256xf32>
    %130 = vector.shape_cast %129 : vector<1x1x128x256xf32> to vector<128x256xf32>
    %cst_156 = arith.constant dense<0.000000e+00> : vector<4x256xf32>
    %131 = tpu.matmul %125, %130, %cst_156 {dimension_numbers = #tpu.dot_dimension_numbers<[1], [0], [0], [1], [0, 0, 1, 1], [], []>} : vector<4x128xf32>, vector<128x256xf32>, vector<4x256xf32> -> vector<4x256xf32>
    %c0_157 = arith.constant 0 : index
    %c2_158 = arith.constant 2 : index
    %c0_159 = arith.constant 0 : index
    %c0_160 = arith.constant 0 : index
    %132 = vector.load %arg34[%c0_157, %c2_158, %c0_159, %c0_160] : memref<1x3x128x256xf32, #tpu.memory_space<vmem>>, vector<1x1x128x256xf32>
    %133 = vector.shape_cast %132 : vector<1x1x128x256xf32> to vector<128x256xf32>
    %cst_161 = arith.constant dense<0.000000e+00> : vector<4x256xf32>
    %134 = tpu.matmul %125, %133, %cst_161 {dimension_numbers = #tpu.dot_dimension_numbers<[1], [0], [0], [1], [0, 0, 1, 1], [], []>} : vector<4x128xf32>, vector<128x256xf32>, vector<4x256xf32> -> vector<4x256xf32>
    %c0_162 = arith.constant 0 : index
    %c0_163 = arith.constant 0 : index
    %135 = vector.load %arg36[%c0_162, %c0_163] : memref<4x4xf32, #tpu.memory_space<vmem>>, vector<4x4xf32>
    %cst_164 = arith.constant dense<0.000000e+00> : vector<4x256xf32>
    %136 = tpu.matmul %135, %128, %cst_164 {dimension_numbers = #tpu.dot_dimension_numbers<[1], [0], [0], [1], [0, 0, 1, 1], [], []>} : vector<4x4xf32>, vector<4x256xf32>, vector<4x256xf32> -> vector<4x256xf32>
    %137 = arith.addf %136, %131 : vector<4x256xf32>
    %c0_165 = arith.constant 0 : index
    %c0_166 = arith.constant 0 : index
    %138 = vector.load %arg37[%c0_165, %c0_166] : memref<4x4xf32, #tpu.memory_space<vmem>>, vector<4x4xf32>
    %cst_167 = arith.constant dense<0.000000e+00> : vector<4x256xf32>
    %139 = tpu.matmul %138, %134, %cst_167 {dimension_numbers = #tpu.dot_dimension_numbers<[1], [0], [0], [1], [0, 0, 1, 1], [], []>} : vector<4x4xf32>, vector<4x256xf32>, vector<4x256xf32> -> vector<4x256xf32>
    %140 = arith.addf %137, %139 : vector<4x256xf32>
    %c0_168 = arith.constant 0 : index
    %c0_169 = arith.constant 0 : index
    %141 = vector.load %arg38[%c0_168, %c0_169] : memref<2x4xf32, #tpu.memory_space<vmem>>, vector<2x4xf32>
    %cst_170 = arith.constant dense<0.000000e+00> : vector<2x256xf32>
    %142 = tpu.matmul %141, %140, %cst_170 {dimension_numbers = #tpu.dot_dimension_numbers<[1], [0], [0], [1], [0, 0, 1, 1], [], []>} : vector<2x4xf32>, vector<4x256xf32>, vector<2x256xf32> -> vector<2x256xf32>
    %c0_171 = arith.constant 0 : index
    %c0_172 = arith.constant 0 : index
    %143 = vector.load %arg39[%c0_171, %c0_172] : memref<2x4xf32, #tpu.memory_space<vmem>>, vector<2x4xf32>
    %cst_173 = arith.constant dense<0.000000e+00> : vector<2x256xf32>
    %144 = tpu.matmul %143, %140, %cst_173 {dimension_numbers = #tpu.dot_dimension_numbers<[1], [0], [0], [1], [0, 0, 1, 1], [], []>} : vector<2x4xf32>, vector<4x256xf32>, vector<2x256xf32> -> vector<2x256xf32>
    %145 = arith.maximumf %142, %144 : vector<2x256xf32>
    %c0_174 = arith.constant 0 : index
    %c0_175 = arith.constant 0 : index
    %146 = vector.load %arg40[%c0_174, %c0_175] : memref<256x128xf32, #tpu.memory_space<vmem>>, vector<256x128xf32>
    %cst_176 = arith.constant dense<0.000000e+00> : vector<2x128xf32>
    %147 = tpu.matmul %145, %146, %cst_176 {dimension_numbers = #tpu.dot_dimension_numbers<[1], [0], [0], [1], [0, 0, 1, 1], [], []>} : vector<2x256xf32>, vector<256x128xf32>, vector<2x128xf32> -> vector<2x128xf32>
    %c0_177 = arith.constant 0 : index
    %c0_178 = arith.constant 0 : index
    %148 = vector.load %arg41[%c0_177, %c0_178] : memref<256x128xf32, #tpu.memory_space<vmem>>, vector<256x128xf32>
    %cst_179 = arith.constant dense<0.000000e+00> : vector<2x128xf32>
    %149 = tpu.matmul %145, %148, %cst_179 {dimension_numbers = #tpu.dot_dimension_numbers<[1], [0], [0], [1], [0, 0, 1, 1], [], []>} : vector<2x256xf32>, vector<256x128xf32>, vector<2x128xf32> -> vector<2x128xf32>
    %150 = arith.maximumf %147, %149 : vector<2x128xf32>
    %c0_180 = arith.constant 0 : index
    %c0_181 = arith.constant 0 : index
    %c0_182 = arith.constant 0 : index
    %151 = vector.load %arg35[%c0_180, %c0_181, %c0_182] : memref<1x1x128xf32, #tpu.memory_space<vmem>>, vector<1x1x128xf32>
    %152 = vector.shape_cast %151 : vector<1x1x128xf32> to vector<1x128xf32>
    %153 = vector.broadcast %152 : vector<1x128xf32> to vector<2x128xf32>
    %154 = arith.addf %150, %153 : vector<2x128xf32>
    %cst_183 = arith.constant 0.000000e+00 : f32
    %155 = vector.broadcast %cst_183 : f32 to vector<2x128xf32>
    %156 = arith.maximumf %154, %155 : vector<2x128xf32>
    %c0_184 = arith.constant 0 : index
    %c0_185 = arith.constant 0 : index
    %c0_186 = arith.constant 0 : index
    %157 = vector.load %arg42[%c0_184, %c0_185, %c0_186] : memref<1x128x512xf32, #tpu.memory_space<vmem>>, vector<1x128x512xf32>
    %158 = vector.shape_cast %157 : vector<1x128x512xf32> to vector<128x512xf32>
    %cst_187 = arith.constant dense<0.000000e+00> : vector<2x512xf32>
    %159 = tpu.matmul %156, %158, %cst_187 {dimension_numbers = #tpu.dot_dimension_numbers<[1], [0], [0], [1], [0, 0, 1, 1], [], []>} : vector<2x128xf32>, vector<128x512xf32>, vector<2x512xf32> -> vector<2x512xf32>
    %c0_188 = arith.constant 0 : index
    %c0_189 = arith.constant 0 : index
    %c0_190 = arith.constant 0 : index
    %160 = vector.load %arg43[%c0_188, %c0_189, %c0_190] : memref<1x2x512xf32, #tpu.memory_space<vmem>>, vector<1x2x512xf32>
    %161 = vector.shape_cast %160 : vector<1x2x512xf32> to vector<2x512xf32>
    %162 = vector.shape_cast %159 : vector<2x512xf32> to vector<1x2x512xf32>
    tpu.vector_store %arg43[%c0_188, %c0_189, %c0_190], %162 {strides = array<i32>} : memref<1x2x512xf32, #tpu.memory_space<vmem>>, vector<1x2x512xf32>,
    return
  }
  func.func @transform_0(%arg0: i32) -> (i32, i32, i32) {
    %c0_i32 = arith.constant 0 : i32
    %c0_i32_0 = arith.constant 0 : i32
    %c0_i32_1 = arith.constant 0 : i32
    return %arg0, %c0_i32, %c0_i32_0 : i32, i32, i32
  }
  func.func @transform_1(%arg0: i32) -> (i32, i32, i32, i32) {
    %c0_i32 = arith.constant 0 : i32
    %c0_i32_0 = arith.constant 0 : i32
    %c0_i32_1 = arith.constant 0 : i32
    %c0_i32_2 = arith.constant 0 : i32
    return %arg0, %c0_i32, %c0_i32_0, %c0_i32_1 : i32, i32, i32, i32
  }
  func.func @transform_2(%arg0: i32) -> (i32, i32, i32) {
    %c0_i32 = arith.constant 0 : i32
    %c0_i32_0 = arith.constant 0 : i32
    %c0_i32_1 = arith.constant 0 : i32
    return %arg0, %c0_i32, %c0_i32_0 : i32, i32, i32
  }
  func.func @transform_3(%arg0: i32) -> (i32, i32) {
    %c0_i32 = arith.constant 0 : i32
    %c0_i32_0 = arith.constant 0 : i32
    %c0_i32_1 = arith.constant 0 : i32
    return %c0_i32, %c0_i32_0 : i32, i32
  }
  func.func @transform_4(%arg0: i32) -> (i32, i32) {
    %c0_i32 = arith.constant 0 : i32
    %c0_i32_0 = arith.constant 0 : i32
    %c0_i32_1 = arith.constant 0 : i32
    return %c0_i32, %c0_i32_0 : i32, i32
  }
  func.func @transform_5(%arg0: i32) -> (i32, i32) {
    %c0_i32 = arith.constant 0 : i32
    %c0_i32_0 = arith.constant 0 : i32
    %c0_i32_1 = arith.constant 0 : i32
    return %c0_i32, %c0_i32_0 : i32, i32
  }
  func.func @transform_6(%arg0: i32) -> (i32, i32) {
    %c0_i32 = arith.constant 0 : i32
    %c0_i32_0 = arith.constant 0 : i32
    %c0_i32_1 = arith.constant 0 : i32
    return %c0_i32, %c0_i32_0 : i32, i32
  }
  func.func @transform_7(%arg0: i32) -> (i32, i32) {
    %c0_i32 = arith.constant 0 : i32
    %c0_i32_0 = arith.constant 0 : i32
    %c0_i32_1 = arith.constant 0 : i32
    return %c0_i32, %c0_i32_0 : i32, i32
  }
  func.func @transform_8(%arg0: i32) -> (i32, i32) {
    %c0_i32 = arith.constant 0 : i32
    %c0_i32_0 = arith.constant 0 : i32
    %c0_i32_1 = arith.constant 0 : i32
    return %c0_i32, %c0_i32_0 : i32, i32
  }
  func.func @transform_9(%arg0: i32) -> (i32, i32, i32, i32) {
    %c0_i32 = arith.constant 0 : i32
    %c0_i32_0 = arith.constant 0 : i32
    %c0_i32_1 = arith.constant 0 : i32
    %c0_i32_2 = arith.constant 0 : i32
    return %arg0, %c0_i32, %c0_i32_0, %c0_i32_1 : i32, i32, i32, i32
  }
  func.func @transform_10(%arg0: i32) -> (i32, i32, i32) {
    %c0_i32 = arith.constant 0 : i32
    %c0_i32_0 = arith.constant 0 : i32
    %c0_i32_1 = arith.constant 0 : i32
    return %arg0, %c0_i32, %c0_i32_0 : i32, i32, i32
  }
  func.func @transform_11(%arg0: i32) -> (i32, i32) {
    %c0_i32 = arith.constant 0 : i32
    %c0_i32_0 = arith.constant 0 : i32
    %c0_i32_1 = arith.constant 0 : i32
    return %c0_i32, %c0_i32_0 : i32, i32
  }
  func.func @transform_12(%arg0: i32) -> (i32, i32) {
    %c0_i32 = arith.constant 0 : i32
    %c0_i32_0 = arith.constant 0 : i32
    %c0_i32_1 = arith.constant 0 : i32
    return %c0_i32, %c0_i32_0 : i32, i32
  }
  func.func @transform_13(%arg0: i32) -> (i32, i32) {
    %c0_i32 = arith.constant 0 : i32
    %c0_i32_0 = arith.constant 0 : i32
    %c0_i32_1 = arith.constant 0 : i32
    return %c0_i32, %c0_i32_0 : i32, i32
  }
  func.func @transform_14(%arg0: i32) -> (i32, i32) {
    %c0_i32 = arith.constant 0 : i32
    %c0_i32_0 = arith.constant 0 : i32
    %c0_i32_1 = arith.constant 0 : i32
    return %c0_i32, %c0_i32_0 : i32, i32
  }
  func.func @transform_15(%arg0: i32) -> (i32, i32) {
    %c0_i32 = arith.constant 0 : i32
    %c0_i32_0 = arith.constant 0 : i32
    %c0_i32_1 = arith.constant 0 : i32
    return %c0_i32, %c0_i32_0 : i32, i32
  }
  func.func @transform_16(%arg0: i32) -> (i32, i32) {
    %c0_i32 = arith.constant 0 : i32
    %c0_i32_0 = arith.constant 0 : i32
    %c0_i32_1 = arith.constant 0 : i32
    return %c0_i32, %c0_i32_0 : i32, i32
  }
  func.func @transform_17(%arg0: i32) -> (i32, i32, i32, i32) {
    %c0_i32 = arith.constant 0 : i32
    %c0_i32_0 = arith.constant 0 : i32
    %c0_i32_1 = arith.constant 0 : i32
    %c0_i32_2 = arith.constant 0 : i32
    return %arg0, %c0_i32, %c0_i32_0, %c0_i32_1 : i32, i32, i32, i32
  }
  func.func @transform_18(%arg0: i32) -> (i32, i32, i32) {
    %c0_i32 = arith.constant 0 : i32
    %c0_i32_0 = arith.constant 0 : i32
    %c0_i32_1 = arith.constant 0 : i32
    return %arg0, %c0_i32, %c0_i32_0 : i32, i32, i32
  }
  func.func @transform_19(%arg0: i32) -> (i32, i32) {
    %c0_i32 = arith.constant 0 : i32
    %c0_i32_0 = arith.constant 0 : i32
    %c0_i32_1 = arith.constant 0 : i32
    return %c0_i32, %c0_i32_0 : i32, i32
  }
  func.func @transform_20(%arg0: i32) -> (i32, i32) {
    %c0_i32 = arith.constant 0 : i32
    %c0_i32_0 = arith.constant 0 : i32
    %c0_i32_1 = arith.constant 0 : i32
    return %c0_i32, %c0_i32_0 : i32, i32
  }
  func.func @transform_21(%arg0: i32) -> (i32, i32) {
    %c0_i32 = arith.constant 0 : i32
    %c0_i32_0 = arith.constant 0 : i32
    %c0_i32_1 = arith.constant 0 : i32
    return %c0_i32, %c0_i32_0 : i32, i32
  }
  func.func @transform_22(%arg0: i32) -> (i32, i32) {
    %c0_i32 = arith.constant 0 : i32
    %c0_i32_0 = arith.constant 0 : i32
    %c0_i32_1 = arith.constant 0 : i32
    return %c0_i32, %c0_i32_0 : i32, i32
  }
  func.func @transform_23(%arg0: i32) -> (i32, i32) {
    %c0_i32 = arith.constant 0 : i32
    %c0_i32_0 = arith.constant 0 : i32
    %c0_i32_1 = arith.constant 0 : i32
    return %c0_i32, %c0_i32_0 : i32, i32
  }
  func.func @transform_24(%arg0: i32) -> (i32, i32) {
    %c0_i32 = arith.constant 0 : i32
    %c0_i32_0 = arith.constant 0 : i32
    %c0_i32_1 = arith.constant 0 : i32
    return %c0_i32, %c0_i32_0 : i32, i32
  }
  func.func @transform_25(%arg0: i32) -> (i32, i32, i32, i32) {
    %c0_i32 = arith.constant 0 : i32
    %c0_i32_0 = arith.constant 0 : i32
    %c0_i32_1 = arith.constant 0 : i32
    %c0_i32_2 = arith.constant 0 : i32
    return %arg0, %c0_i32, %c0_i32_0, %c0_i32_1 : i32, i32, i32, i32
  }
  func.func @transform_26(%arg0: i32) -> (i32, i32, i32) {
    %c0_i32 = arith.constant 0 : i32
    %c0_i32_0 = arith.constant 0 : i32
    %c0_i32_1 = arith.constant 0 : i32
    return %arg0, %c0_i32, %c0_i32_0 : i32, i32, i32
  }
  func.func @transform_27(%arg0: i32) -> (i32, i32) {
    %c0_i32 = arith.constant 0 : i32
    %c0_i32_0 = arith.constant 0 : i32
    %c0_i32_1 = arith.constant 0 : i32
    return %c0_i32, %c0_i32_0 : i32, i32
  }
  func.func @transform_28(%arg0: i32) -> (i32, i32) {
    %c0_i32 = arith.constant 0 : i32
    %c0_i32_0 = arith.constant 0 : i32
    %c0_i32_1 = arith.constant 0 : i32
    return %c0_i32, %c0_i32_0 : i32, i32
  }
  func.func @transform_29(%arg0: i32) -> (i32, i32) {
    %c0_i32 = arith.constant 0 : i32
    %c0_i32_0 = arith.constant 0 : i32
    %c0_i32_1 = arith.constant 0 : i32
    return %c0_i32, %c0_i32_0 : i32, i32
  }
  func.func @transform_30(%arg0: i32) -> (i32, i32) {
    %c0_i32 = arith.constant 0 : i32
    %c0_i32_0 = arith.constant 0 : i32
    %c0_i32_1 = arith.constant 0 : i32
    return %c0_i32, %c0_i32_0 : i32, i32
  }
  func.func @transform_31(%arg0: i32) -> (i32, i32) {
    %c0_i32 = arith.constant 0 : i32
    %c0_i32_0 = arith.constant 0 : i32
    %c0_i32_1 = arith.constant 0 : i32
    return %c0_i32, %c0_i32_0 : i32, i32
  }
  func.func @transform_32(%arg0: i32) -> (i32, i32) {
    %c0_i32 = arith.constant 0 : i32
    %c0_i32_0 = arith.constant 0 : i32
    %c0_i32_1 = arith.constant 0 : i32
    return %c0_i32, %c0_i32_0 : i32, i32
  }
  func.func @transform_33(%arg0: i32) -> (i32, i32, i32, i32) {
    %c0_i32 = arith.constant 0 : i32
    %c0_i32_0 = arith.constant 0 : i32
    %c0_i32_1 = arith.constant 0 : i32
    %c0_i32_2 = arith.constant 0 : i32
    return %arg0, %c0_i32, %c0_i32_0, %c0_i32_1 : i32, i32, i32, i32
  }
  func.func @transform_34(%arg0: i32) -> (i32, i32, i32) {
    %c0_i32 = arith.constant 0 : i32
    %c0_i32_0 = arith.constant 0 : i32
    %c0_i32_1 = arith.constant 0 : i32
    return %arg0, %c0_i32, %c0_i32_0 : i32, i32, i32
  }
  func.func @transform_35(%arg0: i32) -> (i32, i32) {
    %c0_i32 = arith.constant 0 : i32
    %c0_i32_0 = arith.constant 0 : i32
    %c0_i32_1 = arith.constant 0 : i32
    return %c0_i32, %c0_i32_0 : i32, i32
  }
  func.func @transform_36(%arg0: i32) -> (i32, i32) {
    %c0_i32 = arith.constant 0 : i32
    %c0_i32_0 = arith.constant 0 : i32
    %c0_i32_1 = arith.constant 0 : i32
    return %c0_i32, %c0_i32_0 : i32, i32
  }
  func.func @transform_37(%arg0: i32) -> (i32, i32) {
    %c0_i32 = arith.constant 0 : i32
    %c0_i32_0 = arith.constant 0 : i32
    %c0_i32_1 = arith.constant 0 : i32
    return %c0_i32, %c0_i32_0 : i32, i32
  }
  func.func @transform_38(%arg0: i32) -> (i32, i32) {
    %c0_i32 = arith.constant 0 : i32
    %c0_i32_0 = arith.constant 0 : i32
    %c0_i32_1 = arith.constant 0 : i32
    return %c0_i32, %c0_i32_0 : i32, i32
  }
  func.func @transform_39(%arg0: i32) -> (i32, i32) {
    %c0_i32 = arith.constant 0 : i32
    %c0_i32_0 = arith.constant 0 : i32
    %c0_i32_1 = arith.constant 0 : i32
    return %c0_i32, %c0_i32_0 : i32, i32
  }
  func.func @transform_40(%arg0: i32) -> (i32, i32) {
    %c0_i32 = arith.constant 0 : i32
    %c0_i32_0 = arith.constant 0 : i32
    %c0_i32_1 = arith.constant 0 : i32
    return %c0_i32, %c0_i32_0 : i32, i32
  }
  func.func @transform_41(%arg0: i32) -> (i32, i32, i32) {
    %c0_i32 = arith.constant 0 : i32
    %c0_i32_0 = arith.constant 0 : i32
    %c0_i32_1 = arith.constant 0 : i32
    return %arg0, %c0_i32, %c0_i32_0 : i32, i32, i32
  }
  func.func @transform_42(%arg0: i32) -> (i32, i32, i32) {
    %c0_i32 = arith.constant 0 : i32
    %c0_i32_0 = arith.constant 0 : i32
    %c0_i32_1 = arith.constant 0 : i32
    return %arg0, %c0_i32, %c0_i32_0 : i32, i32, i32
  }
}

</mosaic_0001>

<bundles_post_ra>
// kernel: multi_stream_bio_cnn.3
= control target key start
LH: loop header
LB: loop body
LE: loop exit
PB: predicated region body
PF: predicated region fallthrough
CT: control target
= control target key end

     0   :  { %v24_v48 = vlaneseq  ;;  %v471_v61 = vmov 1983009808   ;;  %s714_s0 = inlined_call_operand.vmem [shape: f32[2,2,512], index: 0, kind: input, shape index: {}]   ;;  %s715_s1 = inlined_call_operand.vmem [shape: f32[1,512], index: 1, kind: input, shape index: {}]   ;;  %s716_s2 = inlined_call_operand.vmem [shape: f32[512,53], index: 2, kind: input, shape index: {}]   ;;  %s717_s3 = inlined_call_operand.vmem [shape: f32[1,53], index: 3, kind: input, shape index: {}]   ;;  %s718_s4 = inlined_call_operand.hbm [shape: f32[2,53], index: 4, kind: output, shape index: {}]  }
   0x1   :  { %v76_v0 = vld [vmem:[%s716_s2 + $0x80] sm:$0xff]  ;;  %v77_v1 = vld [vmem:[%s716_s2 + $0x88] sm:$0xff]  ;;  %v78_v11 = vld [vmem:[%s716_s2 + $0x90] sm:$0xff]  ;;  %v43_v62 = vunpack.c.l.s4 %v471_v61 }
   0x2   :  { %v60_v2 = vld [vmem:[%s716_s2] sm:$0xff]  ;;  %v381_v3 = vpack.c.bf16 %v77_v1, %v76_v0  ;;  %v61_v4 = vld [vmem:[%s716_s2 + $0x8] sm:$0xff]  ;;  %v79_v13 = vld [vmem:[%s716_s2 + $0x98] sm:$0xff]  ;;  %v25_v1 = vshrl.u32 %v24_v48, 7 }
   0x3   :  { %v108_v5 = vld [vmem:[%s716_s2 + $0x180] sm:$0xff]  ;;  %v109_v6 = vld [vmem:[%s716_s2 + $0x188] sm:$0xff]  ;;  %v383_v7 = vpack.c.bf16 %v61_v4, %v60_v2  ;;  %v62_v14 = vld [vmem:[%s716_s2 + $0x10] sm:$0xff]  ;;  %v385_v16 = vpack.c.bf16 %v79_v13, %v78_v11 }
   0x4   :  { %v413_v8 = vpack.c.bf16 %v109_v6, %v108_v5  ;;  %v92_v9 = vld [vmem:[%s716_s2 + $0x100] sm:$0xff]  ;;  %v93_v10 = vld [vmem:[%s716_s2 + $0x108] sm:$0xff]  ;;  %382 = vmatprep.subr.bf16.mxu0 %v381_v3  ;;  %v63_v15 = vld [vmem:[%s716_s2 + $0x18] sm:$0xff] }
   0x5   :  { %v415_v12 = vpack.c.bf16 %v93_v10, %v92_v9  ;;  %384 = vmatpush3.bf16.msra.mxu0 %v383_v7  ;;  %v387_v17 = vpack.c.bf16 %v63_v15, %v62_v14  ;;  %v110_v18 = vld [vmem:[%s716_s2 + $0x190] sm:$0xff]  ;;  %v111_v19 = vld [vmem:[%s716_s2 + $0x198] sm:$0xff]  ;;  %v80_v23 = vld [vmem:[%s716_s2 + $0xa0] sm:$0xff]  ;;  %v26_v15 = vsub.s32 0, %v25_v1 }
   0x6   :  { %414 = vmatprep.subr.bf16.mxu1 %v413_v8  ;;  %v94_v20 = vld [vmem:[%s716_s2 + $0x110] sm:$0xff]  ;;  %v417_v21 = vpack.c.bf16 %v111_v19, %v110_v18  ;;  %v95_v22 = vld [vmem:[%s716_s2 + $0x118] sm:$0xff]  ;;  %v81_v24 = vld [vmem:[%s716_s2 + $0xa8] sm:$0xff]  ;;  %386 = vmatprep.subr.bf16.mxu0 %v385_v16  ;;  %v30_v16 = vsub.s32 1, %v25_v1  ;;  %v38_v18 = vsub.s32 3, %v25_v1 }
   0x7   :  { %416 = vmatpush3.bf16.msra.mxu1 %v415_v12  ;;  %v419_v25 = vpack.c.bf16 %v95_v22, %v94_v20  ;;  %v389_v26 = vpack.c.bf16 %v81_v24, %v80_v23  ;;  %v64_v27 = vld [vmem:[%s716_s2 + $0x20] sm:$0xff]  ;;  %v65_v28 = vld [vmem:[%s716_s2 + $0x28] sm:$0xff]  ;;  %v82_v35 = vld [vmem:[%s716_s2 + $0xb0] sm:$0xff]  ;;  %v44_v12 = vunpack.c.0.s8 %v43_v62 }
   0x8   :  { %v112_v29 = vld [vmem:[%s716_s2 + $0x1a0] sm:$0xff]  ;;  %418 = vmatprep.subr.bf16.mxu1 %v417_v21  ;;  %v113_v30 = vld [vmem:[%s716_s2 + $0x1a8] sm:$0xff]  ;;  %v391_v33 = vpack.c.bf16 %v65_v28, %v64_v27  ;;  %v83_v36 = vld [vmem:[%s716_s2 + $0xb8] sm:$0xff] }
   0x9   :  { %v96_v31 = vld [vmem:[%s716_s2 + $0x120] sm:$0xff]  ;;  %v97_v32 = vld [vmem:[%s716_s2 + $0x128] sm:$0xff]  ;;  %388 = vmatpush3.bf16.msra.mxu0 %v387_v17  ;;  %v421_v34 = vpack.c.bf16 %v113_v30, %v112_v29  ;;  %v66_v37 = vld [vmem:[%s716_s2 + $0x30] sm:$0xff]  ;;  %v393_v39 = vpack.c.bf16 %v83_v36, %v82_v35  ;;  %v34_v17 = vsub.s32 2, %v25_v1  ;;  %v47_v30 = vsub.s32 %v44_v12, %v25_v1 }
   0xa   :  { %390 = vmatprep.subr.bf16.mxu0 %v389_v26  ;;  %v423_v38 = vpack.c.bf16 %v97_v32, %v96_v31  ;;  %v67_v40 = vld [vmem:[%s716_s2 + $0x38] sm:$0xff]  ;;  %v114_v41 = vld [vmem:[%s716_s2 + $0x1b0] sm:$0xff]  ;;  %v84_v46 = vld [vmem:[%s716_s2 + $0xc0] sm:$0xff] }
   0xb   :  { %420 = vmatpush3.bf16.msra.mxu1 %v419_v25  ;;  %v115_v42 = vld [vmem:[%s716_s2 + $0x1b8] sm:$0xff]  ;;  %v98_v44 = vld [vmem:[%s716_s2 + $0x130] sm:$0xff]  ;;  %v85_v47 = vld [vmem:[%s716_s2 + $0xc8] sm:$0xff]  ;;  %v395_v49 = vpack.c.bf16 %v67_v40, %v66_v37 }
   0xc   :  { %422 = vmatprep.subr.bf16.mxu1 %v421_v34  ;;  %v425_v43 = vpack.c.bf16 %v115_v42, %v114_v41  ;;  %v99_v45 = vld [vmem:[%s716_s2 + $0x138] sm:$0xff]  ;;  %v116_v50 = vld [vmem:[%s716_s2 + $0x1c0] sm:$0xff]  ;;  %v117_v51 = vld [vmem:[%s716_s2 + $0x1c8] sm:$0xff]  ;;  %v397_v53 = vpack.c.bf16 %v85_v47, %v84_v46 }
   0xd   :  { %392 = vmatpush3.bf16.msra.mxu0 %v391_v33  ;;  %v427_v52 = vpack.c.bf16 %v99_v45, %v98_v44  ;;  %v68_v54 = vld [vmem:[%s716_s2 + $0x40] sm:$0xff]  ;;  %v69_v55 = vld [vmem:[%s716_s2 + $0x48] sm:$0xff]  ;;  %v429_v57 = vpack.c.bf16 %v117_v51, %v116_v50  ;;  %v86_v59 = vld [vmem:[%s716_s2 + $0xd0] sm:$0xff] }
   0xe   :  { %394 = vmatprep.subr.bf16.mxu0 %v393_v39  ;;  %v100_v56 = vld [vmem:[%s716_s2 + $0x140] sm:$0xff]  ;;  %v101_v58 = vld [vmem:[%s716_s2 + $0x148] sm:$0xff]  ;;  %v87_v60 = vld [vmem:[%s716_s2 + $0xd8] sm:$0xff]  ;;  %v399_v2 = vpack.c.bf16 %v69_v55, %v68_v54 }
   0xf   :  { %424 = vmatpush3.bf16.msra.mxu1 %v423_v38  ;;  %v118_v63 = vld [vmem:[%s716_s2 + $0x1d0] sm:$0xff]  ;;  %v119_v0 = vld [vmem:[%s716_s2 + $0x1d8] sm:$0xff]  ;;  %v431_v3 = vpack.c.bf16 %v101_v58, %v100_v56  ;;  %v401_v4 = vpack.c.bf16 %v87_v60, %v86_v59  ;;  %v88_v10 = vld [vmem:[%s716_s2 + $0xe0] sm:$0xff] }
  0x10   :  { %426 = vmatprep.subr.bf16.mxu1 %v425_v43  ;;  %v70_v5 = vld [vmem:[%s716_s2 + $0x50] sm:$0xff]  ;;  %v71_v6 = vld [vmem:[%s716_s2 + $0x58] sm:$0xff]  ;;  %v433_v8 = vpack.c.bf16 %v119_v0, %v118_v63  ;;  %v89_v11 = vld [vmem:[%s716_s2 + $0xe8] sm:$0xff] }
  0x11   :  { %396 = vmatpush3.bf16.msra.mxu0 %v395_v49  ;;  %v102_v7 = vld [vmem:[%s716_s2 + $0x150] sm:$0xff]  ;;  %v103_v9 = vld [vmem:[%s716_s2 + $0x158] sm:$0xff]  ;;  %v120_v13 = vld [vmem:[%s716_s2 + $0x1e0] sm:$0xff]  ;;  %v403_v19 = vpack.c.bf16 %v71_v6, %v70_v5  ;;  %v405_v23 = vpack.c.bf16 %v89_v11, %v88_v10 }
  0x12   :  { %398 = vmatprep.subr.bf16.mxu0 %v397_v53  ;;  %v121_v14 = vld [vmem:[%s716_s2 + $0x1e8] sm:$0xff]  ;;  %v72_v20 = vld [vmem:[%s716_s2 + $0x60] sm:$0xff]  ;;  %v435_v22 = vpack.c.bf16 %v103_v9, %v102_v7  ;;  %v90_v26 = vld [vmem:[%s716_s2 + $0xf0] sm:$0xff] }
  0x13   :  { %428 = vmatpush3.bf16.msra.mxu1 %v427_v52  ;;  %v73_v21 = vld [vmem:[%s716_s2 + $0x68] sm:$0xff]  ;;  %v104_v24 = vld [vmem:[%s716_s2 + $0x160] sm:$0xff]  ;;  %v437_v27 = vpack.c.bf16 %v121_v14, %v120_v13  ;;  %v91_v28 = vld [vmem:[%s716_s2 + $0xf8] sm:$0xff] }
  0x14   :  { %430 = vmatprep.subr.bf16.mxu1 %v429_v57  ;;  %v105_v25 = vld [vmem:[%s716_s2 + $0x168] sm:$0xff]  ;;  %v22_v29 = vld [vmem:[%s715_s1] sm:$0xf] }
  0x15   :  { %400 = vmatpush3.bf16.msra.mxu0 %v399_v2 }
  0x16   :  { %402 = vmatprep.subr.bf16.mxu0 %v401_v4 }
  0x17   :  { %432 = vmatpush3.bf16.msra.mxu1 %v431_v3 }
  0x18   :  { %434 = vmatprep.subr.bf16.mxu1 %v433_v8 }
  0x19   :  { %9 = vsyncpa [#allocation3], 0  ;;  %v122_v31 = vld [vmem:[%s716_s2 + $0x1f0] sm:$0xff]  ;;  %v123_v32 = vld [vmem:[%s716_s2 + $0x1f8] sm:$0xff]  ;;  %v27_v33 = vrot.slane %v22_v29, %v26_v15  ;;  %v31_v34 = vrot.slane %v22_v29, %v30_v16  ;;  %v35_v35 = vrot.slane %v22_v29, %v34_v17  ;;  %v39_v36 = vrot.slane %v22_v29, %v38_v18  ;;  %404 = vmatpush3.bf16.msra.mxu0 %v403_v19  ;;  %s472_s18 = smov [#allocation2]  }
  0x1a   :  { %v407_v37 = vpack.c.bf16 %v73_v21, %v72_v20  ;;  %v439_v38 = vpack.c.bf16 %v105_v25, %v104_v24  ;;  %v18_v39 = vld [vmem:[%s714_s0] sm:$0xff]  ;;  %v309_v40 = vld [vmem:[%s714_s0 + $0x8] sm:$0xff]  ;;  %406 = vmatprep.subr.bf16.mxu0 %v405_v23  ;;  %v409_v41 = vpack.c.bf16 %v91_v28, %v90_v26  ;;  %v74_v42 = vld [vmem:[%s716_s2 + $0x70] sm:$0xff]  ;;  %v441_v46 = vpack.c.bf16 %v123_v32, %v122_v31  ;;  %s301_s19 = sshll.u32 %s472_s18, 4  ;;  %s302_s19 = int_to_ptr.vmem [resolvable:$true] %s301_s19 }
  0x1b   :  { %436 = vmatpush3.bf16.msra.mxu1 %v435_v22  ;;  %v75_v43 = vld [vmem:[%s716_s2 + $0x78] sm:$0xff]  ;;  %v40_v44 = vcombine.low %v27_v33, %v31_v34  ;;  %v41_v45 = vcombine.low %v35_v35, %v39_v36  ;;  %v106_v47 = vld [vmem:[%s716_s2 + $0x170] sm:$0xff]  ;;  %v21_v49 = vadd.f32 %v309_v40, %v18_v39  ;;  %v310_v63 = vld [vmem:[%s717_s3] ss:$0 sm:$0xff]  ;;  %vm293_vm0 = vcmask 427008   ;;  %s447_s20 = scalar_lea.vmem %s302_s19, 32  ;;  %p452_p1 = scmp.lt.s32.totalorder %s302_s19, %s302_s19 }
  0x1c   :  { %438 = vmatprep.subr.bf16.mxu1 %v437_v27  ;;  %v107_v48 = vld [vmem:[%s716_s2 + $0x178] sm:$0xff]  ;;  %v411_v52 = vpack.c.bf16 %v75_v43, %v74_v42  ;;  %p448_p0 = scmp.ne.s32.totalorder %s302_s19, %s447_s20  ;;  %p453_p2 = scmp.lt.s32.totalorder %s447_s20, %s447_s20 }
  0x1d   :  { %v48_v50 = vrot.slane %v40_v44, %v47_v30  ;;  %v55_v51 = vrot.slane %v41_v45, %v47_v30  ;;  %408 = vmatpush3.bf16.msra.mxu0 %v407_v37  ;;  %v443_v53 = vpack.c.bf16 %v107_v48, %v106_v47 }
  0x1e   :  { %410 = vmatprep.subr.bf16.mxu0 %v409_v41  ;;  %p454_p3 = por %p453_p2, %p452_p1 }
  0x1f   :  { %440 = vmatpush3.bf16.msra.mxu1 %v439_v38  ;;  %v56_v54 = vcombine.low %v48_v50, %v55_v51 }
  0x20   :  { %442 = vmatprep.subr.bf16.mxu1 %v441_v46  ;;  %p455_p4 = pnand %p454_p3, %p448_p0 }
  0x21   :  { %v58_v55 = vadd.f32 %v56_v54, %v21_v49  ;;  %412 = vmatpush3.bf16.msra.mxu0 %v411_v52 }
  0x23   :  { %444 = vmatpush3.bf16.msra.mxu1 %v443_v53  ;;  %v59_v56 = vmax.f32 %v58_v55, 0.0 }
  0x25   :  { %v139_v57 = vrot.slane %v59_v56, %v47_v30  ;;  %v132_v58 = vcombine.high %v59_v56, %v59_v56 }
  0x27   :  { %v147_v59 = vcombine.high %v139_v57, %v139_v57  ;;  %v146_v60 = vrot.slane %v132_v58, %v47_v30 }
  0x29   :  { %217 = vmatprep.mubr.f32.mxu0 %v147_v59  ;;  %v148_v61 = vcombine.high %v146_v60, %v146_v60 }
  0x2a   :  { %218 = vmatmul.mubr.f32.vlgmr.msra.gmra.mrb[0].mxu0 %v139_v57 }
  0x2b   :  { %287 = vmatprep.mubr.f32.mxu1 %v148_v61 }
  0x2c   :  { %288 = vmatmul.mubr.f32.vlgmr.msra.gmra.mrb[0].mxu1 %v146_v60 }
  0xfd   :  { %v343_v62 = vpop.f32.mrb[0].mxu0 }
  0xfe   :  { %v344_v0 = vpop.f32.mrb[1].mxu0 }
  0xff   :  { %v345_v1 = vadd.f32 %v344_v0, %v343_v62  ;;  %v378_v2 = vpop.f32.mrb[0].mxu1 }
 0x100   :  { %v379_v3 = vpop.f32.mrb[1].mxu1 }
 0x101   :  { %v220_v4 = vadd.f32 %v345_v1, %v310_v63  ;;  %v380_v5 = vadd.f32 %v379_v3, %v378_v2 }
 0x103   :  { %v290_v6 = vadd.f32 %v380_v5, %v220_v4 }
 0x105   :  { %294 = vst.msk [vmem:[#allocation2] sm:$0x3] %vm293_vm0, %v290_v6 }
 0x106   :  { %458 = shalt.err (!%p455_p4)
}
 0x107   :  { %s459_s22 = scalar_lea.hbm %s718_s4, 32 }
 0x108   :  { %p460_p5 = scmp.ne.s32.totalorder %s718_s4, %s459_s22  ;;  %p463_p6 = scmp.lt.u32.totalorder %s459_s22, %s718_s4 }
 0x10a   :  { %p465_p7 = pnand %p463_p6, %p460_p5 }
 0x10c   :  { %468 = shalt.err (!%p465_p7)
}
 0x10d   :  { %304 = dma.vmem_to_hbm [thread:$0]  %s302_s19, 32, %s718_s4, [#allocation3]  }
 0x10e   :  { %469 = dma.done.wait [#allocation3], 32  }
 0x10f   :  { %470 = vsyncadd [#allocation3], 4294967264 }
 0x110   :  { %308 = vsyncpa [#allocation3], 1 }

// kernel: multi_stream_bio_cnn.2
= control target key start
LH: loop header
LB: loop body
LE: loop exit
PB: predicated region body
PF: predicated region fallthrough
CT: control target
= control target key end

     0   :  { %s10129_s6 = smov 1   ;;  %s10130_s10 = smov 2   ;;  %s11920_s0 = inlined_call_operand.smem [shape: u32[43], index: -1, kind: input, shape index: {}] }
   0x1   :  { %s10212_s5 = sld [smem:[%s11920_s0]]   ;;  %s10131_s14 = smov 3  }
   0x2   :  { %s10217_s9 = sld [smem:[%s11920_s0 + %s10129_s6]]   ;;  %s10132_s18 = smov 4  }
   0x3   :  { %s10222_s13 = sld [smem:[%s11920_s0 + %s10130_s10]]   ;;  %s10133_s22 = smov 5  }
   0x4   :  { %s10227_s17 = sld [smem:[%s11920_s0 + %s10131_s14]]   ;;  %s10134_s26 = smov 6  }
   0x5   :  { %s10232_s21 = sld [smem:[%s11920_s0 + %s10132_s18]]   ;;  %s10135_s30 = smov 7  }
   0x6   :  { %s10237_s25 = sld [smem:[%s11920_s0 + %s10133_s22]]   ;;  %s10136_s4 = smov 8  }
   0x7   :  { %11981 = sst [smem:[#allocation57_spill]] %s10212_s5  ;;  %s10137_s10 = smov 9  }
   0x8   :  { %11982 = sst [smem:[#allocation58_spill]] %s10217_s9  ;;  %s10138_s15 = smov 10  }
   0x9   :  { %11983 = sst [smem:[#allocation59_spill]] %s10222_s13  ;;  %s10139_s20 = smov 11  }
   0xa   :  { %11984 = sst [smem:[#allocation60_spill]] %s10227_s17  ;;  %s10141_s1 = smov 13  }
   0xb   :  { %11985 = sst [smem:[#allocation61_spill]] %s10232_s21  ;;  %s10142_s7 = smov 14  }
   0xc   :  { %11986 = sst [smem:[#allocation62_spill]] %s10237_s25  ;;  %s10144_s22 = smov 16  }
   0xd   :  { %s10242_s29 = sld [smem:[%s11920_s0 + %s10134_s26]]   ;;  %s10140_s26 = smov 12  }
   0xe   :  { %s10247_s3 = sld [smem:[%s11920_s0 + %s10135_s30]]   ;;  %s10145_s28 = smov 17  }
   0xf   :  { %s10252_s8 = sld [smem:[%s11920_s0 + %s10136_s4]]  }
  0x10   :  { %s10257_s14 = sld [smem:[%s11920_s0 + %s10137_s10]]  }
  0x11   :  { %s10262_s19 = sld [smem:[%s11920_s0 + %s10138_s15]]   ;;  %s10143_s15 = smov 15  }
  0x12   :  { %s10267_s24 = sld [smem:[%s11920_s0 + %s10139_s20]]  }
  0x13   :  { %11987 = sst [smem:[#allocation63_spill]] %s10242_s29 }
  0x14   :  { %11988 = sst [smem:[#allocation64_spill]] %s10247_s3 }
  0x15   :  { %11989 = sst [smem:[#allocation65_spill]] %s10252_s8 }
  0x16   :  { %11990 = sst [smem:[#allocation66_spill]] %s10257_s14 }
  0x17   :  { %11991 = sst [smem:[#allocation67_spill]] %s10262_s19 }
  0x18   :  { %11992 = sst [smem:[#allocation68_spill]] %s10267_s24 }
  0x19   :  { %s10272_s30 = sld [smem:[%s11920_s0 + %s10140_s26]]  }
  0x1a   :  { %s10277_s6 = sld [smem:[%s11920_s0 + %s10141_s1]]  }
  0x1b   :  { %s10282_s12 = sld [smem:[%s11920_s0 + %s10142_s7]]   ;;  %s10146_s7 = smov 18  }
  0x1c   :  { %s10287_s20 = sld [smem:[%s11920_s0 + %s10143_s15]]   ;;  %s10147_s15 = smov 19  }
  0x1d   :  { %s10292_s27 = sld [smem:[%s11920_s0 + %s10144_s22]]   ;;  %s10148_s22 = smov 20  }
  0x1e   :  { %s10297_s4 = sld [smem:[%s11920_s0 + %s10145_s28]]   ;;  %s10149_s28 = smov 21  }
  0x1f   :  { %s10312_s25 = sld [smem:[%s11920_s0 + %s10148_s22]]   ;;  %s10152_s22 = smov 24  }
  0x20   :  { %11993 = sst [smem:[#allocation69_spill]] %s10277_s6 }
  0x21   :  { %11994 = sst [smem:[#allocation70_spill]] %s10282_s12 }
  0x22   :  { %11995 = sst [smem:[#allocation71_spill]] %s10287_s20 }
  0x23   :  { %11996 = sst [smem:[#allocation72_spill]] %s10292_s27 }
  0x24   :  { %11997 = sst [smem:[#allocation73_spill]] %s10297_s4 }
  0x25   :  { %s10302_s12 = sld [smem:[%s11920_s0 + %s10146_s7]]   ;;  %s10150_s7 = smov 22  }
  0x26   :  { %s10307_s6 = sld [smem:[%s11920_s0 + %s10147_s15]]   ;;  %s10151_s15 = smov 23  }
  0x27   :  { %12000 = sst [smem:[#allocation76_spill]] %s10312_s25 }
  0x28   :  { %s10317_s3 = sld [smem:[%s11920_s0 + %s10149_s28]]   ;;  %s10153_s28 = smov 25  }
  0x29   :  { %s10322_s5 = sld [smem:[%s11920_s0 + %s10150_s7]]   ;;  %s10154_s7 = smov 26  }
  0x2a   :  { %s10332_s27 = sld [smem:[%s11920_s0 + %s10152_s22]]   ;;  %s10156_s22 = smov 28  }
  0x2b   :  { %11998 = sst [smem:[#allocation74_spill]] %s10302_s12 }
  0x2c   :  { %11999 = sst [smem:[#allocation75_spill]] %s10307_s6 }
  0x2d   :  { %s10327_s6 = sld [smem:[%s11920_s0 + %s10151_s15]]   ;;  %s10155_s15 = smov 27  }
  0x2e   :  { %12001 = sst [smem:[#allocation77_spill]] %s10317_s3 }
  0x2f   :  { %12002 = sst [smem:[#allocation78_spill]] %s10322_s5 }
  0x30   :  { %s10337_s3 = sld [smem:[%s11920_s0 + %s10153_s28]]   ;;  %s10157_s28 = smov 29  }
  0x31   :  { %s10342_s5 = sld [smem:[%s11920_s0 + %s10154_s7]]   ;;  %s10158_s7 = smov 30  }
  0x32   :  { %s10347_s12 = sld [smem:[%s11920_s0 + %s10155_s15]]   ;;  %s10159_s15 = smov 31  }
  0x33   :  { %12003 = sst [smem:[#allocation79_spill]] %s10327_s6 }
  0x34   :  { %s10352_s19 = sld [smem:[%s11920_s0 + %s10156_s22]]   ;;  %s10160_s22 = smov 32  }
  0x36   :  { %12004 = sst [smem:[#allocation80_spill]] %s10337_s3 }
  0x37   :  { %12005 = sst [smem:[#allocation81_spill]] %s10342_s5 }
  0x38   :  { %12006 = sst [smem:[#allocation82_spill]] %s10347_s12 }
  0x39   :  { %s10357_s3 = sld [smem:[%s11920_s0 + %s10157_s28]]   ;;  %s10161_s28 = smov 33  }
  0x3a   :  { %12007 = sst [smem:[#allocation83_spill]] %s10352_s19 }
  0x3b   :  { %s10362_s5 = sld [smem:[%s11920_s0 + %s10158_s7]]   ;;  %s10162_s7 = smov 34  }
  0x3c   :  { %s10367_s12 = sld [smem:[%s11920_s0 + %s10159_s15]]   ;;  %s10163_s15 = smov 35  }
  0x3d   :  { %s10372_s19 = sld [smem:[%s11920_s0 + %s10160_s22]]   ;;  %s10164_s22 = smov 36  }
  0x3f   :  { %12008 = sst [smem:[#allocation84_spill]] %s10357_s3 }
  0x40   :  { %s10377_s3 = sld [smem:[%s11920_s0 + %s10161_s28]]   ;;  %s10165_s28 = smov 37  }
  0x41   :  { %12009 = sst [smem:[#allocation85_spill]] %s10362_s5 }
  0x42   :  { %12010 = sst [smem:[#allocation86_spill]] %s10367_s12 }
  0x43   :  { %12011 = sst [smem:[#allocation87_spill]] %s10372_s19 }
  0x44   :  { %s10382_s5 = sld [smem:[%s11920_s0 + %s10162_s7]]   ;;  %s10166_s7 = smov 38  }
  0x45   :  { %s10387_s12 = sld [smem:[%s11920_s0 + %s10163_s15]]   ;;  %s10167_s15 = smov 39  }
  0x46   :  { %12012 = sst [smem:[#allocation88_spill]] %s10377_s3 }
  0x47   :  { %s10392_s19 = sld [smem:[%s11920_s0 + %s10164_s22]]   ;;  %s10168_s22 = smov 40  }
  0x48   :  { %s10397_s3 = sld [smem:[%s11920_s0 + %s10165_s28]]   ;;  %s10169_s28 = smov 41  }
  0x4a   :  { %12013 = sst [smem:[#allocation89_spill]] %s10382_s5 }
  0x4b   :  { %12014 = sst [smem:[#allocation90_spill]] %s10387_s12 }
  0x4c   :  { %s10402_s5 = sld [smem:[%s11920_s0 + %s10166_s7]]   ;;  %s10170_s7 = smov 42  }
  0x4d   :  { %12015 = sst [smem:[#allocation91_spill]] %s10392_s19 }
  0x4e   :  { %12016 = sst [smem:[#allocation92_spill]] %s10397_s3 }
  0x4f   :  { %s10407_s12 = sld [smem:[%s11920_s0 + %s10167_s15]]  }
  0x50   :  { %s10412_s19 = sld [smem:[%s11920_s0 + %s10168_s22]]  }
  0x51   :  { %s10417_s3 = sld [smem:[%s11920_s0 + %s10169_s28]]  }
  0x52   :  { %12017 = sst [smem:[#allocation93_spill]] %s10402_s5 }
  0x53   :  { %s10422_s5 = sld [smem:[%s11920_s0 + %s10170_s7]]  }
  0x57   :  { %12018 = sst [smem:[#allocation94_spill]] %s10417_s3 }
  0x59   :  { %12019 = sst [smem:[#allocation95_spill]] %s10422_s5 }
  0x5a   :  { %90 = vsyncpa [#allocation3], 0 }
  0x5b   :  { %92 = vsyncpa [#allocation3 + $0x1], 0 }
  0x5c   :  { %93 = vsyncpa [#allocation5], 0 }
  0x5d   :  { %95 = vsyncpa [#allocation5 + $0x1], 0 }
  0x5e   :  { %96 = vsyncpa [#allocation8], 0 }
  0x5f   :  { %97 = vsyncpa [#allocation11], 0 }
  0x60   :  { %98 = vsyncpa [#allocation17], 0 }
  0x61   :  { %99 = vsyncpa [#allocation20], 0 }
  0x62   :  { %101 = vsyncpa [#allocation20 + $0x1], 0 }
  0x63   :  { %102 = vsyncpa [#allocation23], 0 }
  0x64   :  { %103 = vsyncpa [#allocation26], 0 }
  0x65   :  { %104 = vsyncpa [#allocation35], 0 }
  0x66   :  { %106 = vsyncpa [#allocation35 + $0x1], 0  ;;  %s10424_s15 = smov 0   ;;  %s10426_s16 = smov 0  }
  0x67   :  { %s10428_s18 = smov 0   ;;  %s10430_s0 = smov 0  }
  0x68 LB: > { %s12020_s14 = sld [smem:[#allocation66_spill]]  ;;  %s12021_s24 = sld [smem:[#allocation68_spill]]  ;;  %s10127_s0 = sphi %s10430_s0, %s12121_s0   ;;  %s10123_s18 = sphi %s10428_s18, %s12124_s18   ;;  %s10119_s16 = sphi %s10426_s16, %s12123_s16   ;;  %s10115_s15 = sphi %s10424_s15, %s12122_s15  }
  0x69   : > { %s12022_s20 = sld [smem:[#allocation71_spill]]  ;;  %s12024_s4 = sld [smem:[#allocation73_spill]] }
  0x6a   : > { %s12023_s6 = sld [smem:[#allocation79_spill]]  ;;  %s12025_s13 = sld [smem:[#allocation59_spill]] }
  0x6b   : > { %s12026_s9 = sld [smem:[#allocation58_spill]]  ;;  %s12027_s29 = sld [smem:[#allocation63_spill]] }
  0x6c   : > { %s12028_s25 = sld [smem:[#allocation76_spill]]  ;;  %s12029_s8 = sld [smem:[#allocation65_spill]] }
  0x6d   : > { %s12030_s21 = sld [smem:[#allocation61_spill]]  ;;  %s12031_s17 = sld [smem:[#allocation60_spill]] }
  0x6e   : > { %12032 = sst [smem:[#allocation96_spill]] %s10119_s16  ;;  %s10171_s22 = smov [#allocation6]  }
  0x6f   : > { %12033 = sst [smem:[#allocation97_spill]] %s10123_s18  ;;  %s1097_s23 = sshll.u32 %s10171_s22, 4  ;;  %s10450_s23 = int_to_ptr.vmem [resolvable:$true] %s1097_s23 }
  0x70   : > { %s10445_s26 = sadd.s32 4294967295, %s10127_s0   ;;  %p7240_p0 = scmp.ge.s32.totalorder %s10127_s0, 1 }
  0x71   : > { %12034 = sst [smem:[#allocation98_spill]] %s10445_s26  ;;  %p11934_p1 = scmp.eq.s32.totalorder %s10445_s26, 0 }
  0x72   : > { %p1085_p2 = scmp.lt.s32.totalorder %s10127_s0, 3  ;;  %s10172_s1 = smov [#allocation7]  }
  0x73   : > { %s1110_s2 = sshll.u32 %s10172_s1, 4  ;;  %s10173_s10 = smov [#allocation9]   ;;  %s10464_s2 = int_to_ptr.vmem [resolvable:$true] %s1110_s2 }
  0x74   : > { %p10452_p3 = pnand %p7240_p0, %p1085_p2  ;;  %s1126_s11 = sshll.u32 %s10173_s10, 4  ;;  %s10466_s11 = int_to_ptr.vmem [resolvable:$true] %s1126_s11 }
  0x75   : > { %s9293_s22 = scalar_lea.hbm %s12031_s17, 1024 }
  0x76   : > { %s12035_s28 = scalar_select %p10452_p3, 1, 0 }
  0x77   : > { %p9088_p4 = pneg %p10452_p3  ;;  %p9294_p6 = scmp.ne.s32.totalorder %s12031_s17, %s9293_s22 }
  0x78   : > { %12036 = sst [smem:[#allocation99_spill]] %s12035_s28  ;;  %p9300_p10 = scmp.lt.u32.totalorder %s9293_s22, %s12031_s17 }
  0x79   : > { %p10460_p5 = pnand %p9088_p4, %p11934_p1 }
  0x7b   : > { %s12037_s7 = scalar_select %p10460_p5, 1, 0 }
  0x7c   : > { %p10472_p7 = pneg %p10460_p5 }
  0x7e   : > { %s12038_s5 = scalar_select %p10472_p7, 1, 0 }
  0x7f   : > { %p9296_p8 = pnand %p10472_p7, %p9294_p6 }
  0x81   : > { %p9297_p9 = pneg %p9296_p8 }
  0x83   : > { %p9302_p11 = pnand %p9300_p10, %p9297_p9 }
  0x85   : > { %9305 = shalt.err (!%p9302_p11)
}
  0x86   : > { %s9306_s1 = scalar_lea.vmem %s10450_s23, 1024  ;;  %p9314_p2 = scmp.lt.s32.totalorder %s10450_s23, %s10450_s23 }
  0x87   : > { %p9307_p12 = scmp.ne.s32.totalorder %s10450_s23, %s9306_s1  ;;  %p9315_p4 = scmp.lt.s32.totalorder %s9306_s1, %s9306_s1 }
  0x89   : > { %p9309_p13 = pnand %p9307_p12, %p10472_p7  ;;  %p9316_p1 = por %p9315_p4, %p9314_p2 }
  0x8b   : > { %p9310_p0 = pneg %p9309_p13 }
  0x8d   : > { %p9317_p3 = pnand %p9316_p1, %p9310_p0 }
  0x8f   : > { %9320 = shalt.err (!%p9317_p3)
}
  0x90   : > { %s11939_s10 = smov 128   ;;  %s11941_s22 = smov 8  }
  0x91   : > { %9091 = dma.hbm_to_vmem [thread:$0]  (!%p10460_p5), %s12031_s17, 1024, %s10450_s23, [#allocation5], %s11939_s10, %s11939_s10, %s11941_s22  }
  0x92   : > { %s9321_s28 = scalar_lea.hbm %s12030_s21, 1024 }
  0x93   : > { %p9322_p6 = scmp.ne.s32.totalorder %s12030_s21, %s9321_s28  ;;  %p9328_p3 = scmp.lt.u32.totalorder %s9321_s28, %s12030_s21 }
  0x95   : > { %p9324_p8 = pnand %p9322_p6, %p10472_p7 }
  0x97   : > { %p9325_p1 = pneg %p9324_p8 }
  0x99   : > { %p9330_p9 = pnand %p9328_p3, %p9325_p1 }
  0x9b   : > { %9333 = shalt.err (!%p9330_p9)
}
  0x9c   : > { %s9334_s1 = scalar_lea.vmem %s10464_s2, 1024  ;;  %p9342_p13 = scmp.lt.s32.totalorder %s10464_s2, %s10464_s2 }
  0x9d   : > { %p9335_p10 = scmp.ne.s32.totalorder %s10464_s2, %s9334_s1  ;;  %p9343_p0 = scmp.lt.s32.totalorder %s9334_s1, %s9334_s1 }
  0x9f   : > { %p9337_p11 = pnand %p9335_p10, %p10472_p7  ;;  %p9344_p2 = por %p9343_p0, %p9342_p13 }
  0xa1   : > { %p9338_p12 = pneg %p9337_p11 }
  0xa3   : > { %p9345_p4 = pnand %p9344_p2, %p9338_p12 }
  0xa5   : > { %9348 = shalt.err (!%p9345_p4)
}
  0xa6   : > { %9094 = dma.hbm_to_vmem [thread:$0]  (!%p10460_p5), %s12030_s21, 1024, %s10464_s2, [#allocation8], %s11939_s10, %s11939_s10, %s11941_s22  }
  0xa7   : > { %s9349_s23 = scalar_lea.hbm %s12027_s29, 512 }
  0xa8   : > { %p9350_p6 = scmp.ne.s32.totalorder %s12027_s29, %s9349_s23  ;;  %p9356_p3 = scmp.lt.u32.totalorder %s9349_s23, %s12027_s29 }
  0xaa   : > { %p9352_p8 = pnand %p9350_p6, %p10472_p7 }
  0xac   : > { %p9353_p1 = pneg %p9352_p8 }
  0xae   : > { %p9358_p9 = pnand %p9356_p3, %p9353_p1 }
  0xb0   : > { %9361 = shalt.err (!%p9358_p9)
}
  0xb1   : > { %s9362_s28 = scalar_lea.vmem %s10466_s11, 512  ;;  %p9370_p13 = scmp.lt.s32.totalorder %s10466_s11, %s10466_s11 }
  0xb2   : > { %p9363_p10 = scmp.ne.s32.totalorder %s10466_s11, %s9362_s28  ;;  %p9371_p0 = scmp.lt.s32.totalorder %s9362_s28, %s9362_s28 }
  0xb4   : > { %p9365_p11 = pnand %p9363_p10, %p10472_p7  ;;  %p9372_p2 = por %p9371_p0, %p9370_p13 }
  0xb6   : > { %p9366_p12 = pneg %p9365_p11 }
  0xb8   : > { %p9373_p4 = pnand %p9372_p2, %p9366_p12 }
  0xba   : > { %9376 = shalt.err (!%p9373_p4)
}
  0xbb   : > { %9097 = dma.hbm_to_vmem [thread:$0]  (!%p10460_p5), %s12027_s29, 512, %s10466_s11, [#allocation8], %s11939_s10, %s11939_s10, %s11941_s22  }
  0xbc   : > { %s10176_s2 = smov [#allocation10]   ;;  %s10177_s23 = smov [#allocation22]  }
  0xbd   : > { %s1142_s1 = sshll.u32 %s10176_s2, 4  ;;  %s1216_s28 = sshll.u32 %s10177_s23, 4  ;;  %s1143_s1 = int_to_ptr.vmem [resolvable:$true] %s1142_s1  ;;  %s1217_s28 = int_to_ptr.vmem [resolvable:$true] %s1216_s28 }
  0xbe   : > { %s9377_s17 = scalar_lea.hbm %s12029_s8, 4096 }
  0xbf   : > { %p9378_p6 = scmp.ne.s32.totalorder %s12029_s8, %s9377_s17  ;;  %p9384_p3 = scmp.lt.u32.totalorder %s9377_s17, %s12029_s8 }
  0xc1   : > { %p9380_p8 = pnand %p9378_p6, %p10472_p7 }
  0xc3   : > { %p9381_p1 = pneg %p9380_p8 }
  0xc5   : > { %p9386_p9 = pnand %p9384_p3, %p9381_p1 }
  0xc7   : > { %9389 = shalt.err (!%p9386_p9)
}
  0xc8   : > { %s9390_s21 = scalar_lea.vmem %s1143_s1, 4096  ;;  %p9398_p13 = scmp.lt.s32.totalorder %s1143_s1, %s1143_s1 }
  0xc9   : > { %p9391_p10 = scmp.ne.s32.totalorder %s1143_s1, %s9390_s21  ;;  %p9399_p0 = scmp.lt.s32.totalorder %s9390_s21, %s9390_s21 }
  0xcb   : > { %p9393_p11 = pnand %p9391_p10, %p10472_p7  ;;  %p9400_p2 = por %p9399_p0, %p9398_p13 }
  0xcd   : > { %p9394_p12 = pneg %p9393_p11 }
  0xcf   : > { %p9401_p4 = pnand %p9400_p2, %p9394_p12 }
  0xd1   : > { %9404 = shalt.err (!%p9401_p4)
}
  0xd2   : > { %9100 = dma.hbm_to_vmem [thread:$0]  (!%p10460_p5), %s12029_s8, 4096, %s1143_s1, [#allocation11], %s11939_s10, %s11939_s10, %s11941_s22  }
  0xd3   : > { %s9405_s17 = scalar_lea.hbm %s12028_s25, 256 }
  0xd4   : > { %p9406_p6 = scmp.ne.s32.totalorder %s12028_s25, %s9405_s17  ;;  %p9412_p3 = scmp.lt.u32.totalorder %s9405_s17, %s12028_s25 }
  0xd6   : > { %p9408_p8 = pnand %p9406_p6, %p10472_p7 }
  0xd8   : > { %p9409_p1 = pneg %p9408_p8 }
  0xda   : > { %p9414_p9 = pnand %p9412_p3, %p9409_p1 }
  0xdc   : > { %9417 = shalt.err (!%p9414_p9)
}
  0xdd   : > { %s9418_s21 = scalar_lea.vmem %s1217_s28, 256  ;;  %p9426_p13 = scmp.lt.s32.totalorder %s1217_s28, %s1217_s28 }
  0xde   : > { %p9419_p10 = scmp.ne.s32.totalorder %s1217_s28, %s9418_s21  ;;  %p9427_p0 = scmp.lt.s32.totalorder %s9418_s21, %s9418_s21 }
  0xe0   : > { %p9421_p11 = pnand %p9419_p10, %p10472_p7  ;;  %p9428_p2 = por %p9427_p0, %p9426_p13 }
  0xe2   : > { %p9422_p12 = pneg %p9421_p11 }
  0xe4   : > { %p9429_p4 = pnand %p9428_p2, %p9422_p12 }
  0xe6   : > { %9432 = shalt.err (!%p9429_p4)
}
  0xe7   : > { %9115 = dma.hbm_to_vmem [thread:$0]  (!%p10460_p5), %s12028_s25, 256, %s1217_s28, [#allocation23], %s11939_s10, %s11939_s10, %s11941_s22  }
  0xe8   : > { %s10555_s11 = sadd.s32 1, %s10127_s0   ;;  %s145_s1 = sadd.s32 1, %s10123_s18 }
  0xe9   : > { %12039 = sst [smem:[#allocation100_spill]] %s10555_s11  ;;  %s142_s2 = ssub.s32 %s10127_s0, %s10555_s11 }
  0xea   : > { %p143_p6 = scmp.eq.s32.totalorder %s142_s2, 0  ;;  %p152_p8 = scmp.ne.s32.totalorder %s10123_s18, %s10119_s16 }
  0xeb   : > { %p153_p1 = scmp.eq.s32.totalorder %s10127_s0, 0  ;;  %p158_p3 = scmp.ne.s32.totalorder %s10119_s16, %s10115_s15 }
  0xec   : > { %s10566_s23 = scalar_select %p143_p6, %s10123_s18, %s145_s1  }
  0xed   : > { %p154_p9 = por %p153_p1, %p152_p8  ;;  %p12041_p10 = scmp.eq.s32.totalorder %s10445_s26, 0 }
  0xee   : > { %12040 = sst [smem:[#allocation101_spill]] %s10566_s23  ;;  %p9180_p12 = scmp.lt.s32.totalorder %s10127_s0, 2 }
  0xef   : > { %p10570_p11 = por %p12041_p10, %p158_p3  ;;  %s10576_s28 = sand.u32 1, %s10127_s0  }
  0xf0   : > { %s10579_s21 = sand.u32 1, %s10123_s18   ;;  %p10582_p13 = pnand %p9180_p12, %p154_p9 }
  0xf1   : > { %s12042_s17 = scalar_select %p10570_p11, 1, 0 }
  0xf2   : > { %s8996_s2 = smul.u32 192, %s10579_s21  ;;  %s10593_s25 = scalar_lea.sflag [#allocation3], %s10576_s28 }
  0xf3   : > { %12043 = sst [smem:[#allocation102_spill]] %s12042_s17  ;;  %s8997_s1 = smul.u32 3072, %s10127_s0 }
  0xf4   : > { %s12044_s15 = scalar_select %p10582_p13, 1, 0 }
  0xf5   : > { %s10588_s10 = scalar_lea.hbm %s12026_s9, %s8997_s1  ;;  %s1350_s22 = scalar_lea.vmem [#allocation2], %s8996_s2 }
  0xf6   : > { %s1357_s8 = sshll.u32 %s1350_s22, 4  ;;  %s9433_s29 = scalar_lea.hbm %s10588_s10, 3072  ;;  %s10590_s8 = int_to_ptr.vmem [resolvable:$true] %s1357_s8 }
  0xf7   : > { %p9434_p0 = scmp.ne.s32.totalorder %s10588_s10, %s9433_s29  ;;  %p10599_p2 = pneg %p10582_p13 }
  0xf8   : > { %s9438_s1 = scalar_lea.hbm %s12026_s9, 6144  ;;  %p9439_p8 = scmp.lt.u32.totalorder %s10588_s10, %s12026_s9 }
  0xf9   : > { %s12045_s23 = scalar_select %p10599_p2, 1, 0 }
  0xfa   : > { %p9436_p4 = pnand %p10599_p2, %p9434_p0  ;;  %p9440_p1 = scmp.lt.u32.totalorder %s9438_s1, %s9433_s29 }
  0xfb   : > { %p9442_p9 = scmp.lt.u32.totalorder %s9433_s29, %s10588_s10 }
  0xfc   : > { %p9437_p6 = pneg %p9436_p4  ;;  %p9441_p3 = por %p9440_p1, %p9439_p8 }
  0xfe   : > { %p9443_p10 = por %p9442_p9, %p9441_p3 }
 0x100   : > { %p9444_p12 = pnand %p9443_p10, %p9437_p6 }
 0x102   : > { %9447 = shalt.err (!%p9444_p12)
}
 0x103   : > { %s9448_s22 = scalar_lea.vmem %s10590_s8, 3072  ;;  %s10178_s2 = smov [#allocation2]  }
 0x104   : > { %p9449_p11 = scmp.ne.s32.totalorder %s10590_s8, %s9448_s22  ;;  %s9453_s18 = sshll.u32 %s10178_s2, 4  ;;  %s9454_s18 = int_to_ptr.vmem [resolvable:$false] %s9453_s18 }
 0x105   : > { %s9455_s11 = scalar_lea.vmem %s9454_s18, 6144  ;;  %p9456_p0 = scmp.lt.s32.totalorder %s10590_s8, %s9454_s18 }
 0x106   : > { %p9451_p5 = pnand %p9449_p11, %p10599_p2  ;;  %p9457_p4 = scmp.lt.s32.totalorder %s9455_s11, %s9448_s22 }
 0x108   : > { %p9452_p7 = pneg %p9451_p5  ;;  %p9458_p8 = por %p9457_p4, %p9456_p0 }
 0x10a   : > { %p9459_p1 = pnand %p9458_p8, %p9452_p7 }
 0x10c   : > { %9462 = shalt.err (!%p9459_p1)
}
 0x10d   : > { %s11957_s29 = smov 256   ;;  %s11959_s1 = smov 16  }
 0x10e   : > { %9137 = dma.hbm_to_vmem [thread:$0]  (!%p10582_p13), %s10588_s10, 3072, %s10590_s8, %s10593_s25, %s11957_s29, %s11957_s29, %s11959_s1  }
 0x10f   : > { %s10623_s18 = sshll.u32 %s10127_s0, 4  ;;  %s1370_s11 = scalar_lea.vmem [#allocation4], %s10579_s21 }
 0x110   : > { %s1377_s22 = sshll.u32 %s1370_s11, 4  ;;  %s10628_s2 = scalar_lea.hbm %s12025_s13, %s10623_s18  ;;  %s1378_s22 = int_to_ptr.vmem [resolvable:$true] %s1377_s22 }
 0x111   : > { %s10631_s9 = scalar_lea.sflag [#allocation5], %s10576_s28  ;;  %s9463_s17 = scalar_lea.hbm %s10628_s2, 16 }
 0x112   : > { %p9464_p5 = scmp.ne.s32.totalorder %s10628_s2, %s9463_s17  ;;  %s9468_s8 = scalar_lea.hbm %s12025_s13, 32 }
 0x113   : > { %p9469_p6 = scmp.lt.u32.totalorder %s10628_s2, %s12025_s13  ;;  %p9470_p3 = scmp.lt.u32.totalorder %s9468_s8, %s9463_s17 }
 0x114   : > { %p9466_p7 = pnand %p9464_p5, %p10599_p2  ;;  %p9472_p10 = scmp.lt.u32.totalorder %s9463_s17, %s10628_s2 }
 0x115   : > { %p9471_p9 = por %p9470_p3, %p9469_p6 }
 0x116   : > { %p9467_p11 = pneg %p9466_p7 }
 0x117   : > { %p9473_p12 = por %p9472_p10, %p9471_p9 }
 0x119   : > { %p9474_p0 = pnand %p9473_p12, %p9467_p11 }
 0x11b   : > { %9477 = shalt.err (!%p9474_p0)
}
 0x11c   : > { %s9478_s10 = scalar_lea.vmem %s1378_s22, 16  ;;  %s10181_s11 = smov [#allocation4]  }
 0x11d   : > { %p9479_p4 = scmp.ne.s32.totalorder %s1378_s22, %s9478_s10  ;;  %s9483_s29 = sshll.u32 %s10181_s11, 4  ;;  %s9484_s29 = int_to_ptr.vmem [resolvable:$false] %s9483_s29 }
 0x11e   : > { %s9485_s1 = scalar_lea.vmem %s9484_s29, 32  ;;  %p9486_p5 = scmp.lt.s32.totalorder %s1378_s22, %s9484_s29 }
 0x11f   : > { %p9481_p8 = pnand %p9479_p4, %p10599_p2  ;;  %p9487_p7 = scmp.lt.s32.totalorder %s9485_s1, %s9478_s10 }
 0x121   : > { %p9482_p1 = pneg %p9481_p8  ;;  %p9488_p13 = por %p9487_p7, %p9486_p5 }
 0x123   : > { %p9489_p3 = pnand %p9488_p13, %p9482_p1 }
 0x125   : > { %9492 = shalt.err (!%p9489_p3)
}
 0x126   : > { %p12046_p6 = scmp.ne.s32.totalorder %s12044_s15, 0  ;;  %s10648_s17 = smul.u32 768, %s10579_s21 }
 0x127   : > { %s10651_s29 = smul.u32 12288, %s10127_s0  ;;  %s10182_s1 = smov [#allocation14]  }
 0x128   : > { %9140 = dma.hbm_to_vmem [thread:$0]  (!%p12046_p6), %s10628_s2, 16, %s1378_s22, %s10631_s9  }
 0x129   : > { %s1155_s8 = sshll.u32 %s10182_s1, 4  ;;  %s10655_s10 = scalar_lea.hbm %s12024_s4, %s10651_s29  ;;  %s10660_s8 = int_to_ptr.vmem [resolvable:$true] %s1155_s8 }
 0x12a   : > { %s1426_s11 = scalar_lea.vmem [#allocation19], %s10648_s17  ;;  %s10663_s22 = scalar_lea.sflag [#allocation20], %s10576_s28 }
 0x12b   : > { %s1433_s13 = sshll.u32 %s1426_s11, 4  ;;  %s9493_s2 = scalar_lea.hbm %s10655_s10, 12288  ;;  %s10658_s13 = int_to_ptr.vmem [resolvable:$true] %s1433_s13 }
 0x12c   : > { %p9494_p13 = scmp.ne.s32.totalorder %s10655_s10, %s9493_s2  ;;  %s9498_s1 = scalar_lea.hbm %s12024_s4, 24576 }
 0x12d   : > { %p9499_p10 = scmp.lt.u32.totalorder %s10655_s10, %s12024_s4  ;;  %p9500_p12 = scmp.lt.u32.totalorder %s9498_s1, %s9493_s2 }
 0x12e   : > { %p9496_p11 = pnand %p9494_p13, %p10599_p2  ;;  %p9502_p4 = scmp.lt.u32.totalorder %s9493_s2, %s10655_s10 }
 0x12f   : > { %p9501_p0 = por %p9500_p12, %p9499_p10 }
 0x130   : > { %p9497_p9 = pneg %p9496_p11 }
 0x131   : > { %p9503_p8 = por %p9502_p4, %p9501_p0 }
 0x133   : > { %p9504_p1 = pnand %p9503_p8, %p9497_p9 }
 0x135   : > { %9507 = shalt.err (!%p9504_p1)
}
 0x136   : > { %s9508_s11 = scalar_lea.vmem %s10658_s13, 12288  ;;  %s10183_s28 = smov [#allocation19]  }
 0x137   : > { %p9509_p5 = scmp.ne.s32.totalorder %s10658_s13, %s9508_s11  ;;  %s9513_s16 = sshll.u32 %s10183_s28, 4  ;;  %s9514_s16 = int_to_ptr.vmem [resolvable:$false] %s9513_s16 }
 0x138   : > { %s9515_s26 = scalar_lea.vmem %s9514_s16, 24576  ;;  %p9516_p13 = scmp.lt.s32.totalorder %s10658_s13, %s9514_s16 }
 0x139   : > { %p9511_p7 = pnand %p9509_p5, %p10599_p2  ;;  %p9517_p11 = scmp.lt.s32.totalorder %s9515_s26, %s9508_s11 }
 0x13b   : > { %p9512_p3 = pneg %p9511_p7  ;;  %p9518_p10 = por %p9517_p11, %p9516_p13 }
 0x13d   : > { %p9519_p12 = pnand %p9518_p10, %p9512_p3 }
 0x13f   : > { %9522 = shalt.err (!%p9519_p12)
}
 0x140   : > { %s12047_s2 = smov 16   ;;  %s12048_s1 = smov 256  }
 0x141   : > { %9149 = dma.hbm_to_vmem [thread:$0]  (!%p12046_p6), %s10655_s10, 12288, %s10658_s13, %s10663_s22, %s12048_s1, %s12048_s1, %s12047_s2  }
 0x142   : > { %s9523_s28 = scalar_lea.hbm %s12021_s24, 512  ;;  %p12049_p0 = scmp.ne.s32.totalorder %s12038_s5, 0 }
 0x143   : > { %p9524_p9 = scmp.ne.s32.totalorder %s12021_s24, %s9523_s28  ;;  %p9530_p1 = scmp.lt.u32.totalorder %s9523_s28, %s12021_s24 }
 0x145   : > { %p9526_p4 = pnand %p9524_p9, %p12049_p0 }
 0x147   : > { %p9527_p8 = pneg %p9526_p4 }
 0x149   : > { %p9532_p5 = pnand %p9530_p1, %p9527_p8 }
 0x14b   : > { %9535 = shalt.err (!%p9532_p5)
}
 0x14c   : > { %s9536_s16 = scalar_lea.vmem %s10660_s8, 512  ;;  %p9544_p11 = scmp.lt.s32.totalorder %s10660_s8, %s10660_s8 }
 0x14d   : > { %p9537_p7 = scmp.ne.s32.totalorder %s10660_s8, %s9536_s16  ;;  %p9545_p10 = scmp.lt.s32.totalorder %s9536_s16, %s9536_s16 }
 0x14f   : > { %p9539_p3 = pnand %p9537_p7, %p12049_p0  ;;  %p9546_p12 = por %p9545_p10, %p9544_p11 }
 0x151   : > { %p9540_p13 = pneg %p9539_p3 }
 0x153   : > { %p9547_p6 = pnand %p9546_p12, %p9540_p13 }
 0x155   : > { %9550 = shalt.err (!%p9547_p6)
}
 0x156   : > { %p12050_p9 = scmp.ne.s32.totalorder %s12037_s7, 0  ;;  %s12051_s13 = smov 8  }
 0x157   : > { %s12052_s26 = smov 128   ;;  %s10184_s10 = smov [#allocation15]  }
 0x158   : > { %9103 = dma.hbm_to_vmem [thread:$0]  (!%p12050_p9), %s12021_s24, 512, %s10660_s8, [#allocation8], %s12052_s26, %s12052_s26, %s12051_s13  }
 0x159   : > { %s1168_s11 = sshll.u32 %s10184_s10, 4  ;;  %s10185_s28 = smov [#allocation16]   ;;  %s1169_s11 = int_to_ptr.vmem [resolvable:$true] %s1168_s11 }
 0x15a   : > { %s1187_s4 = sshll.u32 %s10185_s28, 4  ;;  %s9551_s16 = scalar_lea.hbm %s10272_s30, 512  ;;  %s10704_s4 = int_to_ptr.vmem [resolvable:$true] %s1187_s4 }
 0x15b   : > { %p9552_p6 = scmp.ne.s32.totalorder %s10272_s30, %s9551_s16  ;;  %p9558_p1 = scmp.lt.u32.totalorder %s9551_s16, %s10272_s30 }
 0x15d   : > { %p9554_p4 = pnand %p9552_p6, %p12049_p0 }
 0x15f   : > { %p9555_p8 = pneg %p9554_p4 }
 0x161   : > { %p9560_p5 = pnand %p9558_p1, %p9555_p8 }
 0x163   : > { %9563 = shalt.err (!%p9560_p5)
}
 0x164   : > { %s9564_s3 = scalar_lea.vmem %s1169_s11, 512  ;;  %p9572_p11 = scmp.lt.s32.totalorder %s1169_s11, %s1169_s11 }
 0x165   : > { %p9565_p7 = scmp.ne.s32.totalorder %s1169_s11, %s9564_s3  ;;  %p9573_p10 = scmp.lt.s32.totalorder %s9564_s3, %s9564_s3 }
 0x167   : > { %p9567_p3 = pnand %p9565_p7, %p12049_p0  ;;  %p9574_p12 = por %p9573_p10, %p9572_p11 }
 0x169   : > { %p9568_p13 = pneg %p9567_p3 }
 0x16b   : > { %p9575_p2 = pnand %p9574_p12, %p9568_p13 }
 0x16d   : > { %9578 = shalt.err (!%p9575_p2)
}
 0x16e   : > { %9106 = dma.hbm_to_vmem [thread:$0]  (!%p12050_p9), %s10272_s30, 512, %s1169_s11, [#allocation11], %s12052_s26, %s12052_s26, %s12051_s13  }
 0x16f   : > { %s9579_s8 = scalar_lea.hbm %s12022_s20, 4096 }
 0x170   : > { %p9580_p6 = scmp.ne.s32.totalorder %s12022_s20, %s9579_s8  ;;  %p9586_p1 = scmp.lt.u32.totalorder %s9579_s8, %s12022_s20 }
 0x172   : > { %p9582_p4 = pnand %p9580_p6, %p12049_p0 }
 0x174   : > { %p9583_p8 = pneg %p9582_p4 }
 0x176   : > { %p9588_p5 = pnand %p9586_p1, %p9583_p8 }
 0x178   : > { %9591 = shalt.err (!%p9588_p5)
}
 0x179   : > { %s9592_s3 = scalar_lea.vmem %s10704_s4, 4096  ;;  %p9600_p13 = scmp.lt.s32.totalorder %s10704_s4, %s10704_s4 }
 0x17a   : > { %p9593_p2 = scmp.ne.s32.totalorder %s10704_s4, %s9592_s3  ;;  %p9601_p11 = scmp.lt.s32.totalorder %s9592_s3, %s9592_s3 }
 0x17c   : > { %p9595_p7 = pnand %p9593_p2, %p12049_p0  ;;  %p9602_p10 = por %p9601_p11, %p9600_p13 }
 0x17e   : > { %p9596_p3 = pneg %p9595_p7 }
 0x180   : > { %p9603_p12 = pnand %p9602_p10, %p9596_p3 }
 0x182   : > { %9606 = shalt.err (!%p9603_p12)
}
 0x183   : > { %9109 = dma.hbm_to_vmem [thread:$0]  (!%p12050_p9), %s12022_s20, 4096, %s10704_s4, [#allocation17], %s12052_s26, %s12052_s26, %s12051_s13  }
 0x184   : > { %s10186_s10 = smov [#allocation24]   ;;  %s10187_s28 = smov [#allocation25]  }
 0x185   : > { %s1235_s11 = sshll.u32 %s10186_s10, 4  ;;  %s1248_s16 = sshll.u32 %s10187_s28, 4  ;;  %s1236_s11 = int_to_ptr.vmem [resolvable:$true] %s1235_s11  ;;  %s10737_s16 = int_to_ptr.vmem [resolvable:$true] %s1248_s16 }
 0x186   : > { %s9607_s8 = scalar_lea.hbm %s12023_s6, 4096 }
 0x187   : > { %p9608_p6 = scmp.ne.s32.totalorder %s12023_s6, %s9607_s8  ;;  %p9614_p1 = scmp.lt.u32.totalorder %s9607_s8, %s12023_s6 }
 0x189   : > { %p9610_p4 = pnand %p9608_p6, %p12049_p0 }
 0x18b   : > { %p9611_p8 = pneg %p9610_p4 }
 0x18d   : > { %p9616_p5 = pnand %p9614_p1, %p9611_p8 }
 0x18f   : > { %9619 = shalt.err (!%p9616_p5)
}
 0x190   : > { %s9620_s3 = scalar_lea.vmem %s1236_s11, 4096  ;;  %p9628_p13 = scmp.lt.s32.totalorder %s1236_s11, %s1236_s11 }
 0x191   : > { %p9621_p2 = scmp.ne.s32.totalorder %s1236_s11, %s9620_s3  ;;  %p9629_p11 = scmp.lt.s32.totalorder %s9620_s3, %s9620_s3 }
 0x193   : > { %p9623_p7 = pnand %p9621_p2, %p12049_p0  ;;  %p9630_p10 = por %p9629_p11, %p9628_p13 }
 0x195   : > { %p9624_p3 = pneg %p9623_p7 }
 0x197   : > { %p9631_p12 = pnand %p9630_p10, %p9624_p3 }
 0x199   : > { %9634 = shalt.err (!%p9631_p12)
}
 0x19a   : > { %9118 = dma.hbm_to_vmem [thread:$0]  (!%p12050_p9), %s12023_s6, 4096, %s1236_s11, [#allocation23], %s12052_s26, %s12052_s26, %s12051_s13  }
 0x19b   : > { %s9635_s4 = scalar_lea.hbm %s10332_s27, 4096 }
 0x19c   : > { %p9636_p6 = scmp.ne.s32.totalorder %s10332_s27, %s9635_s4  ;;  %p9642_p1 = scmp.lt.u32.totalorder %s9635_s4, %s10332_s27 }
 0x19e   : > { %p9638_p4 = pnand %p9636_p6, %p12049_p0 }
 0x1a0   : > { %p9639_p8 = pneg %p9638_p4 }
 0x1a2   : > { %p9644_p5 = pnand %p9642_p1, %p9639_p8 }
 0x1a4   : > { %9647 = shalt.err (!%p9644_p5)
}
 0x1a5   : > { %s9648_s10 = scalar_lea.vmem %s10737_s16, 4096  ;;  %p9656_p13 = scmp.lt.s32.totalorder %s10737_s16, %s10737_s16 }
 0x1a6   : > { %p9649_p2 = scmp.ne.s32.totalorder %s10737_s16, %s9648_s10  ;;  %p9657_p11 = scmp.lt.s32.totalorder %s9648_s10, %s9648_s10 }
 0x1a8   : > { %p9651_p7 = pnand %p9649_p2, %p12049_p0  ;;  %p9658_p10 = por %p9657_p11, %p9656_p13 }
 0x1aa   : > { %p9652_p3 = pneg %p9651_p7 }
 0x1ac   : > { %p9659_p12 = pnand %p9658_p10, %p9652_p3 }
 0x1ae   : > { %9662 = shalt.err (!%p9659_p12)
}
 0x1af   : > { %s12053_s11 = sld [smem:[#allocation67_spill]]  ;;  %s10772_s28 = scalar_lea.hbm %s12020_s14, %s10651_s29 }
 0x1b0   : > { %9121 = dma.hbm_to_vmem [thread:$0]  (!%p12050_p9), %s10332_s27, 4096, %s10737_s16, [#allocation26], %s12052_s26, %s12052_s26, %s12051_s13  }
 0x1b1   : > { %s1388_s8 = scalar_lea.vmem [#allocation12], %s10648_s17  ;;  %s9663_s10 = scalar_lea.hbm %s10772_s28, 12288 }
 0x1b2   : > { %s1395_s3 = sshll.u32 %s1388_s8, 4  ;;  %p9664_p6 = scmp.ne.s32.totalorder %s10772_s28, %s9663_s10  ;;  %s10775_s3 = int_to_ptr.vmem [resolvable:$true] %s1395_s3 }
 0x1b3   : > { %p12054_p4 = scmp.ne.s32.totalorder %s12045_s23, 0  ;;  %s9668_s6 = scalar_lea.hbm %s12020_s14, 24576 }
 0x1b4   : > { %p9669_p5 = scmp.lt.u32.totalorder %s10772_s28, %s12020_s14  ;;  %p9670_p2 = scmp.lt.u32.totalorder %s9668_s6, %s9663_s10 }
 0x1b5   : > { %s10779_s4 = scalar_lea.hbm %s12053_s11, %s10623_s18  ;;  %p9666_p8 = pnand %p9664_p6, %p12054_p4 }
 0x1b6   : > { %p9671_p7 = por %p9670_p2, %p9669_p5  ;;  %p9672_p3 = scmp.lt.u32.totalorder %s9663_s10, %s10772_s28 }
 0x1b7   : > { %p9667_p1 = pneg %p9666_p8 }
 0x1b8   : > { %p9673_p13 = por %p9672_p3, %p9671_p7 }
 0x1ba   : > { %p9674_p11 = pnand %p9673_p13, %p9667_p1 }
 0x1bc   : > { %9677 = shalt.err (!%p9674_p11)
}
 0x1bd   : > { %s9678_s16 = scalar_lea.vmem %s10775_s3, 12288  ;;  %s10188_s8 = smov [#allocation12]  }
 0x1be   : > { %p9679_p10 = scmp.ne.s32.totalorder %s10775_s3, %s9678_s16  ;;  %s9683_s20 = sshll.u32 %s10188_s8, 4  ;;  %s9684_s20 = int_to_ptr.vmem [resolvable:$false] %s9683_s20 }
 0x1bf   : > { %s9685_s24 = scalar_lea.vmem %s9684_s20, 24576  ;;  %p9686_p6 = scmp.lt.s32.totalorder %s10775_s3, %s9684_s20 }
 0x1c0   : > { %p9681_p12 = pnand %p9679_p10, %p12054_p4  ;;  %p9687_p8 = scmp.lt.s32.totalorder %s9685_s24, %s9678_s16 }
 0x1c2   : > { %p9682_p9 = pneg %p9681_p12  ;;  %p9688_p5 = por %p9687_p8, %p9686_p6 }
 0x1c4   : > { %p9689_p2 = pnand %p9688_p5, %p9682_p9 }
 0x1c6   : > { %9692 = shalt.err (!%p9689_p2)
}
 0x1c7   : > { %p12055_p1 = scmp.ne.s32.totalorder %s12044_s15, 0  ;;  %s12056_s6 = sld [smem:[#allocation74_spill]] }
 0x1c8   : > { %s1408_s24 = scalar_lea.vmem [#allocation13], %s10579_s21  ;;  %s9693_s16 = scalar_lea.hbm %s10779_s4, 16 }
 0x1c9   : > { %9143 = dma.hbm_to_vmem [thread:$0]  (!%p12055_p1), %s10772_s28, 12288, %s10775_s3, %s10593_s25, %s12048_s1, %s12048_s1, %s12047_s2  }
 0x1ca   : > { %s1415_s20 = sshll.u32 %s1408_s24, 4  ;;  %p9694_p9 = scmp.ne.s32.totalorder %s10779_s4, %s9693_s16  ;;  %s1416_s20 = int_to_ptr.vmem [resolvable:$true] %s1415_s20 }
 0x1cb   : > { %s9698_s8 = scalar_lea.hbm %s12053_s11, 32  ;;  %p9699_p13 = scmp.lt.u32.totalorder %s10779_s4, %s12053_s11 }
 0x1cc   : > { %p9696_p7 = pnand %p9694_p9, %p12054_p4  ;;  %p9700_p11 = scmp.lt.u32.totalorder %s9698_s8, %s9693_s16 }
 0x1cd   : > { %s10805_s10 = scalar_lea.hbm %s12056_s6, %s10623_s18  ;;  %p9702_p12 = scmp.lt.u32.totalorder %s9693_s16, %s10779_s4 }
 0x1ce   : > { %p9697_p3 = pneg %p9696_p7  ;;  %p9701_p10 = por %p9700_p11, %p9699_p13 }
 0x1d0   : > { %p9703_p6 = por %p9702_p12, %p9701_p10 }
 0x1d2   : > { %p9704_p8 = pnand %p9703_p6, %p9697_p3 }
 0x1d4   : > { %9707 = shalt.err (!%p9704_p8)
}
 0x1d5   : > { %s9708_s14 = scalar_lea.vmem %s1416_s20, 16  ;;  %s10189_s28 = smov [#allocation13]  }
 0x1d6   : > { %p9709_p5 = scmp.ne.s32.totalorder %s1416_s20, %s9708_s14  ;;  %s9713_s3 = sshll.u32 %s10189_s28, 4  ;;  %s9714_s3 = int_to_ptr.vmem [resolvable:$false] %s9713_s3 }
 0x1d7   : > { %s9715_s24 = scalar_lea.vmem %s9714_s3, 32  ;;  %p9716_p9 = scmp.lt.s32.totalorder %s1416_s20, %s9714_s3 }
 0x1d8   : > { %p9711_p2 = pnand %p9709_p5, %p12054_p4  ;;  %p9717_p7 = scmp.lt.s32.totalorder %s9715_s24, %s9708_s14 }
 0x1da   : > { %p9712_p0 = pneg %p9711_p2  ;;  %p9718_p1 = por %p9717_p7, %p9716_p9 }
 0x1dc   : > { %p9719_p11 = pnand %p9718_p1, %p9712_p0 }
 0x1de   : > { %9722 = shalt.err (!%p9719_p11)
}
 0x1df   : > { %p12057_p13 = scmp.ne.s32.totalorder %s12044_s15, 0  ;;  %s1446_s16 = scalar_lea.vmem [#allocation21], %s10579_s21 }
 0x1e0   : > { %s1453_s8 = sshll.u32 %s1446_s16, 4  ;;  %s10190_s14 = smov [#allocation18]   ;;  %s10822_s8 = int_to_ptr.vmem [resolvable:$true] %s1453_s8 }
 0x1e1   : > { %9146 = dma.hbm_to_vmem [thread:$0]  (!%p12057_p13), %s10779_s4, 16, %s1416_s20, %s10631_s9  }
 0x1e2   : > { %s1200_s28 = sshll.u32 %s10190_s14, 4  ;;  %s9723_s3 = scalar_lea.hbm %s10805_s10, 16  ;;  %s1201_s28 = int_to_ptr.vmem [resolvable:$true] %s1200_s28 }
 0x1e3   : > { %p9724_p0 = scmp.ne.s32.totalorder %s10805_s10, %s9723_s3  ;;  %s9728_s24 = scalar_lea.hbm %s12056_s6, 32 }
 0x1e4   : > { %p9729_p10 = scmp.lt.u32.totalorder %s10805_s10, %s12056_s6  ;;  %p9730_p12 = scmp.lt.u32.totalorder %s9728_s24, %s9723_s3 }
 0x1e5   : > { %p9726_p1 = pnand %p9724_p0, %p12054_p4  ;;  %p9732_p8 = scmp.lt.u32.totalorder %s9723_s3, %s10805_s10 }
 0x1e6   : > { %p9731_p6 = por %p9730_p12, %p9729_p10 }
 0x1e7   : > { %p9727_p3 = pneg %p9726_p1 }
 0x1e8   : > { %p9733_p5 = por %p9732_p8, %p9731_p6 }
 0x1ea   : > { %p9734_p2 = pnand %p9733_p5, %p9727_p3 }
 0x1ec   : > { %9737 = shalt.err (!%p9734_p2)
}
 0x1ed   : > { %s9738_s4 = scalar_lea.vmem %s10822_s8, 16  ;;  %s10191_s20 = smov [#allocation21]  }
 0x1ee   : > { %p9739_p9 = scmp.ne.s32.totalorder %s10822_s8, %s9738_s4  ;;  %s9743_s16 = sshll.u32 %s10191_s20, 4  ;;  %s9744_s16 = int_to_ptr.vmem [resolvable:$false] %s9743_s16 }
 0x1ef   : > { %s9745_s14 = scalar_lea.vmem %s9744_s16, 32  ;;  %p9746_p0 = scmp.lt.s32.totalorder %s10822_s8, %s9744_s16 }
 0x1f0   : > { %p9741_p7 = pnand %p9739_p9, %p12054_p4  ;;  %p9747_p1 = scmp.lt.s32.totalorder %s9745_s14, %s9738_s4 }
 0x1f2   : > { %p9742_p11 = pneg %p9741_p7  ;;  %p9748_p10 = por %p9747_p1, %p9746_p0 }
 0x1f4   : > { %p9749_p12 = pnand %p9748_p10, %p9742_p11 }
 0x1f6   : > { %9752 = shalt.err (!%p9749_p12)
}
 0x1f7   : > { %s12058_s3 = sld [smem:[#allocation72_spill]]  ;;  %p12059_p6 = scmp.ne.s32.totalorder %s12038_s5, 0 }
 0x1f8   : > { %9152 = dma.hbm_to_vmem [thread:$0]  (!%p12057_p13), %s10805_s10, 16, %s10822_s8, %s10663_s22  }
 0x1fd   : > { %s9753_s24 = scalar_lea.hbm %s12058_s3, 4096 }
 0x1fe   : > { %p9754_p3 = scmp.ne.s32.totalorder %s12058_s3, %s9753_s24  ;;  %p9760_p2 = scmp.lt.u32.totalorder %s9753_s24, %s12058_s3 }
 0x200   : > { %p9756_p8 = pnand %p9754_p3, %p12059_p6 }
 0x202   : > { %p9757_p5 = pneg %p9756_p8 }
 0x204   : > { %p9762_p9 = pnand %p9760_p2, %p9757_p5 }
 0x206   : > { %9765 = shalt.err (!%p9762_p9)
}
 0x207   : > { %s9766_s4 = scalar_lea.vmem %s1201_s28, 4096  ;;  %p9774_p1 = scmp.lt.s32.totalorder %s1201_s28, %s1201_s28 }
 0x208   : > { %p9767_p7 = scmp.ne.s32.totalorder %s1201_s28, %s9766_s4  ;;  %p9775_p10 = scmp.lt.s32.totalorder %s9766_s4, %s9766_s4 }
 0x20a   : > { %p9769_p11 = pnand %p9767_p7, %p12059_p6  ;;  %p9776_p12 = por %p9775_p10, %p9774_p1 }
 0x20c   : > { %p9770_p0 = pneg %p9769_p11 }
 0x20e   : > { %p9777_p4 = pnand %p9776_p12, %p9770_p0 }
 0x210   : > { %9780 = shalt.err (!%p9777_p4)
}
 0x211   : > { %p12060_p13 = scmp.ne.s32.totalorder %s12037_s7, 0  ;;  %s12061_s10 = sld [smem:[#allocation86_spill]] }
 0x212   : > { %s10192_s8 = smov [#allocation29]   ;;  %s10193_s16 = smov [#allocation30]  }
 0x213   : > { %9112 = dma.hbm_to_vmem [thread:$0]  (!%p12060_p13), %s12058_s3, 4096, %s1201_s28, [#allocation17], %s12052_s26, %s12052_s26, %s12051_s13  }
 0x214   : > { %s1273_s20 = sshll.u32 %s10192_s8, 4  ;;  %s1286_s14 = sshll.u32 %s10193_s16, 4  ;;  %s1274_s20 = int_to_ptr.vmem [resolvable:$true] %s1273_s20  ;;  %s1287_s14 = int_to_ptr.vmem [resolvable:$true] %s1286_s14 }
 0x217   : > { %s9781_s24 = scalar_lea.hbm %s12061_s10, 4096 }
 0x218   : > { %p9782_p3 = scmp.ne.s32.totalorder %s12061_s10, %s9781_s24  ;;  %p9788_p5 = scmp.lt.u32.totalorder %s9781_s24, %s12061_s10 }
 0x21a   : > { %p9784_p4 = pnand %p9782_p3, %p12059_p6 }
 0x21c   : > { %p9785_p8 = pneg %p9784_p4 }
 0x21e   : > { %p9790_p2 = pnand %p9788_p5, %p9785_p8 }
 0x220   : > { %9793 = shalt.err (!%p9790_p2)
}
 0x221   : > { %s9794_s4 = scalar_lea.vmem %s1274_s20, 4096  ;;  %p9802_p0 = scmp.lt.s32.totalorder %s1274_s20, %s1274_s20 }
 0x222   : > { %p9795_p9 = scmp.ne.s32.totalorder %s1274_s20, %s9794_s4  ;;  %p9803_p1 = scmp.lt.s32.totalorder %s9794_s4, %s9794_s4 }
 0x224   : > { %p9797_p7 = pnand %p9795_p9, %p12059_p6  ;;  %p9804_p10 = por %p9803_p1, %p9802_p0 }
 0x226   : > { %p9798_p11 = pneg %p9797_p7 }
 0x228   : > { %p9805_p12 = pnand %p9804_p10, %p9798_p11 }
 0x22a   : > { %9808 = shalt.err (!%p9805_p12)
}
 0x22b   : > { %s12062_s28 = sld [smem:[#allocation87_spill]] }
 0x22c   : > { %9124 = dma.hbm_to_vmem [thread:$0]  (!%p12060_p13), %s12061_s10, 4096, %s1274_s20, [#allocation8], %s12052_s26, %s12052_s26, %s12051_s13  }
 0x231   : > { %s9809_s8 = scalar_lea.hbm %s12062_s28, 4096 }
 0x232   : > { %p9810_p3 = scmp.ne.s32.totalorder %s12062_s28, %s9809_s8  ;;  %p9816_p5 = scmp.lt.u32.totalorder %s9809_s8, %s12062_s28 }
 0x234   : > { %p9812_p4 = pnand %p9810_p3, %p12059_p6 }
 0x236   : > { %p9813_p8 = pneg %p9812_p4 }
 0x238   : > { %p9818_p2 = pnand %p9816_p5, %p9813_p8 }
 0x23a   : > { %9821 = shalt.err (!%p9818_p2)
}
 0x23b   : > { %s9822_s16 = scalar_lea.vmem %s1287_s14, 4096  ;;  %p9830_p0 = scmp.lt.s32.totalorder %s1287_s14, %s1287_s14 }
 0x23c   : > { %p9823_p9 = scmp.ne.s32.totalorder %s1287_s14, %s9822_s16  ;;  %p9831_p1 = scmp.lt.s32.totalorder %s9822_s16, %s9822_s16 }
 0x23e   : > { %p9825_p7 = pnand %p9823_p9, %p12059_p6  ;;  %p9832_p10 = por %p9831_p1, %p9830_p0 }
 0x240   : > { %p9826_p11 = pneg %p9825_p7 }
 0x242   : > { %p9833_p12 = pnand %p9832_p10, %p9826_p11 }
 0x244   : > { %9836 = shalt.err (!%p9833_p12)
}
 0x245   : > { %9127 = dma.hbm_to_vmem [thread:$0]  (!%p12060_p13), %s12062_s28, 4096, %s1287_s14, [#allocation11], %s12052_s26, %s12052_s26, %s12051_s13  }
 0x246   : > { %s10194_s20 = smov [#allocation32]   ;;  %s10195_s4 = smov [#allocation33]  }
 0x247   : > { %s1311_s24 = sshll.u32 %s10194_s20, 4  ;;  %s1324_s8 = sshll.u32 %s10195_s4, 4  ;;  %s1312_s24 = int_to_ptr.vmem [resolvable:$true] %s1311_s24  ;;  %s1325_s8 = int_to_ptr.vmem [resolvable:$true] %s1324_s8 }
 0x248   : > { %s9837_s16 = scalar_lea.hbm %s10407_s12, 4096 }
 0x249   : > { %p9838_p3 = scmp.ne.s32.totalorder %s10407_s12, %s9837_s16  ;;  %p9844_p5 = scmp.lt.u32.totalorder %s9837_s16, %s10407_s12 }
 0x24b   : > { %p9840_p4 = pnand %p9838_p3, %p12059_p6 }
 0x24d   : > { %p9841_p8 = pneg %p9840_p4 }
 0x24f   : > { %p9846_p2 = pnand %p9844_p5, %p9841_p8 }
 0x251   : > { %9849 = shalt.err (!%p9846_p2)
}
 0x252   : > { %s9850_s3 = scalar_lea.vmem %s1312_s24, 4096  ;;  %p9858_p0 = scmp.lt.s32.totalorder %s1312_s24, %s1312_s24 }
 0x253   : > { %p9851_p9 = scmp.ne.s32.totalorder %s1312_s24, %s9850_s3  ;;  %p9859_p1 = scmp.lt.s32.totalorder %s9850_s3, %s9850_s3 }
 0x255   : > { %p9853_p7 = pnand %p9851_p9, %p12059_p6  ;;  %p9860_p10 = por %p9859_p1, %p9858_p0 }
 0x257   : > { %p9854_p11 = pneg %p9853_p7 }
 0x259   : > { %p9861_p12 = pnand %p9860_p10, %p9854_p11 }
 0x25b   : > { %9864 = shalt.err (!%p9861_p12)
}
 0x25c   : > { %9130 = dma.hbm_to_vmem [thread:$0]  (!%p12060_p13), %s10407_s12, 4096, %s1312_s24, [#allocation23], %s12052_s26, %s12052_s26, %s12051_s13  }
 0x25d   : > { %s9865_s14 = scalar_lea.hbm %s10412_s19, 4096 }
 0x25e   : > { %p9866_p3 = scmp.ne.s32.totalorder %s10412_s19, %s9865_s14  ;;  %p9872_p5 = scmp.lt.u32.totalorder %s9865_s14, %s10412_s19 }
 0x260   : > { %p9868_p4 = pnand %p9866_p3, %p12059_p6 }
 0x262   : > { %p9869_p8 = pneg %p9868_p4 }
 0x264   : > { %p9874_p2 = pnand %p9872_p5, %p9869_p8 }
 0x266   : > { %9877 = shalt.err (!%p9874_p2)
}
 0x267   : > { %s9878_s3 = scalar_lea.vmem %s1325_s8, 4096  ;;  %p9886_p0 = scmp.lt.s32.totalorder %s1325_s8, %s1325_s8 }
 0x268   : > { %p9879_p9 = scmp.ne.s32.totalorder %s1325_s8, %s9878_s3  ;;  %p9887_p1 = scmp.lt.s32.totalorder %s9878_s3, %s9878_s3 }
 0x26a   : > { %p9881_p7 = pnand %p9879_p9, %p12059_p6  ;;  %p9888_p10 = por %p9887_p1, %p9886_p0 }
 0x26c   : > { %p9882_p11 = pneg %p9881_p7 }
 0x26e   : > { %p9889_p12 = pnand %p9888_p10, %p9882_p11 }
 0x270   : > { %9892 = shalt.err (!%p9889_p12)
}
 0x271   : > { %s12063_s20 = sld [smem:[#allocation80_spill]]  ;;  %s1464_s24 = scalar_lea.vmem [#allocation27], %s10648_s17 }
 0x272   : > { %9133 = dma.hbm_to_vmem [thread:$0]  (!%p12060_p13), %s10412_s19, 4096, %s1325_s8, [#allocation26], %s12052_s26, %s12052_s26, %s12051_s13  }
 0x273   : > { %s1471_s4 = sshll.u32 %s1464_s24, 4  ;;  %p12064_p3 = scmp.ne.s32.totalorder %s12045_s23, 0  ;;  %s10912_s4 = int_to_ptr.vmem [resolvable:$true] %s1471_s4 }
 0x277   : > { %s10909_s5 = scalar_lea.hbm %s12063_s20, %s10651_s29  ;;  %s9898_s16 = scalar_lea.hbm %s12063_s20, 24576 }
 0x278   : > { %s9893_s7 = scalar_lea.hbm %s10909_s5, 12288  ;;  %p9899_p5 = scmp.lt.u32.totalorder %s10909_s5, %s12063_s20 }
 0x279   : > { %p9894_p6 = scmp.ne.s32.totalorder %s10909_s5, %s9893_s7  ;;  %p9900_p2 = scmp.lt.u32.totalorder %s9898_s16, %s9893_s7 }
 0x27a   : > { %p9902_p13 = scmp.lt.u32.totalorder %s9893_s7, %s10909_s5 }
 0x27b   : > { %p9896_p4 = pnand %p9894_p6, %p12064_p3  ;;  %p9901_p9 = por %p9900_p2, %p9899_p5 }
 0x27d   : > { %p9897_p8 = pneg %p9896_p4  ;;  %p9903_p7 = por %p9902_p13, %p9901_p9 }
 0x27f   : > { %p9904_p11 = pnand %p9903_p7, %p9897_p8 }
 0x281   : > { %9907 = shalt.err (!%p9904_p11)
}
 0x282   : > { %s9908_s13 = scalar_lea.vmem %s10912_s4, 12288  ;;  %s10196_s26 = smov [#allocation27]  }
 0x283   : > { %p9909_p0 = scmp.ne.s32.totalorder %s10912_s4, %s9908_s13  ;;  %s9913_s8 = sshll.u32 %s10196_s26, 4  ;;  %s9914_s8 = int_to_ptr.vmem [resolvable:$false] %s9913_s8 }
 0x284   : > { %s9915_s14 = scalar_lea.vmem %s9914_s8, 24576  ;;  %p9916_p12 = scmp.lt.s32.totalorder %s10912_s4, %s9914_s8 }
 0x285   : > { %p9911_p1 = pnand %p9909_p0, %p12064_p3  ;;  %p9917_p6 = scmp.lt.s32.totalorder %s9915_s14, %s9908_s13 }
 0x287   : > { %p9912_p10 = pneg %p9911_p1  ;;  %p9918_p4 = por %p9917_p6, %p9916_p12 }
 0x289   : > { %p9919_p5 = pnand %p9918_p4, %p9912_p10 }
 0x28b   : > { %9922 = shalt.err (!%p9919_p5)
}
 0x28c   : > { %p12065_p8 = scmp.ne.s32.totalorder %s12044_s15, 0  ;;  %s12066_s3 = sld [smem:[#allocation81_spill]] }
 0x28d   : > { %s1484_s7 = scalar_lea.vmem [#allocation28], %s10579_s21 }
 0x28e   : > { %9155 = dma.hbm_to_vmem [thread:$0]  (!%p12065_p8), %s10909_s5, 12288, %s10912_s4, %s10593_s25, %s12048_s1, %s12048_s1, %s12047_s2  }
 0x28f   : > { %s1491_s16 = sshll.u32 %s1484_s7, 4  ;;  %s1492_s16 = int_to_ptr.vmem [resolvable:$true] %s1491_s16 }
 0x292   : > { %s10937_s24 = scalar_lea.hbm %s12066_s3, %s10623_s18  ;;  %s9928_s26 = scalar_lea.hbm %s12066_s3, 32 }
 0x293   : > { %s9923_s13 = scalar_lea.hbm %s10937_s24, 16  ;;  %p9929_p7 = scmp.lt.u32.totalorder %s10937_s24, %s12066_s3 }
 0x294   : > { %p9924_p2 = scmp.ne.s32.totalorder %s10937_s24, %s9923_s13  ;;  %p9930_p11 = scmp.lt.u32.totalorder %s9928_s26, %s9923_s13 }
 0x295   : > { %p9932_p1 = scmp.lt.u32.totalorder %s9923_s13, %s10937_s24 }
 0x296   : > { %p9926_p9 = pnand %p9924_p2, %p12064_p3  ;;  %p9931_p0 = por %p9930_p11, %p9929_p7 }
 0x298   : > { %p9927_p13 = pneg %p9926_p9  ;;  %p9933_p10 = por %p9932_p1, %p9931_p0 }
 0x29a   : > { %p9934_p12 = pnand %p9933_p10, %p9927_p13 }
 0x29c   : > { %9937 = shalt.err (!%p9934_p12)
}
 0x29d   : > { %s9938_s25 = scalar_lea.vmem %s1492_s16, 16  ;;  %s10197_s18 = smov [#allocation28]  }
 0x29e   : > { %p9939_p6 = scmp.ne.s32.totalorder %s1492_s16, %s9938_s25  ;;  %s9943_s5 = sshll.u32 %s10197_s18, 4  ;;  %s9944_s5 = int_to_ptr.vmem [resolvable:$false] %s9943_s5 }
 0x29f   : > { %s9945_s4 = scalar_lea.vmem %s9944_s5, 32  ;;  %p9946_p2 = scmp.lt.s32.totalorder %s1492_s16, %s9944_s5 }
 0x2a0   : > { %p9941_p4 = pnand %p9939_p6, %p12064_p3  ;;  %p9947_p9 = scmp.lt.s32.totalorder %s9945_s4, %s9938_s25 }
 0x2a2   : > { %p9942_p5 = pneg %p9941_p4  ;;  %p9948_p8 = por %p9947_p9, %p9946_p2 }
 0x2a4   : > { %p9949_p7 = pnand %p9948_p8, %p9942_p5 }
 0x2a6   : > { %9952 = shalt.err (!%p9949_p7)
}
 0x2a7   : > { %p12067_p11 = scmp.ne.s32.totalorder %s12044_s15, 0  ;;  %s12068_s8 = sld [smem:[#allocation88_spill]] }
 0x2a8   : > { %s1502_s7 = scalar_lea.vmem [#allocation31], %s10648_s17 }
 0x2a9   : > { %9158 = dma.hbm_to_vmem [thread:$0]  (!%p12067_p11), %s10937_s24, 16, %s1492_s16, %s10631_s9  }
 0x2aa   : > { %s1509_s13 = sshll.u32 %s1502_s7, 4  ;;  %s10959_s13 = int_to_ptr.vmem [resolvable:$true] %s1509_s13 }
 0x2ad   : > { %s10956_s14 = scalar_lea.hbm %s12068_s8, %s10651_s29  ;;  %s9958_s25 = scalar_lea.hbm %s12068_s8, 24576 }
 0x2ae   : > { %s9953_s26 = scalar_lea.hbm %s10956_s14, 12288  ;;  %p9959_p1 = scmp.lt.u32.totalorder %s10956_s14, %s12068_s8 }
 0x2af   : > { %p9954_p8 = scmp.ne.s32.totalorder %s10956_s14, %s9953_s26  ;;  %p9960_p10 = scmp.lt.u32.totalorder %s9958_s25, %s9953_s26 }
 0x2b0   : > { %p9962_p6 = scmp.lt.u32.totalorder %s9953_s26, %s10956_s14 }
 0x2b1   : > { %p9956_p13 = pnand %p9954_p8, %p12064_p3  ;;  %p9961_p12 = por %p9960_p10, %p9959_p1 }
 0x2b3   : > { %p9957_p0 = pneg %p9956_p13  ;;  %p9963_p4 = por %p9962_p6, %p9961_p12 }
 0x2b5   : > { %p9964_p5 = pnand %p9963_p4, %p9957_p0 }
 0x2b7   : > { %9967 = shalt.err (!%p9964_p5)
}
 0x2b8   : > { %s9968_s9 = scalar_lea.vmem %s10959_s13, 12288  ;;  %s10198_s17 = smov [#allocation31]  }
 0x2b9   : > { %p9969_p2 = scmp.ne.s32.totalorder %s10959_s13, %s9968_s9  ;;  %s9973_s29 = sshll.u32 %s10198_s17, 4  ;;  %s9974_s29 = int_to_ptr.vmem [resolvable:$false] %s9973_s29 }
 0x2ba   : > { %s9975_s24 = scalar_lea.vmem %s9974_s29, 24576  ;;  %p9976_p8 = scmp.lt.s32.totalorder %s10959_s13, %s9974_s29 }
 0x2bb   : > { %p9971_p9 = pnand %p9969_p2, %p12064_p3  ;;  %p9977_p13 = scmp.lt.s32.totalorder %s9975_s24, %s9968_s9 }
 0x2bd   : > { %p9972_p7 = pneg %p9971_p9  ;;  %p9978_p1 = por %p9977_p13, %p9976_p8 }
 0x2bf   : > { %p9979_p10 = pnand %p9978_p1, %p9972_p7 }
 0x2c1   : > { %9982 = shalt.err (!%p9979_p10)
}
 0x2c2   : > { %s12069_s16 = sld [smem:[#allocation94_spill]]  ;;  %s7266_s18 = sshll.u32 %s10579_s21, 9 }
 0x2c3   : > { %9161 = dma.hbm_to_vmem [thread:$0]  (!%p12067_p11), %s10956_s14, 12288, %s10959_s13, %s10663_s22, %s12048_s1, %s12048_s1, %s12047_s2  }
 0x2c4   : > { %s7651_s4 = sshll.u32 %s10127_s0, 13  ;;  %s1529_s26 = scalar_lea.vmem [#allocation34], %s7266_s18 }
 0x2c5   : > { %s1536_s25 = sshll.u32 %s1529_s26, 4  ;;  %s1526_s9 = scalar_lea.sflag [#allocation35], %s10579_s21  ;;  %s10987_s25 = int_to_ptr.vmem [resolvable:$true] %s1536_s25 }
 0x2c8   : > { %s12070_s5 = smov %s12069_s16  ;;  %s10985_s7 = scalar_lea.hbm %s12069_s16, %s7651_s4 }
 0x2c9   : > { %s9983_s17 = scalar_lea.hbm %s10985_s7, 8192  ;;  %s9988_s29 = scalar_lea.hbm %s12070_s5, 16384 }
 0x2ca   : > { %p9984_p0 = scmp.ne.s32.totalorder %s10985_s7, %s9983_s17  ;;  %p9989_p4 = scmp.lt.u32.totalorder %s10985_s7, %s12070_s5 }
 0x2cb   : > { %p9990_p5 = scmp.lt.u32.totalorder %s9988_s29, %s9983_s17  ;;  %p9992_p9 = scmp.lt.u32.totalorder %s9983_s17, %s10985_s7 }
 0x2cc   : > { %p9986_p12 = pnand %p9984_p0, %p12064_p3 }
 0x2cd   : > { %p9991_p2 = por %p9990_p5, %p9989_p4 }
 0x2ce   : > { %p9987_p6 = pneg %p9986_p12 }
 0x2cf   : > { %p9993_p7 = por %p9992_p9, %p9991_p2 }
 0x2d1   : > { %p9994_p8 = pnand %p9993_p7, %p9987_p6 }
 0x2d3   : > { %9997 = shalt.err (!%p9994_p8)
}
 0x2d4   : > { %s9998_s0 = scalar_lea.vmem %s10987_s25, 8192  ;;  %s10199_s22 = smov [#allocation34]  }
 0x2d5   : > { %p9999_p13 = scmp.ne.s32.totalorder %s10987_s25, %s9998_s0  ;;  %s10003_s2 = sshll.u32 %s10199_s22, 4  ;;  %s10004_s2 = int_to_ptr.vmem [resolvable:$false] %s10003_s2 }
 0x2d6   : > { %s10005_s1 = scalar_lea.vmem %s10004_s2, 16384  ;;  %p10006_p0 = scmp.lt.s32.totalorder %s10987_s25, %s10004_s2 }
 0x2d7   : > { %p10001_p1 = pnand %p9999_p13, %p12064_p3  ;;  %p10007_p12 = scmp.lt.s32.totalorder %s10005_s1, %s9998_s0 }
 0x2d9   : > { %p10002_p10 = pneg %p10001_p1  ;;  %p10008_p4 = por %p10007_p12, %p10006_p0 }
 0x2db   : > { %p10009_p5 = pnand %p10008_p4, %p10002_p10 }
 0x2dd   : > { %10012 = shalt.err (!%p10009_p5)
}
 0x2de   : > { %s10200_s14 = smov 512   ;;  %s10201_s13 = smov 32  }
 0x2df   : > { %9164 = dma.hbm_to_vmem [thread:$0]  (!%p12067_p11), %s10985_s7, 8192, %s10987_s25, %s1526_s9, %s10200_s14, %s10200_s14, %s10201_s13  }
 0x2e0   : > { %s12071_s23 = sld [smem:[#allocation99_spill]] }
 0x2e6   : > { %p12072_p3 = scmp.ne.s32.totalorder %s12071_s23, 0 }
 0x2e7   : > { %s12073_s24 = sld [smem:[#allocation98_spill]] (!%p12072_p3)  ;;  %s12074_s16 = sld [smem:[#allocation96_spill]] (!%p12072_p3) }
 0x2e8   : > { %1548 = sbr.rel (%p12072_p3) target bundleno = 5685 (0x1635), region = 188  ;;  %s12075_s18 = sld [smem:[#allocation102_spill]] (!%p12072_p3) }
 0x2ed   : > { %s1550_s4 = sand.u32 (!%p12072_p3), 1, %s12073_s24   ;;  %s11013_s26 = sand.u32 (!%p12072_p3), 1, %s12074_s16  }
 0x2ee   : > { %s9006_s17 = smul.u32 (!%p12072_p3), 192, %s11013_s26  ;;  %s11016_s29 = scalar_lea.sflag (!%p12072_p3), [#allocation3], %s1550_s4 }
 0x2ef   : > { %p12076_p6 = scmp.ne.s32.totalorder %s12075_s18, 0 }
 0x2f0   : > { %s11018_s0 = scalar_lea.vmem [#allocation2], %s9006_s17 }
 0x2f1   : > { %10030 = dma.done.wait (%p12076_p6), %s11016_s29, 3072  }
 0x2f2   : > { %10032 = vsyncadd (%p12076_p6), %s11016_s29, 4294964224  ;;  %s11026_s21 = scalar_lea.sflag [#allocation5], %s1550_s4  ;;  %s1562_s15 = scalar_lea.vmem [#allocation4], %s11013_s26 }
 0x2f3   : > { %10034 = dma.done.wait (%p12076_p6), %s11026_s21, 16  }
 0x2f4   : > { %10036 = vsyncadd (%p12076_p6), %s11026_s21, 4294967280  ;;  %p12077_p11 = scmp.eq.s32.totalorder %s12073_s24, 0 }
 0x2f6   : > { %10038 = dma.done.wait (%p12077_p11), [#allocation5], 1024   ;;  %p12078_p2 = pmov %p12077_p11 }
 0x2f8   : > { %10040 = vsyncadd (%p12078_p2), [#allocation5], 4294966272  ;;  %p12079_p9 = pmov %p12078_p2 }
 0x2f9   : > { %p12080_p7 = pmov %p12078_p2 }
 0x2fa   : > { %10042 = dma.done.wait (%p12079_p9), [#allocation8], 1536  }
 0x2fb   : > { %10044 = vsyncadd (%p12080_p7), [#allocation8], 4294965760  ;;  %p12081_p8 = pmov %p12078_p2 }
 0x2fc   : > { %p12082_p13 = pmov %p12078_p2 }
 0x2fd   : > { %10046 = dma.done.wait (%p12081_p8), [#allocation11], 4096  }
 0x2fe   : > { %10048 = vsyncadd (%p12082_p13), [#allocation11], 4294963200  ;;  %s11048_s7 = smul.u32 768, %s11013_s26 }
 0x300   : > { %s11051_s25 = scalar_lea.vmem [#allocation12], %s11048_s7 }
 0x301   : > { %10050 = dma.done.wait (%p12076_p6), %s11016_s29, 12288  }
 0x302   : > { %10052 = vsyncadd (%p12076_p6), %s11016_s29, 4294955008  ;;  %s1595_s9 = scalar_lea.vmem [#allocation13], %s11013_s26 }
 0x303   : > { %10054 = dma.done.wait (%p12076_p6), %s11026_s21, 16  }
 0x304   : > { %10056 = vsyncadd (%p12076_p6), %s11026_s21, 4294967280  ;;  %p12083_p1 = pmov %p12078_p2 }
 0x306   : > { %10058 = dma.done.wait (%p12083_p1), [#allocation8], 512   ;;  %p12084_p10 = pmov %p12083_p1 }
 0x307   : > { %p12085_p0 = pmov %p12083_p1 }
 0x308   : > { %10060 = vsyncadd (%p12084_p10), [#allocation8], 4294966784 }
 0x309   : > { %10062 = dma.done.wait (%p12085_p0), [#allocation11], 512   ;;  %p12086_p12 = pmov %p12085_p0 }
 0x30a   : > { %p12087_p4 = pmov %p12085_p0 }
 0x30b   : > { %10064 = vsyncadd (%p12086_p12), [#allocation11], 4294966784 }
 0x30c   : > { %10066 = dma.done.wait (%p12087_p4), [#allocation17], 8192   ;;  %p12088_p5 = pmov %p12085_p0 }
 0x30d   : > { %s1617_s22 = scalar_lea.sflag [#allocation20], %s1550_s4  ;;  %s11079_s2 = scalar_lea.vmem [#allocation19], %s11048_s7 }
 0x30e   : > { %10068 = vsyncadd (%p12088_p5), [#allocation17], 4294959104 }
 0x30f   : > { %10070 = dma.done.wait (%p12076_p6), %s1617_s22, 12304  }
 0x310   : > { %10072 = vsyncadd (%p12076_p6), %s1617_s22, 4294954992  ;;  %s1628_s1 = scalar_lea.vmem [#allocation21], %s11013_s26  ;;  %p12089_p3 = pmov %p12085_p0 }
 0x311   : > { %p12090_p11 = pmov %p12085_p0 }
 0x312   : > { %10074 = dma.done.wait (%p12089_p3), [#allocation23], 4352  }
 0x313   : > { %10076 = vsyncadd (%p12090_p11), [#allocation23], 4294962944  ;;  %p12091_p2 = pmov %p12085_p0 }
 0x314   : > { %p12092_p9 = pmov %p12085_p0 }
 0x315   : > { %10078 = dma.done.wait (%p12091_p2), [#allocation26], 4096  }
 0x316   : > { %10080 = vsyncadd (%p12092_p9), [#allocation26], 4294963200  ;;  %s11095_s14 = scalar_lea.vmem [#allocation27], %s11048_s7 }
 0x317   : > { %10082 = dma.done.wait (%p12076_p6), %s11016_s29, 12288  }
 0x318   : > { %10084 = vsyncadd (%p12076_p6), %s11016_s29, 4294955008  ;;  %s1657_s13 = scalar_lea.vmem [#allocation28], %s11013_s26 }
 0x319   : > { %10086 = dma.done.wait (%p12076_p6), %s11026_s21, 16  }
 0x31a   : > { %10088 = vsyncadd (%p12076_p6), %s11026_s21, 4294967280  ;;  %p12093_p7 = pmov %p12085_p0 }
 0x31b   : > { %p12094_p8 = pmov %p12085_p0 }
 0x31c   : > { %10090 = dma.done.wait (%p12093_p7), [#allocation8], 4096  }
 0x31d   : > { %10092 = vsyncadd (%p12094_p8), [#allocation8], 4294963200  ;;  %p12095_p13 = pmov %p12085_p0 }
 0x31e   : > { %p12096_p1 = pmov %p12085_p0 }
 0x31f   : > { %10094 = dma.done.wait (%p12095_p13), [#allocation11], 4096  }
 0x320   : > { %10096 = vsyncadd (%p12096_p1), [#allocation11], 4294963200  ;;  %s11119_s23 = scalar_lea.vmem [#allocation31], %s11048_s7 }
 0x321   : > { %10098 = dma.done.wait (%p12076_p6), %s1617_s22, 12288  }
 0x322   : > { %10100 = vsyncadd (%p12076_p6), %s1617_s22, 4294955008  ;;  %p12097_p10 = pmov %p12085_p0 }
 0x324   : > { %10102 = dma.done.wait (%p12097_p10), [#allocation23], 4096  }
 0x325   : > { %10104 = vsyncadd (%p12085_p0), [#allocation23], 4294963200  ;;  %p12098_p12 = pmov %p12085_p0 }
 0x326   : > { %p12099_p4 = pmov %p12085_p0 }
 0x327   : > { %10106 = dma.done.wait (%p12098_p12), [#allocation26], 4096  }
 0x328   : > { %10108 = vsyncadd (%p12099_p4), [#allocation26], 4294963200  ;;  %s7285_s16 = sshll.u32 %s11013_s26, 9  ;;  %s1688_s4 = scalar_lea.sflag [#allocation35], %s11013_s26 }
 0x329   : > { %s11135_s17 = scalar_lea.vmem [#allocation34], %s7285_s16 }
 0x32a   : > { %10110 = dma.done.wait (%p12076_p6), %s1688_s4, 8192  }
 0x32b   : > { %10112 = vsyncadd (%p12076_p6), %s1688_s4, 4294959104  ;;  %p1841_p5 = scmp.lt.s32.totalorder %s12073_s24, 1  ;;  %v10202_v0 = vmov 0.0   ;;  %v1863_v1 = vld [vmem:[%s11018_s0 + $0x8] sm:$0xff]  ;;  %v1865_v2 = vld [vmem:[%s11018_s0 + $0x18] sm:$0xff]  ;;  %s12100_s18 = sld [smem:[#allocation57_spill]] }
 0x32c   : > { %1959 = vmatprep.mubr.f32.mxu0 %v10202_v0  ;;  %2081 = vmatprep.mubr.f32.mxu1 %v10202_v0  ;;  %v1862_v3 = vld [vmem:[%s11018_s0] sm:$0xff]  ;;  %v8028_v4 = vpack.c.bf16 %v1865_v2, %v1863_v1  ;;  %v1864_v5 = vld [vmem:[%s11018_s0 + $0x10] sm:$0xff]  ;;  %v1867_v6 = vld [vmem:[%s11018_s0 + $0x28] sm:$0xff]  ;;  %vm1870_vm0 = vcmask 261120   ;;  %vm2260_vm1 = vcmask 523264   ;;  %s12103_s22 = sld [smem:[#allocation62_spill]] }
 0x32d   : > { %s12126_s24 = smov (!%p1841_p5, %s12073_s24), 1  ;;  %v1869_v7 = vld [vmem:[%s11018_s0 + $0x38] sm:$0xff]  ;;  %v8030_v8 = vpack.c.bf16 %v1864_v5, %v1862_v3  ;;  %v1866_v10 = vld [vmem:[%s11018_s0 + $0x20] sm:$0xff]  ;;  %v1868_v11 = vld [vmem:[%s11018_s0 + $0x30] sm:$0xff]  ;;  %s12106_s16 = sld [smem:[#allocation70_spill]]  ;;  %vm4345_vm2 = vcmask 130048  }
 0x32e   : > { %s7652_s29 = sshll.u32 %s12126_s24, 6  ;;  %v8032_v9 = vpack.c.bf16 %v1869_v7, %v1867_v6  ;;  %8029 = vmatprep.subr.bf16.mxu0 %v8028_v4  ;;  %v7315_v12 = vld [vmem:[%s11018_s0 + $0x88] sm:$0xff]  ;;  %v7317_v13 = vld [vmem:[%s11018_s0 + $0x98] sm:$0xff]  ;;  %v8034_v14 = vpack.c.bf16 %v1868_v11, %v1866_v10  ;;  %v7314_v16 = vld [vmem:[%s11018_s0 + $0x80] sm:$0xff]  ;;  %vm5196_vm3 = vcmask 64512   ;;  %s12115_s26 = sld [smem:[#allocation90_spill]] }
 0x32f   : > { %8031 = vmatpush1.bf16.msra.mxu0 %v8030_v8  ;;  %v8044_v15 = vpack.c.bf16 %v7317_v13, %v7315_v12  ;;  %v7316_v17 = vld [vmem:[%s11018_s0 + $0x90] sm:$0xff]  ;;  %v7319_v18 = vld [vmem:[%s11018_s0 + $0xa8] sm:$0xff]  ;;  %v7321_v19 = vld [vmem:[%s11018_s0 + $0xb8] sm:$0xff]  ;;  %vm6030_vm4 = vcmask 1043456   ;;  %vm6026_vm5 = vcmask 31744  }
 0x330   : > { %8033 = vmatprep.subr.bf16.mxu0 %v8032_v9  ;;  %v8046_v21 = vpack.c.bf16 %v7316_v17, %v7314_v16  ;;  %v7299_v22 = vld [vmem:[%s11018_s0 + $0x48] sm:$0xff]  ;;  %v7301_v23 = vld [vmem:[%s11018_s0 + $0x58] sm:$0xff]  ;;  %v7298_v24 = vld [vmem:[%s11018_s0 + $0x40] sm:$0xff]  ;;  %v8048_v25 = vpack.c.bf16 %v7321_v19, %v7319_v18 }
 0x331   : > { %s11159_s21 = scalar_lea.vmem %s12100_s18, %s7652_s29  ;;  %v7318_v26 = vld [vmem:[%s11018_s0 + $0xa0] sm:$0xff]  ;;  %v7320_v27 = vld [vmem:[%s11018_s0 + $0xb0] sm:$0xff]  ;;  %v8036_v28 = vpack.c.bf16 %v7301_v23, %v7299_v22  ;;  %v7303_v39 = vld [vmem:[%s11018_s0 + $0x68] sm:$0xff]  ;;  %s12110_s18 = sld [smem:[#allocation78_spill]] }
 0x332   : > { %v11166_v20 = vld [vmem:[%s11159_s21] sm:$0xff]  ;;  %v7300_v29 = vld [vmem:[%s11018_s0 + $0x50] sm:$0xff]  ;;  %v1855_v31 = vld [vmem:[%s11159_s21 + $0x8] sm:$0xff]  ;;  %v8050_v32 = vpack.c.bf16 %v7320_v27, %v7318_v26  ;;  %s12112_s29 = sld [smem:[#allocation83_spill]] }
 0x333   : > { %8035 = vmatpush1.bf16.msra.mxu0 %v8034_v14  ;;  %v8038_v30 = vpack.c.bf16 %v7300_v29, %v7298_v24  ;;  %8037 = vmatprep.subr.bf16.mxu1 %v8036_v28  ;;  %v1856_v33 = vld [vmem:[%s11159_s21 + $0x10] sm:$0xff]  ;;  %v1857_v34 = vld [vmem:[%s11159_s21 + $0x18] sm:$0xff]  ;;  %v1858_v35 = vld [vmem:[%s11159_s21 + $0x20] sm:$0xff]  ;;  %s12107_s4 = smov %s12106_s16 }
 0x334   : > { %8045 = vmatprep.subr.bf16.mxu0 %v8044_v15  ;;  %v1859_v36 = vld [vmem:[%s11159_s21 + $0x28] sm:$0xff]  ;;  %v1860_v37 = vld [vmem:[%s11159_s21 + $0x30] sm:$0xff]  ;;  %v1861_v38 = vld [vmem:[%s11159_s21 + $0x38] sm:$0xff]  ;;  %s12114_s21 = sld [smem:[#allocation85_spill]] }
 0x335   : > { %8039 = vmatpush1.bf16.msra.mxu1 %v8038_v30  ;;  %v7305_v40 = vld [vmem:[%s11018_s0 + $0x78] sm:$0xff]  ;;  %v7302_v42 = vld [vmem:[%s11018_s0 + $0x60] sm:$0xff]  ;;  %v7304_v43 = vld [vmem:[%s11018_s0 + $0x70] sm:$0xff]  ;;  %s12101_s0 = sld [smem:[#allocation64_spill]] }
 0x336   : > { %7290 = vmatmul.mubr.msk.f32.vlgmr.msra.gmra.mrb[0].mxu0 %vm1870_vm0, %v11166_v20  ;;  %v8040_v41 = vpack.c.bf16 %v7305_v40, %v7303_v39  ;;  %v8042_v44 = vpack.c.bf16 %v7304_v43, %v7302_v42  ;;  %v2252_v8 = vld [vmem:[#allocation6] sm:$0xff]  ;;  %v2253_v12 = vld [vmem:[#allocation6 + $0x8] sm:$0xff]  ;;  %v2254_v16 = vld [vmem:[#allocation6 + $0x10] sm:$0xff] }
 0x337   : > { %1965 = vmatprep.mubr.f32.mxu0 %v10202_v0  ;;  %8047 = vmatpush1.bf16.msra.mxu0 %v8046_v21  ;;  %v2256_v24 = vld [vmem:[#allocation6 + $0x20] sm:$0xff]  ;;  %v2257_v28 = vld [vmem:[#allocation6 + $0x28] sm:$0xff]  ;;  %v2400_v40 = vld [vmem:[#allocation7 + $0x10] sm:$0xff] }
 0x338   : > { %8049 = vmatprep.subr.bf16.mxu0 %v8048_v25  ;;  %8041 = vmatprep.subr.bf16.mxu1 %v8040_v41  ;;  %v2399_v39 = vld [vmem:[#allocation7 + $0x8] sm:$0xff]  ;;  %v2401_v41 = vld [vmem:[#allocation7 + $0x18] sm:$0xff]  ;;  %v2402_v42 = vld [vmem:[#allocation7 + $0x20] sm:$0xff] }
 0x339   : > { %8043 = vmatpush1.bf16.msra.mxu1 %v8042_v44  ;;  %v2403_v43 = vld [vmem:[#allocation7 + $0x28] sm:$0xff]  ;;  %v2404_v44 = vld [vmem:[#allocation7 + $0x30] sm:$0xff] }
 0x33a   : > { %7291 = vmatmul.mubr.msk.f32.gmra.mrb[2].mxu0 %vm1870_vm0, %v1855_v31 }
 0x33b   : > { %1971 = vmatprep.mubr.f32.mxu0 %v10202_v0  ;;  %8051 = vmatpush1.bf16.msra.mxu0 %v8050_v32  ;;  %v2258_v32 = vld [vmem:[#allocation6 + $0x30] sm:$0xff]  ;;  %s12102_s7 = smov %s12101_s0 }
 0x33c   : > { %7306 = vmatmul.mubr.msk.f32.vlgmr.msra.gmra.mrb[0].mxu1 %vm1870_vm0, %v11166_v20 }
 0x33d   : > { %2087 = vmatprep.mubr.f32.mxu1 %v10202_v0 }
 0x33e   : > { %7292 = vmatmul.mubr.msk.f32.gmra.mrb[4].mxu0 %vm1870_vm0, %v1856_v33 }
 0x33f   : > { %1977 = vmatprep.mubr.f32.mxu0 %v10202_v0 }
 0x340   : > { %7307 = vmatmul.mubr.msk.f32.gmra.mrb[2].mxu1 %vm1870_vm0, %v1855_v31 }
 0x341   : > { %2093 = vmatprep.mubr.f32.mxu1 %v10202_v0 }
 0x342   : > { %7293 = vmatmul.mubr.msk.f32.gmra.mrb[6].mxu0 %vm1870_vm0, %v1857_v34 }
 0x343   : > { %1983 = vmatprep.mubr.f32.mxu0 %v10202_v0 }
 0x344   : > { %7308 = vmatmul.mubr.msk.f32.gmra.mrb[4].mxu1 %vm1870_vm0, %v1856_v33 }
 0x345   : > { %2099 = vmatprep.mubr.f32.mxu1 %v10202_v0 }
 0x346   : > { %7294 = vmatmul.mubr.msk.f32.gmra.mrb[8].mxu0 %vm1870_vm0, %v1858_v35 }
 0x347   : > { %1989 = vmatprep.mubr.f32.mxu0 %v10202_v0 }
 0x348   : > { %7309 = vmatmul.mubr.msk.f32.gmra.mrb[6].mxu1 %vm1870_vm0, %v1857_v34 }
 0x349   : > { %2105 = vmatprep.mubr.f32.mxu1 %v10202_v0 }
 0x34a   : > { %7295 = vmatmul.mubr.msk.f32.gmra.mrb[10].mxu0 %vm1870_vm0, %v1859_v36 }
 0x34b   : > { %1995 = vmatprep.mubr.f32.mxu0 %v10202_v0 }
 0x34c   : > { %7310 = vmatmul.mubr.msk.f32.gmra.mrb[8].mxu1 %vm1870_vm0, %v1858_v35 }
 0x34d   : > { %2111 = vmatprep.mubr.f32.mxu1 %v10202_v0 }
 0x34e   : > { %7296 = vmatmul.mubr.msk.f32.gmra.mrb[12].mxu0 %vm1870_vm0, %v1860_v37 }
 0x34f   : > { %2001 = vmatprep.mubr.f32.mxu0 %v10202_v0 }
 0x350   : > { %7311 = vmatmul.mubr.msk.f32.gmra.mrb[10].mxu1 %vm1870_vm0, %v1859_v36 }
 0x351   : > { %2117 = vmatprep.mubr.f32.mxu1 %v10202_v0 }
 0x352   : > { %7297 = vmatmul.mubr.msk.f32.gmra.mrb[14].mxu0 %vm1870_vm0, %v1861_v38 }
 0x353   : > { %2203 = vmatprep.mubr.f32.mxu0 %v10202_v0 }
 0x354   : > { %7312 = vmatmul.mubr.msk.f32.gmra.mrb[12].mxu1 %vm1870_vm0, %v1860_v37 }
 0x355   : > { %2123 = vmatprep.mubr.f32.mxu1 %v10202_v0 }
 0x356   : > { %7322 = vmatmul.mubr.msk.f32.vlgmr.msra.gmra.mrb[16].mxu0 %vm1870_vm0, %v11166_v20  ;;  %v2255_v20 = vld [vmem:[#allocation6 + $0x18] sm:$0xff] }
 0x357   : > { %2209 = vmatprep.mubr.f32.mxu0 %v10202_v0 }
 0x358   : > { %7313 = vmatmul.mubr.msk.f32.gmra.mrb[14].mxu1 %vm1870_vm0, %v1861_v38 }
 0x359   : > { %2349 = vmatprep.mubr.f32.mxu1 %v10202_v0 }
 0x35a   : > { %7323 = vmatmul.mubr.msk.f32.gmra.mrb[18].mxu0 %vm1870_vm0, %v1855_v31 }
 0x35b   : > { %2215 = vmatprep.mubr.f32.mxu0 %v10202_v0 }
 0x35e   : > { %7324 = vmatmul.mubr.msk.f32.gmra.mrb[20].mxu0 %vm1870_vm0, %v1856_v33 }
 0x35f   : > { %2221 = vmatprep.mubr.f32.mxu0 %v10202_v0 }
 0x362   : > { %7325 = vmatmul.mubr.msk.f32.gmra.mrb[22].mxu0 %vm1870_vm0, %v1857_v34 }
 0x363   : > { %2227 = vmatprep.mubr.f32.mxu0 %v10202_v0 }
 0x366   : > { %7326 = vmatmul.mubr.msk.f32.gmra.mrb[24].mxu0 %vm1870_vm0, %v1858_v35 }
 0x367   : > { %2233 = vmatprep.mubr.f32.mxu0 %v10202_v0 }
 0x36a   : > { %7327 = vmatmul.mubr.msk.f32.gmra.mrb[26].mxu0 %vm1870_vm0, %v1859_v36  ;;  %v2259_v36 = vld [vmem:[#allocation6 + $0x38] sm:$0xff] }
 0x36b   : > { %2239 = vmatprep.mubr.f32.mxu0 %v10202_v0 }
 0x36e   : > { %7328 = vmatmul.mubr.msk.f32.gmra.mrb[28].mxu0 %vm1870_vm0, %v1860_v37 }
 0x36f   : > { %2245 = vmatprep.mubr.f32.mxu0 %v10202_v0 }
 0x372   : > { %7329 = vmatmul.mubr.msk.f32.gmra.mrb[30].mxu0 %vm1870_vm0, %v1861_v38  ;;  %v2398_v38 = vld [vmem:[#allocation7] sm:$0xff] }
 0x373   : > { %2639 = vmatprep.mubr.f32.mxu0 %v10202_v0 }
 0x409   : > { %v1961_v45 = vpop.f32.mrb[0].mxu0 }
 0x40a   : > { %v1963_v46 = vpop.f32.mrb[1].mxu0 }
 0x40d   : > { %v1967_v47 = vpop.f32.mrb[2].mxu0 }
 0x40e   : > { %v8054_v48 = vpack.c.bf16 %v1967_v47, %v1961_v45  ;;  %v1969_v49 = vpop.f32.mrb[3].mxu0  ;;  %v2405_v45 = vld [vmem:[#allocation7 + $0x38] sm:$0xff]  ;;  %v2794_v47 = vld [vmem:[%s12102_s7 + $0x88] sm:$0xff] }
 0x40f   : > { %v8052_v50 = vpack.c.bf16 %v1969_v49, %v1963_v46  ;;  %v2793_v46 = vld [vmem:[%s12101_s0 + $0x80] sm:$0xff]  ;;  %s12118_s0 = sld [smem:[#allocation93_spill]] }
 0x410   : > { %v2777_v49 = vld [vmem:[%s12102_s7] sm:$0xff] }
 0x411   : > { %v1973_v51 = vpop.f32.mrb[4].mxu0  ;;  %8053 = vmatprep.subr.bf16.mxu1 %v8052_v50  ;;  %v2778_v50 = vld [vmem:[%s12102_s7 + $0x8] sm:$0xff] }
 0x412   : > { %v1975_v52 = vpop.f32.mrb[5].mxu0  ;;  %8055 = vmatpush1.bf16.msra.mxu1 %v8054_v48  ;;  %v8116_v48 = vpack.c.bf16 %v2794_v47, %v2793_v46  ;;  %v2898_v46 = vld [vmem:[#allocation10 + $0x20] sm:$0xff]  ;;  %v2899_v47 = vld [vmem:[#allocation10 + $0x28] sm:$0xff] }
 0x415   : > { %v1979_v53 = vpop.f32.mrb[6].mxu0 }
 0x416   : > { %v8058_v54 = vpack.c.bf16 %v1979_v53, %v1973_v51  ;;  %v1981_v55 = vpop.f32.mrb[7].mxu0  ;;  %v8118_v51 = vpack.c.bf16 %v2778_v50, %v2777_v49  ;;  %v2796_v53 = vld [vmem:[%s12102_s7 + $0x98] sm:$0xff]  ;;  %v8158_v49 = vpack.c.bf16 %v2899_v47, %v2898_v46 }
 0x417   : > { %v8056_v56 = vpack.c.bf16 %v1981_v55, %v1975_v52  ;;  %v2795_v52 = vld [vmem:[%s12102_s7 + $0x90] sm:$0xff]  ;;  %v2667_v50 = vld [vmem:[#allocation9 + $0x18] sm:$0xff] }
 0x418   : > { %v2779_v55 = vld [vmem:[%s12102_s7 + $0x10] sm:$0xff]  ;;  %v2909_v46 = vld [vmem:[#allocation10 + $0x78] sm:$0xff] }
 0x419   : > { %v1985_v57 = vpop.f32.mrb[8].mxu0  ;;  %8057 = vmatprep.subr.bf16.mxu1 %v8056_v56  ;;  %v2780_v56 = vld [vmem:[%s12102_s7 + $0x18] sm:$0xff] }
 0x41a   : > { %v1987_v58 = vpop.f32.mrb[9].mxu0  ;;  %8059 = vmatpush1.bf16.msra.mxu1 %v8058_v54  ;;  %v8120_v54 = vpack.c.bf16 %v2796_v53, %v2795_v52  ;;  %v2800_v52 = vld [vmem:[%s12102_s7 + $0xb8] sm:$0xff] }
 0x41b   : > { %v2916_v53 = vld [vmem:[#allocation10 + $0xb0] sm:$0xff] }
 0x41d   : > { %v1991_v59 = vpop.f32.mrb[10].mxu0 }
 0x41e   : > { %v8062_v60 = vpack.c.bf16 %v1991_v59, %v1985_v57  ;;  %v1993_v61 = vpop.f32.mrb[11].mxu0  ;;  %v8122_v57 = vpack.c.bf16 %v2780_v56, %v2779_v55  ;;  %v2798_v59 = vld [vmem:[%s12102_s7 + $0xa8] sm:$0xff]  ;;  %v2917_v55 = vld [vmem:[#allocation10 + $0xb8] sm:$0xff]  ;;  %v2783_v56 = vld [vmem:[%s12102_s7 + $0x30] sm:$0xff] }
 0x41f   : > { %v8060_v62 = vpack.c.bf16 %v1993_v61, %v1987_v58  ;;  %v2797_v58 = vld [vmem:[%s12102_s7 + $0xa0] sm:$0xff] }
 0x420   : > { %v2781_v61 = vld [vmem:[%s12102_s7 + $0x20] sm:$0xff] }
 0x421   : > { %v1997_v63 = vpop.f32.mrb[12].mxu0  ;;  %8061 = vmatprep.subr.bf16.mxu1 %v8060_v62  ;;  %v2782_v62 = vld [vmem:[%s12102_s7 + $0x28] sm:$0xff] }
 0x422   : > { %v1999_v1 = vpop.f32.mrb[13].mxu0  ;;  %8063 = vmatpush1.bf16.msra.mxu1 %v8062_v60  ;;  %v8124_v60 = vpack.c.bf16 %v2798_v59, %v2797_v58  ;;  %v8160_v58 = vpack.c.bf16 %v2917_v55, %v2916_v53 }
 0x425   : > { %v2003_v2 = vpop.f32.mrb[14].mxu0 }
 0x426   : > { %v8066_v3 = vpack.c.bf16 %v2003_v2, %v1997_v63  ;;  %v2005_v4 = vpop.f32.mrb[15].mxu0  ;;  %v8126_v63 = vpack.c.bf16 %v2782_v62, %v2781_v61  ;;  %v2901_v61 = vld [vmem:[#allocation10 + $0x38] sm:$0xff] }
 0x427   : > { %v8064_v5 = vpack.c.bf16 %v2005_v4, %v1999_v1 }
 0x429   : > { %v2205_v6 = vpop.f32.mrb[16].mxu0  ;;  %8065 = vmatprep.subr.bf16.mxu1 %v8064_v5 }
 0x42a   : > { %v2207_v7 = vpop.f32.mrb[17].mxu0  ;;  %8067 = vmatpush1.bf16.msra.mxu1 %v8066_v3 }
 0x42d   : > { %v2211_v9 = vpop.f32.mrb[18].mxu0  ;;  %7330 = vmatmul.mubr.msk.f32.vlgmr.msra.gmra.mrb[0].mxu1 %vm2260_vm1, %v2252_v8 }
 0x42e   : > { %v8070_v10 = vpack.c.bf16 %v2211_v9, %v2205_v6  ;;  %v2213_v11 = vpop.f32.mrb[19].mxu0  ;;  %2355 = vmatprep.mubr.f32.mxu1 %v10202_v0 }
 0x42f   : > { %v8068_v13 = vpack.c.bf16 %v2213_v11, %v2207_v7 }
 0x431   : > { %v2217_v14 = vpop.f32.mrb[20].mxu0  ;;  %7331 = vmatmul.mubr.msk.f32.gmra.mrb[2].mxu1 %vm2260_vm1, %v2253_v12  ;;  %8069 = vmatprep.subr.bf16.mxu1 %v8068_v13 }
 0x432   : > { %v2219_v15 = vpop.f32.mrb[21].mxu0  ;;  %8071 = vmatpush1.bf16.msra.mxu1 %v8070_v10  ;;  %2361 = vmatprep.mubr.f32.mxu1 %v10202_v0 }
 0x435   : > { %v2223_v17 = vpop.f32.mrb[22].mxu0  ;;  %7332 = vmatmul.mubr.msk.f32.gmra.mrb[4].mxu1 %vm2260_vm1, %v2254_v16 }
 0x436   : > { %v8074_v18 = vpack.c.bf16 %v2223_v17, %v2217_v14  ;;  %v2225_v19 = vpop.f32.mrb[23].mxu0  ;;  %2367 = vmatprep.mubr.f32.mxu1 %v10202_v0 }
 0x437   : > { %v8072_v21 = vpack.c.bf16 %v2225_v19, %v2219_v15 }
 0x439   : > { %v2229_v22 = vpop.f32.mrb[24].mxu0  ;;  %7333 = vmatmul.mubr.msk.f32.gmra.mrb[6].mxu1 %vm2260_vm1, %v2255_v20  ;;  %8073 = vmatprep.subr.bf16.mxu1 %v8072_v21 }
 0x43a   : > { %v2231_v23 = vpop.f32.mrb[25].mxu0  ;;  %8075 = vmatpush1.bf16.msra.mxu1 %v8074_v18  ;;  %2373 = vmatprep.mubr.f32.mxu1 %v10202_v0 }
 0x43d   : > { %v2235_v25 = vpop.f32.mrb[26].mxu0  ;;  %7334 = vmatmul.mubr.msk.f32.gmra.mrb[8].mxu1 %vm2260_vm1, %v2256_v24 }
 0x43e   : > { %v8078_v26 = vpack.c.bf16 %v2235_v25, %v2229_v22  ;;  %v2237_v27 = vpop.f32.mrb[27].mxu0  ;;  %2379 = vmatprep.mubr.f32.mxu1 %v10202_v0  ;;  %v2559_v25 = vld [vmem:[%s12103_s22] sm:$0xff] }
 0x43f   : > { %v8076_v29 = vpack.c.bf16 %v2237_v27, %v2231_v23  ;;  %v2561_v27 = vld [vmem:[%s12103_s22 + $0x10] sm:$0xff] }
 0x441   : > { %v2241_v30 = vpop.f32.mrb[28].mxu0  ;;  %7335 = vmatmul.mubr.msk.f32.gmra.mrb[10].mxu1 %vm2260_vm1, %v2257_v28  ;;  %8077 = vmatprep.subr.bf16.mxu1 %v8076_v29  ;;  %v2910_v28 = vld [vmem:[#allocation10 + $0x80] sm:$0xff]  ;;  %v2911_v29 = vld [vmem:[#allocation10 + $0x88] sm:$0xff] }
 0x442   : > { %v2243_v31 = vpop.f32.mrb[29].mxu0  ;;  %8079 = vmatpush1.bf16.msra.mxu1 %v8078_v26  ;;  %2385 = vmatprep.mubr.f32.mxu1 %v10202_v0  ;;  %v2560_v26 = vld [vmem:[%s12103_s22 + $0x8] sm:$0xff] }
 0x445   : > { %v2247_v33 = vpop.f32.mrb[30].mxu0  ;;  %7336 = vmatmul.mubr.msk.f32.gmra.mrb[12].mxu1 %vm2260_vm1, %v2258_v32  ;;  %v2894_v32 = vld [vmem:[#allocation10] sm:$0xff] }
 0x446   : > { %v8082_v34 = vpack.c.bf16 %v2247_v33, %v2241_v30  ;;  %v2249_v35 = vpop.f32.mrb[31].mxu0  ;;  %2391 = vmatprep.mubr.f32.mxu1 %v10202_v0  ;;  %v2562_v30 = vld [vmem:[%s12103_s22 + $0x18] sm:$0xff]  ;;  %v2895_v33 = vld [vmem:[#allocation10 + $0x8] sm:$0xff] }
 0x447   : > { %v8080_v37 = vpack.c.bf16 %v2249_v35, %v2243_v31  ;;  %v8148_v31 = vpack.c.bf16 %v2911_v29, %v2910_v28  ;;  %v2913_v35 = vld [vmem:[#allocation10 + $0x98] sm:$0xff]  ;;  %v2923_v28 = vld [vmem:[#allocation10 + $0xe8] sm:$0xff] }
 0x448   : > { %v2789_v29 = vld [vmem:[%s12102_s7 + $0x60] sm:$0xff] }
 0x449   : > { %7337 = vmatmul.mubr.msk.f32.gmra.mrb[14].mxu1 %vm2260_vm1, %v2259_v36  ;;  %8081 = vmatprep.subr.bf16.mxu1 %v8080_v37  ;;  %v2664_v36 = vld [vmem:[#allocation9] sm:$0xff]  ;;  %v8150_v37 = vpack.c.bf16 %v2895_v33, %v2894_v32 }
 0x44a   : > { %8083 = vmatpush1.bf16.msra.mxu1 %v8082_v34  ;;  %2494 = vmatprep.mubr.f32.mxu1 %v10202_v0  ;;  %v2912_v34 = vld [vmem:[#allocation10 + $0x90] sm:$0xff]  ;;  %v2906_v33 = vld [vmem:[#allocation10 + $0x60] sm:$0xff] }
 0x44b   : > { %8117 = vmatprep.subr.bf16.mxu1 %v8116_v48  ;;  %v2666_v48 = vld [vmem:[#allocation9 + $0x10] sm:$0xff] }
 0x44d   : > { %7338 = vmatmul.mubr.msk.f32.vlgmr.msra.gmra.mrb[0].mxu1 %vm2260_vm1, %v2398_v38  ;;  %v8152_v38 = vpack.c.bf16 %v2913_v35, %v2912_v34  ;;  %v2907_v34 = vld [vmem:[#allocation10 + $0x68] sm:$0xff] }
 0x44e   : > { %2500 = vmatprep.mubr.f32.mxu1 %v10202_v0  ;;  %8119 = vmatpush3.bf16.msra.mxu1 %v8118_v51  ;;  %v2799_v51 = vld [vmem:[%s12102_s7 + $0xb0] sm:$0xff]  ;;  %v8174_v35 = vpack.c.bf16 %v2907_v34, %v2906_v33  ;;  %v7363_v33 = vld [vmem:[%s11051_s25 + $0x140] sm:$0xff] }
 0x44f   : > { %8121 = vmatprep.subr.bf16.mxu1 %v8120_v54  ;;  %v8128_v54 = vpack.c.bf16 %v2800_v52, %v2799_v51  ;;  %v7356_v51 = vld [vmem:[%s11051_s25 + $0x108] sm:$0xff]  ;;  %v7358_v52 = vld [vmem:[%s11051_s25 + $0x118] sm:$0xff]  ;;  %v7365_v34 = vld [vmem:[%s11051_s25 + $0x150] sm:$0xff] }
 0x450   : > { %v8212_v53 = vpack.c.bf16 %v7358_v52, %v7356_v51  ;;  %v3047_v51 = vld [vmem:[%s11051_s25 + $0x88] sm:$0xff] }
 0x451   : > { %7339 = vmatmul.mubr.msk.f32.gmra.mrb[2].mxu1 %vm2260_vm1, %v2399_v39  ;;  %v2896_v39 = vld [vmem:[#allocation10 + $0x10] sm:$0xff] }
 0x452   : > { %2506 = vmatprep.mubr.f32.mxu1 %v10202_v0  ;;  %8123 = vmatpush3.bf16.msra.mxu1 %v8122_v57  ;;  %v2784_v57 = vld [vmem:[%s12102_s7 + $0x38] sm:$0xff] }
 0x453   : > { %8125 = vmatprep.subr.bf16.mxu1 %v8124_v60  ;;  %v8130_v59 = vpack.c.bf16 %v2784_v57, %v2783_v56  ;;  %v2900_v60 = vld [vmem:[#allocation10 + $0x30] sm:$0xff] }
 0x454   : > { %v8162_v62 = vpack.c.bf16 %v2901_v61, %v2900_v60 }
 0x455   : > { %7340 = vmatmul.mubr.msk.f32.gmra.mrb[4].mxu1 %vm2260_vm1, %v2400_v40  ;;  %v2897_v40 = vld [vmem:[#allocation10 + $0x18] sm:$0xff] }
 0x456   : > { %2512 = vmatprep.mubr.f32.mxu1 %v10202_v0  ;;  %8127 = vmatpush3.bf16.msra.mxu1 %v8126_v63  ;;  %v2801_v63 = vld [vmem:[%s12102_s7 + $0xc0] sm:$0xff] }
 0x457   : > { %8129 = vmatprep.subr.bf16.mxu1 %v8128_v54 }
 0x459   : > { %7341 = vmatmul.mubr.msk.f32.gmra.mrb[6].mxu1 %vm2260_vm1, %v2401_v41  ;;  %v2914_v41 = vld [vmem:[#allocation10 + $0xa0] sm:$0xff] }
 0x45a   : > { %2518 = vmatprep.mubr.f32.mxu1 %v10202_v0  ;;  %8131 = vmatpush3.bf16.msra.mxu1 %v8130_v59 }
 0x45d   : > { %7342 = vmatmul.mubr.msk.f32.gmra.mrb[8].mxu1 %vm2260_vm1, %v2402_v42  ;;  %v2915_v42 = vld [vmem:[#allocation10 + $0xa8] sm:$0xff] }
 0x45e   : > { %2524 = vmatprep.mubr.f32.mxu1 %v10202_v0 }
 0x461   : > { %7343 = vmatmul.mubr.msk.f32.gmra.mrb[10].mxu1 %vm2260_vm1, %v2403_v43  ;;  %v2665_v43 = vld [vmem:[#allocation9 + $0x8] sm:$0xff] }
 0x462   : > { %2530 = vmatprep.mubr.f32.mxu1 %v10202_v0 }
 0x465   : > { %7344 = vmatmul.mubr.msk.f32.gmra.mrb[12].mxu1 %vm2260_vm1, %v2404_v44  ;;  %v8154_v44 = vpack.c.bf16 %v2897_v40, %v2896_v39  ;;  %v2925_v40 = vld [vmem:[#allocation10 + $0xf8] sm:$0xff] }
 0x466   : > { %2536 = vmatprep.mubr.f32.mxu1 %v10202_v0 }
 0x469   : > { %7345 = vmatmul.mubr.msk.f32.gmra.mrb[14].mxu1 %vm2260_vm1, %v2405_v45  ;;  %v8156_v45 = vpack.c.bf16 %v2915_v42, %v2914_v41  ;;  %v2791_v41 = vld [vmem:[%s12102_s7 + $0x70] sm:$0xff]  ;;  %v2792_v42 = vld [vmem:[%s12102_s7 + $0x78] sm:$0xff] }
 0x520   : > { %v2496_v1 = vpop.f32.mrb[0].mxu1 }
 0x521   : > { %v2498_v2 = vpop.f32.mrb[1].mxu1 }
 0x524   : > { %v2502_v3 = vpop.f32.mrb[2].mxu1 }
 0x525   : > { %v8086_v4 = vpack.c.bf16 %v2502_v3, %v2496_v1  ;;  %v2504_v5 = vpop.f32.mrb[3].mxu1  ;;  %v2802_v1 = vld [vmem:[%s12102_s7 + $0xc8] sm:$0xff] }
 0x526   : > { %v8084_v6 = vpack.c.bf16 %v2504_v5, %v2498_v2  ;;  %v2918_v2 = vld [vmem:[#allocation10 + $0xc0] sm:$0xff]  ;;  %v8132_v3 = vpack.c.bf16 %v2802_v1, %v2801_v63  ;;  %v3032_v63 = vld [vmem:[%s11051_s25 + $0x10] sm:$0xff] }
 0x527   : > { %v2785_v5 = vld [vmem:[%s12102_s7 + $0x40] sm:$0xff] }
 0x528   : > { %v2508_v7 = vpop.f32.mrb[4].mxu1  ;;  %8085 = vmatprep.subr.bf16.mxu0 %v8084_v6  ;;  %8133 = vmatprep.subr.bf16.mxu1 %v8132_v3  ;;  %v7355_v1 = vld [vmem:[%s11051_s25 + $0x100] sm:$0xff]  ;;  %v3035_v3 = vld [vmem:[%s11051_s25 + $0x28] sm:$0xff] }
 0x529   : > { %v2510_v8 = vpop.f32.mrb[5].mxu1  ;;  %8087 = vmatpush1.bf16.msra.mxu0 %v8086_v4 }
 0x52c   : > { %v2514_v9 = vpop.f32.mrb[6].mxu1 }
 0x52d   : > { %v8090_v10 = vpack.c.bf16 %v2514_v9, %v2508_v7  ;;  %v2516_v11 = vpop.f32.mrb[7].mxu1  ;;  %v2902_v9 = vld [vmem:[#allocation10 + $0x40] sm:$0xff] }
 0x52e   : > { %v8088_v12 = vpack.c.bf16 %v2516_v11, %v2510_v8 }
 0x530   : > { %v2520_v13 = vpop.f32.mrb[8].mxu1  ;;  %8089 = vmatprep.subr.bf16.mxu0 %v8088_v12 }
 0x531   : > { %v2522_v14 = vpop.f32.mrb[9].mxu1  ;;  %8091 = vmatpush1.bf16.msra.mxu0 %v8090_v10 }
 0x534   : > { %v2526_v15 = vpop.f32.mrb[10].mxu1 }
 0x535   : > { %v8094_v16 = vpack.c.bf16 %v2526_v15, %v2520_v13  ;;  %v2528_v17 = vpop.f32.mrb[11].mxu1  ;;  %v2804_v13 = vld [vmem:[%s12102_s7 + $0xd8] sm:$0xff] }
 0x536   : > { %v8092_v18 = vpack.c.bf16 %v2528_v17, %v2522_v14  ;;  %v2920_v14 = vld [vmem:[#allocation10 + $0xd0] sm:$0xff] }
 0x537   : > { %v2787_v17 = vld [vmem:[%s12102_s7 + $0x50] sm:$0xff] }
 0x538   : > { %v2532_v19 = vpop.f32.mrb[12].mxu1  ;;  %8093 = vmatprep.subr.bf16.mxu0 %v8092_v18 }
 0x539   : > { %v2534_v20 = vpop.f32.mrb[13].mxu1  ;;  %8095 = vmatpush1.bf16.msra.mxu0 %v8094_v16 }
 0x53c   : > { %v2538_v21 = vpop.f32.mrb[14].mxu1 }
 0x53d   : > { %v8098_v22 = vpack.c.bf16 %v2538_v21, %v2532_v19  ;;  %v2540_v23 = vpop.f32.mrb[15].mxu1  ;;  %v2904_v21 = vld [vmem:[#allocation10 + $0x50] sm:$0xff] }
 0x53e   : > { %v8096_v24 = vpack.c.bf16 %v2540_v23, %v2534_v20 }
 0x540   : > { %8097 = vmatprep.subr.bf16.mxu0 %v8096_v24 }
 0x541   : > { %8099 = vmatpush1.bf16.msra.mxu0 %v8098_v22 }
 0x542   : > { %8101 = vmatprep.subr.bf16.mxu0 %v8084_v6  ;;  %v2786_v6 = vld [vmem:[%s12102_s7 + $0x48] sm:$0xff] }
 0x543   : > { %v8134_v8 = vpack.c.bf16 %v2786_v6, %v2785_v5  ;;  %v3037_v5 = vld [vmem:[%s11051_s25 + $0x38] sm:$0xff]  ;;  %v7360_v6 = vld [vmem:[%s11051_s25 + $0x128] sm:$0xff] }
 0x544   : > { %7346 = vmatmul.mubr.msk.f32.vlgmr.msra.gmra.mrb[32].mxu0 %vm2260_vm1, %v2559_v25  ;;  %v2806_v25 = vld [vmem:[%s12102_s7 + $0xe8] sm:$0xff] }
 0x545   : > { %8103 = vmatpush1.bf16.msra.mxu0 %v8086_v4  ;;  %2645 = vmatprep.mubr.f32.mxu0 %v10202_v0  ;;  %v2919_v4 = vld [vmem:[#allocation10 + $0xc8] sm:$0xff] }
 0x546   : > { %8105 = vmatprep.subr.bf16.mxu0 %v8088_v12  ;;  %v8164_v7 = vpack.c.bf16 %v2919_v4, %v2918_v2  ;;  %8135 = vmatpush3.bf16.msra.mxu1 %v8134_v8  ;;  %v2803_v12 = vld [vmem:[%s12102_s7 + $0xd0] sm:$0xff] }
 0x547   : > { %v8136_v15 = vpack.c.bf16 %v2804_v13, %v2803_v12  ;;  %v7357_v2 = vld [vmem:[%s11051_s25 + $0x110] sm:$0xff]  ;;  %v3034_v13 = vld [vmem:[%s11051_s25 + $0x20] sm:$0xff] }
 0x548   : > { %7347 = vmatmul.mubr.msk.f32.gmra.mrb[34].mxu0 %vm2260_vm1, %v2560_v26  ;;  %v2922_v26 = vld [vmem:[#allocation10 + $0xe0] sm:$0xff]  ;;  %v8214_v12 = vpack.c.bf16 %v7357_v2, %v7355_v1  ;;  %v3048_v1 = vld [vmem:[%s11051_s25 + $0x90] sm:$0xff] }
 0x549   : > { %8107 = vmatpush1.bf16.msra.mxu0 %v8090_v10  ;;  %2651 = vmatprep.mubr.f32.mxu0 %v10202_v0  ;;  %v2903_v10 = vld [vmem:[#allocation10 + $0x48] sm:$0xff] }
 0x54a   : > { %8109 = vmatprep.subr.bf16.mxu0 %v8092_v18  ;;  %v8166_v11 = vpack.c.bf16 %v2903_v10, %v2902_v9  ;;  %v2788_v18 = vld [vmem:[%s12102_s7 + $0x58] sm:$0xff]  ;;  %8137 = vmatprep.subr.bf16.mxu1 %v8136_v15  ;;  %v8184_v15 = vpack.c.bf16 %v3037_v5, %v3035_v3  ;;  %v7371_v3 = vld [vmem:[%s11051_s25 + $0x180] sm:$0xff]  ;;  %v3051_v5 = vld [vmem:[%s11051_s25 + $0xa8] sm:$0xff] }
 0x54b   : > { %v8138_v20 = vpack.c.bf16 %v2788_v18, %v2787_v17  ;;  %v7359_v17 = vld [vmem:[%s11051_s25 + $0x120] sm:$0xff]  ;;  %v7361_v18 = vld [vmem:[%s11051_s25 + $0x130] sm:$0xff] }
 0x54c   : > { %7348 = vmatmul.mubr.msk.f32.gmra.mrb[36].mxu0 %vm2260_vm1, %v2561_v27 }
 0x54d   : > { %8111 = vmatpush1.bf16.msra.mxu0 %v8094_v16  ;;  %2657 = vmatprep.mubr.f32.mxu0 %v10202_v0  ;;  %v2921_v16 = vld [vmem:[#allocation10 + $0xd8] sm:$0xff] }
 0x54e   : > { %8113 = vmatprep.subr.bf16.mxu0 %v8096_v24  ;;  %v8168_v19 = vpack.c.bf16 %v2921_v16, %v2920_v14  ;;  %8139 = vmatpush3.bf16.msra.mxu1 %v8138_v20  ;;  %v2805_v24 = vld [vmem:[%s12102_s7 + $0xe0] sm:$0xff]  ;;  %v3036_v14 = vld [vmem:[%s11051_s25 + $0x30] sm:$0xff] }
 0x54f   : > { %v8140_v27 = vpack.c.bf16 %v2806_v25, %v2805_v24 }
 0x550   : > { %7349 = vmatmul.mubr.msk.f32.gmra.mrb[38].mxu0 %vm2260_vm1, %v2562_v30  ;;  %v2790_v30 = vld [vmem:[%s12102_s7 + $0x68] sm:$0xff] }
 0x551   : > { %8115 = vmatpush1.bf16.msra.mxu0 %v8098_v22  ;;  %2744 = vmatprep.mubr.f32.mxu0 %v10202_v0  ;;  %v2905_v22 = vld [vmem:[#allocation10 + $0x58] sm:$0xff]  ;;  %v8142_v32 = vpack.c.bf16 %v2790_v30, %v2789_v29  ;;  %v3038_v29 = vld [vmem:[%s11051_s25 + $0x40] sm:$0xff]  ;;  %v3040_v30 = vld [vmem:[%s11051_s25 + $0x50] sm:$0xff] }
 0x552   : > { %8149 = vmatprep.subr.bf16.mxu0 %v8148_v31  ;;  %v8170_v23 = vpack.c.bf16 %v2905_v22, %v2904_v21  ;;  %v8172_v31 = vpack.c.bf16 %v2923_v28, %v2922_v26  ;;  %8141 = vmatprep.subr.bf16.mxu1 %v8140_v27  ;;  %v3041_v21 = vld [vmem:[%s11051_s25 + $0x58] sm:$0xff]  ;;  %v7364_v22 = vld [vmem:[%s11051_s25 + $0x148] sm:$0xff]  ;;  %v8186_v27 = vpack.c.bf16 %v3036_v14, %v3034_v13  ;;  %v7375_v14 = vld [vmem:[%s11051_s25 + $0x1a0] sm:$0xff] }
 0x553   : > { %8143 = vmatpush3.bf16.msra.mxu1 %v8142_v32  ;;  %v8218_v28 = vpack.c.bf16 %v7361_v18, %v7359_v17  ;;  %v3055_v18 = vld [vmem:[%s11051_s25 + $0xc8] sm:$0xff] }
 0x554   : > { %7350 = vmatmul.mubr.msk.f32.vlgmr.msra.gmra.mrb[40].mxu0 %vm2260_vm1, %v2664_v36  ;;  %v2807_v36 = vld [vmem:[%s12102_s7 + $0xf0] sm:$0xff] }
 0x555   : > { %2750 = vmatprep.mubr.f32.mxu0 %v10202_v0  ;;  %8151 = vmatpush3.bf16.msra.mxu0 %v8150_v37  ;;  %v2808_v37 = vld [vmem:[%s12102_s7 + $0xf8] sm:$0xff] }
 0x556   : > { %8153 = vmatprep.subr.bf16.mxu0 %v8152_v38  ;;  %v2924_v38 = vld [vmem:[#allocation10 + $0xf0] sm:$0xff]  ;;  %v8144_v39 = vpack.c.bf16 %v2808_v37, %v2807_v36  ;;  %v3045_v37 = vld [vmem:[%s11051_s25 + $0x78] sm:$0xff] }
 0x558   : > { %7351 = vmatmul.mubr.msk.f32.gmra.mrb[42].mxu0 %vm2260_vm1, %v2665_v43  ;;  %v8176_v43 = vpack.c.bf16 %v2925_v40, %v2924_v38  ;;  %8145 = vmatprep.subr.bf16.mxu1 %v8144_v39  ;;  %v7368_v38 = vld [vmem:[%s11051_s25 + $0x168] sm:$0xff]  ;;  %v7370_v39 = vld [vmem:[%s11051_s25 + $0x178] sm:$0xff] }
 0x559   : > { %2756 = vmatprep.mubr.f32.mxu0 %v10202_v0  ;;  %8155 = vmatpush3.bf16.msra.mxu0 %v8154_v44  ;;  %v8146_v44 = vpack.c.bf16 %v2792_v42, %v2791_v41 }
 0x55a   : > { %8157 = vmatprep.subr.bf16.mxu0 %v8156_v45  ;;  %v2908_v45 = vld [vmem:[#allocation10 + $0x70] sm:$0xff] }
 0x55b   : > { %v8178_v47 = vpack.c.bf16 %v2909_v46, %v2908_v45  ;;  %8147 = vmatpush3.bf16.msra.mxu1 %v8146_v44  ;;  %v8222_v44 = vpack.c.bf16 %v7365_v34, %v7363_v33  ;;  %v3042_v45 = vld [vmem:[%s11051_s25 + $0x60] sm:$0xff]  ;;  %v3044_v46 = vld [vmem:[%s11051_s25 + $0x70] sm:$0xff] }
 0x55c   : > { %7352 = vmatmul.mubr.msk.f32.gmra.mrb[44].mxu0 %vm2260_vm1, %v2666_v48  ;;  %v3031_v48 = vld [vmem:[%s11051_s25 + $0x8] sm:$0xff]  ;;  %v3058_v33 = vld [vmem:[%s11051_s25 + $0xe0] sm:$0xff]  ;;  %v3060_v34 = vld [vmem:[%s11051_s25 + $0xf0] sm:$0xff] }
 0x55d   : > { %2762 = vmatprep.mubr.f32.mxu0 %v10202_v0  ;;  %8159 = vmatpush3.bf16.msra.mxu0 %v8158_v49  ;;  %v3033_v49 = vld [vmem:[%s11051_s25 + $0x18] sm:$0xff] }
 0x55e   : > { %8161 = vmatprep.subr.bf16.mxu0 %v8160_v58 }
 0x560   : > { %7353 = vmatmul.mubr.msk.f32.gmra.mrb[46].mxu0 %vm2260_vm1, %v2667_v50  ;;  %v8180_v50 = vpack.c.bf16 %v3033_v49, %v3031_v48  ;;  %v8224_v48 = vpack.c.bf16 %v7370_v39, %v7368_v38  ;;  %v7367_v49 = vld [vmem:[%s11051_s25 + $0x160] sm:$0xff] }
 0x561   : > { %8163 = vmatpush3.bf16.msra.mxu0 %v8162_v62  ;;  %v3030_v62 = vld [vmem:[%s11051_s25] sm:$0xff] }
 0x562   : > { %8165 = vmatprep.subr.bf16.mxu0 %v8164_v7  ;;  %8181 = vmatprep.subr.bf16.mxu1 %v8180_v50  ;;  %v7362_v7 = vld [vmem:[%s11051_s25 + $0x138] sm:$0xff]  ;;  %v7369_v50 = vld [vmem:[%s11051_s25 + $0x170] sm:$0xff]  ;;  %v7383_v38 = vld [vmem:[%s11051_s25 + $0x1e0] sm:$0xff] }
 0x563   : > { %v8216_v16 = vpack.c.bf16 %v7362_v7, %v7360_v6  ;;  %v7376_v6 = vld [vmem:[%s11051_s25 + $0x1a8] sm:$0xff]  ;;  %v7378_v7 = vld [vmem:[%s11051_s25 + $0x1b8] sm:$0xff] }
 0x564   : > { %v8232_v13 = vpack.c.bf16 %v7378_v7, %v7376_v6  ;;  %v7391_v7 = vld [vmem:[%s11051_s25 + $0x220] sm:$0xff] }
 0x565   : > { %8167 = vmatpush3.bf16.msra.mxu0 %v8166_v11  ;;  %v8182_v11 = vpack.c.bf16 %v3032_v63, %v3030_v62  ;;  %v8226_v62 = vpack.c.bf16 %v7369_v50, %v7367_v49  ;;  %v3046_v63 = vld [vmem:[%s11051_s25 + $0x80] sm:$0xff] }
 0x566   : > { %8169 = vmatprep.subr.bf16.mxu0 %v8168_v19  ;;  %v3039_v19 = vld [vmem:[%s11051_s25 + $0x48] sm:$0xff] }
 0x569   : > { %8171 = vmatpush3.bf16.msra.mxu0 %v8170_v23  ;;  %v7366_v23 = vld [vmem:[%s11051_s25 + $0x158] sm:$0xff] }
 0x56a   : > { %8173 = vmatprep.subr.bf16.mxu0 %v8172_v31  ;;  %v8188_v31 = vpack.c.bf16 %v3041_v21, %v3039_v19  ;;  %v8220_v32 = vpack.c.bf16 %v7366_v23, %v7364_v22  ;;  %v3057_v19 = vld [vmem:[%s11051_s25 + $0xd8] sm:$0xff]  ;;  %v3054_v21 = vld [vmem:[%s11051_s25 + $0xc0] sm:$0xff]  ;;  %v3056_v22 = vld [vmem:[%s11051_s25 + $0xd0] sm:$0xff] }
 0x56b   : > { %v7380_v23 = vld [vmem:[%s11051_s25 + $0x1c8] sm:$0xff] }
 0x56d   : > { %8175 = vmatpush3.bf16.msra.mxu0 %v8174_v35  ;;  %v3043_v35 = vld [vmem:[%s11051_s25 + $0x68] sm:$0xff] }
 0x56e   : > { %8177 = vmatprep.subr.bf16.mxu0 %v8176_v43  ;;  %v8190_v43 = vpack.c.bf16 %v3040_v30, %v3038_v29  ;;  %v3059_v30 = vld [vmem:[%s11051_s25 + $0xe8] sm:$0xff] }
 0x571   : > { %8179 = vmatpush3.bf16.msra.mxu0 %v8178_v47  ;;  %v8192_v47 = vpack.c.bf16 %v3045_v37, %v3043_v35  ;;  %v7384_v35 = vld [vmem:[%s11051_s25 + $0x1e8] sm:$0xff]  ;;  %v7386_v37 = vld [vmem:[%s11051_s25 + $0x1f8] sm:$0xff] }
 0x572   : > { %8213 = vmatprep.subr.bf16.mxu0 %v8212_v53  ;;  %v3049_v53 = vld [vmem:[%s11051_s25 + $0x98] sm:$0xff]  ;;  %v8240_v39 = vpack.c.bf16 %v7386_v37, %v7384_v35  ;;  %v7399_v35 = vld [vmem:[%s11051_s25 + $0x260] sm:$0xff]  ;;  %v7404_v37 = vld [vmem:[%s11051_s25 + $0x288] sm:$0xff] }
 0x573   : > { %v8196_v2 = vpack.c.bf16 %v3049_v53, %v3047_v51  ;;  %v11394_v51 = vld [vmem:[%s1562_s15] ss:$0 sm:$0xff]  ;;  %s12104_s15 = sld [smem:[#allocation69_spill]] }
 0x617   : > { %v2641_v54 = vpop.f32.mrb[32].mxu0 }
 0x618   : > { %v2643_v55 = vpop.f32.mrb[33].mxu0 }
 0x61b   : > { %v2647_v56 = vpop.f32.mrb[34].mxu0 }
 0x61c   : > { %v2649_v57 = vpop.f32.mrb[35].mxu0 }
 0x61f   : > { %v2653_v58 = vpop.f32.mrb[36].mxu0 }
 0x620   : > { %v2655_v59 = vpop.f32.mrb[37].mxu0 }
 0x623   : > { %v11322_v60 = vpop.f32.mrb[38].mxu0 }
 0x624   : > { %v11324_v61 = vpop.f32.mrb[39].mxu0 }
 0x627   : > { %v2746_v4 = vpop.f32.mrb[40].mxu0 }
 0x628   : > { %v2769_v8 = vmax.f32 %v2641_v54, %v2746_v4  ;;  %v2748_v9 = vpop.f32.mrb[41].mxu0  ;;  %v7372_v54 = vld [vmem:[%s11051_s25 + $0x188] sm:$0xff]  ;;  %v7373_v4 = vld [vmem:[%s11051_s25 + $0x190] sm:$0xff] }
 0x629   : > { %v2770_v10 = vmax.f32 %v2643_v55, %v2748_v9  ;;  %v7374_v55 = vld [vmem:[%s11051_s25 + $0x198] sm:$0xff]  ;;  %v8230_v9 = vpack.c.bf16 %v7373_v4, %v7371_v3 }
 0x62b   : > { %v2752_v20 = vpop.f32.mrb[42].mxu0  ;;  %2873 = vmatprep.mubr.f32.mxu1 %v2770_v10  ;;  %2990 = vmatprep.mubr.f32.mxu0 %v2770_v10  ;;  %v3050_v10 = vld [vmem:[%s11051_s25 + $0xa0] sm:$0xff] }
 0x62c   : > { %v2771_v24 = vmax.f32 %v2647_v56, %v2752_v20  ;;  %v2754_v25 = vpop.f32.mrb[43].mxu0  ;;  %2874 = vmatmul.mubr.f32.vlgmr.msra.gmra.mrb[16].mxu1 %v2769_v8  ;;  %2991 = vmatmul.mubr.f32.vlgmr.msra.gmra.mrb[48].mxu0 %v2769_v8  ;;  %v8198_v8 = vpack.c.bf16 %v3048_v1, %v3046_v63  ;;  %v8204_v20 = vpack.c.bf16 %v3057_v19, %v3055_v18 }
 0x62d   : > { %v2772_v26 = vmax.f32 %v2649_v57, %v2754_v25  ;;  %8183 = vmatpush1.bf16.msra.mxu1 %v8182_v11  ;;  %8215 = vmatpush1.bf16.msra.mxu0 %v8214_v12  ;;  %v3052_v12 = vld [vmem:[%s11051_s25 + $0xb0] sm:$0xff]  ;;  %v7382_v25 = vld [vmem:[%s11051_s25 + $0x1d8] sm:$0xff] }
 0x62e   : > { %8185 = vmatprep.subr.bf16.mxu1 %v8184_v15  ;;  %8217 = vmatprep.subr.bf16.mxu0 %v8216_v16  ;;  %v7377_v15 = vld [vmem:[%s11051_s25 + $0x1b0] sm:$0xff]  ;;  %v8202_v16 = vpack.c.bf16 %v3052_v12, %v3050_v10  ;;  %v7398_v12 = vld [vmem:[%s11051_s25 + $0x258] sm:$0xff] }
 0x62f   : > { %v2758_v36 = vpop.f32.mrb[44].mxu0  ;;  %2878 = vmatprep.mubr.f32.mxu1 %v2772_v26  ;;  %2995 = vmatprep.mubr.f32.mxu0 %v2772_v26  ;;  %v8234_v17 = vpack.c.bf16 %v7377_v15, %v7375_v14  ;;  %v7379_v26 = vld [vmem:[%s11051_s25 + $0x1c0] sm:$0xff] }
 0x630   : > { %v2773_v40 = vmax.f32 %v2653_v58, %v2758_v36  ;;  %v2760_v41 = vpop.f32.mrb[45].mxu0  ;;  %2879 = vmatmul.mubr.f32.gmra.mrb[18].mxu1 %v2771_v24  ;;  %2996 = vmatmul.mubr.f32.gmra.mrb[50].mxu0 %v2771_v24  ;;  %v8206_v24 = vpack.c.bf16 %v3056_v22, %v3054_v21  ;;  %v8210_v36 = vpack.c.bf16 %v3060_v34, %v3058_v33  ;;  %v7395_v22 = vld [vmem:[%s11051_s25 + $0x240] sm:$0xff] }
 0x631   : > { %v2774_v42 = vmax.f32 %v2655_v59, %v2760_v41  ;;  %8187 = vmatpush1.bf16.msra.mxu1 %v8186_v27  ;;  %8219 = vmatpush1.bf16.msra.mxu0 %v8218_v28  ;;  %v8194_v59 = vpack.c.bf16 %v3044_v46, %v3042_v45  ;;  %v7381_v27 = vld [vmem:[%s11051_s25 + $0x1d0] sm:$0xff]  ;;  %v8236_v28 = vpack.c.bf16 %v7382_v25, %v7380_v23 }
 0x632   : > { %8189 = vmatprep.subr.bf16.mxu1 %v8188_v31  ;;  %8221 = vmatprep.subr.bf16.mxu0 %v8220_v32  ;;  %v8238_v29 = vpack.c.bf16 %v7381_v27, %v7379_v26  ;;  %v3061_v31 = vld [vmem:[%s11051_s25 + $0xf8] sm:$0xff]  ;;  %v7397_v23 = vld [vmem:[%s11051_s25 + $0x250] sm:$0xff]  ;;  %v7400_v26 = vld [vmem:[%s11051_s25 + $0x268] sm:$0xff] }
 0x633   : > { %v2764_v52 = vpop.f32.mrb[46].mxu0  ;;  %2883 = vmatprep.mubr.f32.mxu1 %v2774_v42  ;;  %3000 = vmatprep.mubr.f32.mxu0 %v2774_v42  ;;  %v8208_v32 = vpack.c.bf16 %v3061_v31, %v3059_v30  ;;  %v7388_v42 = vld [vmem:[%s11051_s25 + $0x208] sm:$0xff]  ;;  %v7402_v27 = vld [vmem:[%s11051_s25 + $0x278] sm:$0xff]  ;;  %v8254_v31 = vpack.c.bf16 %v7397_v23, %v7395_v22 }
 0x634   : > { %v2775_v56 = vmax.f32 %v11322_v60, %v2764_v52  ;;  %v2766_v57 = vpop.f32.mrb[47].mxu0  ;;  %2884 = vmatmul.mubr.f32.gmra.mrb[20].mxu1 %v2773_v40  ;;  %3001 = vmatmul.mubr.f32.gmra.mrb[52].mxu0 %v2773_v40  ;;  %v8228_v60 = vpack.c.bf16 %v7374_v55, %v7372_v54  ;;  %v7385_v40 = vld [vmem:[%s11051_s25 + $0x1f0] sm:$0xff]  ;;  %v7387_v55 = vld [vmem:[%s11051_s25 + $0x200] sm:$0xff]  ;;  %v8256_v34 = vpack.c.bf16 %v7402_v27, %v7400_v26 }
 0x635   : > { %v2776_v58 = vmax.f32 %v11324_v61, %v2766_v57  ;;  %8191 = vmatpush1.bf16.msra.mxu1 %v8190_v43  ;;  %8223 = vmatpush1.bf16.msra.mxu0 %v8222_v44  ;;  %v3053_v61 = vld [vmem:[%s11051_s25 + $0xb8] sm:$0xff]  ;;  %v8242_v41 = vpack.c.bf16 %v7385_v40, %v7383_v38 }
 0x636   : > { %8193 = vmatprep.subr.bf16.mxu1 %v8192_v47  ;;  %8225 = vmatprep.subr.bf16.mxu0 %v8224_v48  ;;  %v8200_v11 = vpack.c.bf16 %v3053_v61, %v3051_v5  ;;  %v7390_v43 = vld [vmem:[%s11051_s25 + $0x218] sm:$0xff] }
 0x637   : > { %2888 = vmatprep.mubr.f32.mxu1 %v2776_v58  ;;  %3005 = vmatprep.mubr.f32.mxu0 %v2776_v58  ;;  %v8244_v44 = vpack.c.bf16 %v7390_v43, %v7388_v42  ;;  %v7406_v38 = vld [vmem:[%s11051_s25 + $0x298] sm:$0xff]  ;;  %v7403_v43 = vld [vmem:[%s11051_s25 + $0x280] sm:$0xff] }
 0x638   : > { %2889 = vmatmul.mubr.f32.gmra.mrb[22].mxu1 %v2775_v56  ;;  %3006 = vmatmul.mubr.f32.gmra.mrb[54].mxu0 %v2775_v56  ;;  %v7389_v56 = vld [vmem:[%s11051_s25 + $0x210] sm:$0xff]  ;;  %v8260_v42 = vpack.c.bf16 %v7406_v38, %v7404_v37 }
 0x639   : > { %8195 = vmatpush1.bf16.msra.mxu1 %v8194_v59  ;;  %8227 = vmatpush1.bf16.msra.mxu0 %v8226_v62  ;;  %v7392_v59 = vld [vmem:[%s11051_s25 + $0x228] sm:$0xff]  ;;  %v7394_v62 = vld [vmem:[%s11051_s25 + $0x238] sm:$0xff] }
 0x63a   : > { %8197 = vmatprep.subr.bf16.mxu1 %v8196_v2  ;;  %8229 = vmatprep.subr.bf16.mxu0 %v8228_v60  ;;  %v8246_v60 = vpack.c.bf16 %v7389_v56, %v7387_v55  ;;  %v8248_v6 = vpack.c.bf16 %v7394_v62, %v7392_v59  ;;  %v7411_v55 = vld [vmem:[%s11051_s25 + $0x2c0] sm:$0xff]  ;;  %v7413_v56 = vld [vmem:[%s11051_s25 + $0x2d0] sm:$0xff] }
 0x63b   : > { %3126 = vmatprep.mubr.f32.mxu1 %v10202_v0  ;;  %3248 = vmatprep.mubr.f32.mxu0 %v10202_v0  ;;  %v8270_v59 = vpack.c.bf16 %v7413_v56, %v7411_v55  ;;  %v3788_v37 = vld [vmem:[#allocation16 + $0x8] sm:$0xff]  ;;  %v3794_v55 = vld [vmem:[#allocation16 + $0x38] sm:$0xff]  ;;  %v3811_v56 = vld [vmem:[#allocation16 + $0xc0] sm:$0xff] }
 0x63d   : > { %8199 = vmatpush1.bf16.msra.mxu1 %v8198_v8  ;;  %8231 = vmatpush1.bf16.msra.mxu0 %v8230_v9  ;;  %v7393_v8 = vld [vmem:[%s11051_s25 + $0x230] sm:$0xff] }
 0x63e   : > { %8201 = vmatprep.subr.bf16.mxu1 %v8200_v11  ;;  %8233 = vmatprep.subr.bf16.mxu0 %v8232_v13  ;;  %v7396_v11 = vld [vmem:[%s11051_s25 + $0x248] sm:$0xff] }
 0x63f   : > { %v8252_v21 = vpack.c.bf16 %v7398_v12, %v7396_v11 }
 0x641   : > { %8203 = vmatpush1.bf16.msra.mxu1 %v8202_v16  ;;  %8235 = vmatpush1.bf16.msra.mxu0 %v8234_v17  ;;  %v8250_v16 = vpack.c.bf16 %v7393_v8, %v7391_v7 }
 0x642   : > { %8205 = vmatprep.subr.bf16.mxu1 %v8204_v20  ;;  %8237 = vmatprep.subr.bf16.mxu0 %v8236_v28 }
 0x645   : > { %8207 = vmatpush1.bf16.msra.mxu1 %v8206_v24  ;;  %8239 = vmatpush1.bf16.msra.mxu0 %v8238_v29 }
 0x646   : > { %8209 = vmatprep.subr.bf16.mxu1 %v8208_v32  ;;  %8241 = vmatprep.subr.bf16.mxu0 %v8240_v39 }
 0x649   : > { %8211 = vmatpush1.bf16.msra.mxu1 %v8210_v36  ;;  %8243 = vmatpush1.bf16.msra.mxu0 %v8242_v41  ;;  %v7401_v36 = vld [vmem:[%s11051_s25 + $0x270] sm:$0xff] }
 0x64a   : > { %8245 = vmatprep.subr.bf16.mxu1 %v8244_v44  ;;  %v8258_v40 = vpack.c.bf16 %v7401_v36, %v7399_v35  ;;  %v7405_v44 = vld [vmem:[%s11051_s25 + $0x290] sm:$0xff]  ;;  %v3787_v36 = vld [vmem:[#allocation16] sm:$0xff] }
 0x64b   : > { %v8310_v38 = vpack.c.bf16 %v3788_v37, %v3787_v36  ;;  %v3900_v37 = vld [vmem:[#allocation18 + $0x30] sm:$0xff] }
 0x6ff   : > { %v7686_v45 = vpop.f32.mrb[16].mxu1  ;;  %v7730_v46 = vpop.f32.mrb[48].mxu0 }
 0x700   : > { %v7687_v47 = vpop.f32.mrb[17].mxu1  ;;  %v7731_v48 = vpop.f32.mrb[49].mxu0 }
 0x701   : > { %v7688_v49 = vadd.f32 %v7687_v47, %v7686_v45  ;;  %v7732_v50 = vadd.f32 %v7731_v48, %v7730_v46  ;;  %v7408_v45 = vld [vmem:[%s11051_s25 + $0x2a8] sm:$0xff]  ;;  %v7410_v46 = vld [vmem:[%s11051_s25 + $0x2b8] sm:$0xff]  ;;  %v8262_v47 = vpack.c.bf16 %v7405_v44, %v7403_v43 }
 0x702   : > { %v8264_v48 = vpack.c.bf16 %v7410_v46, %v7408_v45  ;;  %v3790_v43 = vld [vmem:[#allocation16 + $0x18] sm:$0xff]  ;;  %v3807_v45 = vld [vmem:[#allocation16 + $0xa0] sm:$0xff]  ;;  %v3808_v46 = vld [vmem:[#allocation16 + $0xa8] sm:$0xff] }
 0x703   : > { %v3011_v52 = vmax.f32 %v7688_v49, %v7732_v50  ;;  %v7689_v53 = vpop.f32.mrb[18].mxu1  ;;  %v7733_v54 = vpop.f32.mrb[50].mxu0  ;;  %v7407_v49 = vld [vmem:[%s11051_s25 + $0x2a0] sm:$0xff]  ;;  %v7409_v50 = vld [vmem:[%s11051_s25 + $0x2b0] sm:$0xff] }
 0x704   : > { %v7690_v57 = vpop.f32.mrb[19].mxu1  ;;  %v7734_v58 = vpop.f32.mrb[51].mxu0 }
 0x705   : > { %v3022_v63 = vadd.f32 %v11394_v51, %v3011_v52  ;;  %v7691_v1 = vadd.f32 %v7690_v57, %v7689_v53  ;;  %v7735_v2 = vadd.f32 %v7734_v58, %v7733_v54  ;;  %v7414_v52 = vld [vmem:[%s11051_s25 + $0x2d8] sm:$0xff]  ;;  %v8266_v53 = vpack.c.bf16 %v7409_v50, %v7407_v49  ;;  %v7416_v57 = vld [vmem:[%s11051_s25 + $0x2e8] sm:$0xff] }
 0x706   : > { %v7418_v58 = vld [vmem:[%s11051_s25 + $0x2f8] sm:$0xff]  ;;  %v3792_v49 = vld [vmem:[#allocation16 + $0x28] sm:$0xff] }
 0x707   : > { %v11401_v3 = vmax.f32 %v3022_v63, 0.0  ;;  %v3012_v4 = vmax.f32 %v7691_v1, %v7735_v2  ;;  %v7692_v5 = vpop.f32.mrb[20].mxu1  ;;  %v7736_v61 = vpop.f32.mrb[52].mxu0  ;;  %v8272_v62 = vpack.c.bf16 %v7418_v58, %v7416_v57  ;;  %v7415_v63 = vld [vmem:[%s11051_s25 + $0x2e0] sm:$0xff]  ;;  %v7417_v1 = vld [vmem:[%s11051_s25 + $0x2f0] sm:$0xff] }
 0x708   : > { %v7693_v9 = vpop.f32.mrb[21].mxu1  ;;  %v7737_v10 = vpop.f32.mrb[53].mxu0  ;;  %v8274_v2 = vpack.c.bf16 %v7417_v1, %v7415_v63  ;;  %v3812_v57 = vld [vmem:[#allocation16 + $0xc8] sm:$0xff] }
 0x709   : > { %v7694_v13 = vadd.f32 %v7693_v9, %v7692_v5  ;;  %v7738_v14 = vadd.f32 %v7737_v10, %v7736_v61  ;;  %3127 = vmatmul.mubr.f32.vlgmr.msra.gmra.mrb[24].mxu1 %v11401_v3  ;;  %3249 = vmatmul.mubr.f32.vlgmr.msra.gmra.mrb[56].mxu0 %v11401_v3  ;;  %v3023_v15 = vadd.f32 %v11394_v51, %v3012_v4  ;;  %v3796_v63 = vld [vmem:[#allocation16 + $0x48] sm:$0xff] }
 0x70a   : > { %8247 = vmatpush1.bf16.msra.mxu1 %v8246_v60  ;;  %3132 = vmatprep.mubr.f32.mxu1 %v10202_v0 }
 0x70b   : > { %v3013_v17 = vmax.f32 %v7694_v13, %v7738_v14  ;;  %v7695_v18 = vpop.f32.mrb[22].mxu1  ;;  %v7739_v19 = vpop.f32.mrb[54].mxu0  ;;  %3254 = vmatprep.mubr.f32.mxu0 %v10202_v0  ;;  %8249 = vmatprep.subr.bf16.mxu1 %v8248_v6  ;;  %v11412_v20 = vmax.f32 %v3023_v15, 0.0  ;;  %v3395_v13 = vld [vmem:[#allocation14] sm:$0xff]  ;;  %v3396_v14 = vld [vmem:[#allocation14 + $0x8] sm:$0xff]  ;;  %v3397_v15 = vld [vmem:[#allocation14 + $0x10] sm:$0xff] }
 0x70c   : > { %v7696_v24 = vpop.f32.mrb[23].mxu1  ;;  %v7740_v25 = vpop.f32.mrb[55].mxu0 }
 0x70d   : > { %v7697_v28 = vadd.f32 %v7696_v24, %v7695_v18  ;;  %v7741_v29 = vadd.f32 %v7740_v25, %v7739_v19  ;;  %3133 = vmatmul.mubr.f32.gmra.mrb[26].mxu1 %v11412_v20  ;;  %3255 = vmatmul.mubr.f32.gmra.mrb[58].mxu0 %v11412_v20  ;;  %v3024_v30 = vadd.f32 %v11394_v51, %v3013_v17 }
 0x70e   : > { %8251 = vmatpush1.bf16.msra.mxu1 %v8250_v16  ;;  %3138 = vmatprep.mubr.f32.mxu1 %v10202_v0  ;;  %v3398_v16 = vld [vmem:[#allocation14 + $0x18] sm:$0xff] }
 0x70f   : > { %v3014_v32 = vmax.f32 %v7697_v28, %v7741_v29  ;;  %3260 = vmatprep.mubr.f32.mxu0 %v10202_v0  ;;  %8253 = vmatprep.subr.bf16.mxu1 %v8252_v21  ;;  %v3028_v33 = vmax.f32 %v3024_v30, 0.0  ;;  %v3500_v29 = vld [vmem:[#allocation15] sm:$0xff]  ;;  %v3501_v30 = vld [vmem:[#allocation15 + $0x8] sm:$0xff] }
 0x711   : > { %3139 = vmatmul.mubr.f32.gmra.mrb[28].mxu1 %v3028_v33  ;;  %3261 = vmatmul.mubr.f32.gmra.mrb[60].mxu0 %v3028_v33  ;;  %v3025_v39 = vadd.f32 %v11394_v51, %v3014_v32  ;;  %v7412_v51 = vld [vmem:[%s11051_s25 + $0x2c8] sm:$0xff]  ;;  %v3503_v32 = vld [vmem:[#allocation15 + $0x18] sm:$0xff]  ;;  %s12105_s25 = smov %s12104_s15 }
 0x712   : > { %8255 = vmatpush1.bf16.msra.mxu1 %v8254_v31  ;;  %3144 = vmatprep.mubr.f32.mxu1 %v10202_v0  ;;  %v8268_v54 = vpack.c.bf16 %v7414_v52, %v7412_v51  ;;  %v3502_v31 = vld [vmem:[#allocation15 + $0x10] sm:$0xff]  ;;  %v3810_v52 = vld [vmem:[#allocation16 + $0xb8] sm:$0xff] }
 0x713   : > { %3266 = vmatprep.mubr.f32.mxu0 %v10202_v0  ;;  %8257 = vmatprep.subr.bf16.mxu1 %v8256_v34  ;;  %v3029_v41 = vmax.f32 %v3025_v39, 0.0  ;;  %v3804_v34 = vld [vmem:[#allocation16 + $0x88] sm:$0xff]  ;;  %v3805_v39 = vld [vmem:[#allocation16 + $0x90] sm:$0xff] }
 0x714   : > { %v3809_v51 = vld [vmem:[#allocation16 + $0xb0] sm:$0xff] }
 0x715   : > { %3145 = vmatmul.mubr.f32.gmra.mrb[30].mxu1 %v3029_v41  ;;  %3267 = vmatmul.mubr.f32.gmra.mrb[62].mxu0 %v3029_v41 }
 0x716   : > { %8259 = vmatpush1.bf16.msra.mxu1 %v8258_v40  ;;  %3370 = vmatprep.mubr.f32.mxu1 %v10202_v0  ;;  %v3806_v40 = vld [vmem:[#allocation16 + $0x98] sm:$0xff] }
 0x717   : > { %8261 = vmatprep.subr.bf16.mxu1 %v8260_v42  ;;  %3475 = vmatprep.mubr.f32.mxu0 %v10202_v0  ;;  %v3789_v42 = vld [vmem:[#allocation16 + $0x10] sm:$0xff] }
 0x718   : > { %v8314_v44 = vpack.c.bf16 %v3790_v43, %v3789_v42  ;;  %v3902_v43 = vld [vmem:[#allocation18 + $0x40] sm:$0xff] }
 0x71a   : > { %8263 = vmatpush1.bf16.msra.mxu1 %v8262_v47  ;;  %v8316_v47 = vpack.c.bf16 %v3808_v46, %v3807_v45  ;;  %v3813_v46 = vld [vmem:[#allocation16 + $0xd0] sm:$0xff] }
 0x71b   : > { %8265 = vmatprep.subr.bf16.mxu1 %v8264_v48  ;;  %v3791_v48 = vld [vmem:[#allocation16 + $0x20] sm:$0xff] }
 0x71c   : > { %v8318_v50 = vpack.c.bf16 %v3792_v49, %v3791_v48  ;;  %v3920_v48 = vld [vmem:[#allocation18 + $0xd0] sm:$0xff] }
 0x71e   : > { %8267 = vmatpush1.bf16.msra.mxu1 %v8266_v53  ;;  %v8320_v53 = vpack.c.bf16 %v3810_v52, %v3809_v51  ;;  %v3797_v51 = vld [vmem:[#allocation16 + $0x50] sm:$0xff]  ;;  %v3798_v52 = vld [vmem:[#allocation16 + $0x58] sm:$0xff] }
 0x71f   : > { %8269 = vmatprep.subr.bf16.mxu1 %v8268_v54  ;;  %v3793_v54 = vld [vmem:[#allocation16 + $0x30] sm:$0xff] }
 0x720   : > { %v8322_v58 = vpack.c.bf16 %v3794_v55, %v3793_v54  ;;  %v8330_v54 = vpack.c.bf16 %v3798_v52, %v3797_v51  ;;  %v3904_v55 = vld [vmem:[#allocation18 + $0x50] sm:$0xff]  ;;  %v4025_v51 = vld [vmem:[%s11079_s2 + $0x58] sm:$0xff]  ;;  %v7441_v52 = vld [vmem:[%s11079_s2 + $0x148] sm:$0xff] }
 0x722   : > { %8271 = vmatpush1.bf16.msra.mxu1 %v8270_v59  ;;  %v8324_v59 = vpack.c.bf16 %v3812_v57, %v3811_v56  ;;  %v3905_v56 = vld [vmem:[#allocation18 + $0x58] sm:$0xff] }
 0x723   : > { %8273 = vmatprep.subr.bf16.mxu1 %v8272_v62  ;;  %v3795_v62 = vld [vmem:[#allocation16 + $0x40] sm:$0xff]  ;;  %v8362_v57 = vpack.c.bf16 %v3905_v56, %v3904_v55 }
 0x724   : > { %v8326_v1 = vpack.c.bf16 %v3796_v63, %v3795_v62  ;;  %v3922_v62 = vld [vmem:[#allocation18 + $0xe0] sm:$0xff] }
 0x726   : > { %8275 = vmatpush1.bf16.msra.mxu1 %v8274_v2 }
 0x729   : > { %3371 = vmatmul.mubr.f32.vlgmr.msra.gmra.mrb[32].mxu1 %v11401_v3 }
 0x72a   : > { %3376 = vmatprep.mubr.f32.mxu1 %v10202_v0 }
 0x72d   : > { %3377 = vmatmul.mubr.f32.gmra.mrb[34].mxu1 %v11412_v20 }
 0x72e   : > { %3382 = vmatprep.mubr.f32.mxu1 %v10202_v0 }
 0x731   : > { %3383 = vmatmul.mubr.f32.gmra.mrb[36].mxu1 %v3028_v33  ;;  %v3803_v33 = vld [vmem:[#allocation16 + $0x80] sm:$0xff] }
 0x732   : > { %3388 = vmatprep.mubr.f32.mxu1 %v10202_v0  ;;  %v8308_v35 = vpack.c.bf16 %v3804_v34, %v3803_v33  ;;  %v3916_v33 = vld [vmem:[#allocation18 + $0xb0] sm:$0xff]  ;;  %v3917_v34 = vld [vmem:[#allocation18 + $0xb8] sm:$0xff] }
 0x733   : > { %v8352_v36 = vpack.c.bf16 %v3917_v34, %v3916_v33  ;;  %v4019_v33 = vld [vmem:[%s11079_s2 + $0x28] sm:$0xff] }
 0x735   : > { %3389 = vmatmul.mubr.f32.gmra.mrb[38].mxu1 %v3029_v41  ;;  %v8312_v41 = vpack.c.bf16 %v3806_v40, %v3805_v39  ;;  %v3918_v39 = vld [vmem:[#allocation18 + $0xc0] sm:$0xff]  ;;  %v3919_v40 = vld [vmem:[#allocation18 + $0xc8] sm:$0xff] }
 0x736   : > { %3685 = vmatprep.mubr.f32.mxu1 %v10202_v0  ;;  %v8356_v42 = vpack.c.bf16 %v3919_v40, %v3918_v39 }
 0x7dc   : > { %v3128_v60 = vpop.f32.mrb[24].mxu1 }
 0x7dd   : > { %v3130_v4 = vpop.f32.mrb[25].mxu1 }
 0x7e0   : > { %v3134_v5 = vpop.f32.mrb[26].mxu1 }
 0x7e1   : > { %v8278_v61 = vpack.c.bf16 %v3134_v5, %v3128_v60  ;;  %v3136_v6 = vpop.f32.mrb[27].mxu1 }
 0x7e2   : > { %v8276_v7 = vpack.c.bf16 %v3136_v6, %v3130_v4 }
 0x7e4   : > { %v3140_v8 = vpop.f32.mrb[28].mxu1  ;;  %8277 = vmatprep.subr.bf16.mxu0 %v8276_v7 }
 0x7e5   : > { %v3142_v3 = vpop.f32.mrb[29].mxu1  ;;  %8279 = vmatpush1.bf16.msra.mxu0 %v8278_v61 }
 0x7e8   : > { %v3146_v9 = vpop.f32.mrb[30].mxu1 }
 0x7e9   : > { %v8282_v10 = vpack.c.bf16 %v3146_v9, %v3140_v8  ;;  %v3148_v11 = vpop.f32.mrb[31].mxu1 }
 0x7ea   : > { %v8280_v12 = vpack.c.bf16 %v3148_v11, %v3142_v3 }
 0x7ec   : > { %8281 = vmatprep.subr.bf16.mxu0 %v8280_v12  ;;  %v3613_v12 = vld [vmem:[%s12104_s15] sm:$0xff]  ;;  %s12119_s15 = sld [smem:[#allocation89_spill]] }
 0x7ed   : > { %8283 = vmatpush1.bf16.msra.mxu0 %v8282_v10 }
 0x7f0   : > { %7419 = vmatmul.mubr.msk.f32.vlgmr.msra.gmra.mrb[56].mxu0 %vm1870_vm0, %v3395_v13  ;;  %v3910_v13 = vld [vmem:[#allocation18 + $0x80] sm:$0xff] }
 0x7f1   : > { %3481 = vmatprep.mubr.f32.mxu0 %v10202_v0 }
 0x7f4   : > { %7420 = vmatmul.mubr.msk.f32.gmra.mrb[58].mxu0 %vm1870_vm0, %v3396_v14  ;;  %v3911_v14 = vld [vmem:[#allocation18 + $0x88] sm:$0xff] }
 0x7f5   : > { %3487 = vmatprep.mubr.f32.mxu0 %v10202_v0 }
 0x7f8   : > { %7421 = vmatmul.mubr.msk.f32.gmra.mrb[60].mxu0 %vm1870_vm0, %v3397_v15  ;;  %v3614_v15 = vld [vmem:[%s12105_s25 + $0x8] sm:$0xff] }
 0x7f9   : > { %3493 = vmatprep.mubr.f32.mxu0 %v10202_v0 }
 0x7fc   : > { %v3372_v17 = vpop.f32.mrb[32].mxu1  ;;  %7422 = vmatmul.mubr.msk.f32.gmra.mrb[62].mxu0 %vm1870_vm0, %v3398_v16  ;;  %v8340_v16 = vpack.c.bf16 %v3911_v14, %v3910_v13  ;;  %v3802_v13 = vld [vmem:[#allocation16 + $0x78] sm:$0xff] }
 0x7fd   : > { %v3374_v18 = vpop.f32.mrb[33].mxu1  ;;  %3580 = vmatprep.mubr.f32.mxu0 %v10202_v0 }
 0x800   : > { %v3378_v19 = vpop.f32.mrb[34].mxu1 }
 0x801   : > { %v8286_v20 = vpack.c.bf16 %v3378_v19, %v3372_v17  ;;  %v3380_v21 = vpop.f32.mrb[35].mxu1  ;;  %v3894_v17 = vld [vmem:[#allocation18] sm:$0xff]  ;;  %v3912_v19 = vld [vmem:[#allocation18 + $0x90] sm:$0xff] }
 0x802   : > { %v8284_v22 = vpack.c.bf16 %v3380_v21, %v3374_v18  ;;  %v3895_v18 = vld [vmem:[#allocation18 + $0x8] sm:$0xff]  ;;  %v3698_v21 = vld [vmem:[%s12106_s16] sm:$0xff]  ;;  %s1848_s16 = scalar_lea.vmem %s12119_s15, %s12126_s24 }
 0x804   : > { %v3384_v23 = vpop.f32.mrb[36].mxu1  ;;  %8285 = vmatprep.subr.bf16.mxu0 %v8284_v22  ;;  %v8342_v22 = vpack.c.bf16 %v3895_v18, %v3894_v17  ;;  %v3909_v17 = vld [vmem:[#allocation18 + $0x78] sm:$0xff] }
 0x805   : > { %v3386_v24 = vpop.f32.mrb[37].mxu1  ;;  %8287 = vmatpush1.bf16.msra.mxu0 %v8286_v20  ;;  %v3913_v20 = vld [vmem:[#allocation18 + $0x98] sm:$0xff] }
 0x808   : > { %v3390_v25 = vpop.f32.mrb[38].mxu1 }
 0x809   : > { %v8290_v26 = vpack.c.bf16 %v3390_v25, %v3384_v23  ;;  %v3392_v27 = vpop.f32.mrb[39].mxu1  ;;  %v8344_v23 = vpack.c.bf16 %v3913_v20, %v3912_v19  ;;  %v3897_v25 = vld [vmem:[#allocation18 + $0x18] sm:$0xff]  ;;  %v4015_v19 = vld [vmem:[%s11079_s2 + $0x8] sm:$0xff] }
 0x80a   : > { %v8288_v28 = vpack.c.bf16 %v3392_v27, %v3386_v24  ;;  %v3896_v24 = vld [vmem:[#allocation18 + $0x10] sm:$0xff]  ;;  %v3915_v27 = vld [vmem:[#allocation18 + $0xa8] sm:$0xff]  ;;  %v4017_v20 = vld [vmem:[%s11079_s2 + $0x18] sm:$0xff] }
 0x80c   : > { %8289 = vmatprep.subr.bf16.mxu0 %v8288_v28  ;;  %v3699_v28 = vld [vmem:[%s12107_s4 + $0x8] sm:$0xff] }
 0x80d   : > { %8291 = vmatpush1.bf16.msra.mxu0 %v8290_v26  ;;  %v3914_v26 = vld [vmem:[#allocation18 + $0xa0] sm:$0xff] }
 0x80e   : > { %8309 = vmatprep.subr.bf16.mxu0 %v8308_v35 }
 0x810   : > { %7423 = vmatmul.mubr.msk.f32.vlgmr.msra.gmra.mrb[56].mxu0 %vm1870_vm0, %v3500_v29  ;;  %v8346_v29 = vpack.c.bf16 %v3897_v25, %v3896_v24 }
 0x811   : > { %3586 = vmatprep.mubr.f32.mxu0 %v10202_v0  ;;  %8311 = vmatpush3.bf16.msra.mxu0 %v8310_v38  ;;  %v3901_v38 = vld [vmem:[#allocation18 + $0x38] sm:$0xff] }
 0x812   : > { %8313 = vmatprep.subr.bf16.mxu0 %v8312_v41  ;;  %v8354_v41 = vpack.c.bf16 %v3901_v38, %v3900_v37  ;;  %v7439_v37 = vld [vmem:[%s11079_s2 + $0x138] sm:$0xff] }
 0x814   : > { %7424 = vmatmul.mubr.msk.f32.gmra.mrb[58].mxu0 %vm1870_vm0, %v3501_v30  ;;  %v8348_v30 = vpack.c.bf16 %v3915_v27, %v3914_v26 }
 0x815   : > { %3592 = vmatprep.mubr.f32.mxu0 %v10202_v0  ;;  %8315 = vmatpush3.bf16.msra.mxu0 %v8314_v44  ;;  %v3903_v44 = vld [vmem:[#allocation18 + $0x48] sm:$0xff] }
 0x816   : > { %8317 = vmatprep.subr.bf16.mxu0 %v8316_v47  ;;  %v8358_v45 = vpack.c.bf16 %v3903_v44, %v3902_v43  ;;  %v3814_v47 = vld [vmem:[#allocation16 + $0xd8] sm:$0xff]  ;;  %v4018_v43 = vld [vmem:[%s11079_s2 + $0x20] sm:$0xff]  ;;  %v4020_v44 = vld [vmem:[%s11079_s2 + $0x30] sm:$0xff] }
 0x817   : > { %v8328_v49 = vpack.c.bf16 %v3814_v47, %v3813_v46  ;;  %v7436_v47 = vld [vmem:[%s11079_s2 + $0x120] sm:$0xff] }
 0x818   : > { %7425 = vmatmul.mubr.msk.f32.gmra.mrb[60].mxu0 %vm1870_vm0, %v3502_v31  ;;  %v3898_v31 = vld [vmem:[#allocation18 + $0x20] sm:$0xff] }
 0x819   : > { %3598 = vmatprep.mubr.f32.mxu0 %v10202_v0  ;;  %8319 = vmatpush3.bf16.msra.mxu0 %v8318_v50  ;;  %v3921_v50 = vld [vmem:[#allocation18 + $0xd8] sm:$0xff] }
 0x81a   : > { %8321 = vmatprep.subr.bf16.mxu0 %v8320_v53  ;;  %v8360_v53 = vpack.c.bf16 %v3921_v50, %v3920_v48  ;;  %v7438_v48 = vld [vmem:[%s11079_s2 + $0x130] sm:$0xff] }
 0x81c   : > { %7426 = vmatmul.mubr.msk.f32.gmra.mrb[62].mxu0 %vm1870_vm0, %v3503_v32  ;;  %v3899_v32 = vld [vmem:[#allocation18 + $0x28] sm:$0xff] }
 0x81d   : > { %8323 = vmatpush3.bf16.msra.mxu0 %v8322_v58  ;;  %v8350_v35 = vpack.c.bf16 %v3899_v32, %v3898_v31  ;;  %v3815_v58 = vld [vmem:[#allocation16 + $0xe0] sm:$0xff]  ;;  %v7434_v32 = vld [vmem:[%s11079_s2 + $0x110] sm:$0xff] }
 0x81e   : > { %8325 = vmatprep.subr.bf16.mxu0 %v8324_v59  ;;  %v3816_v59 = vld [vmem:[#allocation16 + $0xe8] sm:$0xff]  ;;  %v7432_v31 = vld [vmem:[%s11079_s2 + $0x100] sm:$0xff] }
 0x81f   : > { %v8332_v63 = vpack.c.bf16 %v3816_v59, %v3815_v58  ;;  %v8410_v58 = vpack.c.bf16 %v7438_v48, %v7436_v47  ;;  %v4022_v59 = vld [vmem:[%s11079_s2 + $0x40] sm:$0xff]  ;;  %v7459_v47 = vld [vmem:[%s11079_s2 + $0x1d8] sm:$0xff] }
 0x820   : > { %v7456_v48 = vld [vmem:[%s11079_s2 + $0x1c0] sm:$0xff] }
 0x821   : > { %8327 = vmatpush3.bf16.msra.mxu0 %v8326_v1  ;;  %v3923_v1 = vld [vmem:[#allocation18 + $0xe8] sm:$0xff] }
 0x822   : > { %8329 = vmatprep.subr.bf16.mxu0 %v8328_v49  ;;  %v4023_v49 = vld [vmem:[%s11079_s2 + $0x48] sm:$0xff] }
 0x825   : > { %8331 = vmatpush3.bf16.msra.mxu0 %v8330_v54 }
 0x826   : > { %8333 = vmatprep.subr.bf16.mxu0 %v8332_v63  ;;  %v8380_v63 = vpack.c.bf16 %v4025_v51, %v4023_v49  ;;  %v7458_v49 = vld [vmem:[%s11079_s2 + $0x1d0] sm:$0xff] }
 0x827   : > { %v8430_v51 = vpack.c.bf16 %v7458_v49, %v7456_v48  ;;  %v7482_v48 = vld [vmem:[%s11079_s2 + $0x290] sm:$0xff]  ;;  %v7485_v49 = vld [vmem:[%s11079_s2 + $0x2a8] sm:$0xff] }
 0x8e3   : > { %v3582_v2 = vpop.f32.mrb[56].mxu0 }
 0x8e4   : > { %v3584_v60 = vpop.f32.mrb[57].mxu0 }
 0x8e7   : > { %v3588_v4 = vpop.f32.mrb[58].mxu0 }
 0x8e8   : > { %v8294_v5 = vpack.c.bf16 %v3588_v4, %v3582_v2  ;;  %v3590_v61 = vpop.f32.mrb[59].mxu0  ;;  %v3799_v2 = vld [vmem:[#allocation16 + $0x60] sm:$0xff]  ;;  %v8364_v4 = vpack.c.bf16 %v3923_v1, %v3922_v62  ;;  %v4024_v62 = vld [vmem:[%s11079_s2 + $0x50] sm:$0xff] }
 0x8e9   : > { %v8292_v6 = vpack.c.bf16 %v3590_v61, %v3584_v60  ;;  %v3800_v60 = vld [vmem:[#allocation16 + $0x68] sm:$0xff]  ;;  %v3906_v61 = vld [vmem:[#allocation18 + $0x60] sm:$0xff] }
 0x8eb   : > { %v3594_v7 = vpop.f32.mrb[60].mxu0  ;;  %8293 = vmatprep.subr.bf16.mxu1 %v8292_v6 }
 0x8ec   : > { %v3596_v8 = vpop.f32.mrb[61].mxu0  ;;  %8295 = vmatpush1.bf16.msra.mxu1 %v8294_v5 }
 0x8ef   : > { %v3600_v3 = vpop.f32.mrb[62].mxu0 }
 0x8f0   : > { %v8298_v9 = vpack.c.bf16 %v3600_v3, %v3594_v7  ;;  %v3602_v10 = vpop.f32.mrb[63].mxu0  ;;  %v3818_v3 = vld [vmem:[#allocation16 + $0xf8] sm:$0xff] }
 0x8f1   : > { %v8296_v11 = vpack.c.bf16 %v3602_v10, %v3596_v8  ;;  %v3817_v8 = vld [vmem:[#allocation16 + $0xf0] sm:$0xff] }
 0x8f2   : > { %v8336_v10 = vpack.c.bf16 %v3818_v3, %v3817_v8  ;;  %v4026_v3 = vld [vmem:[%s11079_s2 + $0x60] sm:$0xff] }
 0x8f3   : > { %8297 = vmatprep.subr.bf16.mxu1 %v8296_v11 }
 0x8f4   : > { %8299 = vmatpush1.bf16.msra.mxu1 %v8298_v9 }
 0x8f5   : > { %8301 = vmatprep.subr.bf16.mxu1 %v8292_v6  ;;  %v3907_v6 = vld [vmem:[#allocation18 + $0x68] sm:$0xff] }
 0x8f6   : > { %v8366_v7 = vpack.c.bf16 %v3907_v6, %v3906_v61  ;;  %v7445_v61 = vld [vmem:[%s11079_s2 + $0x168] sm:$0xff]  ;;  %v7447_v6 = vld [vmem:[%s11079_s2 + $0x178] sm:$0xff] }
 0x8f7   : > { %7427 = vmatmul.mubr.msk.f32.vlgmr.msra.gmra.mrb[40].mxu1 %vm1870_vm0, %v3613_v12  ;;  %v3801_v12 = vld [vmem:[#allocation16 + $0x70] sm:$0xff] }
 0x8f8   : > { %8303 = vmatpush1.bf16.msra.mxu1 %v8294_v5  ;;  %3691 = vmatprep.mubr.f32.mxu1 %v10202_v0  ;;  %v8334_v5 = vpack.c.bf16 %v3800_v60, %v3799_v2  ;;  %v7440_v2 = vld [vmem:[%s11079_s2 + $0x140] sm:$0xff]  ;;  %v7442_v60 = vld [vmem:[%s11079_s2 + $0x150] sm:$0xff] }
 0x8f9   : > { %8305 = vmatprep.subr.bf16.mxu1 %v8296_v11  ;;  %v3925_v11 = vld [vmem:[#allocation18 + $0xf8] sm:$0xff]  ;;  %v8414_v8 = vpack.c.bf16 %v7442_v60, %v7440_v2  ;;  %v7465_v60 = vld [vmem:[%s11079_s2 + $0x208] sm:$0xff] }
 0x8fa   : > { %8335 = vmatpush3.bf16.msra.mxu0 %v8334_v5  ;;  %v4029_v5 = vld [vmem:[%s11079_s2 + $0x78] sm:$0xff] }
 0x8fb   : > { %7428 = vmatmul.mubr.msk.f32.gmra.mrb[42].mxu1 %vm1870_vm0, %v3614_v15  ;;  %v8338_v15 = vpack.c.bf16 %v3802_v13, %v3801_v12  ;;  %8337 = vmatprep.subr.bf16.mxu0 %v8336_v10  ;;  %v7444_v12 = vld [vmem:[%s11079_s2 + $0x160] sm:$0xff]  ;;  %v7446_v13 = vld [vmem:[%s11079_s2 + $0x170] sm:$0xff] }
 0x8fc   : > { %8307 = vmatpush1.bf16.msra.mxu1 %v8298_v9  ;;  %3770 = vmatprep.mubr.f32.mxu1 %v10202_v0  ;;  %v3924_v9 = vld [vmem:[#allocation18 + $0xf0] sm:$0xff] }
 0x8fd   : > { %8341 = vmatprep.subr.bf16.mxu1 %v8340_v16  ;;  %v8368_v14 = vpack.c.bf16 %v3925_v11, %v3924_v9  ;;  %v3908_v16 = vld [vmem:[#allocation18 + $0x70] sm:$0xff]  ;;  %v8416_v11 = vpack.c.bf16 %v7447_v6, %v7445_v61 }
 0x8fe   : > { %v8370_v18 = vpack.c.bf16 %v3909_v17, %v3908_v16  ;;  %8339 = vmatpush3.bf16.msra.mxu0 %v8338_v15  ;;  %v4028_v9 = vld [vmem:[%s11079_s2 + $0x70] sm:$0xff]  ;;  %v4033_v15 = vld [vmem:[%s11079_s2 + $0x98] sm:$0xff]  ;;  %v7449_v16 = vld [vmem:[%s11079_s2 + $0x188] sm:$0xff] }
 0x8ff   : > { %7429 = vmatmul.mubr.msk.f32.vlgmr.msra.gmra.mrb[44].mxu1 %vm1870_vm0, %v3698_v21  ;;  %v8372_v21 = vpack.c.bf16 %v4017_v20, %v4015_v19  ;;  %v7451_v17 = vld [vmem:[%s11079_s2 + $0x198] sm:$0xff]  ;;  %v8418_v19 = vpack.c.bf16 %v7446_v13, %v7444_v12  ;;  %v4030_v20 = vld [vmem:[%s11079_s2 + $0x80] sm:$0xff] }
 0x900   : > { %3776 = vmatprep.mubr.f32.mxu1 %v10202_v0  ;;  %8343 = vmatpush3.bf16.msra.mxu1 %v8342_v22  ;;  %v7433_v22 = vld [vmem:[%s11079_s2 + $0x108] sm:$0xff] }
 0x901   : > { %8345 = vmatprep.subr.bf16.mxu1 %v8344_v23  ;;  %v7435_v23 = vld [vmem:[%s11079_s2 + $0x118] sm:$0xff]  ;;  %8373 = vmatprep.subr.bf16.mxu0 %v8372_v21  ;;  %v4032_v21 = vld [vmem:[%s11079_s2 + $0x90] sm:$0xff] }
 0x902   : > { %v8404_v24 = vpack.c.bf16 %v7435_v23, %v7433_v22  ;;  %v8420_v23 = vpack.c.bf16 %v7451_v17, %v7449_v16 }
 0x903   : > { %7430 = vmatmul.mubr.msk.f32.gmra.mrb[46].mxu1 %vm1870_vm0, %v3699_v28 }
 0x904   : > { %8347 = vmatpush3.bf16.msra.mxu1 %v8346_v29  ;;  %v4014_v29 = vld [vmem:[%s11079_s2] sm:$0xff] }
 0x905   : > { %8349 = vmatprep.subr.bf16.mxu1 %v8348_v30  ;;  %v4016_v30 = vld [vmem:[%s11079_s2 + $0x10] sm:$0xff] }
 0x908   : > { %8351 = vmatpush3.bf16.msra.mxu1 %v8350_v35  ;;  %v4021_v35 = vld [vmem:[%s11079_s2 + $0x38] sm:$0xff] }
 0x909   : > { %8353 = vmatprep.subr.bf16.mxu1 %v8352_v36  ;;  %v7437_v36 = vld [vmem:[%s11079_s2 + $0x128] sm:$0xff] }
 0x90a   : > { %v8408_v46 = vpack.c.bf16 %v7439_v37, %v7437_v36  ;;  %v7452_v36 = vld [vmem:[%s11079_s2 + $0x1a0] sm:$0xff]  ;;  %v7454_v37 = vld [vmem:[%s11079_s2 + $0x1b0] sm:$0xff] }
 0x90c   : > { %8355 = vmatpush3.bf16.msra.mxu1 %v8354_v41  ;;  %v8374_v41 = vpack.c.bf16 %v4016_v30, %v4014_v29  ;;  %v7455_v29 = vld [vmem:[%s11079_s2 + $0x1b8] sm:$0xff]  ;;  %v8390_v30 = vpack.c.bf16 %v4032_v21, %v4030_v20 }
 0x90d   : > { %8357 = vmatprep.subr.bf16.mxu1 %v8356_v42  ;;  %v8406_v42 = vpack.c.bf16 %v7434_v32, %v7432_v31  ;;  %v4034_v32 = vld [vmem:[%s11079_s2 + $0xa0] sm:$0xff] }
 0x910   : > { %8359 = vmatpush3.bf16.msra.mxu1 %v8358_v45  ;;  %v8376_v45 = vpack.c.bf16 %v4021_v35, %v4019_v33 }
 0x911   : > { %8361 = vmatprep.subr.bf16.mxu1 %v8360_v53  ;;  %v7443_v53 = vld [vmem:[%s11079_s2 + $0x158] sm:$0xff] }
 0x912   : > { %v8412_v1 = vpack.c.bf16 %v7443_v53, %v7441_v52  ;;  %v4043_v52 = vld [vmem:[%s11079_s2 + $0xe8] sm:$0xff]  ;;  %v4045_v53 = vld [vmem:[%s11079_s2 + $0xf8] sm:$0xff] }
 0x914   : > { %8363 = vmatpush3.bf16.msra.mxu1 %v8362_v57  ;;  %v8378_v57 = vpack.c.bf16 %v4020_v44, %v4018_v43  ;;  %v4038_v43 = vld [vmem:[%s11079_s2 + $0xc0] sm:$0xff]  ;;  %v4040_v44 = vld [vmem:[%s11079_s2 + $0xd0] sm:$0xff] }
 0x915   : > { %8365 = vmatprep.subr.bf16.mxu1 %v8364_v4  ;;  %v4027_v4 = vld [vmem:[%s11079_s2 + $0x68] sm:$0xff] }
 0x916   : > { %v8384_v10 = vpack.c.bf16 %v4029_v5, %v4027_v4  ;;  %v7467_v4 = vld [vmem:[%s11079_s2 + $0x218] sm:$0xff] }
 0x917   : > { %v8436_v5 = vpack.c.bf16 %v7467_v4, %v7465_v60  ;;  %v7492_v4 = vld [vmem:[%s11079_s2 + $0x2e0] sm:$0xff] }
 0x918   : > { %8367 = vmatpush3.bf16.msra.mxu1 %v8366_v7  ;;  %v8382_v7 = vpack.c.bf16 %v4024_v62, %v4022_v59  ;;  %v7463_v59 = vld [vmem:[%s11079_s2 + $0x1f8] sm:$0xff]  ;;  %v7460_v62 = vld [vmem:[%s11079_s2 + $0x1e0] sm:$0xff] }
 0x919   : > { %8369 = vmatprep.subr.bf16.mxu1 %v8368_v14  ;;  %v4031_v14 = vld [vmem:[%s11079_s2 + $0x88] sm:$0xff] }
 0x91a   : > { %v8388_v22 = vpack.c.bf16 %v4033_v15, %v4031_v14  ;;  %v7464_v14 = vld [vmem:[%s11079_s2 + $0x200] sm:$0xff]  ;;  %v7466_v15 = vld [vmem:[%s11079_s2 + $0x210] sm:$0xff] }
 0x91c   : > { %8371 = vmatpush3.bf16.msra.mxu1 %v8370_v18  ;;  %v8386_v18 = vpack.c.bf16 %v4028_v9, %v4026_v3 }
 0x91d   : > { %8405 = vmatprep.subr.bf16.mxu1 %v8404_v24  ;;  %v7448_v24 = vld [vmem:[%s11079_s2 + $0x180] sm:$0xff] }
 0x9ca   : > { %v3687_v25 = vpop.f32.mrb[40].mxu1 }
 0x9cb   : > { %v3689_v26 = vpop.f32.mrb[41].mxu1 }
 0x9ce   : > { %v3693_v27 = vpop.f32.mrb[42].mxu1 }
 0x9cf   : > { %v3695_v28 = vpop.f32.mrb[43].mxu1 }
 0x9d2   : > { %v3772_v34 = vpop.f32.mrb[44].mxu1 }
 0x9d3   : > { %v3783_v38 = vmax.f32 %v3687_v25, %v3772_v34  ;;  %v3774_v39 = vpop.f32.mrb[45].mxu1  ;;  %v7450_v25 = vld [vmem:[%s11079_s2 + $0x190] sm:$0xff] }
 0x9d4   : > { %v3784_v40 = vmax.f32 %v3689_v26, %v3774_v39  ;;  %v4035_v26 = vld [vmem:[%s11079_s2 + $0xa8] sm:$0xff]  ;;  %v8422_v31 = vpack.c.bf16 %v7450_v25, %v7448_v24  ;;  %v4036_v34 = vld [vmem:[%s11079_s2 + $0xb0] sm:$0xff]  ;;  %v8426_v39 = vpack.c.bf16 %v7454_v37, %v7452_v36 }
 0x9d5   : > { %v7474_v36 = vld [vmem:[%s11079_s2 + $0x250] sm:$0xff]  ;;  %v7477_v37 = vld [vmem:[%s11079_s2 + $0x268] sm:$0xff] }
 0x9d6   : > { %v3778_v50 = vpop.f32.mrb[46].mxu1  ;;  %3883 = vmatprep.mubr.f32.mxu0 %v3784_v40  ;;  %3990 = vmatprep.mubr.f32.mxu1 %v3784_v40  ;;  %v4039_v40 = vld [vmem:[%s11079_s2 + $0xc8] sm:$0xff] }
 0x9d7   : > { %v3785_v54 = vmax.f32 %v3693_v27, %v3778_v50  ;;  %v3780_v55 = vpop.f32.mrb[47].mxu1  ;;  %3884 = vmatmul.mubr.f32.vlgmr.msra.gmra.mrb[64].mxu0 %v3783_v38  ;;  %3991 = vmatmul.mubr.f32.vlgmr.msra.gmra.mrb[48].mxu1 %v3783_v38  ;;  %v4037_v27 = vld [vmem:[%s11079_s2 + $0xb8] sm:$0xff]  ;;  %v8394_v38 = vpack.c.bf16 %v4036_v34, %v4034_v32 }
 0x9d8   : > { %v3786_v56 = vmax.f32 %v3695_v28, %v3780_v55  ;;  %8375 = vmatpush1.bf16.msra.mxu0 %v8374_v41  ;;  %8407 = vmatpush1.bf16.msra.mxu1 %v8406_v42  ;;  %v7453_v28 = vld [vmem:[%s11079_s2 + $0x1a8] sm:$0xff]  ;;  %v8392_v33 = vpack.c.bf16 %v4037_v27, %v4035_v26  ;;  %v4041_v41 = vld [vmem:[%s11079_s2 + $0xd8] sm:$0xff]  ;;  %v4042_v55 = vld [vmem:[%s11079_s2 + $0xe0] sm:$0xff] }
 0x9d9   : > { %8377 = vmatprep.subr.bf16.mxu0 %v8376_v45  ;;  %8409 = vmatprep.subr.bf16.mxu1 %v8408_v46  ;;  %v8424_v35 = vpack.c.bf16 %v7455_v29, %v7453_v28  ;;  %v8396_v42 = vpack.c.bf16 %v4041_v41, %v4039_v40  ;;  %v7457_v45 = vld [vmem:[%s11079_s2 + $0x1c8] sm:$0xff]  ;;  %v8398_v46 = vpack.c.bf16 %v4040_v44, %v4038_v43  ;;  %v7468_v27 = vld [vmem:[%s11079_s2 + $0x220] sm:$0xff]  ;;  %v7470_v28 = vld [vmem:[%s11079_s2 + $0x230] sm:$0xff] }
 0x9da   : > { %3888 = vmatprep.mubr.f32.mxu0 %v3786_v56  ;;  %3995 = vmatprep.mubr.f32.mxu1 %v3786_v56  ;;  %v8428_v50 = vpack.c.bf16 %v7459_v47, %v7457_v45  ;;  %v4044_v56 = vld [vmem:[%s11079_s2 + $0xf0] sm:$0xff]  ;;  %v7473_v29 = vld [vmem:[%s11079_s2 + $0x248] sm:$0xff]  ;;  %v8442_v32 = vpack.c.bf16 %v7470_v28, %v7468_v27  ;;  %v7476_v41 = vld [vmem:[%s11079_s2 + $0x260] sm:$0xff] }
 0x9db   : > { %3889 = vmatmul.mubr.f32.gmra.mrb[66].mxu0 %v3785_v54  ;;  %3996 = vmatmul.mubr.f32.gmra.mrb[50].mxu1 %v3785_v54  ;;  %v8400_v54 = vpack.c.bf16 %v4045_v53, %v4043_v52  ;;  %v7481_v43 = vld [vmem:[%s11079_s2 + $0x288] sm:$0xff]  ;;  %v7483_v44 = vld [vmem:[%s11079_s2 + $0x298] sm:$0xff]  ;;  %v7480_v47 = vld [vmem:[%s11079_s2 + $0x280] sm:$0xff] }
 0x9dc   : > { %8379 = vmatpush1.bf16.msra.mxu0 %v8378_v57  ;;  %8411 = vmatpush1.bf16.msra.mxu1 %v8410_v58  ;;  %v7461_v57 = vld [vmem:[%s11079_s2 + $0x1e8] sm:$0xff]  ;;  %v8402_v58 = vpack.c.bf16 %v4044_v56, %v4042_v55  ;;  %v7484_v53 = vld [vmem:[%s11079_s2 + $0x2a0] sm:$0xff]  ;;  %v7491_v56 = vld [vmem:[%s11079_s2 + $0x2d8] sm:$0xff] }
 0x9dd   : > { %8381 = vmatprep.subr.bf16.mxu0 %v8380_v63  ;;  %8413 = vmatprep.subr.bf16.mxu1 %v8412_v1  ;;  %v8432_v63 = vpack.c.bf16 %v7463_v59, %v7461_v57  ;;  %v7462_v1 = vld [vmem:[%s11079_s2 + $0x1f0] sm:$0xff]  ;;  %v7489_v55 = vld [vmem:[%s11079_s2 + $0x2c8] sm:$0xff]  ;;  %v7488_v59 = vld [vmem:[%s11079_s2 + $0x2c0] sm:$0xff] }
 0x9de   : > { %4110 = vmatprep.mubr.f32.mxu0 %v10202_v0  ;;  %4220 = vmatprep.mubr.f32.mxu1 %v10202_v0  ;;  %v8434_v2 = vpack.c.bf16 %v7462_v1, %v7460_v62  ;;  %v7490_v62 = vld [vmem:[%s11079_s2 + $0x2d0] sm:$0xff]  ;;  %v7495_v1 = vld [vmem:[%s11079_s2 + $0x2f8] sm:$0xff]  ;;  %v4688_v27 = vld [vmem:[#allocation24 + $0x90] sm:$0xff] }
 0x9df   : > { %v4689_v28 = vld [vmem:[#allocation24 + $0x98] sm:$0xff] }
 0x9e0   : > { %8383 = vmatpush1.bf16.msra.mxu0 %v8382_v7  ;;  %8415 = vmatpush1.bf16.msra.mxu1 %v8414_v8 }
 0x9e1   : > { %8385 = vmatprep.subr.bf16.mxu0 %v8384_v10  ;;  %8417 = vmatprep.subr.bf16.mxu1 %v8416_v11  ;;  %v7431_v10 = vld [vmem:[%s1595_s9] ss:$0 sm:$0xff]  ;;  %s12108_s9 = sld [smem:[#allocation75_spill]] }
 0x9e4   : > { %8387 = vmatpush1.bf16.msra.mxu0 %v8386_v18  ;;  %8419 = vmatpush1.bf16.msra.mxu1 %v8418_v19  ;;  %v7469_v18 = vld [vmem:[%s11079_s2 + $0x228] sm:$0xff]  ;;  %v7471_v19 = vld [vmem:[%s11079_s2 + $0x238] sm:$0xff] }
 0x9e5   : > { %8389 = vmatprep.subr.bf16.mxu0 %v8388_v22  ;;  %8421 = vmatprep.subr.bf16.mxu1 %v8420_v23  ;;  %v8438_v23 = vpack.c.bf16 %v7466_v15, %v7464_v14  ;;  %v8440_v26 = vpack.c.bf16 %v7471_v19, %v7469_v18  ;;  %v4429_v19 = vld [vmem:[#allocation22] sm:$0xff] }
 0x9e8   : > { %8391 = vmatpush1.bf16.msra.mxu0 %v8390_v30  ;;  %8423 = vmatpush1.bf16.msra.mxu1 %v8422_v31  ;;  %v7475_v30 = vld [vmem:[%s11079_s2 + $0x258] sm:$0xff] }
 0x9e9   : > { %8393 = vmatprep.subr.bf16.mxu0 %v8392_v33  ;;  %8425 = vmatprep.subr.bf16.mxu1 %v8424_v35  ;;  %v8444_v34 = vpack.c.bf16 %v7475_v30, %v7473_v29  ;;  %v7472_v35 = vld [vmem:[%s11079_s2 + $0x240] sm:$0xff]  ;;  %v8488_v29 = vpack.c.bf16 %v4689_v28, %v4688_v27 }
 0x9ea   : > { %v4672_v30 = vld [vmem:[#allocation24 + $0x10] sm:$0xff] }
 0x9ec   : > { %8395 = vmatpush1.bf16.msra.mxu0 %v8394_v38  ;;  %8427 = vmatpush1.bf16.msra.mxu1 %v8426_v39  ;;  %v7479_v38 = vld [vmem:[%s11079_s2 + $0x278] sm:$0xff]  ;;  %v8446_v39 = vpack.c.bf16 %v7474_v36, %v7472_v35 }
 0x9ed   : > { %8397 = vmatprep.subr.bf16.mxu0 %v8396_v42  ;;  %8429 = vmatprep.subr.bf16.mxu1 %v8428_v50  ;;  %v8448_v40 = vpack.c.bf16 %v7479_v38, %v7477_v37  ;;  %v7478_v42 = vld [vmem:[%s11079_s2 + $0x270] sm:$0xff]  ;;  %v7487_v50 = vld [vmem:[%s11079_s2 + $0x2b8] sm:$0xff] }
 0x9ee   : > { %v8450_v45 = vpack.c.bf16 %v7478_v42, %v7476_v41  ;;  %v8456_v52 = vpack.c.bf16 %v7487_v50, %v7485_v49  ;;  %v4674_v36 = vld [vmem:[#allocation24 + $0x20] sm:$0xff]  ;;  %v4675_v37 = vld [vmem:[#allocation24 + $0x28] sm:$0xff]  ;;  %v4676_v42 = vld [vmem:[#allocation24 + $0x30] sm:$0xff] }
 0x9ef   : > { %v8494_v38 = vpack.c.bf16 %v4675_v37, %v4674_v36  ;;  %v4679_v49 = vld [vmem:[#allocation24 + $0x48] sm:$0xff]  ;;  %v4783_v36 = vld [vmem:[#allocation25 + $0x58] sm:$0xff] }
 0x9f0   : > { %8399 = vmatpush1.bf16.msra.mxu0 %v8398_v46  ;;  %8431 = vmatpush1.bf16.msra.mxu1 %v8430_v51  ;;  %v8452_v46 = vpack.c.bf16 %v7483_v44, %v7481_v43  ;;  %v8454_v51 = vpack.c.bf16 %v7482_v48, %v7480_v47  ;;  %v4677_v43 = vld [vmem:[#allocation24 + $0x38] sm:$0xff]  ;;  %v4678_v48 = vld [vmem:[#allocation24 + $0x40] sm:$0xff] }
 0x9f1   : > { %8401 = vmatprep.subr.bf16.mxu0 %v8400_v54  ;;  %8433 = vmatprep.subr.bf16.mxu1 %v8432_v63  ;;  %v7486_v54 = vld [vmem:[%s11079_s2 + $0x2b0] sm:$0xff]  ;;  %v7493_v63 = vld [vmem:[%s11079_s2 + $0x2e8] sm:$0xff]  ;;  %v8498_v44 = vpack.c.bf16 %v4677_v43, %v4676_v42  ;;  %v8502_v50 = vpack.c.bf16 %v4679_v49, %v4678_v48  ;;  %v4801_v42 = vld [vmem:[#allocation25 + $0xe8] sm:$0xff] }
 0x9f2   : > { %v8458_v57 = vpack.c.bf16 %v7486_v54, %v7484_v53  ;;  %v8464_v60 = vpack.c.bf16 %v7495_v1, %v7493_v63  ;;  %v4680_v54 = vld [vmem:[#allocation24 + $0x50] sm:$0xff]  ;;  %v4682_v43 = vld [vmem:[#allocation24 + $0x60] sm:$0xff]  ;;  %v4785_v48 = vld [vmem:[#allocation25 + $0x68] sm:$0xff] }
 0x9f4   : > { %8403 = vmatpush1.bf16.msra.mxu0 %v8402_v58  ;;  %8435 = vmatpush1.bf16.msra.mxu1 %v8434_v2  ;;  %v8460_v58 = vpack.c.bf16 %v7491_v56, %v7489_v55  ;;  %v8462_v2 = vpack.c.bf16 %v7490_v62, %v7488_v59  ;;  %v4681_v55 = vld [vmem:[#allocation24 + $0x58] sm:$0xff] }
 0x9f5   : > { %8437 = vmatprep.subr.bf16.mxu0 %v8436_v5  ;;  %v7494_v5 = vld [vmem:[%s11079_s2 + $0x2f0] sm:$0xff]  ;;  %s12109_s2 = sld [smem:[#allocation77_spill]]  ;;  %v8506_v56 = vpack.c.bf16 %v4681_v55, %v4680_v54  ;;  %v4684_v55 = vld [vmem:[#allocation24 + $0x70] sm:$0xff] }
 0x9f6   : > { %v4803_v54 = vld [vmem:[#allocation25 + $0xf8] sm:$0xff] }
 0xaaa   : > { %v7774_v61 = vpop.f32.mrb[64].mxu0  ;;  %v7812_v6 = vpop.f32.mrb[48].mxu1 }
 0xaab   : > { %v7775_v7 = vpop.f32.mrb[65].mxu0  ;;  %v7813_v8 = vpop.f32.mrb[49].mxu1 }
 0xaac   : > { %v7776_v3 = vadd.f32 %v7775_v7, %v7774_v61  ;;  %v7814_v9 = vadd.f32 %v7813_v8, %v7812_v6  ;;  %v8466_v61 = vpack.c.bf16 %v7494_v5, %v7492_v4  ;;  %v4518_v4 = vld [vmem:[%s12109_s2] sm:$0xff]  ;;  %s7653_s2 = sshll.u32 %s12126_s24, 3 }
 0xaae   : > { %v4001_v11 = vmax.f32 %v7776_v3, %v7814_v9  ;;  %v7777_v12 = vpop.f32.mrb[66].mxu0  ;;  %v7815_v13 = vpop.f32.mrb[50].mxu1 }
 0xaaf   : > { %v7778_v16 = vpop.f32.mrb[67].mxu0  ;;  %v7816_v17 = vpop.f32.mrb[51].mxu1 }
 0xab0   : > { %v4010_v20 = vadd.f32 %v7431_v10, %v4001_v11  ;;  %v7779_v21 = vadd.f32 %v7778_v16, %v7777_v12  ;;  %v7817_v22 = vadd.f32 %v7816_v17, %v7815_v13  ;;  %v4343_v11 = vld [vmem:[%s12108_s9] sm:$0xff]  ;;  %v4344_v12 = vld [vmem:[%s12108_s9 + $0x8] sm:$0xff] }
 0xab2   : > { %v11552_v24 = vmax.f32 %v4010_v20, 0.0  ;;  %v4002_v25 = vmax.f32 %v7779_v21, %v7817_v22  ;;  %v4430_v20 = vld [vmem:[#allocation22 + $0x8] sm:$0xff]  ;;  %v4686_v21 = vld [vmem:[#allocation24 + $0x80] sm:$0xff]  ;;  %v4687_v22 = vld [vmem:[#allocation24 + $0x88] sm:$0xff] }
 0xab4   : > { %4111 = vmatmul.mubr.f32.vlgmr.msra.gmra.mrb[68].mxu0 %v11552_v24  ;;  %4221 = vmatmul.mubr.f32.vlgmr.msra.gmra.mrb[52].mxu1 %v11552_v24  ;;  %v4011_v31 = vadd.f32 %v7431_v10, %v4002_v25  ;;  %v4671_v25 = vld [vmem:[#allocation24 + $0x8] sm:$0xff] }
 0xab5   : > { %8439 = vmatpush1.bf16.msra.mxu0 %v8438_v23  ;;  %4116 = vmatprep.mubr.f32.mxu0 %v10202_v0  ;;  %v8484_v23 = vpack.c.bf16 %v4687_v22, %v4686_v21 }
 0xab6   : > { %4226 = vmatprep.mubr.f32.mxu1 %v10202_v0  ;;  %8441 = vmatprep.subr.bf16.mxu0 %v8440_v26  ;;  %v4013_v33 = vmax.f32 %v4011_v31, 0.0  ;;  %v4673_v31 = vld [vmem:[#allocation24 + $0x18] sm:$0xff] }
 0xab8   : > { %4117 = vmatmul.mubr.f32.gmra.mrb[70].mxu0 %v4013_v33  ;;  %4227 = vmatmul.mubr.f32.gmra.mrb[54].mxu1 %v4013_v33 }
 0xab9   : > { %8443 = vmatpush1.bf16.msra.mxu0 %v8442_v32  ;;  %4330 = vmatprep.mubr.f32.mxu0 %v10202_v0  ;;  %v8490_v32 = vpack.c.bf16 %v4673_v31, %v4672_v30  ;;  %v4781_v30 = vld [vmem:[#allocation25 + $0x48] sm:$0xff]  ;;  %v4798_v31 = vld [vmem:[#allocation25 + $0xd0] sm:$0xff] }
 0xaba   : > { %8445 = vmatprep.subr.bf16.mxu0 %v8444_v34  ;;  %4416 = vmatprep.mubr.f32.mxu1 %v10202_v0  ;;  %v4691_v34 = vld [vmem:[#allocation24 + $0xa8] sm:$0xff] }
 0xabd   : > { %8447 = vmatpush1.bf16.msra.mxu0 %v8446_v39  ;;  %v4692_v39 = vld [vmem:[#allocation24 + $0xb0] sm:$0xff] }
 0xabe   : > { %8449 = vmatprep.subr.bf16.mxu0 %v8448_v40  ;;  %v4693_v40 = vld [vmem:[#allocation24 + $0xb8] sm:$0xff] }
 0xabf   : > { %v8496_v41 = vpack.c.bf16 %v4693_v40, %v4692_v39  ;;  %v4699_v39 = vld [vmem:[#allocation24 + $0xe8] sm:$0xff]  ;;  %v4800_v40 = vld [vmem:[#allocation25 + $0xe0] sm:$0xff] }
 0xac1   : > { %8451 = vmatpush1.bf16.msra.mxu0 %v8450_v45  ;;  %v4694_v45 = vld [vmem:[#allocation24 + $0xc0] sm:$0xff] }
 0xac2   : > { %8453 = vmatprep.subr.bf16.mxu0 %v8452_v46  ;;  %v4695_v46 = vld [vmem:[#allocation24 + $0xc8] sm:$0xff] }
 0xac3   : > { %v8500_v47 = vpack.c.bf16 %v4695_v46, %v4694_v45  ;;  %v8540_v45 = vpack.c.bf16 %v4801_v42, %v4800_v40  ;;  %v4899_v40 = vld [vmem:[%s11095_s14 + $0x78] sm:$0xff] }
 0xac4   : > { %v7518_v42 = vld [vmem:[%s11095_s14 + $0x178] sm:$0xff] }
 0xac5   : > { %8455 = vmatpush1.bf16.msra.mxu0 %v8454_v51  ;;  %v4696_v51 = vld [vmem:[#allocation24 + $0xd0] sm:$0xff] }
 0xac6   : > { %8457 = vmatprep.subr.bf16.mxu0 %v8456_v52  ;;  %v4697_v52 = vld [vmem:[#allocation24 + $0xd8] sm:$0xff] }
 0xac7   : > { %v8504_v53 = vpack.c.bf16 %v4697_v52, %v4696_v51  ;;  %v4701_v51 = vld [vmem:[#allocation24 + $0xf8] sm:$0xff]  ;;  %v4802_v52 = vld [vmem:[#allocation25 + $0xf0] sm:$0xff] }
 0xac9   : > { %8459 = vmatpush1.bf16.msra.mxu0 %v8458_v57 }
 0xaca   : > { %8461 = vmatprep.subr.bf16.mxu0 %v8460_v58 }
 0xacd   : > { %8463 = vmatpush1.bf16.msra.mxu0 %v8462_v2  ;;  %v4788_v2 = vld [vmem:[#allocation25 + $0x80] sm:$0xff] }
 0xace   : > { %8465 = vmatprep.subr.bf16.mxu0 %v8464_v60  ;;  %v4789_v60 = vld [vmem:[#allocation25 + $0x88] sm:$0xff] }
 0xacf   : > { %v8516_v5 = vpack.c.bf16 %v4789_v60, %v4788_v2  ;;  %v4887_v2 = vld [vmem:[%s11095_s14 + $0x18] sm:$0xff] }
 0xad1   : > { %8467 = vmatpush1.bf16.msra.mxu0 %v8466_v61  ;;  %v4772_v61 = vld [vmem:[#allocation25] sm:$0xff] }
 0xad2   : > { %8485 = vmatprep.subr.bf16.mxu0 %v8484_v23  ;;  %v4778_v23 = vld [vmem:[#allocation25 + $0x30] sm:$0xff] }
 0xad4   : > { %4331 = vmatmul.mubr.f32.vlgmr.msra.gmra.mrb[72].mxu0 %v11552_v24  ;;  %v4670_v24 = vld [vmem:[#allocation24] sm:$0xff] }
 0xad5   : > { %4336 = vmatprep.mubr.f32.mxu0 %v10202_v0  ;;  %v8486_v26 = vpack.c.bf16 %v4671_v25, %v4670_v24  ;;  %v4779_v24 = vld [vmem:[#allocation25 + $0x38] sm:$0xff]  ;;  %v4796_v25 = vld [vmem:[#allocation25 + $0xc0] sm:$0xff] }
 0xad6   : > { %v8530_v27 = vpack.c.bf16 %v4779_v24, %v4778_v23 }
 0xad7   : > { %8487 = vmatpush3.bf16.msra.mxu0 %v8486_v26  ;;  %v4797_v26 = vld [vmem:[#allocation25 + $0xc8] sm:$0xff] }
 0xad8   : > { %4337 = vmatmul.mubr.f32.gmra.mrb[74].mxu0 %v4013_v33  ;;  %v4690_v33 = vld [vmem:[#allocation24 + $0xa0] sm:$0xff]  ;;  %8489 = vmatprep.subr.bf16.mxu0 %v8488_v29  ;;  %v8532_v28 = vpack.c.bf16 %v4797_v26, %v4796_v25  ;;  %v7509_v26 = vld [vmem:[%s11095_s14 + $0x130] sm:$0xff] }
 0xad9   : > { %v8492_v35 = vpack.c.bf16 %v4691_v34, %v4690_v33  ;;  %v4780_v29 = vld [vmem:[#allocation25 + $0x40] sm:$0xff] }
 0xada   : > { %v8534_v33 = vpack.c.bf16 %v4781_v30, %v4780_v29  ;;  %v7507_v25 = vld [vmem:[%s11095_s14 + $0x120] sm:$0xff]  ;;  %v7512_v29 = vld [vmem:[%s11095_s14 + $0x148] sm:$0xff]  ;;  %v7514_v30 = vld [vmem:[%s11095_s14 + $0x158] sm:$0xff] }
 0xadb   : > { %8491 = vmatpush3.bf16.msra.mxu0 %v8490_v32  ;;  %v4799_v32 = vld [vmem:[#allocation25 + $0xd8] sm:$0xff] }
 0xadc   : > { %8493 = vmatprep.subr.bf16.mxu0 %v8492_v35  ;;  %v8536_v34 = vpack.c.bf16 %v4799_v32, %v4798_v31  ;;  %v4782_v35 = vld [vmem:[#allocation25 + $0x50] sm:$0xff]  ;;  %v8586_v32 = vpack.c.bf16 %v7509_v26, %v7507_v25  ;;  %v4913_v26 = vld [vmem:[%s11095_s14 + $0xe8] sm:$0xff] }
 0xadd   : > { %v8538_v37 = vpack.c.bf16 %v4783_v36, %v4782_v35  ;;  %v8588_v36 = vpack.c.bf16 %v7514_v30, %v7512_v29  ;;  %v4912_v29 = vld [vmem:[%s11095_s14 + $0xe0] sm:$0xff]  ;;  %v4914_v30 = vld [vmem:[%s11095_s14 + $0xf0] sm:$0xff] }
 0xadf   : > { %8495 = vmatpush3.bf16.msra.mxu0 %v8494_v38  ;;  %v4698_v38 = vld [vmem:[#allocation24 + $0xe0] sm:$0xff] }
 0xae0   : > { %8497 = vmatprep.subr.bf16.mxu0 %v8496_v41  ;;  %v8508_v41 = vpack.c.bf16 %v4699_v39, %v4698_v38  ;;  %v7513_v38 = vld [vmem:[%s11095_s14 + $0x150] sm:$0xff]  ;;  %v4897_v39 = vld [vmem:[%s11095_s14 + $0x68] sm:$0xff] }
 0xae3   : > { %8499 = vmatpush3.bf16.msra.mxu0 %v8498_v44  ;;  %v4683_v44 = vld [vmem:[#allocation24 + $0x68] sm:$0xff] }
 0xae4   : > { %8501 = vmatprep.subr.bf16.mxu0 %v8500_v47  ;;  %v8510_v46 = vpack.c.bf16 %v4683_v44, %v4682_v43  ;;  %v4784_v47 = vld [vmem:[#allocation25 + $0x60] sm:$0xff] }
 0xae5   : > { %v8542_v49 = vpack.c.bf16 %v4785_v48, %v4784_v47  ;;  %v8560_v47 = vpack.c.bf16 %v4899_v40, %v4897_v39  ;;  %v7538_v39 = vld [vmem:[%s11095_s14 + $0x218] sm:$0xff] }
 0xae7   : > { %8503 = vmatpush3.bf16.msra.mxu0 %v8502_v50  ;;  %v4700_v50 = vld [vmem:[#allocation24 + $0xf0] sm:$0xff] }
 0xae8   : > { %8505 = vmatprep.subr.bf16.mxu0 %v8504_v53  ;;  %v8512_v53 = vpack.c.bf16 %v4701_v51, %v4700_v50  ;;  %v7517_v50 = vld [vmem:[%s11095_s14 + $0x170] sm:$0xff]  ;;  %v4901_v51 = vld [vmem:[%s11095_s14 + $0x88] sm:$0xff] }
 0xaeb   : > { %8507 = vmatpush3.bf16.msra.mxu0 %v8506_v56  ;;  %v4685_v56 = vld [vmem:[#allocation24 + $0x78] sm:$0xff] }
 0xaec   : > { %8509 = vmatprep.subr.bf16.mxu0 %v8508_v41  ;;  %v7516_v41 = vld [vmem:[%s11095_s14 + $0x168] sm:$0xff] }
 0xaed   : > { %v8592_v48 = vpack.c.bf16 %v7518_v42, %v7516_v41 }
 0xaef   : > { %8511 = vmatpush3.bf16.msra.mxu0 %v8510_v46  ;;  %v4898_v46 = vld [vmem:[%s11095_s14 + $0x70] sm:$0xff] }
 0xaf0   : > { %8513 = vmatprep.subr.bf16.mxu0 %v8512_v53  ;;  %v7520_v53 = vld [vmem:[%s11095_s14 + $0x188] sm:$0xff] }
 0xb87   : > { %v4112_v6 = vpop.f32.mrb[68].mxu0 }
 0xb88   : > { %v4114_v7 = vpop.f32.mrb[69].mxu0 }
 0xb8b   : > { %v4118_v8 = vpop.f32.mrb[70].mxu0 }
 0xb8c   : > { %v8470_v3 = vpack.c.bf16 %v4118_v8, %v4112_v6  ;;  %v4120_v9 = vpop.f32.mrb[71].mxu0  ;;  %v4773_v6 = vld [vmem:[#allocation25 + $0x8] sm:$0xff]  ;;  %v4791_v8 = vld [vmem:[#allocation25 + $0x98] sm:$0xff] }
 0xb8d   : > { %v8468_v10 = vpack.c.bf16 %v4120_v9, %v4114_v7  ;;  %v4790_v7 = vld [vmem:[#allocation25 + $0x90] sm:$0xff]  ;;  %v8518_v9 = vpack.c.bf16 %v4773_v6, %v4772_v61 }
 0xb8f   : > { %8469 = vmatprep.subr.bf16.mxu1 %v8468_v10  ;;  %v8520_v10 = vpack.c.bf16 %v4791_v8, %v4790_v7  ;;  %v4884_v8 = vld [vmem:[%s11095_s14] sm:$0xff] }
 0xb90   : > { %8471 = vmatpush1.bf16.msra.mxu1 %v8470_v3  ;;  %v4593_v3 = vld [vmem:[%s12110_s18] sm:$0xff] }
 0xb93   : > { %7496 = vmatmul.mubr.msk.f32.vlgmr.msra.gmra.mrb[52].mxu1 %vm4345_vm2, %v4343_v11  ;;  %v4774_v11 = vld [vmem:[#allocation25 + $0x10] sm:$0xff] }
 0xb94   : > { %4422 = vmatprep.mubr.f32.mxu1 %v10202_v0 }
 0xb97   : > { %7497 = vmatmul.mubr.msk.f32.gmra.mrb[54].mxu1 %vm4345_vm2, %v4344_v12  ;;  %v4775_v12 = vld [vmem:[#allocation25 + $0x18] sm:$0xff] }
 0xb98   : > { %4501 = vmatprep.mubr.f32.mxu1 %v10202_v0 }
 0xba7   : > { %v4332_v13 = vpop.f32.mrb[72].mxu0 }
 0xba8   : > { %v4334_v14 = vpop.f32.mrb[73].mxu0 }
 0xbab   : > { %v4338_v15 = vpop.f32.mrb[74].mxu0 }
 0xbac   : > { %v8474_v16 = vpack.c.bf16 %v4338_v15, %v4332_v13  ;;  %v4340_v17 = vpop.f32.mrb[75].mxu0  ;;  %v4792_v13 = vld [vmem:[#allocation25 + $0xa0] sm:$0xff]  ;;  %v8522_v15 = vpack.c.bf16 %v4775_v12, %v4774_v11  ;;  %v4889_v11 = vld [vmem:[%s11095_s14 + $0x28] sm:$0xff] }
 0xbad   : > { %v8472_v18 = vpack.c.bf16 %v4340_v17, %v4334_v14  ;;  %v4793_v14 = vld [vmem:[#allocation25 + $0xa8] sm:$0xff]  ;;  %v4776_v17 = vld [vmem:[#allocation25 + $0x20] sm:$0xff] }
 0xbaf   : > { %8473 = vmatprep.subr.bf16.mxu1 %v8472_v18  ;;  %v4777_v18 = vld [vmem:[#allocation25 + $0x28] sm:$0xff] }
 0xbb0   : > { %8475 = vmatpush1.bf16.msra.mxu1 %v8474_v16  ;;  %v8524_v16 = vpack.c.bf16 %v4793_v14, %v4792_v13  ;;  %v8526_v21 = vpack.c.bf16 %v4777_v18, %v4776_v17  ;;  %v4891_v13 = vld [vmem:[%s11095_s14 + $0x38] sm:$0xff]  ;;  %v7508_v14 = vld [vmem:[%s11095_s14 + $0x128] sm:$0xff] }
 0xbb1   : > { %v8552_v23 = vpack.c.bf16 %v4891_v13, %v4889_v11  ;;  %v7525_v11 = vld [vmem:[%s11095_s14 + $0x1b0] sm:$0xff] }
 0xbb3   : > { %7498 = vmatmul.mubr.msk.f32.vlgmr.msra.gmra.mrb[52].mxu1 %vm4345_vm2, %v4429_v19  ;;  %v4794_v19 = vld [vmem:[#allocation25 + $0xb0] sm:$0xff] }
 0xbb4   : > { %4507 = vmatprep.mubr.f32.mxu1 %v10202_v0 }
 0xbb7   : > { %7499 = vmatmul.mubr.msk.f32.gmra.mrb[54].mxu1 %vm4345_vm2, %v4430_v20  ;;  %v4795_v20 = vld [vmem:[#allocation25 + $0xb8] sm:$0xff] }
 0xbb8   : > { %4586 = vmatprep.mubr.f32.mxu1 %v10202_v0  ;;  %v8528_v22 = vpack.c.bf16 %v4795_v20, %v4794_v19 }
 0xc86   : > { %v4503_v57 = vpop.f32.mrb[52].mxu1 }
 0xc87   : > { %v4505_v58 = vpop.f32.mrb[53].mxu1 }
 0xc8a   : > { %v4509_v59 = vpop.f32.mrb[54].mxu1 }
 0xc8b   : > { %v8478_v62 = vpack.c.bf16 %v4509_v59, %v4503_v57  ;;  %v4511_v63 = vpop.f32.mrb[55].mxu1  ;;  %v8544_v57 = vpack.c.bf16 %v4803_v54, %v4802_v52  ;;  %v4786_v59 = vld [vmem:[#allocation25 + $0x70] sm:$0xff]  ;;  %v4903_v52 = vld [vmem:[%s11095_s14 + $0x98] sm:$0xff] }
 0xc8c   : > { %v8476_v1 = vpack.c.bf16 %v4511_v63, %v4505_v58  ;;  %v8514_v58 = vpack.c.bf16 %v4685_v56, %v4684_v55  ;;  %v7522_v54 = vld [vmem:[%s11095_s14 + $0x198] sm:$0xff] }
 0xc8e   : > { %8477 = vmatprep.subr.bf16.mxu1 %v8476_v1  ;;  %8515 = vmatpush3.bf16.msra.mxu0 %v8514_v58  ;;  %v4902_v58 = vld [vmem:[%s11095_s14 + $0x90] sm:$0xff] }
 0xc8f   : > { %8479 = vmatpush1.bf16.msra.mxu1 %v8478_v62 }
 0xc90   : > { %8481 = vmatprep.subr.bf16.mxu1 %v8476_v1  ;;  %v4885_v1 = vld [vmem:[%s11095_s14 + $0x8] sm:$0xff] }
 0xc91   : > { %v8548_v60 = vpack.c.bf16 %v4887_v2, %v4885_v1  ;;  %v7521_v1 = vld [vmem:[%s11095_s14 + $0x190] sm:$0xff]  ;;  %v4905_v2 = vld [vmem:[%s11095_s14 + $0xa8] sm:$0xff] }
 0xc92   : > { %7500 = vmatmul.mubr.msk.f32.vlgmr.msra.gmra.mrb[56].mxu1 %vm4345_vm2, %v4518_v4  ;;  %v7504_v4 = vld [vmem:[%s11095_s14 + $0x108] sm:$0xff] }
 0xc93   : > { %8483 = vmatpush1.bf16.msra.mxu1 %v8478_v62  ;;  %4661 = vmatprep.mubr.f32.mxu1 %v10202_v0  ;;  %v4787_v62 = vld [vmem:[#allocation25 + $0x78] sm:$0xff] }
 0xc94   : > { %8517 = vmatprep.subr.bf16.mxu1 %v8516_v5  ;;  %v8546_v63 = vpack.c.bf16 %v4787_v62, %v4786_v59  ;;  %v7506_v5 = vld [vmem:[%s11095_s14 + $0x118] sm:$0xff]  ;;  %8549 = vmatprep.subr.bf16.mxu0 %v8548_v60  ;;  %v8564_v59 = vpack.c.bf16 %v4903_v52, %v4901_v51  ;;  %v8596_v62 = vpack.c.bf16 %v7522_v54, %v7520_v53  ;;  %v7540_v51 = vld [vmem:[%s11095_s14 + $0x228] sm:$0xff] }
 0xc95   : > { %v8580_v61 = vpack.c.bf16 %v7506_v5, %v7504_v4  ;;  %v4907_v60 = vld [vmem:[%s11095_s14 + $0xb8] sm:$0xff]  ;;  %v7524_v4 = vld [vmem:[%s11095_s14 + $0x1a8] sm:$0xff] }
 0xc96   : > { %7501 = vmatmul.mubr.msk.f32.vlgmr.msra.gmra.mrb[58].mxu1 %vm4345_vm2, %v4593_v3  ;;  %v4886_v3 = vld [vmem:[%s11095_s14 + $0x10] sm:$0xff]  ;;  %v7526_v5 = vld [vmem:[%s11095_s14 + $0x1b8] sm:$0xff] }
 0xc97   : > { %8519 = vmatpush3.bf16.msra.mxu1 %v8518_v9  ;;  %v7503_v9 = vld [vmem:[%s11095_s14 + $0x100] sm:$0xff]  ;;  %v8550_v19 = vpack.c.bf16 %v4886_v3, %v4884_v8  ;;  %v8568_v8 = vpack.c.bf16 %v4907_v60, %v4905_v2  ;;  %v4906_v3 = vld [vmem:[%s11095_s14 + $0xb0] sm:$0xff]  ;;  %v7542_v52 = vld [vmem:[%s11095_s14 + $0x238] sm:$0xff] }
 0xc98   : > { %8521 = vmatprep.subr.bf16.mxu1 %v8520_v10  ;;  %v7505_v10 = vld [vmem:[%s11095_s14 + $0x110] sm:$0xff]  ;;  %v7543_v2 = vld [vmem:[%s11095_s14 + $0x240] sm:$0xff] }
 0xc99   : > { %v8582_v20 = vpack.c.bf16 %v7505_v10, %v7503_v9  ;;  %v8600_v9 = vpack.c.bf16 %v7526_v5, %v7524_v4  ;;  %v7523_v10 = vld [vmem:[%s11095_s14 + $0x1a0] sm:$0xff]  ;;  %v7545_v60 = vld [vmem:[%s11095_s14 + $0x250] sm:$0xff]  ;;  %v7548_v4 = vld [vmem:[%s11095_s14 + $0x268] sm:$0xff] }
 0xc9a   : > { %v8602_v13 = vpack.c.bf16 %v7525_v11, %v7523_v10  ;;  %v7550_v5 = vld [vmem:[%s11095_s14 + $0x278] sm:$0xff] }
 0xc9b   : > { %8523 = vmatpush3.bf16.msra.mxu1 %v8522_v15  ;;  %v7510_v15 = vld [vmem:[%s11095_s14 + $0x138] sm:$0xff] }
 0xc9c   : > { %8525 = vmatprep.subr.bf16.mxu1 %v8524_v16  ;;  %v8584_v24 = vpack.c.bf16 %v7510_v15, %v7508_v14  ;;  %v4909_v14 = vld [vmem:[%s11095_s14 + $0xc8] sm:$0xff]  ;;  %v4911_v15 = vld [vmem:[%s11095_s14 + $0xd8] sm:$0xff] }
 0xc9f   : > { %8527 = vmatpush3.bf16.msra.mxu1 %v8526_v21  ;;  %v4888_v21 = vld [vmem:[%s11095_s14 + $0x20] sm:$0xff] }
 0xca0   : > { %8529 = vmatprep.subr.bf16.mxu1 %v8528_v22  ;;  %v4890_v22 = vld [vmem:[%s11095_s14 + $0x30] sm:$0xff] }
 0xca1   : > { %v8554_v31 = vpack.c.bf16 %v4890_v22, %v4888_v21  ;;  %v7530_v21 = vld [vmem:[%s11095_s14 + $0x1d8] sm:$0xff]  ;;  %v7527_v22 = vld [vmem:[%s11095_s14 + $0x1c0] sm:$0xff] }
 0xca3   : > { %8531 = vmatpush3.bf16.msra.mxu1 %v8530_v27  ;;  %v4893_v27 = vld [vmem:[%s11095_s14 + $0x48] sm:$0xff] }
 0xca4   : > { %8533 = vmatprep.subr.bf16.mxu1 %v8532_v28  ;;  %v4895_v28 = vld [vmem:[%s11095_s14 + $0x58] sm:$0xff] }
 0xca5   : > { %v8556_v35 = vpack.c.bf16 %v4895_v28, %v4893_v27  ;;  %v4915_v27 = vld [vmem:[%s11095_s14 + $0xf8] sm:$0xff] }
 0xca6   : > { %v8576_v28 = vpack.c.bf16 %v4915_v27, %v4913_v26  ;;  %v7564_v26 = vld [vmem:[%s11095_s14 + $0x2e8] sm:$0xff]  ;;  %v7566_v27 = vld [vmem:[%s11095_s14 + $0x2f8] sm:$0xff] }
 0xca7   : > { %8535 = vmatpush3.bf16.msra.mxu1 %v8534_v33  ;;  %v4892_v33 = vld [vmem:[%s11095_s14 + $0x40] sm:$0xff] }
 0xca8   : > { %8537 = vmatprep.subr.bf16.mxu1 %v8536_v34  ;;  %v4894_v34 = vld [vmem:[%s11095_s14 + $0x50] sm:$0xff] }
 0xca9   : > { %v8558_v43 = vpack.c.bf16 %v4894_v34, %v4892_v33  ;;  %v7534_v33 = vld [vmem:[%s11095_s14 + $0x1f8] sm:$0xff]  ;;  %v7531_v34 = vld [vmem:[%s11095_s14 + $0x1e0] sm:$0xff] }
 0xcab   : > { %8539 = vmatpush3.bf16.msra.mxu1 %v8538_v37  ;;  %v7511_v37 = vld [vmem:[%s11095_s14 + $0x140] sm:$0xff] }
 0xcac   : > { %8541 = vmatprep.subr.bf16.mxu1 %v8540_v45  ;;  %v8590_v44 = vpack.c.bf16 %v7513_v38, %v7511_v37  ;;  %v4896_v45 = vld [vmem:[%s11095_s14 + $0x60] sm:$0xff]  ;;  %v7536_v38 = vld [vmem:[%s11095_s14 + $0x208] sm:$0xff] }
 0xcad   : > { %v8562_v55 = vpack.c.bf16 %v4898_v46, %v4896_v45  ;;  %v8612_v40 = vpack.c.bf16 %v7538_v39, %v7536_v38  ;;  %v5271_v38 = vld [vmem:[%s12112_s29] sm:$0xff]  ;;  %v5618_v39 = vld [vmem:[#allocation30 + $0x80] sm:$0xff] }
 0xcaf   : > { %8543 = vmatpush3.bf16.msra.mxu1 %v8542_v49  ;;  %v7515_v49 = vld [vmem:[%s11095_s14 + $0x160] sm:$0xff] }
 0xcb0   : > { %8545 = vmatprep.subr.bf16.mxu1 %v8544_v57  ;;  %v8594_v56 = vpack.c.bf16 %v7517_v50, %v7515_v49  ;;  %v4900_v57 = vld [vmem:[%s11095_s14 + $0x80] sm:$0xff]  ;;  %v7537_v50 = vld [vmem:[%s11095_s14 + $0x210] sm:$0xff] }
 0xcb1   : > { %v7535_v49 = vld [vmem:[%s11095_s14 + $0x200] sm:$0xff] }
 0xcb2   : > { %v8614_v54 = vpack.c.bf16 %v7537_v50, %v7535_v49  ;;  %v5605_v49 = vld [vmem:[#allocation30 + $0x18] sm:$0xff] }
 0xcb3   : > { %8547 = vmatpush3.bf16.msra.mxu1 %v8546_v63  ;;  %v7519_v63 = vld [vmem:[%s11095_s14 + $0x180] sm:$0xff] }
 0xcb4   : > { %8581 = vmatprep.subr.bf16.mxu1 %v8580_v61  ;;  %v8566_v61 = vpack.c.bf16 %v4902_v58, %v4900_v57  ;;  %v7539_v57 = vld [vmem:[%s11095_s14 + $0x220] sm:$0xff]  ;;  %v7541_v58 = vld [vmem:[%s11095_s14 + $0x230] sm:$0xff] }
 0xd65   : > { %v4588_v6 = vpop.f32.mrb[56].mxu1 }
 0xd66   : > { %v4590_v7 = vpop.f32.mrb[57].mxu1 }
 0xd69   : > { %v4663_v12 = vpop.f32.mrb[58].mxu1 }
 0xd6a   : > { %v4668_v16 = vmax.f32 %v4588_v6, %v4663_v12  ;;  %v4665_v17 = vpop.f32.mrb[59].mxu1  ;;  %v8598_v6 = vpack.c.bf16 %v7521_v1, %v7519_v63  ;;  %v8618_v63 = vpack.c.bf16 %v7541_v58, %v7539_v57  ;;  %v5624_v57 = vld [vmem:[#allocation30 + $0xb0] sm:$0xff]  ;;  %v5625_v58 = vld [vmem:[#allocation30 + $0xb8] sm:$0xff] }
 0xd6b   : > { %v4669_v18 = vmax.f32 %v4590_v7, %v4665_v17  ;;  %v4904_v7 = vld [vmem:[%s11095_s14 + $0xa0] sm:$0xff] }
 0xd6c   : > { %v8570_v12 = vpack.c.bf16 %v4906_v3, %v4904_v7  ;;  %v4908_v17 = vld [vmem:[%s11095_s14 + $0xc0] sm:$0xff]  ;;  %v7552_v3 = vld [vmem:[%s11095_s14 + $0x288] sm:$0xff] }
 0xd6d   : > { %4766 = vmatprep.mubr.f32.mxu0 %v4669_v18  ;;  %4868 = vmatprep.mubr.f32.mxu1 %v4669_v18  ;;  %v4910_v18 = vld [vmem:[%s11095_s14 + $0xd0] sm:$0xff]  ;;  %v7547_v7 = vld [vmem:[%s11095_s14 + $0x260] sm:$0xff] }
 0xd6e   : > { %4767 = vmatmul.mubr.f32.vlgmr.msra.gmra.mrb[76].mxu0 %v4668_v16  ;;  %4869 = vmatmul.mubr.f32.vlgmr.msra.gmra.mrb[60].mxu1 %v4668_v16  ;;  %v8572_v16 = vpack.c.bf16 %v4911_v15, %v4909_v14  ;;  %v7556_v14 = vld [vmem:[%s11095_s14 + $0x2a8] sm:$0xff]  ;;  %v7558_v15 = vld [vmem:[%s11095_s14 + $0x2b8] sm:$0xff] }
 0xd6f   : > { %8551 = vmatpush1.bf16.msra.mxu0 %v8550_v19  ;;  %8583 = vmatpush1.bf16.msra.mxu1 %v8582_v20  ;;  %v7528_v19 = vld [vmem:[%s11095_s14 + $0x1c8] sm:$0xff]  ;;  %v8574_v20 = vpack.c.bf16 %v4910_v18, %v4908_v17  ;;  %v8632_v17 = vpack.c.bf16 %v7558_v15, %v7556_v14  ;;  %v7555_v18 = vld [vmem:[%s11095_s14 + $0x2a0] sm:$0xff] }
 0xd70   : > { %8553 = vmatprep.subr.bf16.mxu0 %v8552_v23  ;;  %8585 = vmatprep.subr.bf16.mxu1 %v8584_v24  ;;  %v7529_v23 = vld [vmem:[%s11095_s14 + $0x1d0] sm:$0xff]  ;;  %v8604_v24 = vpack.c.bf16 %v7530_v21, %v7528_v19  ;;  %v7562_v21 = vld [vmem:[%s11095_s14 + $0x2d8] sm:$0xff] }
 0xd71   : > { %4980 = vmatprep.mubr.f32.mxu0 %v10202_v0  ;;  %5084 = vmatprep.mubr.f32.mxu1 %v10202_v0  ;;  %v8606_v25 = vpack.c.bf16 %v7529_v23, %v7527_v22  ;;  %v7557_v19 = vld [vmem:[%s11095_s14 + $0x2b0] sm:$0xff] }
 0xd72   : > { %v8634_v22 = vpack.c.bf16 %v7557_v19, %v7555_v18  ;;  %v5500_v18 = vld [vmem:[#allocation29] sm:$0xff]  ;;  %v5501_v19 = vld [vmem:[#allocation29 + $0x8] sm:$0xff] }
 0xd73   : > { %8555 = vmatpush1.bf16.msra.mxu0 %v8554_v31  ;;  %8587 = vmatpush1.bf16.msra.mxu1 %v8586_v32  ;;  %v7532_v31 = vld [vmem:[%s11095_s14 + $0x1e8] sm:$0xff]  ;;  %v8578_v32 = vpack.c.bf16 %v4914_v30, %v4912_v29  ;;  %v8640_v29 = vpack.c.bf16 %v7566_v27, %v7564_v26  ;;  %v7563_v30 = vld [vmem:[%s11095_s14 + $0x2e0] sm:$0xff] }
 0xd74   : > { %8557 = vmatprep.subr.bf16.mxu0 %v8556_v35  ;;  %8589 = vmatprep.subr.bf16.mxu1 %v8588_v36  ;;  %v8608_v35 = vpack.c.bf16 %v7534_v33, %v7532_v31  ;;  %v7533_v36 = vld [vmem:[%s11095_s14 + $0x1f0] sm:$0xff]  ;;  %v5503_v26 = vld [vmem:[#allocation29 + $0x18] sm:$0xff]  ;;  %v5520_v27 = vld [vmem:[#allocation29 + $0xa0] sm:$0xff] }
 0xd75   : > { %v8610_v37 = vpack.c.bf16 %v7533_v36, %v7531_v34  ;;  %v7565_v31 = vld [vmem:[%s11095_s14 + $0x2f0] sm:$0xff] }
 0xd77   : > { %8559 = vmatpush1.bf16.msra.mxu0 %v8558_v43  ;;  %8591 = vmatpush1.bf16.msra.mxu1 %v8590_v44 }
 0xd78   : > { %8561 = vmatprep.subr.bf16.mxu0 %v8560_v47  ;;  %8593 = vmatprep.subr.bf16.mxu1 %v8592_v48  ;;  %v7502_v47 = vld [vmem:[%s1628_s1] ss:$0 sm:$0xff]  ;;  %s12111_s1 = sld [smem:[#allocation82_spill]] }
 0xd7b   : > { %8563 = vmatpush1.bf16.msra.mxu0 %v8562_v55  ;;  %8595 = vmatpush1.bf16.msra.mxu1 %v8594_v56  ;;  %v8616_v56 = vpack.c.bf16 %v7542_v52, %v7540_v51  ;;  %v5622_v51 = vld [vmem:[#allocation30 + $0xa0] sm:$0xff]  ;;  %v5623_v52 = vld [vmem:[#allocation30 + $0xa8] sm:$0xff] }
 0xd7c   : > { %8565 = vmatprep.subr.bf16.mxu0 %v8564_v59  ;;  %8597 = vmatprep.subr.bf16.mxu1 %v8596_v62  ;;  %v7544_v59 = vld [vmem:[%s11095_s14 + $0x248] sm:$0xff]  ;;  %v7546_v62 = vld [vmem:[%s11095_s14 + $0x258] sm:$0xff] }
 0xd7d   : > { %v8620_v1 = vpack.c.bf16 %v7546_v62, %v7544_v59  ;;  %v8688_v59 = vpack.c.bf16 %v5625_v58, %v5624_v57  ;;  %v5608_v62 = vld [vmem:[#allocation30 + $0x30] sm:$0xff]  ;;  %v5512_v57 = vld [vmem:[#allocation29 + $0x60] sm:$0xff]  ;;  %v5513_v58 = vld [vmem:[#allocation29 + $0x68] sm:$0xff] }
 0xd7f   : > { %8567 = vmatpush1.bf16.msra.mxu0 %v8566_v61  ;;  %8599 = vmatpush1.bf16.msra.mxu1 %v8598_v6  ;;  %v8622_v61 = vpack.c.bf16 %v7545_v60, %v7543_v2  ;;  %v8624_v6 = vpack.c.bf16 %v7550_v5, %v7548_v4  ;;  %v5626_v2 = vld [vmem:[#allocation30 + $0xc0] sm:$0xff]  ;;  %v5627_v60 = vld [vmem:[#allocation30 + $0xc8] sm:$0xff] }
 0xd80   : > { %8569 = vmatprep.subr.bf16.mxu0 %v8568_v8  ;;  %8601 = vmatprep.subr.bf16.mxu1 %v8600_v9  ;;  %v7549_v8 = vld [vmem:[%s11095_s14 + $0x270] sm:$0xff]  ;;  %v7554_v9 = vld [vmem:[%s11095_s14 + $0x298] sm:$0xff]  ;;  %v8692_v4 = vpack.c.bf16 %v5627_v60, %v5626_v2  ;;  %v5610_v5 = vld [vmem:[#allocation30 + $0x40] sm:$0xff] }
 0xd81   : > { %v8626_v10 = vpack.c.bf16 %v7549_v8, %v7547_v7  ;;  %v8628_v11 = vpack.c.bf16 %v7554_v9, %v7552_v3  ;;  %v5628_v7 = vld [vmem:[#allocation30 + $0xd0] sm:$0xff]  ;;  %v5629_v8 = vld [vmem:[#allocation30 + $0xd8] sm:$0xff] }
 0xd82   : > { %v8696_v3 = vpack.c.bf16 %v5629_v8, %v5628_v7  ;;  %v5612_v9 = vld [vmem:[#allocation30 + $0x50] sm:$0xff]  ;;  %v5515_v8 = vld [vmem:[#allocation29 + $0x78] sm:$0xff] }
 0xd83   : > { %8571 = vmatpush1.bf16.msra.mxu0 %v8570_v12  ;;  %8603 = vmatpush1.bf16.msra.mxu1 %v8602_v13  ;;  %v7551_v12 = vld [vmem:[%s11095_s14 + $0x280] sm:$0xff]  ;;  %v7553_v13 = vld [vmem:[%s11095_s14 + $0x290] sm:$0xff] }
 0xd84   : > { %8573 = vmatprep.subr.bf16.mxu0 %v8572_v16  ;;  %8605 = vmatprep.subr.bf16.mxu1 %v8604_v24  ;;  %v8630_v16 = vpack.c.bf16 %v7553_v13, %v7551_v12  ;;  %v7559_v24 = vld [vmem:[%s11095_s14 + $0x2c0] sm:$0xff]  ;;  %v5517_v13 = vld [vmem:[#allocation29 + $0x88] sm:$0xff]  ;;  %v5530_v60 = vld [vmem:[#allocation29 + $0xf0] sm:$0xff] }
 0xd85   : > { %v5516_v12 = vld [vmem:[#allocation29 + $0x80] sm:$0xff]  ;;  %v5514_v7 = vld [vmem:[#allocation29 + $0x70] sm:$0xff] }
 0xd87   : > { %8575 = vmatpush1.bf16.msra.mxu0 %v8574_v20  ;;  %8607 = vmatpush1.bf16.msra.mxu1 %v8606_v25  ;;  %v7560_v20 = vld [vmem:[%s11095_s14 + $0x2c8] sm:$0xff]  ;;  %v7561_v25 = vld [vmem:[%s11095_s14 + $0x2d0] sm:$0xff]  ;;  %s12113_s14 = sld [smem:[#allocation84_spill]] }
 0xd88   : > { %8577 = vmatprep.subr.bf16.mxu0 %v8576_v28  ;;  %8609 = vmatprep.subr.bf16.mxu1 %v8608_v35  ;;  %v8636_v23 = vpack.c.bf16 %v7562_v21, %v7560_v20  ;;  %v8638_v28 = vpack.c.bf16 %v7561_v25, %v7559_v24  ;;  %v5195_v35 = vld [vmem:[%s12111_s1] sm:$0xff]  ;;  %v5518_v20 = vld [vmem:[#allocation29 + $0x90] sm:$0xff]  ;;  %v5519_v21 = vld [vmem:[#allocation29 + $0x98] sm:$0xff] }
 0xd89   : > { %v8648_v24 = vpack.c.bf16 %v5519_v21, %v5518_v20  ;;  %v5502_v25 = vld [vmem:[#allocation29 + $0x10] sm:$0xff]  ;;  %v5714_v21 = vld [vmem:[%s11119_s23] sm:$0xff] }
 0xd8b   : > { %8579 = vmatpush1.bf16.msra.mxu0 %v8578_v32  ;;  %8611 = vmatpush1.bf16.msra.mxu1 %v8610_v37  ;;  %v8642_v32 = vpack.c.bf16 %v7565_v31, %v7563_v30  ;;  %v5504_v31 = vld [vmem:[#allocation29 + $0x20] sm:$0xff] }
 0xd8c   : > { %8613 = vmatprep.subr.bf16.mxu0 %v8612_v40  ;;  %v5619_v40 = vld [vmem:[#allocation30 + $0x88] sm:$0xff] }
 0xe41   : > { %v7850_v41 = vpop.f32.mrb[76].mxu0  ;;  %v7885_v42 = vpop.f32.mrb[60].mxu1 }
 0xe42   : > { %v7851_v43 = vpop.f32.mrb[77].mxu0  ;;  %v7886_v44 = vpop.f32.mrb[61].mxu1 }
 0xe43   : > { %v7852_v45 = vadd.f32 %v7851_v43, %v7850_v41  ;;  %v7887_v46 = vadd.f32 %v7886_v44, %v7885_v42  ;;  %v8676_v41 = vpack.c.bf16 %v5619_v40, %v5618_v39  ;;  %v5602_v42 = vld [vmem:[#allocation30] sm:$0xff]  ;;  %v5603_v43 = vld [vmem:[#allocation30 + $0x8] sm:$0xff] }
 0xe44   : > { %v8678_v44 = vpack.c.bf16 %v5603_v43, %v5602_v42  ;;  %v5524_v39 = vld [vmem:[#allocation29 + $0xc0] sm:$0xff]  ;;  %v5525_v40 = vld [vmem:[#allocation29 + $0xc8] sm:$0xff] }
 0xe45   : > { %v4874_v48 = vmax.f32 %v7852_v45, %v7887_v46  ;;  %v5620_v45 = vld [vmem:[#allocation30 + $0x90] sm:$0xff]  ;;  %v5621_v46 = vld [vmem:[#allocation30 + $0x98] sm:$0xff]  ;;  %v8660_v42 = vpack.c.bf16 %v5525_v40, %v5524_v39  ;;  %v5508_v43 = vld [vmem:[#allocation29 + $0x40] sm:$0xff] }
 0xe46   : > { %v7576_v39 = vld [vmem:[%s11119_s23 + $0x120] sm:$0xff]  ;;  %v7578_v40 = vld [vmem:[%s11119_s23 + $0x130] sm:$0xff] }
 0xe47   : > { %v4882_v53 = vadd.f32 %v7502_v47, %v4874_v48  ;;  %v8680_v47 = vpack.c.bf16 %v5621_v46, %v5620_v45  ;;  %v5604_v48 = vld [vmem:[#allocation30 + $0x10] sm:$0xff]  ;;  %v5527_v46 = vld [vmem:[#allocation29 + $0xd8] sm:$0xff] }
 0xe48   : > { %v8682_v50 = vpack.c.bf16 %v5605_v49, %v5604_v48  ;;  %v5526_v45 = vld [vmem:[#allocation29 + $0xd0] sm:$0xff] }
 0xe49   : > { %v4883_v55 = vmax.f32 %v4882_v53, 0.0  ;;  %v8684_v53 = vpack.c.bf16 %v5623_v52, %v5622_v51  ;;  %v8664_v48 = vpack.c.bf16 %v5527_v46, %v5526_v45  ;;  %v5510_v49 = vld [vmem:[#allocation29 + $0x50] sm:$0xff]  ;;  %v5528_v52 = vld [vmem:[#allocation29 + $0xe0] sm:$0xff]  ;;  %v8746_v46 = vpack.c.bf16 %v7578_v40, %v7576_v39  ;;  %v5743_v40 = vld [vmem:[%s11119_s23 + $0xe8] sm:$0xff] }
 0xe4b   : > { %4981 = vmatmul.mubr.f32.vlgmr.msra.gmra.mrb[78].mxu0 %v4883_v55  ;;  %5085 = vmatmul.mubr.f32.vlgmr.msra.gmra.mrb[62].mxu1 %v4883_v55 }
 0xe4c   : > { %8615 = vmatpush1.bf16.msra.mxu0 %v8614_v54  ;;  %5188 = vmatprep.mubr.f32.mxu0 %v10202_v0  ;;  %v5606_v54 = vld [vmem:[#allocation30 + $0x20] sm:$0xff] }
 0xe4d   : > { %8617 = vmatprep.subr.bf16.mxu0 %v8616_v56  ;;  %5264 = vmatprep.mubr.f32.mxu1 %v10202_v0 }
 0xe50   : > { %8619 = vmatpush1.bf16.msra.mxu0 %v8618_v63  ;;  %v5609_v63 = vld [vmem:[#allocation30 + $0x38] sm:$0xff] }
 0xe51   : > { %8621 = vmatprep.subr.bf16.mxu0 %v8620_v1  ;;  %v8690_v1 = vpack.c.bf16 %v5609_v63, %v5608_v62  ;;  %v8670_v62 = vpack.c.bf16 %v5513_v58, %v5512_v57  ;;  %v5614_v63 = vld [vmem:[#allocation30 + $0x60] sm:$0xff] }
 0xe54   : > { %8623 = vmatpush1.bf16.msra.mxu0 %v8622_v61  ;;  %v5611_v61 = vld [vmem:[#allocation30 + $0x48] sm:$0xff] }
 0xe55   : > { %8625 = vmatprep.subr.bf16.mxu0 %v8624_v6  ;;  %v8694_v6 = vpack.c.bf16 %v5611_v61, %v5610_v5  ;;  %v5632_v5 = vld [vmem:[#allocation30 + $0xf0] sm:$0xff] }
 0xe58   : > { %8627 = vmatpush1.bf16.msra.mxu0 %v8626_v10  ;;  %v5613_v10 = vld [vmem:[#allocation30 + $0x58] sm:$0xff] }
 0xe59   : > { %8629 = vmatprep.subr.bf16.mxu0 %v8628_v11  ;;  %v8698_v11 = vpack.c.bf16 %v5613_v10, %v5612_v9  ;;  %v8674_v9 = vpack.c.bf16 %v5515_v8, %v5514_v7  ;;  %v5616_v10 = vld [vmem:[#allocation30 + $0x70] sm:$0xff] }
 0xe5c   : > { %8631 = vmatpush1.bf16.msra.mxu0 %v8630_v16  ;;  %v5348_v16 = vld [vmem:[%s12113_s14] sm:$0xf] }
 0xe5d   : > { %8633 = vmatprep.subr.bf16.mxu0 %v8632_v17  ;;  %v8644_v17 = vpack.c.bf16 %v5517_v13, %v5516_v12  ;;  %v5715_v13 = vld [vmem:[%s11119_s23 + $0x8] sm:$0xff] }
 0xe60   : > { %8635 = vmatpush1.bf16.msra.mxu0 %v8634_v22  ;;  %v5423_v22 = vld [vmem:[%s12114_s21] sm:$0xf] }
 0xe61   : > { %8637 = vmatprep.subr.bf16.mxu0 %v8636_v23  ;;  %v8646_v23 = vpack.c.bf16 %v5501_v19, %v5500_v18 }
 0xe64   : > { %8639 = vmatpush1.bf16.msra.mxu0 %v8638_v28  ;;  %v5521_v28 = vld [vmem:[#allocation29 + $0xa8] sm:$0xff] }
 0xe65   : > { %8641 = vmatprep.subr.bf16.mxu0 %v8640_v29  ;;  %v8650_v29 = vpack.c.bf16 %v5503_v26, %v5502_v25  ;;  %v8652_v30 = vpack.c.bf16 %v5521_v28, %v5520_v27  ;;  %v5719_v25 = vld [vmem:[%s11119_s23 + $0x28] sm:$0xff]  ;;  %v5721_v27 = vld [vmem:[%s11119_s23 + $0x38] sm:$0xff] }
 0xe66   : > { %v7577_v28 = vld [vmem:[%s11119_s23 + $0x128] sm:$0xff] }
 0xe68   : > { %8643 = vmatpush1.bf16.msra.mxu0 %v8642_v32  ;;  %v5505_v32 = vld [vmem:[#allocation29 + $0x28] sm:$0xff] }
 0xe69   : > { %8677 = vmatprep.subr.bf16.mxu0 %v8676_v41 }
 0xe6b   : > { %5189 = vmatmul.mubr.f32.vlgmr.msra.gmra.mrb[80].mxu0 %v4883_v55  ;;  %v5607_v55 = vld [vmem:[#allocation30 + $0x28] sm:$0xff] }
 0xe6c   : > { %8679 = vmatpush3.bf16.msra.mxu0 %v8678_v44  ;;  %v8686_v56 = vpack.c.bf16 %v5607_v55, %v5606_v54  ;;  %v5509_v44 = vld [vmem:[#allocation29 + $0x48] sm:$0xff]  ;;  %v5630_v54 = vld [vmem:[#allocation30 + $0xe0] sm:$0xff] }
 0xe6d   : > { %8681 = vmatprep.subr.bf16.mxu0 %v8680_v47  ;;  %v8662_v47 = vpack.c.bf16 %v5509_v44, %v5508_v43  ;;  %v7581_v43 = vld [vmem:[%s11119_s23 + $0x148] sm:$0xff]  ;;  %v7583_v44 = vld [vmem:[%s11119_s23 + $0x158] sm:$0xff] }
 0xe70   : > { %8683 = vmatpush3.bf16.msra.mxu0 %v8682_v50  ;;  %v5511_v50 = vld [vmem:[#allocation29 + $0x58] sm:$0xff] }
 0xe71   : > { %8685 = vmatprep.subr.bf16.mxu0 %v8684_v53  ;;  %v8666_v51 = vpack.c.bf16 %v5511_v50, %v5510_v49  ;;  %v5529_v53 = vld [vmem:[#allocation29 + $0xe8] sm:$0xff]  ;;  %v8748_v50 = vpack.c.bf16 %v7583_v44, %v7581_v43  ;;  %v5742_v43 = vld [vmem:[%s11119_s23 + $0xe0] sm:$0xff]  ;;  %v5744_v44 = vld [vmem:[%s11119_s23 + $0xf0] sm:$0xff] }
 0xe72   : > { %v8668_v55 = vpack.c.bf16 %v5529_v53, %v5528_v52  ;;  %v7582_v52 = vld [vmem:[%s11119_s23 + $0x150] sm:$0xff]  ;;  %v5727_v53 = vld [vmem:[%s11119_s23 + $0x68] sm:$0xff] }
 0xe74   : > { %8687 = vmatpush3.bf16.msra.mxu0 %v8686_v56  ;;  %v5631_v56 = vld [vmem:[#allocation30 + $0xe8] sm:$0xff] }
 0xe75   : > { %8689 = vmatprep.subr.bf16.mxu0 %v8688_v59  ;;  %v8700_v59 = vpack.c.bf16 %v5631_v56, %v5630_v54  ;;  %v5729_v54 = vld [vmem:[%s11119_s23 + $0x78] sm:$0xff] }
 0xe76   : > { %v7587_v56 = vld [vmem:[%s11119_s23 + $0x178] sm:$0xff] }
 0xe78   : > { %8691 = vmatpush3.bf16.msra.mxu0 %v8690_v1  ;;  %v5615_v1 = vld [vmem:[#allocation30 + $0x68] sm:$0xff] }
 0xe79   : > { %8693 = vmatprep.subr.bf16.mxu0 %v8692_v4  ;;  %v8702_v2 = vpack.c.bf16 %v5615_v1, %v5614_v63  ;;  %v5531_v4 = vld [vmem:[#allocation29 + $0xf8] sm:$0xff]  ;;  %v8720_v63 = vpack.c.bf16 %v5729_v54, %v5727_v53 }
 0xe7a   : > { %v8672_v61 = vpack.c.bf16 %v5531_v4, %v5530_v60  ;;  %v7586_v60 = vld [vmem:[%s11119_s23 + $0x170] sm:$0xff]  ;;  %v5731_v4 = vld [vmem:[%s11119_s23 + $0x88] sm:$0xff]  ;;  %v7607_v53 = vld [vmem:[%s11119_s23 + $0x218] sm:$0xff] }
 0xe7c   : > { %8695 = vmatpush3.bf16.msra.mxu0 %v8694_v6  ;;  %v5633_v6 = vld [vmem:[#allocation30 + $0xf8] sm:$0xff] }
 0xe7d   : > { %8697 = vmatprep.subr.bf16.mxu0 %v8696_v3  ;;  %v8704_v3 = vpack.c.bf16 %v5633_v6, %v5632_v5  ;;  %v5733_v5 = vld [vmem:[%s11119_s23 + $0x98] sm:$0xff] }
 0xe7e   : > { %v7591_v6 = vld [vmem:[%s11119_s23 + $0x198] sm:$0xff] }
 0xe80   : > { %8699 = vmatpush3.bf16.msra.mxu0 %v8698_v11  ;;  %v5617_v11 = vld [vmem:[#allocation30 + $0x78] sm:$0xff] }
 0xe81   : > { %8701 = vmatprep.subr.bf16.mxu0 %v8700_v59  ;;  %v8706_v12 = vpack.c.bf16 %v5617_v11, %v5616_v10  ;;  %v5726_v59 = vld [vmem:[%s11119_s23 + $0x60] sm:$0xff]  ;;  %v8724_v10 = vpack.c.bf16 %v5733_v5, %v5731_v4  ;;  %v7609_v4 = vld [vmem:[%s11119_s23 + $0x228] sm:$0xff]  ;;  %v7611_v5 = vld [vmem:[%s11119_s23 + $0x238] sm:$0xff] }
 0xe84   : > { %8703 = vmatpush3.bf16.msra.mxu0 %v8702_v2  ;;  %v7584_v2 = vld [vmem:[%s11119_s23 + $0x160] sm:$0xff] }
 0xe85   : > { %8705 = vmatprep.subr.bf16.mxu0 %v8704_v3  ;;  %v8754_v8 = vpack.c.bf16 %v7586_v60, %v7584_v2  ;;  %v5730_v3 = vld [vmem:[%s11119_s23 + $0x80] sm:$0xff]  ;;  %v7606_v60 = vld [vmem:[%s11119_s23 + $0x210] sm:$0xff] }
 0xe86   : > { %v7604_v2 = vld [vmem:[%s11119_s23 + $0x200] sm:$0xff] }
 0xe88   : > { %8707 = vmatpush3.bf16.msra.mxu0 %v8706_v12  ;;  %v7588_v12 = vld [vmem:[%s11119_s23 + $0x180] sm:$0xff] }
 0xf1e   : > { %v4982_v33 = vpop.f32.mrb[78].mxu0 }
 0xf1f   : > { %v4984_v34 = vpop.f32.mrb[79].mxu0 }
 0xf20   : > { %5200 = vmatprep.subr.mxu1 %v4984_v34  ;;  %v5523_v34 = vld [vmem:[#allocation29 + $0xb8] sm:$0xff] }
 0xf21   : > { %5201 = vmatpush1.msra.mxu1 %v4982_v33  ;;  %v5522_v33 = vld [vmem:[#allocation29 + $0xb0] sm:$0xff] }
 0xf22   : > { %7567 = vmatmul.mubr.msk.f32.vlgmr.msra.gmra.mrb[62].mxu1 %vm5196_vm3, %v5195_v35  ;;  %v8654_v35 = vpack.c.bf16 %v5505_v32, %v5504_v31 }
 0xf23   : > { %5339 = vmatprep.mubr.f32.mxu1 %v10202_v0 }
 0xf3e   : > { %v5190_v36 = vpop.f32.mrb[80].mxu0 }
 0xf3f   : > { %v5192_v37 = vpop.f32.mrb[81].mxu0 }
 0xf40   : > { %5275 = vmatprep.subr.mxu1 %v5192_v37  ;;  %v5506_v37 = vld [vmem:[#allocation29 + $0x30] sm:$0xff] }
 0xf41   : > { %5276 = vmatpush1.msra.mxu1 %v5190_v36  ;;  %v8656_v36 = vpack.c.bf16 %v5523_v34, %v5522_v33 }
 0xf42   : > { %7568 = vmatmul.mubr.msk.f32.vlgmr.msra.gmra.mrb[62].mxu1 %vm5196_vm3, %v5271_v38  ;;  %v5507_v38 = vld [vmem:[#allocation29 + $0x38] sm:$0xff] }
 0xf43   : > { %5416 = vmatprep.mubr.f32.mxu1 %v10202_v0  ;;  %v8658_v41 = vpack.c.bf16 %v5507_v38, %v5506_v37  ;;  %v8712_v37 = vpack.c.bf16 %v5721_v27, %v5719_v25  ;;  %v7594_v25 = vld [vmem:[%s11119_s23 + $0x1b0] sm:$0xff] }
0x1015   : > { %v5341_v14 = vpop.f32.mrb[62].mxu1 }
0x1016   : > { %v5343_v15 = vpop.f32.mrb[63].mxu1 }
0x1017   : > { %5352 = vmatprep.subr.mxu1 %v5343_v15 }
0x1018   : > { %5353 = vmatpush1.msra.mxu1 %v5341_v14 }
0x1019   : > { %7569 = vmatmul.mubr.msk.f32.vlgmr.msra.gmra.mrb[64].mxu1 %vm5196_vm3, %v5348_v16  ;;  %5427 = vmatprep.subr.mxu1 %v5343_v15  ;;  %v7573_v16 = vld [vmem:[%s11119_s23 + $0x108] sm:$0xff] }
0x101a   : > { %5428 = vmatpush1.msra.mxu1 %v5341_v14  ;;  %5491 = vmatprep.mubr.f32.mxu1 %v10202_v0  ;;  %v5717_v14 = vld [vmem:[%s11119_s23 + $0x18] sm:$0xff] }
0x101b   : > { %8645 = vmatprep.subr.bf16.mxu1 %v8644_v17  ;;  %v8708_v15 = vpack.c.bf16 %v5717_v14, %v5715_v13  ;;  %v7575_v17 = vld [vmem:[%s11119_s23 + $0x118] sm:$0xff]  ;;  %v7590_v13 = vld [vmem:[%s11119_s23 + $0x190] sm:$0xff]  ;;  %v5735_v14 = vld [vmem:[%s11119_s23 + $0xa8] sm:$0xff] }
0x101c   : > { %v8740_v18 = vpack.c.bf16 %v7575_v17, %v7573_v16  ;;  %v7593_v16 = vld [vmem:[%s11119_s23 + $0x1a8] sm:$0xff]  ;;  %v7595_v17 = vld [vmem:[%s11119_s23 + $0x1b8] sm:$0xff] }
0x101d   : > { %7570 = vmatmul.mubr.msk.f32.vlgmr.msra.gmra.mrb[66].mxu1 %vm5196_vm3, %v5423_v22  ;;  %v5716_v22 = vld [vmem:[%s11119_s23 + $0x10] sm:$0xff] }
0x101e   : > { %8647 = vmatpush3.bf16.msra.mxu1 %v8646_v23  ;;  %8741 = vmatprep.subr.bf16.mxu0 %v8740_v18  ;;  %v7572_v23 = vld [vmem:[%s11119_s23 + $0x100] sm:$0xff]  ;;  %v8710_v33 = vpack.c.bf16 %v5716_v22, %v5714_v21  ;;  %v5736_v22 = vld [vmem:[%s11119_s23 + $0xb0] sm:$0xff] }
0x101f   : > { %8649 = vmatprep.subr.bf16.mxu1 %v8648_v24  ;;  %v7574_v24 = vld [vmem:[%s11119_s23 + $0x110] sm:$0xff] }
0x1020   : > { %v8742_v34 = vpack.c.bf16 %v7574_v24, %v7572_v23  ;;  %v8760_v23 = vpack.c.bf16 %v7595_v17, %v7593_v16  ;;  %v7592_v24 = vld [vmem:[%s11119_s23 + $0x1a0] sm:$0xff]  ;;  %v7617_v16 = vld [vmem:[%s11119_s23 + $0x268] sm:$0xff]  ;;  %v7619_v17 = vld [vmem:[%s11119_s23 + $0x278] sm:$0xff] }
0x1021   : > { %v8762_v27 = vpack.c.bf16 %v7594_v25, %v7592_v24 }
0x1022   : > { %8651 = vmatpush3.bf16.msra.mxu1 %v8650_v29  ;;  %v7579_v29 = vld [vmem:[%s11119_s23 + $0x138] sm:$0xff] }
0x1023   : > { %8653 = vmatprep.subr.bf16.mxu1 %v8652_v30  ;;  %v8744_v38 = vpack.c.bf16 %v7579_v29, %v7577_v28  ;;  %v5739_v28 = vld [vmem:[%s11119_s23 + $0xc8] sm:$0xff]  ;;  %v5741_v29 = vld [vmem:[%s11119_s23 + $0xd8] sm:$0xff] }
0x1026   : > { %8655 = vmatpush3.bf16.msra.mxu1 %v8654_v35  ;;  %v5718_v35 = vld [vmem:[%s11119_s23 + $0x20] sm:$0xff] }
0x1027   : > { %8657 = vmatprep.subr.bf16.mxu1 %v8656_v36  ;;  %v5720_v36 = vld [vmem:[%s11119_s23 + $0x30] sm:$0xff] }
0x1028   : > { %v8714_v45 = vpack.c.bf16 %v5720_v36, %v5718_v35  ;;  %v7599_v35 = vld [vmem:[%s11119_s23 + $0x1d8] sm:$0xff]  ;;  %v7596_v36 = vld [vmem:[%s11119_s23 + $0x1c0] sm:$0xff] }
0x102a   : > { %8659 = vmatpush3.bf16.msra.mxu1 %v8658_v41  ;;  %v5723_v41 = vld [vmem:[%s11119_s23 + $0x48] sm:$0xff] }
0x102b   : > { %8661 = vmatprep.subr.bf16.mxu1 %v8660_v42  ;;  %v5725_v42 = vld [vmem:[%s11119_s23 + $0x58] sm:$0xff] }
0x102c   : > { %v8716_v49 = vpack.c.bf16 %v5725_v42, %v5723_v41  ;;  %v5745_v41 = vld [vmem:[%s11119_s23 + $0xf8] sm:$0xff] }
0x102d   : > { %v8736_v42 = vpack.c.bf16 %v5745_v41, %v5743_v40  ;;  %v7633_v40 = vld [vmem:[%s11119_s23 + $0x2e8] sm:$0xff]  ;;  %v7635_v41 = vld [vmem:[%s11119_s23 + $0x2f8] sm:$0xff] }
0x102e   : > { %8663 = vmatpush3.bf16.msra.mxu1 %v8662_v47  ;;  %v5722_v47 = vld [vmem:[%s11119_s23 + $0x40] sm:$0xff] }
0x102f   : > { %8665 = vmatprep.subr.bf16.mxu1 %v8664_v48  ;;  %v5724_v48 = vld [vmem:[%s11119_s23 + $0x50] sm:$0xff] }
0x1030   : > { %v8718_v57 = vpack.c.bf16 %v5724_v48, %v5722_v47  ;;  %v7603_v47 = vld [vmem:[%s11119_s23 + $0x1f8] sm:$0xff]  ;;  %v7600_v48 = vld [vmem:[%s11119_s23 + $0x1e0] sm:$0xff] }
0x1032   : > { %8667 = vmatpush3.bf16.msra.mxu1 %v8666_v51  ;;  %v7580_v51 = vld [vmem:[%s11119_s23 + $0x140] sm:$0xff] }
0x1033   : > { %8669 = vmatprep.subr.bf16.mxu1 %v8668_v55  ;;  %v7585_v55 = vld [vmem:[%s11119_s23 + $0x168] sm:$0xff]  ;;  %v8750_v58 = vpack.c.bf16 %v7582_v52, %v7580_v51 }
0x1034   : > { %v8752_v1 = vpack.c.bf16 %v7587_v56, %v7585_v55  ;;  %v7605_v52 = vld [vmem:[%s11119_s23 + $0x208] sm:$0xff] }
0x1035   : > { %v8772_v54 = vpack.c.bf16 %v7607_v53, %v7605_v52  ;;  %v6467_v53 = vld [vmem:[#allocation33 + $0x80] sm:$0xff] }
0x1036   : > { %8671 = vmatpush3.bf16.msra.mxu1 %v8670_v62  ;;  %v5728_v62 = vld [vmem:[%s11119_s23 + $0x70] sm:$0xff] }
0x1037   : > { %8673 = vmatprep.subr.bf16.mxu1 %v8672_v61  ;;  %v7589_v61 = vld [vmem:[%s11119_s23 + $0x188] sm:$0xff]  ;;  %v8722_v7 = vpack.c.bf16 %v5728_v62, %v5726_v59 }
0x1038   : > { %v8756_v11 = vpack.c.bf16 %v7591_v6, %v7589_v61  ;;  %v8774_v6 = vpack.c.bf16 %v7606_v60, %v7604_v2  ;;  %v6454_v2 = vld [vmem:[#allocation33 + $0x18] sm:$0xff] }
0x103a   : > { %8675 = vmatpush3.bf16.msra.mxu1 %v8674_v9  ;;  %v5732_v9 = vld [vmem:[%s11119_s23 + $0x90] sm:$0xff] }
0x103b   : > { %8709 = vmatprep.subr.bf16.mxu1 %v8708_v15  ;;  %v5737_v15 = vld [vmem:[%s11119_s23 + $0xb8] sm:$0xff]  ;;  %v8726_v18 = vpack.c.bf16 %v5732_v9, %v5730_v3  ;;  %v7608_v3 = vld [vmem:[%s11119_s23 + $0x220] sm:$0xff]  ;;  %v7610_v9 = vld [vmem:[%s11119_s23 + $0x230] sm:$0xff] }
0x103c   : > { %v8728_v21 = vpack.c.bf16 %v5737_v15, %v5735_v14  ;;  %v7612_v14 = vld [vmem:[%s11119_s23 + $0x240] sm:$0xff]  ;;  %v7614_v15 = vld [vmem:[%s11119_s23 + $0x250] sm:$0xff] }
0x10ec   : > { %v5418_v19 = vpop.f32.mrb[64].mxu1 }
0x10ed   : > { %v5420_v20 = vpop.f32.mrb[65].mxu1 }
0x10f0   : > { %v5493_v26 = vpop.f32.mrb[66].mxu1 }
0x10f1   : > { %v5498_v30 = vmax.f32 %v5418_v19, %v5493_v26  ;;  %v5495_v31 = vpop.f32.mrb[67].mxu1  ;;  %v8758_v19 = vpack.c.bf16 %v7590_v13, %v7588_v12  ;;  %v8778_v12 = vpack.c.bf16 %v7610_v9, %v7608_v3  ;;  %v6473_v3 = vld [vmem:[#allocation33 + $0xb0] sm:$0xff]  ;;  %v6474_v9 = vld [vmem:[#allocation33 + $0xb8] sm:$0xff] }
0x10f2   : > { %v5499_v32 = vmax.f32 %v5420_v20, %v5495_v31  ;;  %v5734_v20 = vld [vmem:[%s11119_s23 + $0xa0] sm:$0xff] }
0x10f3   : > { %v8730_v26 = vpack.c.bf16 %v5736_v22, %v5734_v20  ;;  %v5738_v31 = vld [vmem:[%s11119_s23 + $0xc0] sm:$0xff]  ;;  %v7621_v22 = vld [vmem:[%s11119_s23 + $0x288] sm:$0xff] }
0x10f4   : > { %5596 = vmatprep.mubr.f32.mxu1 %v5499_v32  ;;  %5698 = vmatprep.mubr.f32.mxu0 %v5499_v32  ;;  %v5740_v32 = vld [vmem:[%s11119_s23 + $0xd0] sm:$0xff]  ;;  %v7616_v20 = vld [vmem:[%s11119_s23 + $0x260] sm:$0xff] }
0x10f5   : > { %5597 = vmatmul.mubr.f32.vlgmr.msra.gmra.mrb[68].mxu1 %v5498_v30  ;;  %5699 = vmatmul.mubr.f32.vlgmr.msra.gmra.mrb[82].mxu0 %v5498_v30  ;;  %v8732_v30 = vpack.c.bf16 %v5741_v29, %v5739_v28  ;;  %v7625_v28 = vld [vmem:[%s11119_s23 + $0x2a8] sm:$0xff]  ;;  %v7627_v29 = vld [vmem:[%s11119_s23 + $0x2b8] sm:$0xff] }
0x10f6   : > { %8711 = vmatpush1.bf16.msra.mxu1 %v8710_v33  ;;  %8743 = vmatpush1.bf16.msra.mxu0 %v8742_v34  ;;  %v7597_v33 = vld [vmem:[%s11119_s23 + $0x1c8] sm:$0xff]  ;;  %v8734_v34 = vpack.c.bf16 %v5740_v32, %v5738_v31  ;;  %v8792_v31 = vpack.c.bf16 %v7627_v29, %v7625_v28  ;;  %v7624_v32 = vld [vmem:[%s11119_s23 + $0x2a0] sm:$0xff] }
0x10f7   : > { %8713 = vmatprep.subr.bf16.mxu1 %v8712_v37  ;;  %8745 = vmatprep.subr.bf16.mxu0 %v8744_v38  ;;  %v7598_v37 = vld [vmem:[%s11119_s23 + $0x1d0] sm:$0xff]  ;;  %v8764_v38 = vpack.c.bf16 %v7599_v35, %v7597_v33  ;;  %v7631_v35 = vld [vmem:[%s11119_s23 + $0x2d8] sm:$0xff]  ;;  %v6365_v29 = vld [vmem:[#allocation32 + $0x80] sm:$0xff] }
0x10f8   : > { %5810 = vmatprep.mubr.f32.mxu1 %v10202_v0  ;;  %5914 = vmatprep.mubr.f32.mxu0 %v10202_v0  ;;  %v8766_v39 = vpack.c.bf16 %v7598_v37, %v7596_v36  ;;  %v7626_v33 = vld [vmem:[%s11119_s23 + $0x2b0] sm:$0xff] }
0x10f9   : > { %v8794_v36 = vpack.c.bf16 %v7626_v33, %v7624_v32 }
0x10fa   : > { %8715 = vmatpush1.bf16.msra.mxu1 %v8714_v45  ;;  %8747 = vmatpush1.bf16.msra.mxu0 %v8746_v46  ;;  %v7601_v45 = vld [vmem:[%s11119_s23 + $0x1e8] sm:$0xff]  ;;  %v8738_v46 = vpack.c.bf16 %v5744_v44, %v5742_v43  ;;  %v8800_v43 = vpack.c.bf16 %v7635_v41, %v7633_v40  ;;  %v7632_v44 = vld [vmem:[%s11119_s23 + $0x2e0] sm:$0xff] }
0x10fb   : > { %8717 = vmatprep.subr.bf16.mxu1 %v8716_v49  ;;  %8749 = vmatprep.subr.bf16.mxu0 %v8748_v50  ;;  %v8768_v49 = vpack.c.bf16 %v7603_v47, %v7601_v45  ;;  %v7602_v50 = vld [vmem:[%s11119_s23 + $0x1f0] sm:$0xff] }
0x10fc   : > { %v8770_v51 = vpack.c.bf16 %v7602_v50, %v7600_v48  ;;  %v7634_v45 = vld [vmem:[%s11119_s23 + $0x2f0] sm:$0xff] }
0x10fe   : > { %8719 = vmatpush1.bf16.msra.mxu1 %v8718_v57  ;;  %8751 = vmatpush1.bf16.msra.mxu0 %v8750_v58 }
0x10ff   : > { %8721 = vmatprep.subr.bf16.mxu1 %v8720_v63  ;;  %8753 = vmatprep.subr.bf16.mxu0 %v8752_v1  ;;  %v7571_v63 = vld [vmem:[%s1657_s13] ss:$0 sm:$0xff]  ;;  %s12116_s13 = sld [smem:[#allocation91_spill]] }
0x1102   : > { %8723 = vmatpush1.bf16.msra.mxu1 %v8722_v7  ;;  %8755 = vmatpush1.bf16.msra.mxu0 %v8754_v8  ;;  %v8776_v8 = vpack.c.bf16 %v7611_v5, %v7609_v4  ;;  %v6471_v4 = vld [vmem:[#allocation33 + $0xa0] sm:$0xff]  ;;  %v6472_v5 = vld [vmem:[#allocation33 + $0xa8] sm:$0xff] }
0x1103   : > { %8725 = vmatprep.subr.bf16.mxu1 %v8724_v10  ;;  %8757 = vmatprep.subr.bf16.mxu0 %v8756_v11  ;;  %v7613_v10 = vld [vmem:[%s11119_s23 + $0x248] sm:$0xff]  ;;  %v7615_v11 = vld [vmem:[%s11119_s23 + $0x258] sm:$0xff] }
0x1104   : > { %v8780_v13 = vpack.c.bf16 %v7615_v11, %v7613_v10  ;;  %v8848_v10 = vpack.c.bf16 %v6474_v9, %v6473_v3  ;;  %v6457_v11 = vld [vmem:[#allocation33 + $0x30] sm:$0xff]  ;;  %v6361_v9 = vld [vmem:[#allocation32 + $0x60] sm:$0xff] }
0x1105   : > { %v6108_v52 = vld [vmem:[%s12116_s13] sm:$0xf] }
0x1106   : > { %8727 = vmatpush1.bf16.msra.mxu1 %v8726_v18  ;;  %8759 = vmatpush1.bf16.msra.mxu0 %v8758_v19  ;;  %v8782_v18 = vpack.c.bf16 %v7614_v15, %v7612_v14  ;;  %v8784_v19 = vpack.c.bf16 %v7619_v17, %v7617_v16  ;;  %v6475_v14 = vld [vmem:[#allocation33 + $0xc0] sm:$0xff]  ;;  %v6476_v15 = vld [vmem:[#allocation33 + $0xc8] sm:$0xff] }
0x1107   : > { %8729 = vmatprep.subr.bf16.mxu1 %v8728_v21  ;;  %8761 = vmatprep.subr.bf16.mxu0 %v8760_v23  ;;  %v7618_v21 = vld [vmem:[%s11119_s23 + $0x270] sm:$0xff]  ;;  %v7623_v23 = vld [vmem:[%s11119_s23 + $0x298] sm:$0xff]  ;;  %v8852_v16 = vpack.c.bf16 %v6476_v15, %v6475_v14  ;;  %v6459_v17 = vld [vmem:[#allocation33 + $0x40] sm:$0xff] }
0x1108   : > { %v8786_v24 = vpack.c.bf16 %v7618_v21, %v7616_v20  ;;  %v8788_v25 = vpack.c.bf16 %v7623_v23, %v7621_v22  ;;  %v6477_v20 = vld [vmem:[#allocation33 + $0xd0] sm:$0xff]  ;;  %v6478_v21 = vld [vmem:[#allocation33 + $0xd8] sm:$0xff] }
0x1109   : > { %v8856_v22 = vpack.c.bf16 %v6478_v21, %v6477_v20  ;;  %v6461_v23 = vld [vmem:[#allocation33 + $0x50] sm:$0xff]  ;;  %v6364_v21 = vld [vmem:[#allocation32 + $0x78] sm:$0xff] }
0x110a   : > { %8731 = vmatpush1.bf16.msra.mxu1 %v8730_v26  ;;  %8763 = vmatpush1.bf16.msra.mxu0 %v8762_v27  ;;  %v7620_v26 = vld [vmem:[%s11119_s23 + $0x280] sm:$0xff]  ;;  %v7622_v27 = vld [vmem:[%s11119_s23 + $0x290] sm:$0xff] }
0x110b   : > { %8733 = vmatprep.subr.bf16.mxu1 %v8732_v30  ;;  %8765 = vmatprep.subr.bf16.mxu0 %v8764_v38  ;;  %v8790_v30 = vpack.c.bf16 %v7622_v27, %v7620_v26  ;;  %v7628_v38 = vld [vmem:[%s11119_s23 + $0x2c0] sm:$0xff]  ;;  %v6480_v27 = vld [vmem:[#allocation33 + $0xe8] sm:$0xff]  ;;  %v6379_v15 = vld [vmem:[#allocation32 + $0xf0] sm:$0xff] }
0x110c   : > { %v6479_v26 = vld [vmem:[#allocation33 + $0xe0] sm:$0xff]  ;;  %v6363_v20 = vld [vmem:[#allocation32 + $0x70] sm:$0xff] }
0x110d   : > { %v8860_v28 = vpack.c.bf16 %v6480_v27, %v6479_v26  ;;  %v6564_v27 = vld [vmem:[%s11135_s17 + $0x8] sm:$0xff] }
0x110e   : > { %8735 = vmatpush1.bf16.msra.mxu1 %v8734_v34  ;;  %8767 = vmatpush1.bf16.msra.mxu0 %v8766_v39  ;;  %v7629_v34 = vld [vmem:[%s11119_s23 + $0x2c8] sm:$0xff]  ;;  %v7630_v39 = vld [vmem:[%s11119_s23 + $0x2d0] sm:$0xff]  ;;  %s12117_s23 = sld [smem:[#allocation92_spill]] }
0x110f   : > { %8737 = vmatprep.subr.bf16.mxu1 %v8736_v42  ;;  %8769 = vmatprep.subr.bf16.mxu0 %v8768_v49  ;;  %v8796_v37 = vpack.c.bf16 %v7631_v35, %v7629_v34  ;;  %v8798_v42 = vpack.c.bf16 %v7630_v39, %v7628_v38  ;;  %v6025_v49 = vld [vmem:[%s12115_s26] sm:$0xf]  ;;  %v6349_v35 = vld [vmem:[#allocation32] sm:$0xff]  ;;  %v6368_v38 = vld [vmem:[#allocation32 + $0x98] sm:$0xff] }
0x1110   : > { %v6272_v39 = vld [vmem:[%s12118_s0] sm:$0x3] }
0x1112   : > { %8739 = vmatpush1.bf16.msra.mxu1 %v8738_v46  ;;  %8771 = vmatpush1.bf16.msra.mxu0 %v8770_v51  ;;  %v8802_v46 = vpack.c.bf16 %v7634_v45, %v7632_v44  ;;  %v6369_v44 = vld [vmem:[#allocation32 + $0xa0] sm:$0xff]  ;;  %v6370_v45 = vld [vmem:[#allocation32 + $0xa8] sm:$0xff] }
0x1113   : > { %8773 = vmatprep.subr.bf16.mxu1 %v8772_v54  ;;  %v6468_v54 = vld [vmem:[#allocation33 + $0x88] sm:$0xff] }
0x1114   : > { %v6191_v33 = vld [vmem:[%s12117_s23] sm:$0x3] }
0x11c8   : > { %v7920_v55 = vpop.f32.mrb[68].mxu1  ;;  %v7955_v56 = vpop.f32.mrb[82].mxu0 }
0x11c9   : > { %v7921_v57 = vpop.f32.mrb[69].mxu1  ;;  %v7956_v58 = vpop.f32.mrb[83].mxu0 }
0x11ca   : > { %v7922_v59 = vadd.f32 %v7921_v57, %v7920_v55  ;;  %v7957_v62 = vadd.f32 %v7956_v58, %v7955_v56  ;;  %v8836_v55 = vpack.c.bf16 %v6468_v54, %v6467_v53  ;;  %v6451_v56 = vld [vmem:[#allocation33] sm:$0xff]  ;;  %v6452_v57 = vld [vmem:[#allocation33 + $0x8] sm:$0xff]  ;;  %v6355_v54 = vld [vmem:[#allocation32 + $0x30] sm:$0xff] }
0x11cb   : > { %v8838_v58 = vpack.c.bf16 %v6452_v57, %v6451_v56  ;;  %v6373_v56 = vld [vmem:[#allocation32 + $0xc0] sm:$0xff]  ;;  %v6374_v57 = vld [vmem:[#allocation32 + $0xc8] sm:$0xff] }
0x11cc   : > { %v5704_v1 = vmax.f32 %v7922_v59, %v7957_v62  ;;  %v6469_v59 = vld [vmem:[#allocation33 + $0x90] sm:$0xff]  ;;  %v6470_v62 = vld [vmem:[#allocation33 + $0x98] sm:$0xff] }
0x11ce   : > { %v5712_v61 = vadd.f32 %v7571_v63, %v5704_v1  ;;  %v8840_v63 = vpack.c.bf16 %v6470_v62, %v6469_v59  ;;  %v6453_v1 = vld [vmem:[#allocation33 + $0x10] sm:$0xff]  ;;  %v8820_v59 = vpack.c.bf16 %v6374_v57, %v6373_v56  ;;  %v6357_v62 = vld [vmem:[#allocation32 + $0x40] sm:$0xff]  ;;  %v6584_v56 = vld [vmem:[%s11135_s17 + $0xa8] sm:$0xff] }
0x11cf   : > { %v8842_v60 = vpack.c.bf16 %v6454_v2, %v6453_v1  ;;  %v6375_v1 = vld [vmem:[#allocation32 + $0xd0] sm:$0xff]  ;;  %v6376_v2 = vld [vmem:[#allocation32 + $0xd8] sm:$0xff] }
0x11d0   : > { %v5713_v7 = vmax.f32 %v5712_v61, 0.0  ;;  %v8844_v61 = vpack.c.bf16 %v6472_v5, %v6471_v4  ;;  %v8824_v4 = vpack.c.bf16 %v6376_v2, %v6375_v1  ;;  %v6359_v5 = vld [vmem:[#allocation32 + $0x50] sm:$0xff]  ;;  %v6582_v57 = vld [vmem:[%s11135_s17 + $0x98] sm:$0xff]  ;;  %v6583_v1 = vld [vmem:[%s11135_s17 + $0xa0] sm:$0xff] }
0x11d2   : > { %5811 = vmatmul.mubr.f32.vlgmr.msra.gmra.mrb[70].mxu1 %v5713_v7  ;;  %5915 = vmatmul.mubr.f32.vlgmr.msra.gmra.mrb[84].mxu0 %v5713_v7 }
0x11d3   : > { %8775 = vmatpush1.bf16.msra.mxu1 %v8774_v6  ;;  %6018 = vmatprep.mubr.f32.mxu1 %v10202_v0  ;;  %v6455_v6 = vld [vmem:[#allocation33 + $0x20] sm:$0xff] }
0x11d4   : > { %8777 = vmatprep.subr.bf16.mxu1 %v8776_v8  ;;  %6101 = vmatprep.mubr.f32.mxu0 %v10202_v0 }
0x11d7   : > { %8779 = vmatpush1.bf16.msra.mxu1 %v8778_v12  ;;  %v6458_v12 = vld [vmem:[#allocation33 + $0x38] sm:$0xff] }
0x11d8   : > { %8781 = vmatprep.subr.bf16.mxu1 %v8780_v13  ;;  %v8850_v13 = vpack.c.bf16 %v6458_v12, %v6457_v11  ;;  %v6463_v11 = vld [vmem:[#allocation33 + $0x60] sm:$0xff] }
0x11db   : > { %8783 = vmatpush1.bf16.msra.mxu1 %v8782_v18  ;;  %v6460_v18 = vld [vmem:[#allocation33 + $0x48] sm:$0xff] }
0x11dc   : > { %8785 = vmatprep.subr.bf16.mxu1 %v8784_v19  ;;  %v8854_v19 = vpack.c.bf16 %v6460_v18, %v6459_v17  ;;  %v6481_v17 = vld [vmem:[#allocation33 + $0xf0] sm:$0xff] }
0x11df   : > { %8787 = vmatpush1.bf16.msra.mxu1 %v8786_v24  ;;  %v6462_v24 = vld [vmem:[#allocation33 + $0x58] sm:$0xff] }
0x11e0   : > { %8789 = vmatprep.subr.bf16.mxu1 %v8788_v25  ;;  %v8858_v25 = vpack.c.bf16 %v6462_v24, %v6461_v23  ;;  %v8834_v23 = vpack.c.bf16 %v6364_v21, %v6363_v20  ;;  %v6465_v24 = vld [vmem:[#allocation33 + $0x70] sm:$0xff]  ;;  %v6595_v21 = vld [vmem:[%s11135_s17 + $0x100] sm:$0xff] }
0x11e3   : > { %8791 = vmatpush1.bf16.msra.mxu1 %v8790_v30  ;;  %v6366_v30 = vld [vmem:[#allocation32 + $0x88] sm:$0xff] }
0x11e4   : > { %8793 = vmatprep.subr.bf16.mxu1 %v8792_v31  ;;  %v8804_v34 = vpack.c.bf16 %v6366_v30, %v6365_v29  ;;  %v6566_v29 = vld [vmem:[%s11135_s17 + $0x18] sm:$0xff] }
0x11e7   : > { %8795 = vmatpush1.bf16.msra.mxu1 %v8794_v36  ;;  %v6350_v36 = vld [vmem:[#allocation32 + $0x8] sm:$0xff] }
0x11e8   : > { %8797 = vmatprep.subr.bf16.mxu1 %v8796_v37  ;;  %v6367_v37 = vld [vmem:[#allocation32 + $0x90] sm:$0xff]  ;;  %v8806_v40 = vpack.c.bf16 %v6350_v36, %v6349_v35  ;;  %v6563_v35 = vld [vmem:[%s11135_s17] sm:$0xff] }
0x11e9   : > { %v8808_v41 = vpack.c.bf16 %v6368_v38, %v6367_v37  ;;  %v6567_v36 = vld [vmem:[%s11135_s17 + $0x20] sm:$0xff]  ;;  %v6565_v37 = vld [vmem:[%s11135_s17 + $0x10] sm:$0xff] }
0x11ea   : > { %v6569_v38 = vld [vmem:[%s11135_s17 + $0x30] sm:$0xff] }
0x11eb   : > { %8799 = vmatpush1.bf16.msra.mxu1 %v8798_v42  ;;  %v6351_v42 = vld [vmem:[#allocation32 + $0x10] sm:$0xff] }
0x11ec   : > { %8801 = vmatprep.subr.bf16.mxu1 %v8800_v43  ;;  %v6352_v43 = vld [vmem:[#allocation32 + $0x18] sm:$0xff] }
0x11ef   : > { %8803 = vmatpush1.bf16.msra.mxu1 %v8802_v46  ;;  %v8810_v46 = vpack.c.bf16 %v6352_v43, %v6351_v42  ;;  %v6574_v42 = vld [vmem:[%s11135_s17 + $0x58] sm:$0xff] }
0x11f0   : > { %8837 = vmatprep.subr.bf16.mxu1 %v8836_v55  ;;  %v6356_v55 = vld [vmem:[#allocation32 + $0x38] sm:$0xff] }
0x11f1   : > { %v6578_v43 = vld [vmem:[%s11135_s17 + $0x78] sm:$0xff] }
0x11f2   : > { %6019 = vmatmul.mubr.f32.vlgmr.msra.gmra.mrb[72].mxu1 %v5713_v7  ;;  %v6456_v7 = vld [vmem:[#allocation33 + $0x28] sm:$0xff] }
0x11f3   : > { %8839 = vmatpush3.bf16.msra.mxu1 %v8838_v58  ;;  %v8846_v8 = vpack.c.bf16 %v6456_v7, %v6455_v6  ;;  %v8818_v58 = vpack.c.bf16 %v6356_v55, %v6355_v54  ;;  %v6377_v6 = vld [vmem:[#allocation32 + $0xe0] sm:$0xff]  ;;  %v6378_v7 = vld [vmem:[#allocation32 + $0xe8] sm:$0xff]  ;;  %v6577_v54 = vld [vmem:[%s11135_s17 + $0x70] sm:$0xff] }
0x11f4   : > { %8841 = vmatprep.subr.bf16.mxu1 %v8840_v63  ;;  %v6358_v63 = vld [vmem:[#allocation32 + $0x48] sm:$0xff]  ;;  %v8828_v3 = vpack.c.bf16 %v6378_v7, %v6377_v6  ;;  %v6590_v7 = vld [vmem:[%s11135_s17 + $0xd8] sm:$0xff] }
0x11f5   : > { %v6580_v55 = vld [vmem:[%s11135_s17 + $0x88] sm:$0xff] }
0x11f6   : > { %v8876_v2 = vpack.c.bf16 %v6584_v56, %v6580_v55  ;;  %v6592_v6 = vld [vmem:[%s11135_s17 + $0xe8] sm:$0xff]  ;;  %v6622_v55 = vld [vmem:[%s11135_s17 + $0x1d8] sm:$0xff] }
0x11f7   : > { %8843 = vmatpush3.bf16.msra.mxu1 %v8842_v60  ;;  %v8822_v60 = vpack.c.bf16 %v6358_v63, %v6357_v62  ;;  %v6579_v63 = vld [vmem:[%s11135_s17 + $0x80] sm:$0xff] }
0x11f8   : > { %8845 = vmatprep.subr.bf16.mxu1 %v8844_v61  ;;  %v6360_v61 = vld [vmem:[#allocation32 + $0x58] sm:$0xff] }
0x11fb   : > { %8847 = vmatpush3.bf16.msra.mxu1 %v8846_v8  ;;  %v8826_v8 = vpack.c.bf16 %v6360_v61, %v6359_v5  ;;  %v6585_v5 = vld [vmem:[%s11135_s17 + $0xb0] sm:$0xff]  ;;  %v6588_v61 = vld [vmem:[%s11135_s17 + $0xc8] sm:$0xff] }
0x11fc   : > { %8849 = vmatprep.subr.bf16.mxu1 %v8848_v10  ;;  %v6362_v10 = vld [vmem:[#allocation32 + $0x68] sm:$0xff] }
0x11fd   : > { %v8830_v12 = vpack.c.bf16 %v6362_v10, %v6361_v9  ;;  %v6587_v10 = vld [vmem:[%s11135_s17 + $0xc0] sm:$0xff] }
0x11ff   : > { %8851 = vmatpush3.bf16.msra.mxu1 %v8850_v13  ;;  %v6464_v13 = vld [vmem:[#allocation33 + $0x68] sm:$0xff] }
0x1200   : > { %8853 = vmatprep.subr.bf16.mxu1 %v8852_v16  ;;  %v8862_v14 = vpack.c.bf16 %v6464_v13, %v6463_v11  ;;  %v6380_v16 = vld [vmem:[#allocation32 + $0xf8] sm:$0xff]  ;;  %v6591_v11 = vld [vmem:[%s11135_s17 + $0xe0] sm:$0xff] }
0x1201   : > { %v8832_v18 = vpack.c.bf16 %v6380_v16, %v6379_v15  ;;  %v6593_v15 = vld [vmem:[%s11135_s17 + $0xf0] sm:$0xff]  ;;  %v6596_v16 = vld [vmem:[%s11135_s17 + $0x108] sm:$0xff] }
0x1203   : > { %8855 = vmatpush3.bf16.msra.mxu1 %v8854_v19  ;;  %v6482_v19 = vld [vmem:[#allocation33 + $0xf8] sm:$0xff] }
0x1204   : > { %8857 = vmatprep.subr.bf16.mxu1 %v8856_v22  ;;  %v8864_v22 = vpack.c.bf16 %v6482_v19, %v6481_v17  ;;  %v6598_v17 = vld [vmem:[%s11135_s17 + $0x118] sm:$0xff]  ;;  %v8882_v19 = vpack.c.bf16 %v6591_v11, %v6587_v10 }
0x1207   : > { %8859 = vmatpush3.bf16.msra.mxu1 %v8858_v25  ;;  %v6466_v25 = vld [vmem:[#allocation33 + $0x78] sm:$0xff] }
0x1208   : > { %8861 = vmatprep.subr.bf16.mxu1 %v8860_v28  ;;  %v8866_v26 = vpack.c.bf16 %v6466_v25, %v6465_v24  ;;  %v6568_v28 = vld [vmem:[%s11135_s17 + $0x28] sm:$0xff]  ;;  %v6597_v25 = vld [vmem:[%s11135_s17 + $0x110] sm:$0xff] }
0x1209   : > { %v8868_v30 = vpack.c.bf16 %v6568_v28, %v6564_v27  ;;  %v6604_v27 = vld [vmem:[%s11135_s17 + $0x148] sm:$0xff] }
0x120a   : > { %v6608_v28 = vld [vmem:[%s11135_s17 + $0x168] sm:$0xff] }
0x120b   : > { %8863 = vmatpush3.bf16.msra.mxu1 %v8862_v14  ;;  %v6589_v14 = vld [vmem:[%s11135_s17 + $0xd0] sm:$0xff] }
0x120c   : > { %8865 = vmatprep.subr.bf16.mxu1 %v8864_v22  ;;  %v8914_v20 = vpack.c.bf16 %v6593_v15, %v6589_v14  ;;  %v6599_v22 = vld [vmem:[%s11135_s17 + $0x120] sm:$0xff]  ;;  %v6778_v14 = vlaneseq }
0x120f   : > { %8867 = vmatpush3.bf16.msra.mxu1 %v8866_v26  ;;  %v6601_v26 = vld [vmem:[%s11135_s17 + $0x130] sm:$0xff] }
0x12a5   : > { %v5812_v47 = vpop.f32.mrb[70].mxu1 }
0x12a6   : > { %v5814_v48 = vpop.f32.mrb[71].mxu1 }
0x12a7   : > { %7636 = vmatprep.subr.msk.mxu0 %vm6030_vm4, %v5814_v48  ;;  %v6353_v48 = vld [vmem:[#allocation32 + $0x20] sm:$0xff] }
0x12a8   : > { %7637 = vmatpush1.msk.msra.mxu0 %vm6030_vm4, %v5812_v47  ;;  %v8812_v47 = vpack.c.bf16 %v6370_v45, %v6369_v44 }
0x12a9   : > { %7638 = vmatmul.mubr.msk.f32.vlgmr.msra.gmra.mrb[84].mxu0 %vm6026_vm5, %v6025_v49  ;;  %v6354_v49 = vld [vmem:[#allocation32 + $0x28] sm:$0xff] }
0x12aa   : > { %6182 = vmatprep.mubr.f32.mxu0 %v10202_v0 }
0x12c5   : > { %v6020_v50 = vpop.f32.mrb[72].mxu1 }
0x12c6   : > { %v6022_v51 = vpop.f32.mrb[73].mxu1 }
0x12c7   : > { %7639 = vmatprep.subr.msk.mxu0 %vm6030_vm4, %v6022_v51  ;;  %v6372_v51 = vld [vmem:[#allocation32 + $0xb8] sm:$0xff] }
0x12c8   : > { %7640 = vmatpush1.msk.msra.mxu0 %vm6030_vm4, %v6020_v50  ;;  %v6371_v50 = vld [vmem:[#allocation32 + $0xb0] sm:$0xff] }
0x12c9   : > { %7641 = vmatmul.mubr.msk.f32.vlgmr.msra.gmra.mrb[84].mxu0 %vm6026_vm5, %v6108_v52  ;;  %v8814_v52 = vpack.c.bf16 %v6354_v49, %v6353_v48  ;;  %v8816_v53 = vpack.c.bf16 %v6372_v51, %v6371_v50  ;;  %v8902_v48 = vpack.c.bf16 %v6569_v38, %v6565_v37  ;;  %v6571_v49 = vld [vmem:[%s11135_s17 + $0x40] sm:$0xff]  ;;  %v6605_v37 = vld [vmem:[%s11135_s17 + $0x150] sm:$0xff] }
0x12ca   : > { %6265 = vmatprep.mubr.f32.mxu0 %v10202_v0  ;;  %v6575_v50 = vld [vmem:[%s11135_s17 + $0x60] sm:$0xff]  ;;  %v6609_v38 = vld [vmem:[%s11135_s17 + $0x170] sm:$0xff] }
0x139c   : > { %v6184_v31 = vpop.f32.mrb[84].mxu0 }
0x139d   : > { %v6186_v32 = vpop.f32.mrb[85].mxu0 }
0x139e   : > { %7642 = vmatprep.subr.msk.mxu0 %vm6030_vm4, %v6186_v32 }
0x139f   : > { %7643 = vmatpush1.msk.msra.mxu0 %vm6030_vm4, %v6184_v31 }
0x13a0   : > { %7644 = vmatmul.mubr.msk.f32.vlgmr.msra.gmra.mrb[86].mxu0 %vm6026_vm5, %v6191_v33  ;;  %7645 = vmatprep.subr.msk.mxu0 %vm6030_vm4, %v6186_v32 }
0x13a1   : > { %7646 = vmatpush1.msk.msra.mxu0 %vm6030_vm4, %v6184_v31  ;;  %6340 = vmatprep.mubr.f32.mxu0 %v10202_v0  ;;  %v6570_v31 = vld [vmem:[%s11135_s17 + $0x38] sm:$0xff] }
0x13a2   : > { %8805 = vmatprep.subr.bf16.mxu0 %v8804_v34  ;;  %v8900_v32 = vpack.c.bf16 %v6570_v31, %v6566_v29  ;;  %v6606_v29 = vld [vmem:[%s11135_s17 + $0x158] sm:$0xff]  ;;  %v8886_v31 = vpack.c.bf16 %v6599_v22, %v6595_v21 }
0x13a4   : > { %7647 = vmatmul.mubr.msk.f32.vlgmr.msra.gmra.mrb[88].mxu0 %vm6026_vm5, %v6272_v39  ;;  %8901 = vmatprep.subr.bf16.mxu1 %v8900_v32  ;;  %v6572_v39 = vld [vmem:[%s11135_s17 + $0x48] sm:$0xff]  ;;  %v8918_v32 = vpack.c.bf16 %v6601_v26, %v6597_v25 }
0x13a5   : > { %8807 = vmatpush3.bf16.msra.mxu0 %v8806_v40 }
0x13a6   : > { %8809 = vmatprep.subr.bf16.mxu0 %v8808_v41  ;;  %v6576_v41 = vld [vmem:[%s11135_s17 + $0x68] sm:$0xff] }
0x13a7   : > { %v8872_v51 = vpack.c.bf16 %v6576_v41, %v6572_v39  ;;  %v6612_v41 = vld [vmem:[%s11135_s17 + $0x188] sm:$0xff] }
0x13a9   : > { %8811 = vmatpush3.bf16.msra.mxu0 %v8810_v46 }
0x13aa   : > { %8813 = vmatprep.subr.bf16.mxu0 %v8812_v47  ;;  %v8870_v47 = vpack.c.bf16 %v6567_v36, %v6563_v35  ;;  %v6607_v36 = vld [vmem:[%s11135_s17 + $0x160] sm:$0xff] }
0x13ad   : > { %8815 = vmatpush3.bf16.msra.mxu0 %v8814_v52  ;;  %v8904_v52 = vpack.c.bf16 %v6578_v43, %v6574_v42  ;;  %v6616_v42 = vld [vmem:[%s11135_s17 + $0x1a8] sm:$0xff]  ;;  %v6614_v43 = vld [vmem:[%s11135_s17 + $0x198] sm:$0xff] }
0x13ae   : > { %8817 = vmatprep.subr.bf16.mxu0 %v8816_v53  ;;  %v6573_v53 = vld [vmem:[%s11135_s17 + $0x50] sm:$0xff] }
0x13af   : > { %v8906_v62 = vpack.c.bf16 %v6577_v54, %v6573_v53  ;;  %v6620_v53 = vld [vmem:[%s11135_s17 + $0x1c8] sm:$0xff] }
0x13b0   : > { %v6624_v54 = vld [vmem:[%s11135_s17 + $0x1e8] sm:$0xff] }
0x13b1   : > { %8819 = vmatpush3.bf16.msra.mxu0 %v8818_v58  ;;  %v6586_v58 = vld [vmem:[%s11135_s17 + $0xb8] sm:$0xff]  ;;  %v8896_v56 = vpack.c.bf16 %v6624_v54, %v6620_v53 }
0x13b2   : > { %8821 = vmatprep.subr.bf16.mxu0 %v8820_v59  ;;  %v8874_v59 = vpack.c.bf16 %v6575_v50, %v6571_v49  ;;  %v6613_v50 = vld [vmem:[%s11135_s17 + $0x190] sm:$0xff] }
0x13b5   : > { %8823 = vmatpush3.bf16.msra.mxu0 %v8822_v60  ;;  %v8908_v60 = vpack.c.bf16 %v6586_v58, %v6582_v57  ;;  %v6626_v57 = vld [vmem:[%s11135_s17 + $0x1f8] sm:$0xff]  ;;  %v6619_v58 = vld [vmem:[%s11135_s17 + $0x1c0] sm:$0xff] }
0x13b6   : > { %8825 = vmatprep.subr.bf16.mxu0 %v8824_v4  ;;  %v6581_v4 = vld [vmem:[%s11135_s17 + $0x90] sm:$0xff] }
0x13b7   : > { %v8910_v9 = vpack.c.bf16 %v6585_v5, %v6581_v4 }
0x13b9   : > { %8827 = vmatpush3.bf16.msra.mxu0 %v8826_v8  ;;  %v6594_v8 = vld [vmem:[%s11135_s17 + $0xf8] sm:$0xff] }
0x13ba   : > { %8829 = vmatprep.subr.bf16.mxu0 %v8828_v3  ;;  %v8878_v3 = vpack.c.bf16 %v6583_v1, %v6579_v63  ;;  %v8912_v13 = vpack.c.bf16 %v6594_v8, %v6590_v7  ;;  %v6621_v63 = vld [vmem:[%s11135_s17 + $0x1d0] sm:$0xff] }
0x13bb   : > { %v6625_v1 = vld [vmem:[%s11135_s17 + $0x1f0] sm:$0xff] }
0x13bd   : > { %8831 = vmatpush3.bf16.msra.mxu0 %v8830_v12  ;;  %v8880_v12 = vpack.c.bf16 %v6592_v6, %v6588_v61 }
0x13be   : > { %8833 = vmatprep.subr.bf16.mxu0 %v8832_v18  ;;  %v6602_v18 = vld [vmem:[%s11135_s17 + $0x138] sm:$0xff] }
0x13bf   : > { %v8916_v24 = vpack.c.bf16 %v6602_v18, %v6598_v17 }
0x13c1   : > { %8835 = vmatpush3.bf16.msra.mxu0 %v8834_v23 }
0x13c2   : > { %8869 = vmatprep.subr.bf16.mxu0 %v8868_v30  ;;  %v6610_v30 = vld [vmem:[%s11135_s17 + $0x178] sm:$0xff] }
0x13c3   : > { %v8920_v35 = vpack.c.bf16 %v6610_v30, %v6606_v29 }
0x1473   : > { %v6267_v33 = vpop.f32.mrb[86].mxu0 }
0x1474   : > { %v6269_v34 = vpop.f32.mrb[87].mxu0 }
0x1477   : > { %v6342_v40 = vpop.f32.mrb[88].mxu0 }
0x1478   : > { %v6347_v44 = vmax.f32 %v6267_v33, %v6342_v40  ;;  %v6344_v45 = vpop.f32.mrb[89].mxu0  ;;  %v6603_v33 = vld [vmem:[%s11135_s17 + $0x140] sm:$0xff]  ;;  %v8922_v40 = vpack.c.bf16 %v6609_v38, %v6605_v37 }
0x1479   : > { %v6348_v46 = vmax.f32 %v6269_v34, %v6344_v45  ;;  %v8888_v34 = vpack.c.bf16 %v6608_v28, %v6604_v27  ;;  %v8890_v39 = vpack.c.bf16 %v6607_v36, %v6603_v33  ;;  %v6618_v45 = vld [vmem:[%s11135_s17 + $0x1b8] sm:$0xff] }
0x147b   : > { %6445 = vmatprep.mubr.f32.mxu0 %v6348_v46  ;;  %6547 = vmatprep.mubr.f32.mxu1 %v6348_v46  ;;  %v6611_v46 = vld [vmem:[%s11135_s17 + $0x180] sm:$0xff] }
0x147c   : > { %6446 = vmatmul.mubr.f32.vlgmr.msra.gmra.mrb[90].mxu0 %v6347_v44  ;;  %6548 = vmatmul.mubr.f32.vlgmr.msra.gmra.mrb[74].mxu1 %v6347_v44  ;;  %v8892_v44 = vpack.c.bf16 %v6616_v42, %v6612_v41 }
0x147d   : > { %8871 = vmatpush1.bf16.msra.mxu0 %v8870_v47  ;;  %8903 = vmatpush1.bf16.msra.mxu1 %v8902_v48  ;;  %v6615_v47 = vld [vmem:[%s11135_s17 + $0x1a0] sm:$0xff]  ;;  %v8924_v48 = vpack.c.bf16 %v6618_v45, %v6614_v43 }
0x147e   : > { %8873 = vmatprep.subr.bf16.mxu0 %v8872_v51  ;;  %8905 = vmatprep.subr.bf16.mxu1 %v8904_v52  ;;  %v8894_v49 = vpack.c.bf16 %v6615_v47, %v6611_v46  ;;  %v6617_v51 = vld [vmem:[%s11135_s17 + $0x1b0] sm:$0xff] }
0x147f   : > { %6691 = vmatprep.mubr.f32.mxu0 %v10202_v0  ;;  %6762 = vmatprep.mubr.f32.mxu1 %v10202_v0  ;;  %v6600_v0 = vld [vmem:[%s11135_s17 + $0x128] sm:$0xff]  ;;  %v8926_v52 = vpack.c.bf16 %v6617_v51, %v6613_v50 }
0x1480   : > { %v8884_v23 = vpack.c.bf16 %v6600_v0, %v6596_v16  ;;  %v6779_v16 = vshrl.u32 %v6778_v14, 7 }
0x1481   : > { %8875 = vmatpush1.bf16.msra.mxu0 %v8874_v59  ;;  %8907 = vmatpush1.bf16.msra.mxu1 %v8906_v62  ;;  %v8928_v59 = vpack.c.bf16 %v6626_v57, %v6622_v55  ;;  %v6623_v62 = vld [vmem:[%s11135_s17 + $0x1e0] sm:$0xff]  ;;  %s12120_s17 = sld [smem:[#allocation95_spill]] }
0x1482   : > { %8877 = vmatprep.subr.bf16.mxu0 %v8876_v2  ;;  %8909 = vmatprep.subr.bf16.mxu1 %v8908_v60  ;;  %v8898_v2 = vpack.c.bf16 %v6623_v62, %v6619_v58  ;;  %v8930_v60 = vpack.c.bf16 %v6625_v1, %v6621_v63 }
0x1485   : > { %8879 = vmatpush1.bf16.msra.mxu0 %v8878_v3  ;;  %8911 = vmatpush1.bf16.msra.mxu1 %v8910_v9  ;;  %v7648_v3 = vld [vmem:[%s1848_s16] ss:$0 sm:$0xff] }
0x1486   : > { %8881 = vmatprep.subr.bf16.mxu0 %v8880_v12  ;;  %8913 = vmatprep.subr.bf16.mxu1 %v8912_v13  ;;  %v10203_v12 = vmov 1983009808  }
0x1487   : > { %v6776_v13 = vunpack.c.l.s4 %v10203_v12  ;;  %s1853_s18 = scalar_lea.vmem %s12120_s17, %s7653_s2 }
0x1489   : > { %8883 = vmatpush1.bf16.msra.mxu0 %v8882_v19  ;;  %8915 = vmatpush1.bf16.msra.mxu1 %v8914_v20  ;;  %v6777_v15 = vunpack.c.0.s8 %v6776_v13 }
0x148a   : > { %8885 = vmatprep.subr.bf16.mxu0 %v8884_v23  ;;  %8917 = vmatprep.subr.bf16.mxu1 %v8916_v24 }
0x148b   : > { %v6780_v18 = vsub.s32 %v6777_v15, %v6779_v16 }
0x148d   : > { %8887 = vmatpush1.bf16.msra.mxu0 %v8886_v31  ;;  %8919 = vmatpush1.bf16.msra.mxu1 %v8918_v32 }
0x148e   : > { %8889 = vmatprep.subr.bf16.mxu0 %v8888_v34  ;;  %8921 = vmatprep.subr.bf16.mxu1 %v8920_v35 }
0x1491   : > { %8891 = vmatpush1.bf16.msra.mxu0 %v8890_v39  ;;  %8923 = vmatpush1.bf16.msra.mxu1 %v8922_v40 }
0x1492   : > { %8893 = vmatprep.subr.bf16.mxu0 %v8892_v44  ;;  %8925 = vmatprep.subr.bf16.mxu1 %v8924_v48 }
0x1495   : > { %8895 = vmatpush1.bf16.msra.mxu0 %v8894_v49  ;;  %8927 = vmatpush1.bf16.msra.mxu1 %v8926_v52 }
0x1496   : > { %8897 = vmatprep.subr.bf16.mxu0 %v8896_v56  ;;  %8929 = vmatprep.subr.bf16.mxu1 %v8928_v59 }
0x1499   : > { %8899 = vmatpush1.bf16.msra.mxu0 %v8898_v2  ;;  %8931 = vmatpush1.bf16.msra.mxu1 %v8930_v60 }
0x154f   : > { %v7990_v4 = vpop.f32.mrb[90].mxu0  ;;  %v8025_v5 = vpop.f32.mrb[74].mxu1 }
0x1550   : > { %v7991_v61 = vpop.f32.mrb[91].mxu0  ;;  %v8026_v6 = vpop.f32.mrb[75].mxu1 }
0x1551   : > { %v7992_v7 = vadd.f32 %v7991_v61, %v7990_v4  ;;  %v8027_v8 = vadd.f32 %v8026_v6, %v8025_v5 }
0x1553   : > { %v6553_v9 = vmax.f32 %v7992_v7, %v8027_v8 }
0x1555   : > { %v6561_v10 = vadd.f32 %v7648_v3, %v6553_v9 }
0x1557   : > { %v6562_v11 = vmax.f32 %v6561_v10, 0.0 }
0x1559   : > { %6692 = vmatmul.mubr.f32.vlgmr.msra.gmra.mrb[92].mxu0 %v6562_v11  ;;  %6763 = vmatmul.mubr.f32.vlgmr.msra.gmra.mrb[76].mxu1 %v6562_v11 }
0x162c   : > { %v6693_v0 = vpop.f32.mrb[92].mxu0  ;;  %v6764_v17 = vpop.f32.mrb[76].mxu1 }
0x162d   : > { %v6695_v19 = vpop.f32.mrb[93].mxu0  ;;  %v6766_v20 = vpop.f32.mrb[77].mxu1 }
0x162e   : > { %v6773_v21 = vcombine.low %v6693_v0, %v6695_v19  ;;  %v6774_v22 = vcombine.low %v6764_v17, %v6766_v20 }
0x1630   : > { %v6781_v23 = vrot.slane %v6773_v21, %v6780_v18  ;;  %v6788_v24 = vrot.slane %v6774_v22, %v6780_v18 }
0x1632   : > { %v6789_v25 = vcombine.low %v6781_v23, %v6788_v24 }
0x1634   : > { %6791 = vst [vmem:[%s1853_s18] sm:$0xff] %v6789_v25 }
0x1635 PF: > { %s12121_s0 = sld [smem:[#allocation100_spill]]  ;;  %s12122_s15 = sld [smem:[#allocation96_spill]] }
0x1636   : > { %s12123_s16 = sld [smem:[#allocation97_spill]]  ;;  %s12124_s18 = sld [smem:[#allocation101_spill]] }
0x163b   : > { %p109_p6 = scmp.ge.s32.totalorder %s12121_s0, 4  }
0x163d   :  { %111 = sbr.rel (!%p109_p6) target bundleno = 104 (0x68), region = 451 }
0x1644   :  { %6813 = vsyncpa [#allocation3], 1 }
0x1645   :  { %6815 = vsyncpa [#allocation3 + $0x1], 1 }
0x1646   :  { %6816 = vsyncpa [#allocation5], 1 }
0x1647   :  { %6818 = vsyncpa [#allocation5 + $0x1], 1 }
0x1648   :  { %6819 = vsyncpa [#allocation8], 1 }
0x1649   :  { %6820 = vsyncpa [#allocation11], 1 }
0x164a   :  { %6821 = vsyncpa [#allocation17], 1 }
0x164b   :  { %6822 = vsyncpa [#allocation20], 1 }
0x164c   :  { %6824 = vsyncpa [#allocation20 + $0x1], 1 }
0x164d   :  { %6825 = vsyncpa [#allocation23], 1 }
0x164e   :  { %6826 = vsyncpa [#allocation26], 1 }
0x164f   :  { %6827 = vsyncpa [#allocation35], 1 }
0x1650   :  { %6829 = vsyncpa [#allocation35 + $0x1], 1 }

</bundles_post_ra>
